<compile_context>
chip_gen: v7x
topology: tpu7x:2x2x1
jax: 0.10.0
libtpu: 0.0.40
codegen_flags: <defaults>
</compile_context>

<pallas_src>
import functools

import numpy as np
import jax
import jax.numpy as jnp
from jax.experimental import pallas as pl
from jax.experimental.pallas import tpu as pltpu

LANE = 128  # lane width used for in-VMEM (not HBM) channel padding


def _round_up(n, m):
    return ((n + m - 1) // m) * m


def _leaky(v, slope):
    return jnp.where(v >= 0.0, v, slope * v)


def _down_double_kernel(x_ref, w1_ref, b1_ref, w2_ref, b2_ref, o_ref,
                        xp_ref, a1_ref, s2_ref, *,
                        H, W, Wp, Cin, Cmid, Mc, slope):
    """conv1 -> LeakyReLU -> conv2 -> (maxpool 2x2 ; LeakyReLU).

    x_ref : (1, (H+2)*Wp, Cin)  bf16  flat zero-padded image, row pitch Wp
    w1_ref: (9, Cip, Cmp)       bf16  conv1 taps (tap = kh*3 + kw), lane-padded
    b1_ref: (1, Cmp)            f32
    w2_ref: (9, Cmp, Cmp)       bf16
    b2_ref: (1, Cmp)            f32
    o_ref : (1, H//2, W//2, Cmid) bf16   (unpadded channels)
    xp_ref: ((H+2)*Wp + 8, Cip) bf16  lane-padded input (VMEM only)
    a1_ref: ((H+2)*Wp + 8, Cmp) bf16  zero-bordered LeakyReLU(conv1)
    s2_ref: (H*Wp//2, Cmp)      f32   conv2 result, already 2x1-pooled along H
    """
    Cmp = a1_ref.shape[-1]
    P = (H + 2) * Wp          # rows of one padded image
    M = H * Wp                # matmul rows per conv (valid cols are w < W)
    Ho, Wo = H // 2, W // 2
    n_chunks = M // Mc

    # ---- stage 0: lane-pad the input into VMEM (HBM stays unpadded) --------
    xp_ref[...] = jnp.zeros(xp_ref.shape, xp_ref.dtype)
    xp_ref[0:P, 0:Cin] = x_ref[0]

    # ---- stage 1: conv1 + LeakyReLU, chunked over M, 9 MXU taps per chunk --
    # Tap (kh, kw) of output row r = h*Wp + w reads flat row r + kh*Wp + kw.
    for c in range(n_chunks):
        m0 = c * Mc
        acc = jnp.broadcast_to(b1_ref[...], (Mc, Cmp))
        for kh in range(3):
            for kw in range(3):
                off = m0 + kh * Wp + kw
                acc = acc + jnp.dot(xp_ref[pl.ds(off, Mc), :],
                                    w1_ref[kh * 3 + kw],
                                    preferred_element_type=jnp.float32)
        # interior of the padded act1 buffer: (h, w) -> flat (h+1)*Wp + (w+1)
        a1_ref[pl.ds(m0 + Wp + 1, Mc), :] = _leaky(acc, slope).astype(a1_ref.dtype)

    # ---- stage 2: zero ONLY the halo border of a1 (interior fully written) --
    # Must run every grid step (scratch persists per-core); done after the
    # bulk stores because garbage columns land on some border rows.
    zrow = jnp.zeros((1, Cmp), a1_ref.dtype)
    a1_ref[pl.ds(0, Wp), :] = jnp.zeros((Wp, Cmp), a1_ref.dtype)                   # top row
    a1_ref[pl.ds((H + 1) * Wp, Wp + 8), :] = jnp.zeros((Wp + 8, Cmp), a1_ref.dtype)  # bottom + tail
    for i in range(1, H + 1):
        a1_ref[pl.ds(i * Wp, 1), :] = zrow             # left border column
        a1_ref[pl.ds(i * Wp + W + 1, 1), :] = zrow     # right border column

    # ---- stage 3: conv2 + bias, 2x1 pool along H inside each chunk ----------
    for c in range(n_chunks):
        m0 = c * Mc
        acc = jnp.broadcast_to(b2_ref[...], (Mc, Cmp))
        for kh in range(3):
            for kw in range(3):
                off = m0 + kh * Wp + kw
                acc = acc + jnp.dot(a1_ref[pl.ds(off, Mc), :],
                                    w2_ref[kh * 3 + kw],
                                    preferred_element_type=jnp.float32)
        # pool pairs of output rows h (free reshapes: Wp % 8 == 0)
        acc = acc.reshape(Mc // (2 * Wp), 2, Wp, Cmp)
        hp = jnp.maximum(acc[:, 0], acc[:, 1]).reshape(Mc // 2, Cmp)
        s2_ref[pl.ds(m0 // 2, Mc // 2), :] = hp

    # ---- stage 4: 1x2 pool along W + deferred LeakyReLU + output store ------
    even = s2_ref[pl.ds(0, M // 4, stride=2), :]       # (Ho*Wp/2, Cmp)
    odd = s2_ref[pl.ds(1, M // 4, stride=2), :]
    pooled = jnp.maximum(even, odd).reshape(Ho, Wp // 2, Cmp)
    pooled = pooled[:, :Wo, :Cmid]                     # drop garbage cols + lane pad
    o_ref[0] = _leaky(pooled, slope).astype(o_ref.dtype)


def down_double(x_nchw, w1, b1, w2, b2, *, slope=0.2):
    """DownDouble forward. x_nchw: (B, C, H, W) f32; weights in PyTorch layout."""
    B, Cin, H, W = x_nchw.shape
    Cmid = w1.shape[0]                                   # == 2 * Cin
    assert w1.shape == (Cmid, Cin, 3, 3) and w2.shape == (Cmid, Cmid, 3, 3)
    assert b1.shape == (Cmid,) and b2.shape == (Cmid,)
    assert H % 2 == 0 and W % 2 == 0, "MaxPool2d(2,2) needs even H, W"
    Ho, Wo = H // 2, W // 2

    Wp = _round_up(W + 2, 16)        # row pitch: halo + padding so reshapes are free
    P = (H + 2) * Wp
    M = H * Wp
    Cip = _round_up(Cin, LANE)       # lane-padded widths used ONLY in VMEM
    Cmp = _round_up(Cmid, LANE)

    # chunk of matmul rows: whole 2-row pooling groups, ~256 rows per chunk
    unit = 2 * Wp
    units = M // unit                # == Ho
    upc = max(1, min(units, max(1, 256 // unit)))
    while units % upc:
        upc -= 1
    Mc = upc * unit

    # NCHW -> NHWC bf16, 1px halo + right padding up to the Wp pitch, flattened.
    # Channels are NOT padded in HBM.
    x = jnp.transpose(x_nchw, (0, 2, 3, 1)).astype(jnp.bfloat16)
    x = jnp.pad(x, ((0, 0), (1, 1), (1, Wp - W - 1), (0, 0)))
    x = x.reshape(B, P, Cin)

    def prep_w(w, cin_p, cout_p):
        cout, cin = w.shape[:2]
        wt = jnp.transpose(w, (2, 3, 1, 0)).reshape(9, cin, cout)   # tap-major
        wt = jnp.pad(wt, ((0, 0), (0, cin_p - cin), (0, cout_p - cout)))
        return wt.astype(jnp.bfloat16)

    def prep_b(b, cout_p):
        return (jnp.pad(b, (0, cout_p - b.shape[0]))
                .reshape(1, cout_p).astype(jnp.float32))

    w1t, b1t = prep_w(w1, Cip, Cmp), prep_b(b1, Cmp)
    w2t, b2t = prep_w(w2, Cmp, Cmp), prep_b(b2, Cmp)

    kernel = functools.partial(_down_double_kernel, H=H, W=W, Wp=Wp,
                               Cin=Cin, Cmid=Cmid, Mc=Mc, slope=slope)
    out = pl.pallas_call(
        kernel,
        out_shape=jax.ShapeDtypeStruct((B, Ho, Wo, Cmid), jnp.bfloat16),
        grid_spec=pltpu.PrefetchScalarGridSpec(
            num_scalar_prefetch=0,
            grid=(B,),                                   # one image per step
            in_specs=[
                pl.BlockSpec((1, P, Cin), lambda b: (b, 0, 0)),
                pl.BlockSpec((9, Cip, Cmp), lambda b: (0, 0, 0)),
                pl.BlockSpec((1, Cmp), lambda b: (0, 0)),
                pl.BlockSpec((9, Cmp, Cmp), lambda b: (0, 0, 0)),
                pl.BlockSpec((1, Cmp), lambda b: (0, 0)),
            ],
            out_specs=pl.BlockSpec((1, Ho, Wo, Cmid), lambda b: (b, 0, 0, 0)),
            scratch_shapes=[
                pltpu.VMEM((P + 8, Cip), jnp.bfloat16),   # lane-padded input
                pltpu.VMEM((P + 8, Cmp), jnp.bfloat16),   # zero-bordered act1
                pltpu.VMEM((M // 2, Cmp), jnp.float32),   # h-pooled conv2 staging
            ],
        ),
        compiler_params=pltpu.CompilerParams(
            dimension_semantics=("parallel",),
            # Non-binding here (~2 MiB used); derive from block/scratch shapes
            # (and raise) once an H-row-tile grid axis is added for large images.
            vmem_limit_bytes=32 * 1024 * 1024,
        ),
    )(x, w1t, b1t, w2t, b2t)

    # NHWC bf16 -> NCHW f32 (small pooled tensor; matches the nn.Module layout)
    return jnp.transpose(out, (0, 3, 1, 2)).astype(jnp.float32)


if __name__ == "__main__":
    B, C, H, W = 2, 4, 16, 16                            # DownDouble(4)
    Cmid = 2 * C

    key = jax.random.PRNGKey(0)
    kx, kw1, kb1, kw2, kb2 = jax.random.split(key, 5)
    bnd1 = 1.0 / np.sqrt(C * 9)                          # PyTorch-style init
    bnd2 = 1.0 / np.sqrt(Cmid * 9)
    w1 = jax.random.uniform(kw1, (Cmid, C, 3, 3), jnp.float32, -bnd1, bnd1)
    b1 = jax.random.uniform(kb1, (Cmid,), jnp.float32, -bnd1, bnd1)
    w2 = jax.random.uniform(kw2, (Cmid, Cmid, 3, 3), jnp.float32, -bnd2, bnd2)
    b2 = jax.random.uniform(kb2, (Cmid,), jnp.float32, -bnd2, bnd2)
    x = jax.random.normal(kx, (B, C, H, W), jnp.float32)

    fwd = jax.jit(down_double)
    out = jax.block_until_ready(fwd(x, w1, b1, w2, b2))
    assert out.shape == (B, Cmid, H // 2, W // 2), out.shape

    # Pure-JAX f32 reference; loose tolerance since the kernel runs bf16
    # activations (and a bf16 output) with f32 accumulation.
    def ref(x, w1, b1, w2, b2):
        def conv(v, w, b):
            y = jax.lax.conv_general_dilated(
                v, w, window_strides=(1, 1), padding=((1, 1), (1, 1)),
                dimension_numbers=("NCHW", "OIHW", "NCHW"))
            return y + b.reshape(1, -1, 1, 1)
        act = lambda v: jnp.where(v >= 0, v, 0.2 * v)
        y = act(conv(x, w1, b1))
        y = act(conv(y, w2, b2))
        return jax.lax.reduce_window(y, -jnp.inf, jax.lax.max,
                                     (1, 1, 2, 2), (1, 1, 2, 2), "VALID")

    expected = jax.block_until_ready(ref(x, w1, b1, w2, b2))
    np.testing.assert_allclose(np.asarray(out), np.asarray(expected),
                               rtol=5e-2, atol=5e-2)
    print("KERNEL_OK")
</pallas_src>

<mosaic_0001>
module attributes {stable_mosaic.version = 11 : i64} {
  func.func @_down_double_kernel(%arg0: i32, %arg1: memref<1x576x4xbf16, #tpu.memory_space<vmem>>, %arg2: memref<9x128x128xbf16, #tpu.memory_space<vmem>>, %arg3: memref<1x128xf32, #tpu.memory_space<vmem>>, %arg4: memref<9x128x128xbf16, #tpu.memory_space<vmem>>, %arg5: memref<1x128xf32, #tpu.memory_space<vmem>>, %arg6: memref<1x8x8x8xbf16, #tpu.memory_space<vmem>>, %arg7: memref<584x128xbf16, #tpu.memory_space<vmem>>, %arg8: memref<584x128xbf16, #tpu.memory_space<vmem>>, %arg9: memref<256x128xf32, #tpu.memory_space<vmem>>) attributes {dimension_semantics = [#tpu.dimension_semantics<parallel>], iteration_bounds = array<i64: 2>, scalar_prefetch = 0 : i64, scratch_operands = 3 : i64, tpu.core_type = #tpu.core_type<tc>, window_params = [{transform_indices = @transform_0, window_bounds = array<i64: 1, 576, 4>}, {pipeline_mode = #tpu.pipeline_mode<synchronous>, transform_indices = @transform_1, window_bounds = array<i64: 9, 128, 128>}, {pipeline_mode = #tpu.pipeline_mode<synchronous>, transform_indices = @transform_2, window_bounds = array<i64: 1, 128>}, {pipeline_mode = #tpu.pipeline_mode<synchronous>, transform_indices = @transform_3, window_bounds = array<i64: 9, 128, 128>}, {pipeline_mode = #tpu.pipeline_mode<synchronous>, transform_indices = @transform_4, window_bounds = array<i64: 1, 128>}, {transform_indices = @transform_5, window_bounds = array<i64: 1, 8, 8, 8>}]} {
    %cst = arith.constant 0.000000e+00 : bf16
    %0 = vector.broadcast %cst : bf16 to vector<584x128xbf16>
    %c0 = arith.constant 0 : index
    %c0_0 = arith.constant 0 : index
    %1 = vector.load %arg7[%c0, %c0_0] : memref<584x128xbf16, #tpu.memory_space<vmem>>, vector<584x128xbf16>
    tpu.vector_store %arg7[%c0, %c0_0], %0 {strides = array<i32>} : memref<584x128xbf16, #tpu.memory_space<vmem>>, vector<584x128xbf16>,
    %c0_1 = arith.constant 0 : index
    %c0_2 = arith.constant 0 : index
    %c0_3 = arith.constant 0 : index
    %2 = vector.load %arg1[%c0_1, %c0_2, %c0_3] : memref<1x576x4xbf16, #tpu.memory_space<vmem>>, vector<1x576x4xbf16>
    %3 = vector.shape_cast %2 : vector<1x576x4xbf16> to vector<576x4xbf16>
    %c0_4 = arith.constant 0 : index
    %c0_5 = arith.constant 0 : index
    %4 = vector.load %arg7[%c0_4, %c0_5] : memref<584x128xbf16, #tpu.memory_space<vmem>>, vector<576x4xbf16>
    tpu.vector_store %arg7[%c0_4, %c0_5], %3 {strides = array<i32>} : memref<584x128xbf16, #tpu.memory_space<vmem>>, vector<576x4xbf16>,
    %c0_6 = arith.constant 0 : index
    %c0_7 = arith.constant 0 : index
    %5 = vector.load %arg3[%c0_6, %c0_7] : memref<1x128xf32, #tpu.memory_space<vmem>>, vector<1x128xf32>
    %6 = vector.shape_cast %5 : vector<1x128xf32> to vector<1x128xf32>
    %7 = vector.broadcast %6 : vector<1x128xf32> to vector<256x128xf32>
    %c0_8 = arith.constant 0 : index
    %c0_9 = arith.constant 0 : index
    %8 = vector.load %arg7[%c0_8, %c0_9] : memref<584x128xbf16, #tpu.memory_space<vmem>>, vector<256x128xbf16>
    %c0_10 = arith.constant 0 : index
    %c0_11 = arith.constant 0 : index
    %c0_12 = arith.constant 0 : index
    %9 = vector.load %arg2[%c0_10, %c0_11, %c0_12] : memref<9x128x128xbf16, #tpu.memory_space<vmem>>, vector<1x128x128xbf16>
    %10 = vector.shape_cast %9 : vector<1x128x128xbf16> to vector<128x128xbf16>
    %cst_13 = arith.constant dense<0.000000e+00> : vector<256x128xf32>
    %11 = tpu.matmul %8, %10, %cst_13 {dimension_numbers = #tpu.dot_dimension_numbers<[1], [0], [0], [1], [0, 0, 1, 1], [], []>} : vector<256x128xbf16>, vector<128x128xbf16>, vector<256x128xf32> -> vector<256x128xf32>
    %12 = arith.addf %7, %11 : vector<256x128xf32>
    %c1 = arith.constant 1 : index
    %c0_14 = arith.constant 0 : index
    %13 = vector.load %arg7[%c1, %c0_14] : memref<584x128xbf16, #tpu.memory_space<vmem>>, vector<256x128xbf16>
    %c1_15 = arith.constant 1 : index
    %c0_16 = arith.constant 0 : index
    %c0_17 = arith.constant 0 : index
    %14 = vector.load %arg2[%c1_15, %c0_16, %c0_17] : memref<9x128x128xbf16, #tpu.memory_space<vmem>>, vector<1x128x128xbf16>
    %15 = vector.shape_cast %14 : vector<1x128x128xbf16> to vector<128x128xbf16>
    %cst_18 = arith.constant dense<0.000000e+00> : vector<256x128xf32>
    %16 = tpu.matmul %13, %15, %cst_18 {dimension_numbers = #tpu.dot_dimension_numbers<[1], [0], [0], [1], [0, 0, 1, 1], [], []>} : vector<256x128xbf16>, vector<128x128xbf16>, vector<256x128xf32> -> vector<256x128xf32>
    %17 = arith.addf %12, %16 : vector<256x128xf32>
    %c2 = arith.constant 2 : index
    %c0_19 = arith.constant 0 : index
    %18 = vector.load %arg7[%c2, %c0_19] : memref<584x128xbf16, #tpu.memory_space<vmem>>, vector<256x128xbf16>
    %c2_20 = arith.constant 2 : index
    %c0_21 = arith.constant 0 : index
    %c0_22 = arith.constant 0 : index
    %19 = vector.load %arg2[%c2_20, %c0_21, %c0_22] : memref<9x128x128xbf16, #tpu.memory_space<vmem>>, vector<1x128x128xbf16>
    %20 = vector.shape_cast %19 : vector<1x128x128xbf16> to vector<128x128xbf16>
    %cst_23 = arith.constant dense<0.000000e+00> : vector<256x128xf32>
    %21 = tpu.matmul %18, %20, %cst_23 {dimension_numbers = #tpu.dot_dimension_numbers<[1], [0], [0], [1], [0, 0, 1, 1], [], []>} : vector<256x128xbf16>, vector<128x128xbf16>, vector<256x128xf32> -> vector<256x128xf32>
    %22 = arith.addf %17, %21 : vector<256x128xf32>
    %c32 = arith.constant 32 : index
    %c0_24 = arith.constant 0 : index
    %23 = vector.load %arg7[%c32, %c0_24] : memref<584x128xbf16, #tpu.memory_space<vmem>>, vector<256x128xbf16>
    %c3 = arith.constant 3 : index
    %c0_25 = arith.constant 0 : index
    %c0_26 = arith.constant 0 : index
    %24 = vector.load %arg2[%c3, %c0_25, %c0_26] : memref<9x128x128xbf16, #tpu.memory_space<vmem>>, vector<1x128x128xbf16>
    %25 = vector.shape_cast %24 : vector<1x128x128xbf16> to vector<128x128xbf16>
    %cst_27 = arith.constant dense<0.000000e+00> : vector<256x128xf32>
    %26 = tpu.matmul %23, %25, %cst_27 {dimension_numbers = #tpu.dot_dimension_numbers<[1], [0], [0], [1], [0, 0, 1, 1], [], []>} : vector<256x128xbf16>, vector<128x128xbf16>, vector<256x128xf32> -> vector<256x128xf32>
    %27 = arith.addf %22, %26 : vector<256x128xf32>
    %c33 = arith.constant 33 : index
    %c0_28 = arith.constant 0 : index
    %28 = vector.load %arg7[%c33, %c0_28] : memref<584x128xbf16, #tpu.memory_space<vmem>>, vector<256x128xbf16>
    %c4 = arith.constant 4 : index
    %c0_29 = arith.constant 0 : index
    %c0_30 = arith.constant 0 : index
    %29 = vector.load %arg2[%c4, %c0_29, %c0_30] : memref<9x128x128xbf16, #tpu.memory_space<vmem>>, vector<1x128x128xbf16>
    %30 = vector.shape_cast %29 : vector<1x128x128xbf16> to vector<128x128xbf16>
    %cst_31 = arith.constant dense<0.000000e+00> : vector<256x128xf32>
    %31 = tpu.matmul %28, %30, %cst_31 {dimension_numbers = #tpu.dot_dimension_numbers<[1], [0], [0], [1], [0, 0, 1, 1], [], []>} : vector<256x128xbf16>, vector<128x128xbf16>, vector<256x128xf32> -> vector<256x128xf32>
    %32 = arith.addf %27, %31 : vector<256x128xf32>
    %c34 = arith.constant 34 : index
    %c0_32 = arith.constant 0 : index
    %33 = vector.load %arg7[%c34, %c0_32] : memref<584x128xbf16, #tpu.memory_space<vmem>>, vector<256x128xbf16>
    %c5 = arith.constant 5 : index
    %c0_33 = arith.constant 0 : index
    %c0_34 = arith.constant 0 : index
    %34 = vector.load %arg2[%c5, %c0_33, %c0_34] : memref<9x128x128xbf16, #tpu.memory_space<vmem>>, vector<1x128x128xbf16>
    %35 = vector.shape_cast %34 : vector<1x128x128xbf16> to vector<128x128xbf16>
    %cst_35 = arith.constant dense<0.000000e+00> : vector<256x128xf32>
    %36 = tpu.matmul %33, %35, %cst_35 {dimension_numbers = #tpu.dot_dimension_numbers<[1], [0], [0], [1], [0, 0, 1, 1], [], []>} : vector<256x128xbf16>, vector<128x128xbf16>, vector<256x128xf32> -> vector<256x128xf32>
    %37 = arith.addf %32, %36 : vector<256x128xf32>
    %c64 = arith.constant 64 : index
    %c0_36 = arith.constant 0 : index
    %38 = vector.load %arg7[%c64, %c0_36] : memref<584x128xbf16, #tpu.memory_space<vmem>>, vector<256x128xbf16>
    %c6 = arith.constant 6 : index
    %c0_37 = arith.constant 0 : index
    %c0_38 = arith.constant 0 : index
    %39 = vector.load %arg2[%c6, %c0_37, %c0_38] : memref<9x128x128xbf16, #tpu.memory_space<vmem>>, vector<1x128x128xbf16>
    %40 = vector.shape_cast %39 : vector<1x128x128xbf16> to vector<128x128xbf16>
    %cst_39 = arith.constant dense<0.000000e+00> : vector<256x128xf32>
    %41 = tpu.matmul %38, %40, %cst_39 {dimension_numbers = #tpu.dot_dimension_numbers<[1], [0], [0], [1], [0, 0, 1, 1], [], []>} : vector<256x128xbf16>, vector<128x128xbf16>, vector<256x128xf32> -> vector<256x128xf32>
    %42 = arith.addf %37, %41 : vector<256x128xf32>
    %c65 = arith.constant 65 : index
    %c0_40 = arith.constant 0 : index
    %43 = vector.load %arg7[%c65, %c0_40] : memref<584x128xbf16, #tpu.memory_space<vmem>>, vector<256x128xbf16>
    %c7 = arith.constant 7 : index
    %c0_41 = arith.constant 0 : index
    %c0_42 = arith.constant 0 : index
    %44 = vector.load %arg2[%c7, %c0_41, %c0_42] : memref<9x128x128xbf16, #tpu.memory_space<vmem>>, vector<1x128x128xbf16>
    %45 = vector.shape_cast %44 : vector<1x128x128xbf16> to vector<128x128xbf16>
    %cst_43 = arith.constant dense<0.000000e+00> : vector<256x128xf32>
    %46 = tpu.matmul %43, %45, %cst_43 {dimension_numbers = #tpu.dot_dimension_numbers<[1], [0], [0], [1], [0, 0, 1, 1], [], []>} : vector<256x128xbf16>, vector<128x128xbf16>, vector<256x128xf32> -> vector<256x128xf32>
    %47 = arith.addf %42, %46 : vector<256x128xf32>
    %c66 = arith.constant 66 : index
    %c0_44 = arith.constant 0 : index
    %48 = vector.load %arg7[%c66, %c0_44] : memref<584x128xbf16, #tpu.memory_space<vmem>>, vector<256x128xbf16>
    %c8 = arith.constant 8 : index
    %c0_45 = arith.constant 0 : index
    %c0_46 = arith.constant 0 : index
    %49 = vector.load %arg2[%c8, %c0_45, %c0_46] : memref<9x128x128xbf16, #tpu.memory_space<vmem>>, vector<1x128x128xbf16>
    %50 = vector.shape_cast %49 : vector<1x128x128xbf16> to vector<128x128xbf16>
    %cst_47 = arith.constant dense<0.000000e+00> : vector<256x128xf32>
    %51 = tpu.matmul %48, %50, %cst_47 {dimension_numbers = #tpu.dot_dimension_numbers<[1], [0], [0], [1], [0, 0, 1, 1], [], []>} : vector<256x128xbf16>, vector<128x128xbf16>, vector<256x128xf32> -> vector<256x128xf32>
    %52 = arith.addf %47, %51 : vector<256x128xf32>
    %cst_48 = arith.constant 0.000000e+00 : f32
    %53 = vector.broadcast %cst_48 : f32 to vector<256x128xf32>
    %54 = arith.cmpf oge, %52, %53 : vector<256x128xf32>
    %cst_49 = arith.constant 2.000000e-01 : f32
    %55 = vector.broadcast %cst_49 : f32 to vector<256x128xf32>
    %56 = arith.mulf %55, %52 : vector<256x128xf32>
    %57 = arith.select %54, %52, %56 : vector<256x128xi1>, vector<256x128xf32>
    %58 = arith.truncf %57 : vector<256x128xf32> to vector<256x128xbf16>
    %c33_50 = arith.constant 33 : index
    %c0_51 = arith.constant 0 : index
    %59 = vector.load %arg8[%c33_50, %c0_51] : memref<584x128xbf16, #tpu.memory_space<vmem>>, vector<256x128xbf16>
    tpu.vector_store %arg8[%c33_50, %c0_51], %58 {strides = array<i32>} : memref<584x128xbf16, #tpu.memory_space<vmem>>, vector<256x128xbf16>,
    %c0_52 = arith.constant 0 : index
    %c0_53 = arith.constant 0 : index
    %60 = vector.load %arg3[%c0_52, %c0_53] : memref<1x128xf32, #tpu.memory_space<vmem>>, vector<1x128xf32>
    %61 = vector.shape_cast %60 : vector<1x128xf32> to vector<1x128xf32>
    %62 = vector.broadcast %61 : vector<1x128xf32> to vector<256x128xf32>
    %c256 = arith.constant 256 : index
    %c0_54 = arith.constant 0 : index
    %63 = vector.load %arg7[%c256, %c0_54] : memref<584x128xbf16, #tpu.memory_space<vmem>>, vector<256x128xbf16>
    %c0_55 = arith.constant 0 : index
    %c0_56 = arith.constant 0 : index
    %c0_57 = arith.constant 0 : index
    %64 = vector.load %arg2[%c0_55, %c0_56, %c0_57] : memref<9x128x128xbf16, #tpu.memory_space<vmem>>, vector<1x128x128xbf16>
    %65 = vector.shape_cast %64 : vector<1x128x128xbf16> to vector<128x128xbf16>
    %cst_58 = arith.constant dense<0.000000e+00> : vector<256x128xf32>
    %66 = tpu.matmul %63, %65, %cst_58 {dimension_numbers = #tpu.dot_dimension_numbers<[1], [0], [0], [1], [0, 0, 1, 1], [], []>} : vector<256x128xbf16>, vector<128x128xbf16>, vector<256x128xf32> -> vector<256x128xf32>
    %67 = arith.addf %62, %66 : vector<256x128xf32>
    %c257 = arith.constant 257 : index
    %c0_59 = arith.constant 0 : index
    %68 = vector.load %arg7[%c257, %c0_59] : memref<584x128xbf16, #tpu.memory_space<vmem>>, vector<256x128xbf16>
    %c1_60 = arith.constant 1 : index
    %c0_61 = arith.constant 0 : index
    %c0_62 = arith.constant 0 : index
    %69 = vector.load %arg2[%c1_60, %c0_61, %c0_62] : memref<9x128x128xbf16, #tpu.memory_space<vmem>>, vector<1x128x128xbf16>
    %70 = vector.shape_cast %69 : vector<1x128x128xbf16> to vector<128x128xbf16>
    %cst_63 = arith.constant dense<0.000000e+00> : vector<256x128xf32>
    %71 = tpu.matmul %68, %70, %cst_63 {dimension_numbers = #tpu.dot_dimension_numbers<[1], [0], [0], [1], [0, 0, 1, 1], [], []>} : vector<256x128xbf16>, vector<128x128xbf16>, vector<256x128xf32> -> vector<256x128xf32>
    %72 = arith.addf %67, %71 : vector<256x128xf32>
    %c258 = arith.constant 258 : index
    %c0_64 = arith.constant 0 : index
    %73 = vector.load %arg7[%c258, %c0_64] : memref<584x128xbf16, #tpu.memory_space<vmem>>, vector<256x128xbf16>
    %c2_65 = arith.constant 2 : index
    %c0_66 = arith.constant 0 : index
    %c0_67 = arith.constant 0 : index
    %74 = vector.load %arg2[%c2_65, %c0_66, %c0_67] : memref<9x128x128xbf16, #tpu.memory_space<vmem>>, vector<1x128x128xbf16>
    %75 = vector.shape_cast %74 : vector<1x128x128xbf16> to vector<128x128xbf16>
    %cst_68 = arith.constant dense<0.000000e+00> : vector<256x128xf32>
    %76 = tpu.matmul %73, %75, %cst_68 {dimension_numbers = #tpu.dot_dimension_numbers<[1], [0], [0], [1], [0, 0, 1, 1], [], []>} : vector<256x128xbf16>, vector<128x128xbf16>, vector<256x128xf32> -> vector<256x128xf32>
    %77 = arith.addf %72, %76 : vector<256x128xf32>
    %c288 = arith.constant 288 : index
    %c0_69 = arith.constant 0 : index
    %78 = vector.load %arg7[%c288, %c0_69] : memref<584x128xbf16, #tpu.memory_space<vmem>>, vector<256x128xbf16>
    %c3_70 = arith.constant 3 : index
    %c0_71 = arith.constant 0 : index
    %c0_72 = arith.constant 0 : index
    %79 = vector.load %arg2[%c3_70, %c0_71, %c0_72] : memref<9x128x128xbf16, #tpu.memory_space<vmem>>, vector<1x128x128xbf16>
    %80 = vector.shape_cast %79 : vector<1x128x128xbf16> to vector<128x128xbf16>
    %cst_73 = arith.constant dense<0.000000e+00> : vector<256x128xf32>
    %81 = tpu.matmul %78, %80, %cst_73 {dimension_numbers = #tpu.dot_dimension_numbers<[1], [0], [0], [1], [0, 0, 1, 1], [], []>} : vector<256x128xbf16>, vector<128x128xbf16>, vector<256x128xf32> -> vector<256x128xf32>
    %82 = arith.addf %77, %81 : vector<256x128xf32>
    %c289 = arith.constant 289 : index
    %c0_74 = arith.constant 0 : index
    %83 = vector.load %arg7[%c289, %c0_74] : memref<584x128xbf16, #tpu.memory_space<vmem>>, vector<256x128xbf16>
    %c4_75 = arith.constant 4 : index
    %c0_76 = arith.constant 0 : index
    %c0_77 = arith.constant 0 : index
    %84 = vector.load %arg2[%c4_75, %c0_76, %c0_77] : memref<9x128x128xbf16, #tpu.memory_space<vmem>>, vector<1x128x128xbf16>
    %85 = vector.shape_cast %84 : vector<1x128x128xbf16> to vector<128x128xbf16>
    %cst_78 = arith.constant dense<0.000000e+00> : vector<256x128xf32>
    %86 = tpu.matmul %83, %85, %cst_78 {dimension_numbers = #tpu.dot_dimension_numbers<[1], [0], [0], [1], [0, 0, 1, 1], [], []>} : vector<256x128xbf16>, vector<128x128xbf16>, vector<256x128xf32> -> vector<256x128xf32>
    %87 = arith.addf %82, %86 : vector<256x128xf32>
    %c290 = arith.constant 290 : index
    %c0_79 = arith.constant 0 : index
    %88 = vector.load %arg7[%c290, %c0_79] : memref<584x128xbf16, #tpu.memory_space<vmem>>, vector<256x128xbf16>
    %c5_80 = arith.constant 5 : index
    %c0_81 = arith.constant 0 : index
    %c0_82 = arith.constant 0 : index
    %89 = vector.load %arg2[%c5_80, %c0_81, %c0_82] : memref<9x128x128xbf16, #tpu.memory_space<vmem>>, vector<1x128x128xbf16>
    %90 = vector.shape_cast %89 : vector<1x128x128xbf16> to vector<128x128xbf16>
    %cst_83 = arith.constant dense<0.000000e+00> : vector<256x128xf32>
    %91 = tpu.matmul %88, %90, %cst_83 {dimension_numbers = #tpu.dot_dimension_numbers<[1], [0], [0], [1], [0, 0, 1, 1], [], []>} : vector<256x128xbf16>, vector<128x128xbf16>, vector<256x128xf32> -> vector<256x128xf32>
    %92 = arith.addf %87, %91 : vector<256x128xf32>
    %c320 = arith.constant 320 : index
    %c0_84 = arith.constant 0 : index
    %93 = vector.load %arg7[%c320, %c0_84] : memref<584x128xbf16, #tpu.memory_space<vmem>>, vector<256x128xbf16>
    %c6_85 = arith.constant 6 : index
    %c0_86 = arith.constant 0 : index
    %c0_87 = arith.constant 0 : index
    %94 = vector.load %arg2[%c6_85, %c0_86, %c0_87] : memref<9x128x128xbf16, #tpu.memory_space<vmem>>, vector<1x128x128xbf16>
    %95 = vector.shape_cast %94 : vector<1x128x128xbf16> to vector<128x128xbf16>
    %cst_88 = arith.constant dense<0.000000e+00> : vector<256x128xf32>
    %96 = tpu.matmul %93, %95, %cst_88 {dimension_numbers = #tpu.dot_dimension_numbers<[1], [0], [0], [1], [0, 0, 1, 1], [], []>} : vector<256x128xbf16>, vector<128x128xbf16>, vector<256x128xf32> -> vector<256x128xf32>
    %97 = arith.addf %92, %96 : vector<256x128xf32>
    %c321 = arith.constant 321 : index
    %c0_89 = arith.constant 0 : index
    %98 = vector.load %arg7[%c321, %c0_89] : memref<584x128xbf16, #tpu.memory_space<vmem>>, vector<256x128xbf16>
    %c7_90 = arith.constant 7 : index
    %c0_91 = arith.constant 0 : index
    %c0_92 = arith.constant 0 : index
    %99 = vector.load %arg2[%c7_90, %c0_91, %c0_92] : memref<9x128x128xbf16, #tpu.memory_space<vmem>>, vector<1x128x128xbf16>
    %100 = vector.shape_cast %99 : vector<1x128x128xbf16> to vector<128x128xbf16>
    %cst_93 = arith.constant dense<0.000000e+00> : vector<256x128xf32>
    %101 = tpu.matmul %98, %100, %cst_93 {dimension_numbers = #tpu.dot_dimension_numbers<[1], [0], [0], [1], [0, 0, 1, 1], [], []>} : vector<256x128xbf16>, vector<128x128xbf16>, vector<256x128xf32> -> vector<256x128xf32>
    %102 = arith.addf %97, %101 : vector<256x128xf32>
    %c322 = arith.constant 322 : index
    %c0_94 = arith.constant 0 : index
    %103 = vector.load %arg7[%c322, %c0_94] : memref<584x128xbf16, #tpu.memory_space<vmem>>, vector<256x128xbf16>
    %c8_95 = arith.constant 8 : index
    %c0_96 = arith.constant 0 : index
    %c0_97 = arith.constant 0 : index
    %104 = vector.load %arg2[%c8_95, %c0_96, %c0_97] : memref<9x128x128xbf16, #tpu.memory_space<vmem>>, vector<1x128x128xbf16>
    %105 = vector.shape_cast %104 : vector<1x128x128xbf16> to vector<128x128xbf16>
    %cst_98 = arith.constant dense<0.000000e+00> : vector<256x128xf32>
    %106 = tpu.matmul %103, %105, %cst_98 {dimension_numbers = #tpu.dot_dimension_numbers<[1], [0], [0], [1], [0, 0, 1, 1], [], []>} : vector<256x128xbf16>, vector<128x128xbf16>, vector<256x128xf32> -> vector<256x128xf32>
    %107 = arith.addf %102, %106 : vector<256x128xf32>
    %cst_99 = arith.constant 0.000000e+00 : f32
    %108 = vector.broadcast %cst_99 : f32 to vector<256x128xf32>
    %109 = arith.cmpf oge, %107, %108 : vector<256x128xf32>
    %cst_100 = arith.constant 2.000000e-01 : f32
    %110 = vector.broadcast %cst_100 : f32 to vector<256x128xf32>
    %111 = arith.mulf %110, %107 : vector<256x128xf32>
    %112 = arith.select %109, %107, %111 : vector<256x128xi1>, vector<256x128xf32>
    %113 = arith.truncf %112 : vector<256x128xf32> to vector<256x128xbf16>
    %c289_101 = arith.constant 289 : index
    %c0_102 = arith.constant 0 : index
    %114 = vector.load %arg8[%c289_101, %c0_102] : memref<584x128xbf16, #tpu.memory_space<vmem>>, vector<256x128xbf16>
    tpu.vector_store %arg8[%c289_101, %c0_102], %113 {strides = array<i32>} : memref<584x128xbf16, #tpu.memory_space<vmem>>, vector<256x128xbf16>,
    %cst_103 = arith.constant 0.000000e+00 : bf16
    %115 = vector.broadcast %cst_103 : bf16 to vector<1x128xbf16>
    %cst_104 = arith.constant 0.000000e+00 : bf16
    %116 = vector.broadcast %cst_104 : bf16 to vector<32x128xbf16>
    %c0_105 = arith.constant 0 : index
    %c0_106 = arith.constant 0 : index
    %117 = vector.load %arg8[%c0_105, %c0_106] : memref<584x128xbf16, #tpu.memory_space<vmem>>, vector<32x128xbf16>
    tpu.vector_store %arg8[%c0_105, %c0_106], %116 {strides = array<i32>} : memref<584x128xbf16, #tpu.memory_space<vmem>>, vector<32x128xbf16>,
    %cst_107 = arith.constant 0.000000e+00 : bf16
    %118 = vector.broadcast %cst_107 : bf16 to vector<40x128xbf16>
    %c544 = arith.constant 544 : index
    %c0_108 = arith.constant 0 : index
    %119 = vector.load %arg8[%c544, %c0_108] : memref<584x128xbf16, #tpu.memory_space<vmem>>, vector<40x128xbf16>
    tpu.vector_store %arg8[%c544, %c0_108], %118 {strides = array<i32>} : memref<584x128xbf16, #tpu.memory_space<vmem>>, vector<40x128xbf16>,
    %c32_109 = arith.constant 32 : index
    %c0_110 = arith.constant 0 : index
    %120 = vector.load %arg8[%c32_109, %c0_110] : memref<584x128xbf16, #tpu.memory_space<vmem>>, vector<1x128xbf16>
    tpu.vector_store %arg8[%c32_109, %c0_110], %115 {strides = array<i32>} : memref<584x128xbf16, #tpu.memory_space<vmem>>, vector<1x128xbf16>,
    %c49 = arith.constant 49 : index
    %c0_111 = arith.constant 0 : index
    %121 = vector.load %arg8[%c49, %c0_111] : memref<584x128xbf16, #tpu.memory_space<vmem>>, vector<1x128xbf16>
    tpu.vector_store %arg8[%c49, %c0_111], %115 {strides = array<i32>} : memref<584x128xbf16, #tpu.memory_space<vmem>>, vector<1x128xbf16>,
    %c64_112 = arith.constant 64 : index
    %c0_113 = arith.constant 0 : index
    %122 = vector.load %arg8[%c64_112, %c0_113] : memref<584x128xbf16, #tpu.memory_space<vmem>>, vector<1x128xbf16>
    tpu.vector_store %arg8[%c64_112, %c0_113], %115 {strides = array<i32>} : memref<584x128xbf16, #tpu.memory_space<vmem>>, vector<1x128xbf16>,
    %c81 = arith.constant 81 : index
    %c0_114 = arith.constant 0 : index
    %123 = vector.load %arg8[%c81, %c0_114] : memref<584x128xbf16, #tpu.memory_space<vmem>>, vector<1x128xbf16>
    tpu.vector_store %arg8[%c81, %c0_114], %115 {strides = array<i32>} : memref<584x128xbf16, #tpu.memory_space<vmem>>, vector<1x128xbf16>,
    %c96 = arith.constant 96 : index
    %c0_115 = arith.constant 0 : index
    %124 = vector.load %arg8[%c96, %c0_115] : memref<584x128xbf16, #tpu.memory_space<vmem>>, vector<1x128xbf16>
    tpu.vector_store %arg8[%c96, %c0_115], %115 {strides = array<i32>} : memref<584x128xbf16, #tpu.memory_space<vmem>>, vector<1x128xbf16>,
    %c113 = arith.constant 113 : index
    %c0_116 = arith.constant 0 : index
    %125 = vector.load %arg8[%c113, %c0_116] : memref<584x128xbf16, #tpu.memory_space<vmem>>, vector<1x128xbf16>
    tpu.vector_store %arg8[%c113, %c0_116], %115 {strides = array<i32>} : memref<584x128xbf16, #tpu.memory_space<vmem>>, vector<1x128xbf16>,
    %c128 = arith.constant 128 : index
    %c0_117 = arith.constant 0 : index
    %126 = vector.load %arg8[%c128, %c0_117] : memref<584x128xbf16, #tpu.memory_space<vmem>>, vector<1x128xbf16>
    tpu.vector_store %arg8[%c128, %c0_117], %115 {strides = array<i32>} : memref<584x128xbf16, #tpu.memory_space<vmem>>, vector<1x128xbf16>,
    %c145 = arith.constant 145 : index
    %c0_118 = arith.constant 0 : index
    %127 = vector.load %arg8[%c145, %c0_118] : memref<584x128xbf16, #tpu.memory_space<vmem>>, vector<1x128xbf16>
    tpu.vector_store %arg8[%c145, %c0_118], %115 {strides = array<i32>} : memref<584x128xbf16, #tpu.memory_space<vmem>>, vector<1x128xbf16>,
    %c160 = arith.constant 160 : index
    %c0_119 = arith.constant 0 : index
    %128 = vector.load %arg8[%c160, %c0_119] : memref<584x128xbf16, #tpu.memory_space<vmem>>, vector<1x128xbf16>
    tpu.vector_store %arg8[%c160, %c0_119], %115 {strides = array<i32>} : memref<584x128xbf16, #tpu.memory_space<vmem>>, vector<1x128xbf16>,
    %c177 = arith.constant 177 : index
    %c0_120 = arith.constant 0 : index
    %129 = vector.load %arg8[%c177, %c0_120] : memref<584x128xbf16, #tpu.memory_space<vmem>>, vector<1x128xbf16>
    tpu.vector_store %arg8[%c177, %c0_120], %115 {strides = array<i32>} : memref<584x128xbf16, #tpu.memory_space<vmem>>, vector<1x128xbf16>,
    %c192 = arith.constant 192 : index
    %c0_121 = arith.constant 0 : index
    %130 = vector.load %arg8[%c192, %c0_121] : memref<584x128xbf16, #tpu.memory_space<vmem>>, vector<1x128xbf16>
    tpu.vector_store %arg8[%c192, %c0_121], %115 {strides = array<i32>} : memref<584x128xbf16, #tpu.memory_space<vmem>>, vector<1x128xbf16>,
    %c209 = arith.constant 209 : index
    %c0_122 = arith.constant 0 : index
    %131 = vector.load %arg8[%c209, %c0_122] : memref<584x128xbf16, #tpu.memory_space<vmem>>, vector<1x128xbf16>
    tpu.vector_store %arg8[%c209, %c0_122], %115 {strides = array<i32>} : memref<584x128xbf16, #tpu.memory_space<vmem>>, vector<1x128xbf16>,
    %c224 = arith.constant 224 : index
    %c0_123 = arith.constant 0 : index
    %132 = vector.load %arg8[%c224, %c0_123] : memref<584x128xbf16, #tpu.memory_space<vmem>>, vector<1x128xbf16>
    tpu.vector_store %arg8[%c224, %c0_123], %115 {strides = array<i32>} : memref<584x128xbf16, #tpu.memory_space<vmem>>, vector<1x128xbf16>,
    %c241 = arith.constant 241 : index
    %c0_124 = arith.constant 0 : index
    %133 = vector.load %arg8[%c241, %c0_124] : memref<584x128xbf16, #tpu.memory_space<vmem>>, vector<1x128xbf16>
    tpu.vector_store %arg8[%c241, %c0_124], %115 {strides = array<i32>} : memref<584x128xbf16, #tpu.memory_space<vmem>>, vector<1x128xbf16>,
    %c256_125 = arith.constant 256 : index
    %c0_126 = arith.constant 0 : index
    %134 = vector.load %arg8[%c256_125, %c0_126] : memref<584x128xbf16, #tpu.memory_space<vmem>>, vector<1x128xbf16>
    tpu.vector_store %arg8[%c256_125, %c0_126], %115 {strides = array<i32>} : memref<584x128xbf16, #tpu.memory_space<vmem>>, vector<1x128xbf16>,
    %c273 = arith.constant 273 : index
    %c0_127 = arith.constant 0 : index
    %135 = vector.load %arg8[%c273, %c0_127] : memref<584x128xbf16, #tpu.memory_space<vmem>>, vector<1x128xbf16>
    tpu.vector_store %arg8[%c273, %c0_127], %115 {strides = array<i32>} : memref<584x128xbf16, #tpu.memory_space<vmem>>, vector<1x128xbf16>,
    %c288_128 = arith.constant 288 : index
    %c0_129 = arith.constant 0 : index
    %136 = vector.load %arg8[%c288_128, %c0_129] : memref<584x128xbf16, #tpu.memory_space<vmem>>, vector<1x128xbf16>
    tpu.vector_store %arg8[%c288_128, %c0_129], %115 {strides = array<i32>} : memref<584x128xbf16, #tpu.memory_space<vmem>>, vector<1x128xbf16>,
    %c305 = arith.constant 305 : index
    %c0_130 = arith.constant 0 : index
    %137 = vector.load %arg8[%c305, %c0_130] : memref<584x128xbf16, #tpu.memory_space<vmem>>, vector<1x128xbf16>
    tpu.vector_store %arg8[%c305, %c0_130], %115 {strides = array<i32>} : memref<584x128xbf16, #tpu.memory_space<vmem>>, vector<1x128xbf16>,
    %c320_131 = arith.constant 320 : index
    %c0_132 = arith.constant 0 : index
    %138 = vector.load %arg8[%c320_131, %c0_132] : memref<584x128xbf16, #tpu.memory_space<vmem>>, vector<1x128xbf16>
    tpu.vector_store %arg8[%c320_131, %c0_132], %115 {strides = array<i32>} : memref<584x128xbf16, #tpu.memory_space<vmem>>, vector<1x128xbf16>,
    %c337 = arith.constant 337 : index
    %c0_133 = arith.constant 0 : index
    %139 = vector.load %arg8[%c337, %c0_133] : memref<584x128xbf16, #tpu.memory_space<vmem>>, vector<1x128xbf16>
    tpu.vector_store %arg8[%c337, %c0_133], %115 {strides = array<i32>} : memref<584x128xbf16, #tpu.memory_space<vmem>>, vector<1x128xbf16>,
    %c352 = arith.constant 352 : index
    %c0_134 = arith.constant 0 : index
    %140 = vector.load %arg8[%c352, %c0_134] : memref<584x128xbf16, #tpu.memory_space<vmem>>, vector<1x128xbf16>
    tpu.vector_store %arg8[%c352, %c0_134], %115 {strides = array<i32>} : memref<584x128xbf16, #tpu.memory_space<vmem>>, vector<1x128xbf16>,
    %c369 = arith.constant 369 : index
    %c0_135 = arith.constant 0 : index
    %141 = vector.load %arg8[%c369, %c0_135] : memref<584x128xbf16, #tpu.memory_space<vmem>>, vector<1x128xbf16>
    tpu.vector_store %arg8[%c369, %c0_135], %115 {strides = array<i32>} : memref<584x128xbf16, #tpu.memory_space<vmem>>, vector<1x128xbf16>,
    %c384 = arith.constant 384 : index
    %c0_136 = arith.constant 0 : index
    %142 = vector.load %arg8[%c384, %c0_136] : memref<584x128xbf16, #tpu.memory_space<vmem>>, vector<1x128xbf16>
    tpu.vector_store %arg8[%c384, %c0_136], %115 {strides = array<i32>} : memref<584x128xbf16, #tpu.memory_space<vmem>>, vector<1x128xbf16>,
    %c401 = arith.constant 401 : index
    %c0_137 = arith.constant 0 : index
    %143 = vector.load %arg8[%c401, %c0_137] : memref<584x128xbf16, #tpu.memory_space<vmem>>, vector<1x128xbf16>
    tpu.vector_store %arg8[%c401, %c0_137], %115 {strides = array<i32>} : memref<584x128xbf16, #tpu.memory_space<vmem>>, vector<1x128xbf16>,
    %c416 = arith.constant 416 : index
    %c0_138 = arith.constant 0 : index
    %144 = vector.load %arg8[%c416, %c0_138] : memref<584x128xbf16, #tpu.memory_space<vmem>>, vector<1x128xbf16>
    tpu.vector_store %arg8[%c416, %c0_138], %115 {strides = array<i32>} : memref<584x128xbf16, #tpu.memory_space<vmem>>, vector<1x128xbf16>,
    %c433 = arith.constant 433 : index
    %c0_139 = arith.constant 0 : index
    %145 = vector.load %arg8[%c433, %c0_139] : memref<584x128xbf16, #tpu.memory_space<vmem>>, vector<1x128xbf16>
    tpu.vector_store %arg8[%c433, %c0_139], %115 {strides = array<i32>} : memref<584x128xbf16, #tpu.memory_space<vmem>>, vector<1x128xbf16>,
    %c448 = arith.constant 448 : index
    %c0_140 = arith.constant 0 : index
    %146 = vector.load %arg8[%c448, %c0_140] : memref<584x128xbf16, #tpu.memory_space<vmem>>, vector<1x128xbf16>
    tpu.vector_store %arg8[%c448, %c0_140], %115 {strides = array<i32>} : memref<584x128xbf16, #tpu.memory_space<vmem>>, vector<1x128xbf16>,
    %c465 = arith.constant 465 : index
    %c0_141 = arith.constant 0 : index
    %147 = vector.load %arg8[%c465, %c0_141] : memref<584x128xbf16, #tpu.memory_space<vmem>>, vector<1x128xbf16>
    tpu.vector_store %arg8[%c465, %c0_141], %115 {strides = array<i32>} : memref<584x128xbf16, #tpu.memory_space<vmem>>, vector<1x128xbf16>,
    %c480 = arith.constant 480 : index
    %c0_142 = arith.constant 0 : index
    %148 = vector.load %arg8[%c480, %c0_142] : memref<584x128xbf16, #tpu.memory_space<vmem>>, vector<1x128xbf16>
    tpu.vector_store %arg8[%c480, %c0_142], %115 {strides = array<i32>} : memref<584x128xbf16, #tpu.memory_space<vmem>>, vector<1x128xbf16>,
    %c497 = arith.constant 497 : index
    %c0_143 = arith.constant 0 : index
    %149 = vector.load %arg8[%c497, %c0_143] : memref<584x128xbf16, #tpu.memory_space<vmem>>, vector<1x128xbf16>
    tpu.vector_store %arg8[%c497, %c0_143], %115 {strides = array<i32>} : memref<584x128xbf16, #tpu.memory_space<vmem>>, vector<1x128xbf16>,
    %c512 = arith.constant 512 : index
    %c0_144 = arith.constant 0 : index
    %150 = vector.load %arg8[%c512, %c0_144] : memref<584x128xbf16, #tpu.memory_space<vmem>>, vector<1x128xbf16>
    tpu.vector_store %arg8[%c512, %c0_144], %115 {strides = array<i32>} : memref<584x128xbf16, #tpu.memory_space<vmem>>, vector<1x128xbf16>,
    %c529 = arith.constant 529 : index
    %c0_145 = arith.constant 0 : index
    %151 = vector.load %arg8[%c529, %c0_145] : memref<584x128xbf16, #tpu.memory_space<vmem>>, vector<1x128xbf16>
    tpu.vector_store %arg8[%c529, %c0_145], %115 {strides = array<i32>} : memref<584x128xbf16, #tpu.memory_space<vmem>>, vector<1x128xbf16>,
    %c0_146 = arith.constant 0 : index
    %c0_147 = arith.constant 0 : index
    %152 = vector.load %arg5[%c0_146, %c0_147] : memref<1x128xf32, #tpu.memory_space<vmem>>, vector<1x128xf32>
    %153 = vector.shape_cast %152 : vector<1x128xf32> to vector<1x128xf32>
    %154 = vector.broadcast %153 : vector<1x128xf32> to vector<256x128xf32>
    %c0_148 = arith.constant 0 : index
    %c0_149 = arith.constant 0 : index
    %155 = vector.load %arg8[%c0_148, %c0_149] : memref<584x128xbf16, #tpu.memory_space<vmem>>, vector<256x128xbf16>
    %c0_150 = arith.constant 0 : index
    %c0_151 = arith.constant 0 : index
    %c0_152 = arith.constant 0 : index
    %156 = vector.load %arg4[%c0_150, %c0_151, %c0_152] : memref<9x128x128xbf16, #tpu.memory_space<vmem>>, vector<1x128x128xbf16>
    %157 = vector.shape_cast %156 : vector<1x128x128xbf16> to vector<128x128xbf16>
    %cst_153 = arith.constant dense<0.000000e+00> : vector<256x128xf32>
    %158 = tpu.matmul %155, %157, %cst_153 {dimension_numbers = #tpu.dot_dimension_numbers<[1], [0], [0], [1], [0, 0, 1, 1], [], []>} : vector<256x128xbf16>, vector<128x128xbf16>, vector<256x128xf32> -> vector<256x128xf32>
    %159 = arith.addf %154, %158 : vector<256x128xf32>
    %c1_154 = arith.constant 1 : index
    %c0_155 = arith.constant 0 : index
    %160 = vector.load %arg8[%c1_154, %c0_155] : memref<584x128xbf16, #tpu.memory_space<vmem>>, vector<256x128xbf16>
    %c1_156 = arith.constant 1 : index
    %c0_157 = arith.constant 0 : index
    %c0_158 = arith.constant 0 : index
    %161 = vector.load %arg4[%c1_156, %c0_157, %c0_158] : memref<9x128x128xbf16, #tpu.memory_space<vmem>>, vector<1x128x128xbf16>
    %162 = vector.shape_cast %161 : vector<1x128x128xbf16> to vector<128x128xbf16>
    %cst_159 = arith.constant dense<0.000000e+00> : vector<256x128xf32>
    %163 = tpu.matmul %160, %162, %cst_159 {dimension_numbers = #tpu.dot_dimension_numbers<[1], [0], [0], [1], [0, 0, 1, 1], [], []>} : vector<256x128xbf16>, vector<128x128xbf16>, vector<256x128xf32> -> vector<256x128xf32>
    %164 = arith.addf %159, %163 : vector<256x128xf32>
    %c2_160 = arith.constant 2 : index
    %c0_161 = arith.constant 0 : index
    %165 = vector.load %arg8[%c2_160, %c0_161] : memref<584x128xbf16, #tpu.memory_space<vmem>>, vector<256x128xbf16>
    %c2_162 = arith.constant 2 : index
    %c0_163 = arith.constant 0 : index
    %c0_164 = arith.constant 0 : index
    %166 = vector.load %arg4[%c2_162, %c0_163, %c0_164] : memref<9x128x128xbf16, #tpu.memory_space<vmem>>, vector<1x128x128xbf16>
    %167 = vector.shape_cast %166 : vector<1x128x128xbf16> to vector<128x128xbf16>
    %cst_165 = arith.constant dense<0.000000e+00> : vector<256x128xf32>
    %168 = tpu.matmul %165, %167, %cst_165 {dimension_numbers = #tpu.dot_dimension_numbers<[1], [0], [0], [1], [0, 0, 1, 1], [], []>} : vector<256x128xbf16>, vector<128x128xbf16>, vector<256x128xf32> -> vector<256x128xf32>
    %169 = arith.addf %164, %168 : vector<256x128xf32>
    %c32_166 = arith.constant 32 : index
    %c0_167 = arith.constant 0 : index
    %170 = vector.load %arg8[%c32_166, %c0_167] : memref<584x128xbf16, #tpu.memory_space<vmem>>, vector<256x128xbf16>
    %c3_168 = arith.constant 3 : index
    %c0_169 = arith.constant 0 : index
    %c0_170 = arith.constant 0 : index
    %171 = vector.load %arg4[%c3_168, %c0_169, %c0_170] : memref<9x128x128xbf16, #tpu.memory_space<vmem>>, vector<1x128x128xbf16>
    %172 = vector.shape_cast %171 : vector<1x128x128xbf16> to vector<128x128xbf16>
    %cst_171 = arith.constant dense<0.000000e+00> : vector<256x128xf32>
    %173 = tpu.matmul %170, %172, %cst_171 {dimension_numbers = #tpu.dot_dimension_numbers<[1], [0], [0], [1], [0, 0, 1, 1], [], []>} : vector<256x128xbf16>, vector<128x128xbf16>, vector<256x128xf32> -> vector<256x128xf32>
    %174 = arith.addf %169, %173 : vector<256x128xf32>
    %c33_172 = arith.constant 33 : index
    %c0_173 = arith.constant 0 : index
    %175 = vector.load %arg8[%c33_172, %c0_173] : memref<584x128xbf16, #tpu.memory_space<vmem>>, vector<256x128xbf16>
    %c4_174 = arith.constant 4 : index
    %c0_175 = arith.constant 0 : index
    %c0_176 = arith.constant 0 : index
    %176 = vector.load %arg4[%c4_174, %c0_175, %c0_176] : memref<9x128x128xbf16, #tpu.memory_space<vmem>>, vector<1x128x128xbf16>
    %177 = vector.shape_cast %176 : vector<1x128x128xbf16> to vector<128x128xbf16>
    %cst_177 = arith.constant dense<0.000000e+00> : vector<256x128xf32>
    %178 = tpu.matmul %175, %177, %cst_177 {dimension_numbers = #tpu.dot_dimension_numbers<[1], [0], [0], [1], [0, 0, 1, 1], [], []>} : vector<256x128xbf16>, vector<128x128xbf16>, vector<256x128xf32> -> vector<256x128xf32>
    %179 = arith.addf %174, %178 : vector<256x128xf32>
    %c34_178 = arith.constant 34 : index
    %c0_179 = arith.constant 0 : index
    %180 = vector.load %arg8[%c34_178, %c0_179] : memref<584x128xbf16, #tpu.memory_space<vmem>>, vector<256x128xbf16>
    %c5_180 = arith.constant 5 : index
    %c0_181 = arith.constant 0 : index
    %c0_182 = arith.constant 0 : index
    %181 = vector.load %arg4[%c5_180, %c0_181, %c0_182] : memref<9x128x128xbf16, #tpu.memory_space<vmem>>, vector<1x128x128xbf16>
    %182 = vector.shape_cast %181 : vector<1x128x128xbf16> to vector<128x128xbf16>
    %cst_183 = arith.constant dense<0.000000e+00> : vector<256x128xf32>
    %183 = tpu.matmul %180, %182, %cst_183 {dimension_numbers = #tpu.dot_dimension_numbers<[1], [0], [0], [1], [0, 0, 1, 1], [], []>} : vector<256x128xbf16>, vector<128x128xbf16>, vector<256x128xf32> -> vector<256x128xf32>
    %184 = arith.addf %179, %183 : vector<256x128xf32>
    %c64_184 = arith.constant 64 : index
    %c0_185 = arith.constant 0 : index
    %185 = vector.load %arg8[%c64_184, %c0_185] : memref<584x128xbf16, #tpu.memory_space<vmem>>, vector<256x128xbf16>
    %c6_186 = arith.constant 6 : index
    %c0_187 = arith.constant 0 : index
    %c0_188 = arith.constant 0 : index
    %186 = vector.load %arg4[%c6_186, %c0_187, %c0_188] : memref<9x128x128xbf16, #tpu.memory_space<vmem>>, vector<1x128x128xbf16>
    %187 = vector.shape_cast %186 : vector<1x128x128xbf16> to vector<128x128xbf16>
    %cst_189 = arith.constant dense<0.000000e+00> : vector<256x128xf32>
    %188 = tpu.matmul %185, %187, %cst_189 {dimension_numbers = #tpu.dot_dimension_numbers<[1], [0], [0], [1], [0, 0, 1, 1], [], []>} : vector<256x128xbf16>, vector<128x128xbf16>, vector<256x128xf32> -> vector<256x128xf32>
    %189 = arith.addf %184, %188 : vector<256x128xf32>
    %c65_190 = arith.constant 65 : index
    %c0_191 = arith.constant 0 : index
    %190 = vector.load %arg8[%c65_190, %c0_191] : memref<584x128xbf16, #tpu.memory_space<vmem>>, vector<256x128xbf16>
    %c7_192 = arith.constant 7 : index
    %c0_193 = arith.constant 0 : index
    %c0_194 = arith.constant 0 : index
    %191 = vector.load %arg4[%c7_192, %c0_193, %c0_194] : memref<9x128x128xbf16, #tpu.memory_space<vmem>>, vector<1x128x128xbf16>
    %192 = vector.shape_cast %191 : vector<1x128x128xbf16> to vector<128x128xbf16>
    %cst_195 = arith.constant dense<0.000000e+00> : vector<256x128xf32>
    %193 = tpu.matmul %190, %192, %cst_195 {dimension_numbers = #tpu.dot_dimension_numbers<[1], [0], [0], [1], [0, 0, 1, 1], [], []>} : vector<256x128xbf16>, vector<128x128xbf16>, vector<256x128xf32> -> vector<256x128xf32>
    %194 = arith.addf %189, %193 : vector<256x128xf32>
    %c66_196 = arith.constant 66 : index
    %c0_197 = arith.constant 0 : index
    %195 = vector.load %arg8[%c66_196, %c0_197] : memref<584x128xbf16, #tpu.memory_space<vmem>>, vector<256x128xbf16>
    %c8_198 = arith.constant 8 : index
    %c0_199 = arith.constant 0 : index
    %c0_200 = arith.constant 0 : index
    %196 = vector.load %arg4[%c8_198, %c0_199, %c0_200] : memref<9x128x128xbf16, #tpu.memory_space<vmem>>, vector<1x128x128xbf16>
    %197 = vector.shape_cast %196 : vector<1x128x128xbf16> to vector<128x128xbf16>
    %cst_201 = arith.constant dense<0.000000e+00> : vector<256x128xf32>
    %198 = tpu.matmul %195, %197, %cst_201 {dimension_numbers = #tpu.dot_dimension_numbers<[1], [0], [0], [1], [0, 0, 1, 1], [], []>} : vector<256x128xbf16>, vector<128x128xbf16>, vector<256x128xf32> -> vector<256x128xf32>
    %199 = arith.addf %194, %198 : vector<256x128xf32>
    %200 = vector.shape_cast %199 : vector<256x128xf32> to vector<4x2x32x128xf32>
    %201 = vector.extract_strided_slice %200 {offsets = [0, 0, 0, 0], sizes = [4, 1, 32, 128], strides = [1, 1, 1, 1]} : vector<4x2x32x128xf32> to vector<4x1x32x128xf32>
    %202 = vector.shape_cast %201 : vector<4x1x32x128xf32> to vector<4x32x128xf32>
    %203 = vector.extract_strided_slice %200 {offsets = [0, 1, 0, 0], sizes = [4, 1, 32, 128], strides = [1, 1, 1, 1]} : vector<4x2x32x128xf32> to vector<4x1x32x128xf32>
    %204 = vector.shape_cast %203 : vector<4x1x32x128xf32> to vector<4x32x128xf32>
    %205 = arith.maximumf %202, %204 : vector<4x32x128xf32>
    %206 = vector.shape_cast %205 : vector<4x32x128xf32> to vector<128x128xf32>
    %c0_202 = arith.constant 0 : index
    %c0_203 = arith.constant 0 : index
    %207 = vector.load %arg9[%c0_202, %c0_203] : memref<256x128xf32, #tpu.memory_space<vmem>>, vector<128x128xf32>
    tpu.vector_store %arg9[%c0_202, %c0_203], %206 {strides = array<i32>} : memref<256x128xf32, #tpu.memory_space<vmem>>, vector<128x128xf32>,
    %c0_204 = arith.constant 0 : index
    %c0_205 = arith.constant 0 : index
    %208 = vector.load %arg5[%c0_204, %c0_205] : memref<1x128xf32, #tpu.memory_space<vmem>>, vector<1x128xf32>
    %209 = vector.shape_cast %208 : vector<1x128xf32> to vector<1x128xf32>
    %210 = vector.broadcast %209 : vector<1x128xf32> to vector<256x128xf32>
    %c256_206 = arith.constant 256 : index
    %c0_207 = arith.constant 0 : index
    %211 = vector.load %arg8[%c256_206, %c0_207] : memref<584x128xbf16, #tpu.memory_space<vmem>>, vector<256x128xbf16>
    %c0_208 = arith.constant 0 : index
    %c0_209 = arith.constant 0 : index
    %c0_210 = arith.constant 0 : index
    %212 = vector.load %arg4[%c0_208, %c0_209, %c0_210] : memref<9x128x128xbf16, #tpu.memory_space<vmem>>, vector<1x128x128xbf16>
    %213 = vector.shape_cast %212 : vector<1x128x128xbf16> to vector<128x128xbf16>
    %cst_211 = arith.constant dense<0.000000e+00> : vector<256x128xf32>
    %214 = tpu.matmul %211, %213, %cst_211 {dimension_numbers = #tpu.dot_dimension_numbers<[1], [0], [0], [1], [0, 0, 1, 1], [], []>} : vector<256x128xbf16>, vector<128x128xbf16>, vector<256x128xf32> -> vector<256x128xf32>
    %215 = arith.addf %210, %214 : vector<256x128xf32>
    %c257_212 = arith.constant 257 : index
    %c0_213 = arith.constant 0 : index
    %216 = vector.load %arg8[%c257_212, %c0_213] : memref<584x128xbf16, #tpu.memory_space<vmem>>, vector<256x128xbf16>
    %c1_214 = arith.constant 1 : index
    %c0_215 = arith.constant 0 : index
    %c0_216 = arith.constant 0 : index
    %217 = vector.load %arg4[%c1_214, %c0_215, %c0_216] : memref<9x128x128xbf16, #tpu.memory_space<vmem>>, vector<1x128x128xbf16>
    %218 = vector.shape_cast %217 : vector<1x128x128xbf16> to vector<128x128xbf16>
    %cst_217 = arith.constant dense<0.000000e+00> : vector<256x128xf32>
    %219 = tpu.matmul %216, %218, %cst_217 {dimension_numbers = #tpu.dot_dimension_numbers<[1], [0], [0], [1], [0, 0, 1, 1], [], []>} : vector<256x128xbf16>, vector<128x128xbf16>, vector<256x128xf32> -> vector<256x128xf32>
    %220 = arith.addf %215, %219 : vector<256x128xf32>
    %c258_218 = arith.constant 258 : index
    %c0_219 = arith.constant 0 : index
    %221 = vector.load %arg8[%c258_218, %c0_219] : memref<584x128xbf16, #tpu.memory_space<vmem>>, vector<256x128xbf16>
    %c2_220 = arith.constant 2 : index
    %c0_221 = arith.constant 0 : index
    %c0_222 = arith.constant 0 : index
    %222 = vector.load %arg4[%c2_220, %c0_221, %c0_222] : memref<9x128x128xbf16, #tpu.memory_space<vmem>>, vector<1x128x128xbf16>
    %223 = vector.shape_cast %222 : vector<1x128x128xbf16> to vector<128x128xbf16>
    %cst_223 = arith.constant dense<0.000000e+00> : vector<256x128xf32>
    %224 = tpu.matmul %221, %223, %cst_223 {dimension_numbers = #tpu.dot_dimension_numbers<[1], [0], [0], [1], [0, 0, 1, 1], [], []>} : vector<256x128xbf16>, vector<128x128xbf16>, vector<256x128xf32> -> vector<256x128xf32>
    %225 = arith.addf %220, %224 : vector<256x128xf32>
    %c288_224 = arith.constant 288 : index
    %c0_225 = arith.constant 0 : index
    %226 = vector.load %arg8[%c288_224, %c0_225] : memref<584x128xbf16, #tpu.memory_space<vmem>>, vector<256x128xbf16>
    %c3_226 = arith.constant 3 : index
    %c0_227 = arith.constant 0 : index
    %c0_228 = arith.constant 0 : index
    %227 = vector.load %arg4[%c3_226, %c0_227, %c0_228] : memref<9x128x128xbf16, #tpu.memory_space<vmem>>, vector<1x128x128xbf16>
    %228 = vector.shape_cast %227 : vector<1x128x128xbf16> to vector<128x128xbf16>
    %cst_229 = arith.constant dense<0.000000e+00> : vector<256x128xf32>
    %229 = tpu.matmul %226, %228, %cst_229 {dimension_numbers = #tpu.dot_dimension_numbers<[1], [0], [0], [1], [0, 0, 1, 1], [], []>} : vector<256x128xbf16>, vector<128x128xbf16>, vector<256x128xf32> -> vector<256x128xf32>
    %230 = arith.addf %225, %229 : vector<256x128xf32>
    %c289_230 = arith.constant 289 : index
    %c0_231 = arith.constant 0 : index
    %231 = vector.load %arg8[%c289_230, %c0_231] : memref<584x128xbf16, #tpu.memory_space<vmem>>, vector<256x128xbf16>
    %c4_232 = arith.constant 4 : index
    %c0_233 = arith.constant 0 : index
    %c0_234 = arith.constant 0 : index
    %232 = vector.load %arg4[%c4_232, %c0_233, %c0_234] : memref<9x128x128xbf16, #tpu.memory_space<vmem>>, vector<1x128x128xbf16>
    %233 = vector.shape_cast %232 : vector<1x128x128xbf16> to vector<128x128xbf16>
    %cst_235 = arith.constant dense<0.000000e+00> : vector<256x128xf32>
    %234 = tpu.matmul %231, %233, %cst_235 {dimension_numbers = #tpu.dot_dimension_numbers<[1], [0], [0], [1], [0, 0, 1, 1], [], []>} : vector<256x128xbf16>, vector<128x128xbf16>, vector<256x128xf32> -> vector<256x128xf32>
    %235 = arith.addf %230, %234 : vector<256x128xf32>
    %c290_236 = arith.constant 290 : index
    %c0_237 = arith.constant 0 : index
    %236 = vector.load %arg8[%c290_236, %c0_237] : memref<584x128xbf16, #tpu.memory_space<vmem>>, vector<256x128xbf16>
    %c5_238 = arith.constant 5 : index
    %c0_239 = arith.constant 0 : index
    %c0_240 = arith.constant 0 : index
    %237 = vector.load %arg4[%c5_238, %c0_239, %c0_240] : memref<9x128x128xbf16, #tpu.memory_space<vmem>>, vector<1x128x128xbf16>
    %238 = vector.shape_cast %237 : vector<1x128x128xbf16> to vector<128x128xbf16>
    %cst_241 = arith.constant dense<0.000000e+00> : vector<256x128xf32>
    %239 = tpu.matmul %236, %238, %cst_241 {dimension_numbers = #tpu.dot_dimension_numbers<[1], [0], [0], [1], [0, 0, 1, 1], [], []>} : vector<256x128xbf16>, vector<128x128xbf16>, vector<256x128xf32> -> vector<256x128xf32>
    %240 = arith.addf %235, %239 : vector<256x128xf32>
    %c320_242 = arith.constant 320 : index
    %c0_243 = arith.constant 0 : index
    %241 = vector.load %arg8[%c320_242, %c0_243] : memref<584x128xbf16, #tpu.memory_space<vmem>>, vector<256x128xbf16>
    %c6_244 = arith.constant 6 : index
    %c0_245 = arith.constant 0 : index
    %c0_246 = arith.constant 0 : index
    %242 = vector.load %arg4[%c6_244, %c0_245, %c0_246] : memref<9x128x128xbf16, #tpu.memory_space<vmem>>, vector<1x128x128xbf16>
    %243 = vector.shape_cast %242 : vector<1x128x128xbf16> to vector<128x128xbf16>
    %cst_247 = arith.constant dense<0.000000e+00> : vector<256x128xf32>
    %244 = tpu.matmul %241, %243, %cst_247 {dimension_numbers = #tpu.dot_dimension_numbers<[1], [0], [0], [1], [0, 0, 1, 1], [], []>} : vector<256x128xbf16>, vector<128x128xbf16>, vector<256x128xf32> -> vector<256x128xf32>
    %245 = arith.addf %240, %244 : vector<256x128xf32>
    %c321_248 = arith.constant 321 : index
    %c0_249 = arith.constant 0 : index
    %246 = vector.load %arg8[%c321_248, %c0_249] : memref<584x128xbf16, #tpu.memory_space<vmem>>, vector<256x128xbf16>
    %c7_250 = arith.constant 7 : index
    %c0_251 = arith.constant 0 : index
    %c0_252 = arith.constant 0 : index
    %247 = vector.load %arg4[%c7_250, %c0_251, %c0_252] : memref<9x128x128xbf16, #tpu.memory_space<vmem>>, vector<1x128x128xbf16>
    %248 = vector.shape_cast %247 : vector<1x128x128xbf16> to vector<128x128xbf16>
    %cst_253 = arith.constant dense<0.000000e+00> : vector<256x128xf32>
    %249 = tpu.matmul %246, %248, %cst_253 {dimension_numbers = #tpu.dot_dimension_numbers<[1], [0], [0], [1], [0, 0, 1, 1], [], []>} : vector<256x128xbf16>, vector<128x128xbf16>, vector<256x128xf32> -> vector<256x128xf32>
    %250 = arith.addf %245, %249 : vector<256x128xf32>
    %c322_254 = arith.constant 322 : index
    %c0_255 = arith.constant 0 : index
    %251 = vector.load %arg8[%c322_254, %c0_255] : memref<584x128xbf16, #tpu.memory_space<vmem>>, vector<256x128xbf16>
    %c8_256 = arith.constant 8 : index
    %c0_257 = arith.constant 0 : index
    %c0_258 = arith.constant 0 : index
    %252 = vector.load %arg4[%c8_256, %c0_257, %c0_258] : memref<9x128x128xbf16, #tpu.memory_space<vmem>>, vector<1x128x128xbf16>
    %253 = vector.shape_cast %252 : vector<1x128x128xbf16> to vector<128x128xbf16>
    %cst_259 = arith.constant dense<0.000000e+00> : vector<256x128xf32>
    %254 = tpu.matmul %251, %253, %cst_259 {dimension_numbers = #tpu.dot_dimension_numbers<[1], [0], [0], [1], [0, 0, 1, 1], [], []>} : vector<256x128xbf16>, vector<128x128xbf16>, vector<256x128xf32> -> vector<256x128xf32>
    %255 = arith.addf %250, %254 : vector<256x128xf32>
    %256 = vector.shape_cast %255 : vector<256x128xf32> to vector<4x2x32x128xf32>
    %257 = vector.extract_strided_slice %256 {offsets = [0, 0, 0, 0], sizes = [4, 1, 32, 128], strides = [1, 1, 1, 1]} : vector<4x2x32x128xf32> to vector<4x1x32x128xf32>
    %258 = vector.shape_cast %257 : vector<4x1x32x128xf32> to vector<4x32x128xf32>
    %259 = vector.extract_strided_slice %256 {offsets = [0, 1, 0, 0], sizes = [4, 1, 32, 128], strides = [1, 1, 1, 1]} : vector<4x2x32x128xf32> to vector<4x1x32x128xf32>
    %260 = vector.shape_cast %259 : vector<4x1x32x128xf32> to vector<4x32x128xf32>
    %261 = arith.maximumf %258, %260 : vector<4x32x128xf32>
    %262 = vector.shape_cast %261 : vector<4x32x128xf32> to vector<128x128xf32>
    %c128_260 = arith.constant 128 : index
    %c0_261 = arith.constant 0 : index
    %263 = vector.load %arg9[%c128_260, %c0_261] : memref<256x128xf32, #tpu.memory_space<vmem>>, vector<128x128xf32>
    tpu.vector_store %arg9[%c128_260, %c0_261], %262 {strides = array<i32>} : memref<256x128xf32, #tpu.memory_space<vmem>>, vector<128x128xf32>,
    %c0_262 = arith.constant 0 : index
    %c0_263 = arith.constant 0 : index
    %264 = tpu.strided_load %arg9[%c0_262, %c0_263] {strides = array<i32: 2, 1>} : memref<256x128xf32, #tpu.memory_space<vmem>>, vector<128x128xf32>
    %c1_264 = arith.constant 1 : index
    %c0_265 = arith.constant 0 : index
    %265 = tpu.strided_load %arg9[%c1_264, %c0_265] {strides = array<i32: 2, 1>} : memref<256x128xf32, #tpu.memory_space<vmem>>, vector<128x128xf32>
    %266 = arith.maximumf %264, %265 : vector<128x128xf32>
    %267 = vector.shape_cast %266 : vector<128x128xf32> to vector<8x16x128xf32>
    %268 = vector.extract_strided_slice %267 {offsets = [0, 0, 0], sizes = [8, 8, 8], strides = [1, 1, 1]} : vector<8x16x128xf32> to vector<8x8x8xf32>
    %cst_266 = arith.constant 0.000000e+00 : f32
    %269 = vector.broadcast %cst_266 : f32 to vector<8x8x8xf32>
    %270 = arith.cmpf oge, %268, %269 : vector<8x8x8xf32>
    %cst_267 = arith.constant 2.000000e-01 : f32
    %271 = vector.broadcast %cst_267 : f32 to vector<8x8x8xf32>
    %272 = arith.mulf %271, %268 : vector<8x8x8xf32>
    %273 = arith.select %270, %268, %272 : vector<8x8x8xi1>, vector<8x8x8xf32>
    %274 = arith.truncf %273 : vector<8x8x8xf32> to vector<8x8x8xbf16>
    %c0_268 = arith.constant 0 : index
    %c0_269 = arith.constant 0 : index
    %c0_270 = arith.constant 0 : index
    %c0_271 = arith.constant 0 : index
    %275 = vector.load %arg6[%c0_268, %c0_269, %c0_270, %c0_271] : memref<1x8x8x8xbf16, #tpu.memory_space<vmem>>, vector<1x8x8x8xbf16>
    %276 = vector.shape_cast %275 : vector<1x8x8x8xbf16> to vector<8x8x8xbf16>
    %277 = vector.shape_cast %274 : vector<8x8x8xbf16> to vector<1x8x8x8xbf16>
    tpu.vector_store %arg6[%c0_268, %c0_269, %c0_270, %c0_271], %277 {strides = array<i32>} : memref<1x8x8x8xbf16, #tpu.memory_space<vmem>>, vector<1x8x8x8xbf16>,
    return
  }
  func.func @transform_0(%arg0: i32) -> (i32, i32, i32) {
    %c0_i32 = arith.constant 0 : i32
    %c0_i32_0 = arith.constant 0 : i32
    %c0_i32_1 = arith.constant 0 : i32
    return %arg0, %c0_i32, %c0_i32_0 : i32, i32, i32
  }
  func.func @transform_1(%arg0: i32) -> (i32, i32, i32) {
    %c0_i32 = arith.constant 0 : i32
    %c0_i32_0 = arith.constant 0 : i32
    %c0_i32_1 = arith.constant 0 : i32
    %c0_i32_2 = arith.constant 0 : i32
    return %c0_i32, %c0_i32_0, %c0_i32_1 : i32, i32, i32
  }
  func.func @transform_2(%arg0: i32) -> (i32, i32) {
    %c0_i32 = arith.constant 0 : i32
    %c0_i32_0 = arith.constant 0 : i32
    %c0_i32_1 = arith.constant 0 : i32
    return %c0_i32, %c0_i32_0 : i32, i32
  }
  func.func @transform_3(%arg0: i32) -> (i32, i32, i32) {
    %c0_i32 = arith.constant 0 : i32
    %c0_i32_0 = arith.constant 0 : i32
    %c0_i32_1 = arith.constant 0 : i32
    %c0_i32_2 = arith.constant 0 : i32
    return %c0_i32, %c0_i32_0, %c0_i32_1 : i32, i32, i32
  }
  func.func @transform_4(%arg0: i32) -> (i32, i32) {
    %c0_i32 = arith.constant 0 : i32
    %c0_i32_0 = arith.constant 0 : i32
    %c0_i32_1 = arith.constant 0 : i32
    return %c0_i32, %c0_i32_0 : i32, i32
  }
  func.func @transform_5(%arg0: i32) -> (i32, i32, i32, i32) {
    %c0_i32 = arith.constant 0 : i32
    %c0_i32_0 = arith.constant 0 : i32
    %c0_i32_1 = arith.constant 0 : i32
    %c0_i32_2 = arith.constant 0 : i32
    return %arg0, %c0_i32, %c0_i32_0, %c0_i32_1 : i32, i32, i32, i32
  }
}

</mosaic_0001>

<bundles_post_ra>
// kernel: down_double.1
= control target key start
LH: loop header
LB: loop body
LE: loop exit
PB: predicated region body
PF: predicated region fallthrough
CT: control target
= control target key end

     0   :  { %s22407_s18 = smov 0   ;;  %s26365_s0 = inlined_call_operand.vmem [shape: bf16[2,576,4], index: 0, kind: input, shape index: {}]   ;;  %s26366_s1 = inlined_call_operand.vmem [shape: bf16[9,128,128], index: 1, kind: input, shape index: {}]   ;;  %s26367_s2 = inlined_call_operand.vmem [shape: f32[1,128], index: 2, kind: input, shape index: {}]   ;;  %s26368_s3 = inlined_call_operand.vmem [shape: bf16[9,128,128], index: 3, kind: input, shape index: {}]   ;;  %s26369_s4 = inlined_call_operand.vmem [shape: f32[1,128], index: 4, kind: input, shape index: {}]   ;;  %s26370_s5 = inlined_call_operand.vmem [shape: bf16[2,8,8,8], index: 5, kind: output, shape index: {}]  }
   0x1 LB: > { %s16493_s19 = sadd.s32 4294967295, %s22374_s18   ;;  %p16497_p0 = scmp.ge.s32.totalorder %s22374_s18, 1  ;;  %s22374_s18 = sphi %s22407_s18, %s15_s18  }
   0x2   : > { %p187_p1 = scmp.lt.s32.totalorder %s22374_s18, 3 }
   0x4   : > { %p188_p2 = pnand %p16497_p0, %p187_p1 }
   0x6   : > { %191 = sbr.rel (%p188_p2) target bundleno = 1798 (0x706), region = 40 }
   0xd   : > { %v22418_v0 = vld [vmem:[%s26366_s1] sm:$0xff]   ;;  %p22422_p3 = scmp.lt.s32.totalorder %s16493_s19, 1  ;;  %v22435_v2 = vld [vmem:[%s26366_s1 + $0x8] sm:$0xff]   ;;  %v26371_v3 = vmov 0   ;;  %v21602_v5 = vld [vmem:[%s26366_s1 + $0x10] sm:$0xff]   ;;  %vm371_vm0 = vcmask 27648  }
   0xe   : > { %v22429_v1 = vld [vmem:[%s26366_s1] sm:$0xff]   ;;  %18708 = vmatprep.subr.bf16.mxu0 %v22418_v0  ;;  %226 = vst [vmem:[#allocation2] sm:$0xf] %v26371_v3  ;;  %227 = vst [vmem:[#allocation2 + $0x4] sm:$0xf] %v26371_v3  ;;  %v21601_v4 = vld [vmem:[%s26366_s1 + $0x8] sm:$0xff]  }
   0xf   : > { %228 = vst [vmem:[#allocation2 + $0x8] sm:$0xf] %v26371_v3  ;;  %229 = vst [vmem:[#allocation2 + $0xc] sm:$0xf] %v26371_v3  ;;  %19140 = vmatprep.subr.bf16.mxu1 %v22429_v1  ;;  %18709 = vmatpush3.bf16.msra.mxu0 %v22418_v0  ;;  %v21603_v6 = vld [vmem:[%s26366_s1 + $0x10] sm:$0xff]   ;;  %s26594_s19 = smov (!%p22422_p3, %s16493_s19), 1 }
  0x10   : > { %230 = vst [vmem:[#allocation2 + $0x10] sm:$0xf] %v26371_v3  ;;  %231 = vst [vmem:[#allocation2 + $0x14] sm:$0xf] %v26371_v3  ;;  %19141 = vmatpush3.bf16.msra.mxu1 %v22429_v1  ;;  %18710 = vmatprep.subr.bf16.mxu0 %v22435_v2  ;;  %v21604_v7 = vld [vmem:[%s26366_s1 + $0x18] sm:$0xff]   ;;  %s21588_s12 = smul.u32 288, %s26594_s19 }
  0x11   : > { %232 = vst [vmem:[#allocation2 + $0x18] sm:$0xf] %v26371_v3  ;;  %233 = vst [vmem:[#allocation2 + $0x1c] sm:$0xf] %v26371_v3  ;;  %19142 = vmatprep.subr.bf16.mxu1 %v21601_v4  ;;  %v21605_v8 = vld [vmem:[%s26366_s1 + $0x18] sm:$0xff]   ;;  %v21606_v9 = vld [vmem:[%s26366_s1 + $0x20] sm:$0xff]  }
  0x12   : > { %234 = vst [vmem:[#allocation2 + $0x20] sm:$0xf] %v26371_v3  ;;  %235 = vst [vmem:[#allocation2 + $0x24] sm:$0xf] %v26371_v3  ;;  %v21607_v10 = vld [vmem:[%s26366_s1 + $0x20] sm:$0xff]   ;;  %s22554_s21 = scalar_lea.vmem %s26365_s0, %s21588_s12  ;;  %v21608_v11 = vld [vmem:[%s26366_s1 + $0x28] sm:$0xff]  }
  0x13   : > { %236 = vst [vmem:[#allocation2 + $0x28] sm:$0xf] %v26371_v3  ;;  %237 = vst [vmem:[#allocation2 + $0x2c] sm:$0xf] %v26371_v3  ;;  %18711 = vmatpush3.bf16.msra.mxu0 %v22435_v2  ;;  %v21609_v12 = vld [vmem:[%s26366_s1 + $0x28] sm:$0xff]   ;;  %v21610_v19 = vld [vmem:[%s26366_s1 + $0x30] sm:$0xff]  }
  0x14   : > { %238 = vst [vmem:[#allocation2 + $0x30] sm:$0xf] %v26371_v3  ;;  %239 = vst [vmem:[#allocation2 + $0x34] sm:$0xf] %v26371_v3  ;;  %19143 = vmatpush3.bf16.msra.mxu1 %v21601_v4  ;;  %18712 = vmatprep.subr.bf16.mxu0 %v21602_v5  ;;  %v299_v13 = vld [vmem:[%s22554_s21] sm:$0xf] }
  0x15   : > { %240 = vst [vmem:[#allocation2 + $0x38] sm:$0xf] %v26371_v3  ;;  %241 = vst [vmem:[#allocation2 + $0x3c] sm:$0xf] %v26371_v3  ;;  %19144 = vmatprep.subr.bf16.mxu1 %v21603_v6  ;;  %v300_v14 = vld [vmem:[%s22554_s21 + $0x4] sm:$0xf] }
  0x16   : > { %242 = vst [vmem:[#allocation2 + $0x40] sm:$0xf] %v26371_v3  ;;  %243 = vst [vmem:[#allocation2 + $0x44] sm:$0xf] %v26371_v3  ;;  %v331_v15 = vld [vmem:[%s22554_s21 + $0x80] sm:$0xf] }
  0x17   : > { %244 = vst [vmem:[#allocation2 + $0x48] sm:$0xf] %v26371_v3  ;;  %245 = vst [vmem:[#allocation2 + $0x4c] sm:$0xf] %v26371_v3  ;;  %18713 = vmatpush3.bf16.msra.mxu0 %v21602_v5  ;;  %v332_v16 = vld [vmem:[%s22554_s21 + $0x84] sm:$0xf] }
  0x18   : > { %246 = vst [vmem:[#allocation2 + $0x50] sm:$0xf] %v26371_v3  ;;  %247 = vst [vmem:[#allocation2 + $0x54] sm:$0xf] %v26371_v3  ;;  %19145 = vmatpush3.bf16.msra.mxu1 %v21603_v6  ;;  %18714 = vmatprep.subr.bf16.mxu0 %v21604_v7  ;;  %v301_v17 = vld [vmem:[%s22554_s21 + $0x8] sm:$0xf] }
  0x19   : > { %248 = vst [vmem:[#allocation2 + $0x58] sm:$0xf] %v26371_v3  ;;  %249 = vst [vmem:[#allocation2 + $0x5c] sm:$0xf] %v26371_v3  ;;  %19146 = vmatprep.subr.bf16.mxu1 %v21605_v8  ;;  %v302_v18 = vld [vmem:[%s22554_s21 + $0xc] sm:$0xf] }
  0x1a   : > { %250 = vst [vmem:[#allocation2 + $0x60] sm:$0xf] %v26371_v3  ;;  %251 = vst [vmem:[#allocation2 + $0x64] sm:$0xf] %v26371_v3  ;;  %v21611_v20 = vld [vmem:[%s26366_s1 + $0x30] sm:$0xff]   ;;  %v21612_v29 = vld [vmem:[%s26366_s1 + $0x38] sm:$0xff]  }
  0x1b   : > { %252 = vst [vmem:[#allocation2 + $0x68] sm:$0xf] %v26371_v3  ;;  %253 = vst [vmem:[#allocation2 + $0x6c] sm:$0xf] %v26371_v3  ;;  %18715 = vmatpush3.bf16.msra.mxu0 %v21604_v7  ;;  %v333_v21 = vld [vmem:[%s22554_s21 + $0x88] sm:$0xf] }
  0x1c   : > { %254 = vst [vmem:[#allocation2 + $0x70] sm:$0xf] %v26371_v3  ;;  %255 = vst [vmem:[#allocation2 + $0x74] sm:$0xf] %v26371_v3  ;;  %19147 = vmatpush3.bf16.msra.mxu1 %v21605_v8  ;;  %18716 = vmatprep.subr.bf16.mxu0 %v21606_v9  ;;  %v334_v22 = vld [vmem:[%s22554_s21 + $0x8c] sm:$0xf] }
  0x1d   : > { %256 = vst [vmem:[#allocation2 + $0x78] sm:$0xf] %v26371_v3  ;;  %257 = vst [vmem:[#allocation2 + $0x7c] sm:$0xf] %v26371_v3  ;;  %19148 = vmatprep.subr.bf16.mxu1 %v21607_v10  ;;  %v303_v23 = vld [vmem:[%s22554_s21 + $0x10] sm:$0xf] }
  0x1e   : > { %258 = vst [vmem:[#allocation2 + $0x80] sm:$0xf] %v26371_v3  ;;  %259 = vst [vmem:[#allocation2 + $0x84] sm:$0xf] %v26371_v3  ;;  %v304_v24 = vld [vmem:[%s22554_s21 + $0x14] sm:$0xf] }
  0x1f   : > { %260 = vst [vmem:[#allocation2 + $0x88] sm:$0xf] %v26371_v3  ;;  %261 = vst [vmem:[#allocation2 + $0x8c] sm:$0xf] %v26371_v3  ;;  %18717 = vmatpush3.bf16.msra.mxu0 %v21606_v9  ;;  %v335_v25 = vld [vmem:[%s22554_s21 + $0x90] sm:$0xf] }
  0x20   : > { %262 = vst [vmem:[#allocation2 + $0x90] sm:$0xf] %v26371_v3  ;;  %263 = vst [vmem:[#allocation2 + $0x94] sm:$0xf] %v26371_v3  ;;  %19149 = vmatpush3.bf16.msra.mxu1 %v21607_v10  ;;  %18718 = vmatprep.subr.bf16.mxu0 %v21608_v11  ;;  %v336_v26 = vld [vmem:[%s22554_s21 + $0x94] sm:$0xf] }
  0x21   : > { %264 = vst [vmem:[#allocation2 + $0x98] sm:$0xf] %v26371_v3  ;;  %265 = vst [vmem:[#allocation2 + $0x9c] sm:$0xf] %v26371_v3  ;;  %19150 = vmatprep.subr.bf16.mxu1 %v21609_v12  ;;  %v305_v27 = vld [vmem:[%s22554_s21 + $0x18] sm:$0xf] }
  0x22   : > { %266 = vst [vmem:[#allocation2 + $0xa0] sm:$0xf] %v26371_v3  ;;  %267 = vst [vmem:[#allocation2 + $0xa4] sm:$0xf] %v26371_v3  ;;  %v306_v28 = vld [vmem:[%s22554_s21 + $0x1c] sm:$0xf] }
  0x23   : > { %268 = vst [vmem:[#allocation2 + $0xa8] sm:$0xf] %v26371_v3  ;;  %269 = vst [vmem:[#allocation2 + $0xac] sm:$0xf] %v26371_v3  ;;  %v337_v30 = vld [vmem:[%s22554_s21 + $0x98] sm:$0xf]  ;;  %18719 = vmatpush3.bf16.msra.mxu0 %v21608_v11 }
  0x24   : > { %270 = vst [vmem:[#allocation2 + $0xb0] sm:$0xf] %v26371_v3  ;;  %271 = vst [vmem:[#allocation2 + $0xb4] sm:$0xf] %v26371_v3  ;;  %v21613_v31 = vld [vmem:[%s26366_s1 + $0x38] sm:$0xff]   ;;  %19151 = vmatpush3.bf16.msra.mxu1 %v21609_v12  ;;  %18720 = vmatprep.subr.bf16.mxu0 %v21610_v19  ;;  %v21617_v37 = vld [vmem:[%s26366_s1 + $0x40] sm:$0xff]  }
  0x25   : > { %272 = vst [vmem:[#allocation2 + $0xb8] sm:$0xf] %v26371_v3  ;;  %273 = vst [vmem:[#allocation2 + $0xbc] sm:$0xf] %v26371_v3  ;;  %v338_v32 = vld [vmem:[%s22554_s21 + $0x9c] sm:$0xf]  ;;  %19152 = vmatprep.subr.bf16.mxu1 %v21611_v20 }
  0x26   : > { %274 = vst [vmem:[#allocation2 + $0xc0] sm:$0xf] %v26371_v3  ;;  %275 = vst [vmem:[#allocation2 + $0xc4] sm:$0xf] %v26371_v3  ;;  %v307_v33 = vld [vmem:[%s22554_s21 + $0x20] sm:$0xf] }
  0x27   : > { %276 = vst [vmem:[#allocation2 + $0xc8] sm:$0xf] %v26371_v3  ;;  %277 = vst [vmem:[#allocation2 + $0xcc] sm:$0xf] %v26371_v3  ;;  %v308_v34 = vld [vmem:[%s22554_s21 + $0x24] sm:$0xf]  ;;  %18721 = vmatpush3.bf16.msra.mxu0 %v21610_v19 }
  0x28   : > { %278 = vst [vmem:[#allocation2 + $0xd0] sm:$0xf] %v26371_v3  ;;  %279 = vst [vmem:[#allocation2 + $0xd4] sm:$0xf] %v26371_v3  ;;  %19153 = vmatpush3.bf16.msra.mxu1 %v21611_v20  ;;  %18722 = vmatprep.subr.bf16.mxu0 %v21612_v29  ;;  %v21622_v41 = vld [vmem:[%s26366_s1 + $0x48] sm:$0xff]   ;;  %v21627_v47 = vld [vmem:[%s26366_s1 + $0x50] sm:$0xff]  }
  0x29   : > { %280 = vst [vmem:[#allocation2 + $0xd8] sm:$0xf] %v26371_v3  ;;  %281 = vst [vmem:[#allocation2 + $0xdc] sm:$0xf] %v26371_v3  ;;  %19154 = vmatprep.subr.bf16.mxu1 %v21613_v31  ;;  %v339_v43 = vld [vmem:[%s22554_s21 + $0xa0] sm:$0xf] }
  0x2a   : > { %282 = vst [vmem:[#allocation2 + $0xe0] sm:$0xf] %v26371_v3  ;;  %283 = vst [vmem:[#allocation2 + $0xe4] sm:$0xf] %v26371_v3  ;;  %v340_v44 = vld [vmem:[%s22554_s21 + $0xa4] sm:$0xf] }
  0x2b   : > { %284 = vst [vmem:[#allocation2 + $0xe8] sm:$0xf] %v26371_v3  ;;  %285 = vst [vmem:[#allocation2 + $0xec] sm:$0xf] %v26371_v3  ;;  %18723 = vmatpush3.bf16.msra.mxu0 %v21612_v29  ;;  %v309_v45 = vld [vmem:[%s22554_s21 + $0x28] sm:$0xf] }
  0x2c   : > { %286 = vst [vmem:[#allocation2 + $0xf0] sm:$0xf] %v26371_v3  ;;  %287 = vst [vmem:[#allocation2 + $0xf4] sm:$0xf] %v26371_v3  ;;  %19155 = vmatpush3.bf16.msra.mxu1 %v21613_v31  ;;  %18756 = vmatprep.subr.bf16.mxu0 %v21617_v37  ;;  %v310_v46 = vld [vmem:[%s22554_s21 + $0x2c] sm:$0xf] }
  0x2d   : > { %288 = vst [vmem:[#allocation2 + $0xf8] sm:$0xf] %v26371_v3  ;;  %289 = vst [vmem:[#allocation2 + $0xfc] sm:$0xf] %v26371_v3  ;;  %v341_v48 = vld [vmem:[%s22554_s21 + $0xa8] sm:$0xf] }
  0x2e   : > { %290 = vst [vmem:[#allocation2 + $0x100] sm:$0xf] %v26371_v3  ;;  %291 = vst [vmem:[#allocation2 + $0x104] sm:$0xf] %v26371_v3  ;;  %v342_v49 = vld [vmem:[%s22554_s21 + $0xac] sm:$0xf] }
  0x2f   : > { %292 = vst [vmem:[#allocation2 + $0x108] sm:$0xf] %v26371_v3  ;;  %293 = vst [vmem:[#allocation2 + $0x10c] sm:$0xf] %v26371_v3  ;;  %v311_v51 = vld [vmem:[%s22554_s21 + $0x30] sm:$0xf] }
  0x30   : > { %294 = vst [vmem:[#allocation2 + $0x110] sm:$0xf] %v26371_v3  ;;  %295 = vst [vmem:[#allocation2 + $0x114] sm:$0xf] %v26371_v3  ;;  %v312_v52 = vld [vmem:[%s22554_s21 + $0x34] sm:$0xf] }
  0x31   : > { %296 = vst [vmem:[#allocation2 + $0x118] sm:$0xf] %v26371_v3  ;;  %297 = vst [vmem:[#allocation2 + $0x11c] sm:$0xf] %v26371_v3  ;;  %v343_v53 = vld [vmem:[%s22554_s21 + $0xb0] sm:$0xf] }
  0x32   : > { %298 = vst [vmem:[#allocation2 + $0x120] sm:$0xf] %v26371_v3  ;;  %8870 = vst [vmem:[#allocation3] sm:$0xf] %v26371_v3  ;;  %v344_v55 = vld [vmem:[%s22554_s21 + $0xb4] sm:$0xf] }
  0x33   : > { %8871 = vst [vmem:[#allocation3 + $0x4] sm:$0xf] %v26371_v3  ;;  %8872 = vst [vmem:[#allocation3 + $0x8] sm:$0xf] %v26371_v3  ;;  %v313_v56 = vld [vmem:[%s22554_s21 + $0x38] sm:$0xf] }
  0x34   : > { %8873 = vst [vmem:[#allocation3 + $0xc] sm:$0xf] %v26371_v3  ;;  %8875 = vst [vmem:[#allocation3 + $0x114] sm:$0xf] %v26371_v3  ;;  %v314_v57 = vld [vmem:[%s22554_s21 + $0x3c] sm:$0xf] }
  0x35   : > { %8876 = vst [vmem:[#allocation3 + $0x118] sm:$0xf] %v26371_v3  ;;  %8877 = vst [vmem:[#allocation3 + $0x11c] sm:$0xf] %v26371_v3  ;;  %v21632_v59 = vld [vmem:[%s26366_s1 + $0x58] sm:$0xff]   ;;  %v21637_v10 = vld [vmem:[%s26366_s1 + $0x60] sm:$0xff]  }
  0x36   : > { %8878 = vst [vmem:[#allocation3 + $0x120] sm:$0xf] %v26371_v3  ;;  %372 = vst.msk [vmem:[#allocation2] sm:$0xf] %vm371_vm0, %v299_v13  ;;  %v345_v60 = vld [vmem:[%s22554_s21 + $0xb8] sm:$0xf] }
  0x37   : > { %373 = vst.msk [vmem:[#allocation2 + $0x4] sm:$0xf] %vm371_vm0, %v300_v14  ;;  %404 = vst.msk [vmem:[#allocation2 + $0x80] sm:$0xf] %vm371_vm0, %v331_v15  ;;  %v346_v61 = vld [vmem:[%s22554_s21 + $0xbc] sm:$0xf] }
  0x38   : > { %405 = vst.msk [vmem:[#allocation2 + $0x84] sm:$0xf] %vm371_vm0, %v332_v16  ;;  %374 = vst.msk [vmem:[#allocation2 + $0x8] sm:$0xf] %vm371_vm0, %v301_v17  ;;  %v315_v62 = vld [vmem:[%s22554_s21 + $0x40] sm:$0xf] }
  0x39   : > { %375 = vst.msk [vmem:[#allocation2 + $0xc] sm:$0xf] %vm371_vm0, %v302_v18  ;;  %406 = vst.msk [vmem:[#allocation2 + $0x88] sm:$0xf] %vm371_vm0, %v333_v21  ;;  %v316_v63 = vld [vmem:[%s22554_s21 + $0x44] sm:$0xf] }
  0x3a   : > { %407 = vst.msk [vmem:[#allocation2 + $0x8c] sm:$0xf] %vm371_vm0, %v334_v22  ;;  %376 = vst.msk [vmem:[#allocation2 + $0x10] sm:$0xf] %vm371_vm0, %v303_v23  ;;  %v347_v0 = vld [vmem:[%s22554_s21 + $0xc0] sm:$0xf] }
  0x3b   : > { %377 = vst.msk [vmem:[#allocation2 + $0x14] sm:$0xf] %vm371_vm0, %v304_v24  ;;  %408 = vst.msk [vmem:[#allocation2 + $0x90] sm:$0xf] %vm371_vm0, %v335_v25  ;;  %v348_v1 = vld [vmem:[%s22554_s21 + $0xc4] sm:$0xf] }
  0x3c   : > { %409 = vst.msk [vmem:[#allocation2 + $0x94] sm:$0xf] %vm371_vm0, %v336_v26  ;;  %378 = vst.msk [vmem:[#allocation2 + $0x18] sm:$0xf] %vm371_vm0, %v305_v27  ;;  %v317_v8 = vld [vmem:[%s22554_s21 + $0x48] sm:$0xf] }
  0x3d   : > { %379 = vst.msk [vmem:[#allocation2 + $0x1c] sm:$0xf] %vm371_vm0, %v306_v28  ;;  %410 = vst.msk [vmem:[#allocation2 + $0x98] sm:$0xf] %vm371_vm0, %v337_v30  ;;  %v318_v9 = vld [vmem:[%s22554_s21 + $0x4c] sm:$0xf] }
  0x3e   : > { %v21614_v35 = vld [vmem:[#allocation2] sm:$0xff]   ;;  %411 = vst.msk [vmem:[#allocation2 + $0x9c] sm:$0xf] %vm371_vm0, %v338_v32  ;;  %380 = vst.msk [vmem:[#allocation2 + $0x20] sm:$0xf] %vm371_vm0, %v307_v33  ;;  %v21640_v18 = vld [vmem:[%s26366_s1 + $0x48] sm:$0xff]  }
  0x3f   : > { %381 = vst.msk [vmem:[#allocation2 + $0x24] sm:$0xf] %vm371_vm0, %v308_v34  ;;  %v21615_v36 = vld [vmem:[#allocation2 + $0x80] sm:$0xff]   ;;  %18724 = vmatprep.mubr.bf16.mxu0 %v21614_v35  ;;  %412 = vst.msk [vmem:[#allocation2 + $0xa0] sm:$0xf] %vm371_vm0, %v339_v43  ;;  %v21644_v25 = vld [vmem:[%s26366_s1 + $0x68] sm:$0xff]  }
  0x40   : > { %19156 = vmatprep.mubr.bf16.mxu1 %v21615_v36  ;;  %v21616_v38 = vld [vmem:[#allocation2 + $0x8] sm:$0xff]   ;;  %413 = vst.msk [vmem:[#allocation2 + $0xa4] sm:$0xf] %vm371_vm0, %v340_v44  ;;  %382 = vst.msk [vmem:[#allocation2 + $0x28] sm:$0xf] %vm371_vm0, %v309_v45  ;;  %v21639_v16 = vld [vmem:[%s26366_s1 + $0x40] sm:$0xff]  }
  0x41   : > { %v21618_v39 = vld [vmem:[#allocation2 + $0x88] sm:$0xff]   ;;  %18725 = vmatmul.mubr.bf16.vlgmr.msra.gmra.mrb[0].mxu0 %v21616_v38  ;;  %383 = vst.msk [vmem:[#allocation2 + $0x2c] sm:$0xf] %vm371_vm0, %v310_v46  ;;  %414 = vst.msk [vmem:[#allocation2 + $0xa8] sm:$0xf] %vm371_vm0, %v341_v48  ;;  %19188 = vmatprep.subr.bf16.mxu1 %v21639_v16  ;;  %v21646_v29 = vld [vmem:[%s26366_s1 + $0x50] sm:$0xff]  }
  0x42   : > { %v21619_v40 = vld [vmem:[#allocation2 + $0x10] sm:$0xff]   ;;  %19157 = vmatmul.mubr.bf16.vlgmr.msra.gmra.mrb[0].mxu1 %v21618_v39  ;;  %18757 = vmatpush3.bf16.msra.mxu0 %v21617_v37  ;;  %415 = vst.msk [vmem:[#allocation2 + $0xac] sm:$0xf] %vm371_vm0, %v342_v49  ;;  %384 = vst.msk [vmem:[#allocation2 + $0x30] sm:$0xf] %vm371_vm0, %v311_v51  ;;  %v21647_v30 = vld [vmem:[%s26366_s1 + $0x58] sm:$0xff]  }
  0x43   : > { %v21620_v42 = vld [vmem:[#allocation2 + $0x90] sm:$0xff]   ;;  %18728 = vmatprep.mubr.bf16.mxu0 %v21619_v40  ;;  %18758 = vmatprep.subr.bf16.mxu0 %v21622_v41  ;;  %385 = vst.msk [vmem:[#allocation2 + $0x34] sm:$0xf] %vm371_vm0, %v312_v52  ;;  %416 = vst.msk [vmem:[#allocation2 + $0xb0] sm:$0xf] %vm371_vm0, %v343_v53  ;;  %v21653_v45 = vld [vmem:[%s26366_s1 + $0x60] sm:$0xff]  }
  0x44   : > { %19160 = vmatprep.mubr.bf16.mxu1 %v21620_v42  ;;  %v21621_v50 = vld [vmem:[#allocation2 + $0x18] sm:$0xff]   ;;  %417 = vst.msk [vmem:[#allocation2 + $0xb4] sm:$0xf] %vm371_vm0, %v344_v55  ;;  %386 = vst.msk [vmem:[#allocation2 + $0x38] sm:$0xf] %vm371_vm0, %v313_v56  ;;  %19189 = vmatpush3.bf16.msra.mxu1 %v21639_v16  ;;  %v21654_v46 = vld [vmem:[%s26366_s1 + $0x68] sm:$0xff]  }
  0x45   : > { %v21623_v54 = vld [vmem:[#allocation2 + $0x98] sm:$0xff]   ;;  %387 = vst.msk [vmem:[#allocation2 + $0x3c] sm:$0xf] %vm371_vm0, %v314_v57  ;;  %418 = vst.msk [vmem:[#allocation2 + $0xb8] sm:$0xf] %vm371_vm0, %v345_v60  ;;  %19190 = vmatprep.subr.bf16.mxu1 %v21640_v18  ;;  %vm1380_vm2 = vcmask 1046528  }
  0x46   : > { %v21624_v58 = vld [vmem:[#allocation2 + $0x20] sm:$0xff]   ;;  %18759 = vmatpush3.bf16.msra.mxu0 %v21622_v41  ;;  %419 = vst.msk [vmem:[#allocation2 + $0xbc] sm:$0xf] %vm371_vm0, %v346_v61  ;;  %388 = vst.msk [vmem:[#allocation2 + $0x40] sm:$0xf] %vm371_vm0, %v315_v62  ;;  %v21651_v41 = vld [vmem:[%s26366_s1 + $0x70] sm:$0xff]  }
  0x47   : > { %18760 = vmatprep.subr.bf16.mxu0 %v21627_v47  ;;  %v21625_v2 = vld [vmem:[#allocation2 + $0xa0] sm:$0xff]   ;;  %389 = vst.msk [vmem:[#allocation2 + $0x44] sm:$0xf] %vm371_vm0, %v316_v63  ;;  %420 = vst.msk [vmem:[#allocation2 + $0xc0] sm:$0xf] %vm371_vm0, %v347_v0  ;;  %v21658_v57 = vld [vmem:[%s26366_s1 + $0x78] sm:$0xff]  }
  0x48   : > { %421 = vst.msk [vmem:[#allocation2 + $0xc4] sm:$0xf] %vm371_vm0, %v348_v1  ;;  %v21626_v4 = vld [vmem:[#allocation2 + $0x28] sm:$0xff]   ;;  %390 = vst.msk [vmem:[#allocation2 + $0x48] sm:$0xf] %vm371_vm0, %v317_v8  ;;  %19191 = vmatpush3.bf16.msra.mxu1 %v21640_v18  ;;  %v21660_v62 = vld [vmem:[%s26366_s1 + $0x70] sm:$0xff]  }
  0x49   : > { %18729 = vmatmul.mubr.bf16.gmra.mrb[4].mxu0 %v21621_v50  ;;  %v21628_v5 = vld [vmem:[#allocation2 + $0xa8] sm:$0xff]   ;;  %391 = vst.msk [vmem:[#allocation2 + $0x4c] sm:$0xf] %vm371_vm0, %v318_v9  ;;  %v319_v19 = vld [vmem:[%s22554_s21 + $0x50] sm:$0xf]  ;;  %19192 = vmatprep.subr.bf16.mxu1 %v21646_v29  ;;  %v21661_v0 = vld [vmem:[%s26366_s1 + $0x78] sm:$0xff]  }
  0x4a   : > { %19161 = vmatmul.mubr.bf16.gmra.mrb[4].mxu1 %v21623_v54  ;;  %18732 = vmatprep.mubr.bf16.mxu0 %v21624_v58  ;;  %v21629_v6 = vld [vmem:[#allocation2 + $0x30] sm:$0xff]   ;;  %v349_v11 = vld [vmem:[%s22554_s21 + $0xc8] sm:$0xf]  ;;  %v350_v13 = vld [vmem:[%s22554_s21 + $0xcc] sm:$0xf]  ;;  %vm4624_vm3 = vcmask 1043456  }
  0x4b   : > { %19164 = vmatprep.mubr.bf16.mxu1 %v21625_v2  ;;  %18761 = vmatpush3.bf16.msra.mxu0 %v21627_v47  ;;  %v21630_v7 = vld [vmem:[#allocation2 + $0xb0] sm:$0xff]   ;;  %422 = vst.msk [vmem:[#allocation2 + $0xc8] sm:$0xf] %vm371_vm0, %v349_v11  ;;  %423 = vst.msk [vmem:[#allocation2 + $0xcc] sm:$0xf] %vm371_vm0, %v350_v13  ;;  %vm4661_vm12 = vcmask 1040384  }
  0x4c   : > { %18762 = vmatprep.subr.bf16.mxu0 %v21632_v59  ;;  %v21631_v12 = vld [vmem:[#allocation2 + $0x38] sm:$0xff]   ;;  %v320_v20 = vld [vmem:[%s22554_s21 + $0x54] sm:$0xf]  ;;  %392 = vst.msk [vmem:[#allocation2 + $0x50] sm:$0xf] %vm371_vm0, %v319_v19  ;;  %19193 = vmatpush3.bf16.msra.mxu1 %v21646_v29  ;;  %s17779_s22 = sshll.u32 %s26594_s19, 5 }
  0x4d   : > { %v21633_v14 = vld [vmem:[#allocation2 + $0xb8] sm:$0xff]   ;;  %393 = vst.msk [vmem:[#allocation2 + $0x54] sm:$0xf] %vm371_vm0, %v320_v20  ;;  %v351_v21 = vld [vmem:[%s22554_s21 + $0xd0] sm:$0xf]  ;;  %19194 = vmatprep.subr.bf16.mxu1 %v21647_v30  ;;  %s26318_s25 = scalar_lea.vmem %s26370_s5, %s17779_s22 }
  0x4e   : > { %v21634_v15 = vld [vmem:[#allocation2 + $0x40] sm:$0xff]   ;;  %v352_v22 = vld [vmem:[%s22554_s21 + $0xd4] sm:$0xf]  ;;  %v321_v23 = vld [vmem:[%s22554_s21 + $0x58] sm:$0xf] }
  0x4f   : > { %18763 = vmatpush3.bf16.msra.mxu0 %v21632_v59  ;;  %v21635_v17 = vld [vmem:[#allocation2 + $0xc0] sm:$0xff]   ;;  %424 = vst.msk [vmem:[#allocation2 + $0xd0] sm:$0xf] %vm371_vm0, %v351_v21  ;;  %425 = vst.msk [vmem:[#allocation2 + $0xd4] sm:$0xf] %vm371_vm0, %v352_v22  ;;  %v22764_v21 = vld [vmem:[#allocation2 + $0x10] sm:$0xff]  }
  0x50   : > { %18764 = vmatprep.subr.bf16.mxu0 %v21637_v10  ;;  %v322_v24 = vld [vmem:[%s22554_s21 + $0x5c] sm:$0xf]  ;;  %394 = vst.msk [vmem:[#allocation2 + $0x58] sm:$0xf] %vm371_vm0, %v321_v23  ;;  %v353_v26 = vld [vmem:[%s22554_s21 + $0xd8] sm:$0xf]  ;;  %19195 = vmatpush3.bf16.msra.mxu1 %v21647_v30 }
  0x51   : > { %18733 = vmatmul.mubr.bf16.gmra.mrb[8].mxu0 %v21626_v4  ;;  %395 = vst.msk [vmem:[#allocation2 + $0x5c] sm:$0xf] %vm371_vm0, %v322_v24  ;;  %v354_v27 = vld [vmem:[%s22554_s21 + $0xdc] sm:$0xf]  ;;  %426 = vst.msk [vmem:[#allocation2 + $0xd8] sm:$0xf] %vm371_vm0, %v353_v26  ;;  %19196 = vmatprep.subr.bf16.mxu1 %v21653_v45 }
  0x52   : > { %19165 = vmatmul.mubr.bf16.gmra.mrb[8].mxu1 %v21628_v5  ;;  %18736 = vmatprep.mubr.bf16.mxu0 %v21629_v6  ;;  %427 = vst.msk [vmem:[#allocation2 + $0xdc] sm:$0xf] %vm371_vm0, %v354_v27  ;;  %v21636_v28 = vld [vmem:[#allocation2 + $0x48] sm:$0xff]   ;;  %v323_v34 = vld [vmem:[%s22554_s21 + $0x60] sm:$0xf] }
  0x53   : > { %19168 = vmatprep.mubr.bf16.mxu1 %v21630_v7  ;;  %18765 = vmatpush3.bf16.msra.mxu0 %v21637_v10  ;;  %v21638_v31 = vld [vmem:[#allocation2 + $0xc8] sm:$0xff]   ;;  %v324_v35 = vld [vmem:[%s22554_s21 + $0x64] sm:$0xf]  ;;  %v355_v36 = vld [vmem:[%s22554_s21 + $0xe0] sm:$0xf] }
  0x54   : > { %18766 = vmatprep.subr.bf16.mxu0 %v21644_v25  ;;  %v21641_v32 = vld [vmem:[#allocation2 + $0x50] sm:$0xff]   ;;  %396 = vst.msk [vmem:[#allocation2 + $0x60] sm:$0xf] %vm371_vm0, %v323_v34  ;;  %397 = vst.msk [vmem:[#allocation2 + $0x64] sm:$0xf] %vm371_vm0, %v324_v35  ;;  %19197 = vmatpush3.bf16.msra.mxu1 %v21653_v45  ;;  %v22753_v5 = vld [vmem:[#allocation2 + $0x8] sm:$0xff]  }
  0x55   : > { %v356_v37 = vld [vmem:[%s22554_s21 + $0xe4] sm:$0xf]  ;;  %428 = vst.msk [vmem:[#allocation2 + $0xe0] sm:$0xf] %vm371_vm0, %v355_v36  ;;  %v325_v38 = vld [vmem:[%s22554_s21 + $0x68] sm:$0xf]  ;;  %19198 = vmatprep.subr.bf16.mxu1 %v21654_v46 }
  0x56   : > { %v21642_v33 = vld [vmem:[#allocation2 + $0xd0] sm:$0xff]   ;;  %v326_v39 = vld [vmem:[%s22554_s21 + $0x6c] sm:$0xf]  ;;  %429 = vst.msk [vmem:[#allocation2 + $0xe4] sm:$0xf] %vm371_vm0, %v356_v37  ;;  %v978_v11 = vshll.u32 %v22753_v5, 16 }
  0x57   : > { %18767 = vmatpush3.bf16.msra.mxu0 %v21644_v25  ;;  %398 = vst.msk [vmem:[#allocation2 + $0x68] sm:$0xf] %vm371_vm0, %v325_v38  ;;  %399 = vst.msk [vmem:[#allocation2 + $0x6c] sm:$0xf] %vm371_vm0, %v326_v39  ;;  %v357_v43 = vld [vmem:[%s22554_s21 + $0xe8] sm:$0xf] }
  0x58   : > { %v21643_v40 = vld [vmem:[#allocation2 + $0x58] sm:$0xff]   ;;  %v358_v44 = vld [vmem:[%s22554_s21 + $0xec] sm:$0xf]  ;;  %18768 = vmatprep.subr.bf16.mxu0 %v21651_v41  ;;  %430 = vst.msk [vmem:[#allocation2 + $0xe8] sm:$0xf] %vm371_vm0, %v357_v43  ;;  %19199 = vmatpush3.bf16.msra.mxu1 %v21654_v46  ;;  %v982_v13 = vshrl.u32 %v22753_v5, 16 }
  0x59   : > { %18737 = vmatmul.mubr.bf16.gmra.mrb[12].mxu0 %v21631_v12  ;;  %v21645_v42 = vld [vmem:[#allocation2 + $0xd8] sm:$0xff]   ;;  %431 = vst.msk [vmem:[#allocation2 + $0xec] sm:$0xf] %vm371_vm0, %v358_v44  ;;  %v327_v47 = vld [vmem:[%s22554_s21 + $0x70] sm:$0xf]  ;;  %19200 = vmatprep.subr.bf16.mxu1 %v21660_v62  ;;  %v980_v16 = vrot.slane %v978_v11, 1 }
  0x5a   : > { %19169 = vmatmul.mubr.bf16.gmra.mrb[12].mxu1 %v21633_v14  ;;  %18740 = vmatprep.mubr.bf16.mxu0 %v21634_v15  ;;  %v328_v48 = vld [vmem:[%s22554_s21 + $0x74] sm:$0xf]  ;;  %400 = vst.msk [vmem:[#allocation2 + $0x70] sm:$0xf] %vm371_vm0, %v327_v47  ;;  %v359_v49 = vld [vmem:[%s22554_s21 + $0xf0] sm:$0xf] }
  0x5b   : > { %19172 = vmatprep.mubr.bf16.mxu1 %v21635_v17  ;;  %18769 = vmatpush3.bf16.msra.mxu0 %v21651_v41  ;;  %v360_v50 = vld [vmem:[%s22554_s21 + $0xf4] sm:$0xf]  ;;  %401 = vst.msk [vmem:[#allocation2 + $0x74] sm:$0xf] %vm371_vm0, %v328_v48  ;;  %432 = vst.msk [vmem:[#allocation2 + $0xf0] sm:$0xf] %vm371_vm0, %v359_v49  ;;  %v984_v26 = vor.u32 %v982_v13, %v980_v16 }
  0x5c   : > { %433 = vst.msk [vmem:[#allocation2 + $0xf4] sm:$0xf] %vm371_vm0, %v360_v50  ;;  %v329_v51 = vld [vmem:[%s22554_s21 + $0x78] sm:$0xf]  ;;  %v330_v52 = vld [vmem:[%s22554_s21 + $0x7c] sm:$0xf]  ;;  %18770 = vmatprep.subr.bf16.mxu0 %v21658_v57  ;;  %19201 = vmatpush3.bf16.msra.mxu1 %v21660_v62 }
  0x5d   : > { %v21648_v53 = vld [vmem:[#allocation2 + $0x60] sm:$0xff]   ;;  %402 = vst.msk [vmem:[#allocation2 + $0x78] sm:$0xf] %vm371_vm0, %v329_v51  ;;  %403 = vst.msk [vmem:[#allocation2 + $0x7c] sm:$0xf] %vm371_vm0, %v330_v52  ;;  %19202 = vmatprep.subr.bf16.mxu1 %v21661_v0  ;;  %v22760_v14 = vld [vmem:[#allocation2 + $0x88] sm:$0xff]  }
  0x5e   : > { %v21649_v54 = vld [vmem:[#allocation2 + $0xe0] sm:$0xff]   ;;  %v21650_v55 = vld [vmem:[#allocation2 + $0x68] sm:$0xff]   ;;  %v361_v58 = vld [vmem:[%s22554_s21 + $0xf8] sm:$0xf]  ;;  %vm969_vm1 = vsmask.f32 7424 }
  0x5f   : > { %v362_v59 = vld [vmem:[%s22554_s21 + $0xfc] sm:$0xf]  ;;  %434 = vst.msk [vmem:[#allocation2 + $0xf8] sm:$0xf] %vm371_vm0, %v361_v58  ;;  %18771 = vmatpush3.bf16.msra.mxu0 %v21658_v57  ;;  %v836_v1 = vld [vmem:[#allocation2] sm:$0xf] }
  0x60   : > { %v21652_v56 = vld [vmem:[#allocation2 + $0xe8] sm:$0xff]   ;;  %435 = vst.msk [vmem:[#allocation2 + $0xfc] sm:$0xf] %vm371_vm0, %v362_v59  ;;  %v22750_v2 = vld [vmem:[#allocation2 + $0x4] sm:$0xf]  ;;  %19203 = vmatpush3.bf16.msra.mxu1 %v21661_v0  ;;  %v5198_v19 = vshll.u32 %v22760_v14, 16 }
  0x61   : > { %18741 = vmatmul.mubr.bf16.gmra.mrb[16].mxu0 %v21636_v28  ;;  %v16542_v4 = vcombine.low %v836_v1, %v22750_v2  ;;  %v5058_v6 = vld [vmem:[#allocation2 + $0x80] sm:$0xf]  ;;  %v22755_v7 = vld [vmem:[#allocation2 + $0x84] sm:$0xf]  ;;  %v5202_v20 = vshrl.u32 %v22760_v14, 16  ;;  %v22769_v25 = vld [vmem:[#allocation2 + $0x90] sm:$0xff]  }
  0x62   : > { %19173 = vmatmul.mubr.bf16.gmra.mrb[16].mxu1 %v21638_v31  ;;  %18744 = vmatprep.mubr.bf16.mxu0 %v21641_v32  ;;  %v21655_v60 = vld [vmem:[#allocation2 + $0x70] sm:$0xff]   ;;  %v16877_v12 = vcombine.low %v5058_v6, %v22755_v7  ;;  %v21667_v22 = vld [vmem:[%s26366_s1 + $0x80] sm:$0xff]   ;;  %v5200_v27 = vrot.slane %v5198_v19, 1  ;;  %v986_v28 = vshll.u32 %v22764_v21, 16  ;;  %v5206_v31 = vshll.u32 %v22769_v25, 16  ;;  %v22774_v32 = vld [vmem:[#allocation2 + $0x18] sm:$0xff]  }
  0x63   : > { %19176 = vmatprep.mubr.bf16.mxu1 %v21642_v33  ;;  %v21656_v61 = vld [vmem:[#allocation2 + $0xf0] sm:$0xff]   ;;  %v971_v9 = vshrl.u32 %v16542_v4, 16  ;;  %v973_v10 = vshll.u32 %v16542_v4, 16  ;;  %18804 = vmatprep.subr.bf16.mxu0 %v21667_v22  ;;  %v990_v35 = vshrl.u32 %v22764_v21, 16  ;;  %v994_v38 = vshll.u32 %v22774_v32, 16  ;;  %v22779_v39 = vld [vmem:[#allocation2 + $0x98] sm:$0xff]  }
  0x64   : > { %v21657_v63 = vld [vmem:[#allocation2 + $0x78] sm:$0xff]   ;;  %v5191_v17 = vshrl.u32 %v16877_v12, 16  ;;  %v5193_v18 = vshll.u32 %v16877_v12, 16  ;;  %v5204_v33 = vor.u32 %v5202_v20, %v5200_v27  ;;  %v988_v34 = vrot.slane %v986_v28, 1  ;;  %v22783_v43 = vld [vmem:[#allocation2 + $0x20] sm:$0xff]   ;;  %v21672_v49 = vld [vmem:[%s26366_s1 + $0x88] sm:$0xff]  }
  0x65   : > { %v975_v15 = vrot.slane %v973_v10, 1  ;;  %v5208_v37 = vrot.slane %v5206_v31, 1  ;;  %v998_v44 = vshrl.u32 %v22774_v32, 16  ;;  %v996_v46 = vrot.slane %v994_v38, 1  ;;  %v22791_v50 = vld [vmem:[#allocation2 + $0xa0] sm:$0xff]   ;;  %v22797_v58 = vld [vmem:[#allocation2 + $0x28] sm:$0xff]  }
  0x66   : > { %v5195_v24 = vrot.slane %v5193_v18, 1  ;;  %v989_v41 = vsel %vm969_vm1, %v984_v26, %v988_v34  ;;  %v5214_v48 = vshll.u32 %v22779_v39, 16  ;;  %v1002_v51 = vshll.u32 %v22783_v43, 16  ;;  %v22823_v28 = vld [vmem:[#allocation2 + $0xb8] sm:$0xff]  }
  0x67   : > { %v21659_v8 = vld [vmem:[#allocation2 + $0xf8] sm:$0xff]   ;;  %v976_v23 = vor.u32 %v975_v15, %v971_v9  ;;  %v5209_v45 = vsel %vm969_vm1, %v5204_v33, %v5208_v37  ;;  %v5218_v52 = vshrl.u32 %v22779_v39, 16  ;;  %v1006_v59 = vshrl.u32 %v22783_v43, 16  ;;  %v21677_v9 = vld [vmem:[%s26366_s1 + $0x90] sm:$0xff]  }
  0x68   : > { %v5196_v30 = vor.u32 %v5195_v24, %v5191_v17  ;;  %v1004_v57 = vrot.slane %v1002_v51, 1  ;;  %v5226_v0 = vshrl.u32 %v22791_v50, 16  ;;  %v1010_v4 = vshll.u32 %v22797_v58, 16  ;;  %v22814_v15 = vld [vmem:[#allocation2 + $0xb0] sm:$0xff]   ;;  %v22841_v51 = vld [vmem:[#allocation2 + $0x48] sm:$0xff]  }
  0x69   : > { %18745 = vmatmul.mubr.bf16.gmra.mrb[20].mxu0 %v21643_v40  ;;  %v981_v29 = vsel %vm969_vm1, %v976_v23, %v980_v16  ;;  %v5210_v40 = vshrl.u32 %v22769_v25, 16  ;;  %v1014_v13 = vshrl.u32 %v22797_v58, 16  ;;  %v5238_v20 = vshll.u32 %v22814_v15, 16 }
  0x6a   : > { %19177 = vmatmul.mubr.bf16.gmra.mrb[20].mxu1 %v21645_v42  ;;  %18748 = vmatprep.mubr.bf16.mxu0 %v21648_v53  ;;  %v5201_v36 = vsel %vm969_vm1, %v5196_v30, %v5200_v27  ;;  %v992_v42 = vor.u32 %v990_v35, %v988_v34  ;;  %v1008_v1 = vor.u32 %v1006_v59, %v1004_v57  ;;  %v1012_v16 = vrot.slane %v1010_v4, 1  ;;  %v22827_v34 = vld [vmem:[#allocation2 + $0x40] sm:$0xff]   ;;  %v22852_v4 = vld [vmem:[#allocation2 + $0x50] sm:$0xff]  }
  0x6b   : > { %19180 = vmatprep.mubr.bf16.mxu1 %v21649_v54  ;;  %v5212_v47 = vor.u32 %v5210_v40, %v5208_v37  ;;  %v5216_v54 = vrot.slane %v5214_v48, 1  ;;  %v5240_v30 = vrot.slane %v5238_v20, 1  ;;  %v5242_v35 = vshrl.u32 %v22814_v15, 16  ;;  %v21689_v20 = vld [vmem:[%s26366_s1 + $0x80] sm:$0xff]  }
  0x6c   : > { %v997_v53 = vsel %vm969_vm1, %v992_v42, %v996_v46  ;;  %v1013_v23 = vsel %vm969_vm1, %v1008_v1, %v1012_v16  ;;  %v1016_v26 = vor.u32 %v1014_v13, %v1012_v16  ;;  %v1042_v59 = vshll.u32 %v22841_v51, 16  ;;  %v22858_v13 = vld [vmem:[#allocation2 + $0xd0] sm:$0xff]   ;;  %19236 = vmatprep.subr.bf16.mxu1 %v21689_v20 }
  0x6d   : > { %v5220_v62 = vor.u32 %v5218_v52, %v5216_v54  ;;  %vm4301_vm7 = vsmask.f32 256  ;;  %vm4302_vm8 = vsmask.f32 4368  ;;  %vm4625_vm11 = vsmask.f32 7938 }
  0x6e   : > { %v1044_v1 = vrot.slane %v1042_v59, 1  ;;  %vm24406_vm13 = vmand %vm4624_vm3, %vm4625_vm11 }
  0x6f   : > { %vm24429_vm15 = vmor %vm4301_vm7, %vm4302_vm8 }
  0x71   : > { %18749 = vmatmul.mubr.bf16.gmra.mrb[24].mxu0 %v21650_v55  ;;  %v1000_v55 = vor.u32 %v998_v44, %v996_v46  ;;  %v1034_v44 = vshll.u32 %v22827_v34, 16  ;;  %v22836_v46 = vld [vmem:[#allocation2 + $0xc0] sm:$0xff]  }
  0x72   : > { %19181 = vmatmul.mubr.bf16.gmra.mrb[24].mxu1 %v21652_v56  ;;  %18752 = vmatprep.mubr.bf16.mxu0 %v21655_v60  ;;  %v5222_v56 = vshll.u32 %v22791_v50, 16  ;;  %v22800_v60 = vld [vmem:[#allocation2 + $0xa8] sm:$0xff]  }
  0x73   : > { %19184 = vmatprep.mubr.bf16.mxu1 %v21656_v61  ;;  %v5217_v61 = vsel %vm969_vm1, %v5212_v47, %v5216_v54  ;;  %v5230_v6 = vshll.u32 %v22800_v60, 16  ;;  %v1005_v10 = vsel %vm969_vm1, %v1000_v55, %v1004_v57  ;;  %v5234_v19 = vshrl.u32 %v22800_v60, 16 }
  0x74   : > { %v5254_v54 = vshll.u32 %v22836_v46, 16  ;;  %v1038_v55 = vshrl.u32 %v22827_v34, 16 }
  0x75   : > { %v5232_v17 = vrot.slane %v5230_v6, 1  ;;  %v1046_v6 = vshrl.u32 %v22841_v51, 16 }
  0x79   : > { %18753 = vmatmul.mubr.bf16.gmra.mrb[28].mxu0 %v21657_v63  ;;  %v5224_v63 = vrot.slane %v5222_v56, 1  ;;  %v22846_v56 = vld [vmem:[#allocation2 + $0xc8] sm:$0xff]  }
  0x7a   : > { %19185 = vmatmul.mubr.bf16.gmra.mrb[28].mxu1 %v21659_v8  ;;  %18772 = vmatprep.mubr.bf16.mxu0 %v981_v29  ;;  %v22806_v8 = vld [vmem:[#allocation2 + $0x30] sm:$0xff]   ;;  %v5236_v29 = vor.u32 %v5234_v19, %v5232_v17  ;;  %v5270_v19 = vshll.u32 %v22858_v13, 16 }
  0x7b   : > { %19204 = vmatprep.mubr.bf16.mxu1 %v5201_v36  ;;  %v5225_v11 = vsel %vm969_vm1, %v5220_v62, %v5224_v63  ;;  %v5228_v12 = vor.u32 %v5226_v0, %v5224_v63  ;;  %v1018_v18 = vshll.u32 %v22806_v8, 16  ;;  %v1022_v31 = vshrl.u32 %v22806_v8, 16 }
  0x7c   : > { %v5246_v36 = vshll.u32 %v22823_v28, 16  ;;  %v5241_v48 = vsel %vm969_vm1, %v5236_v29, %v5240_v30  ;;  %v5256_v62 = vrot.slane %v5254_v54, 1  ;;  %v5262_v63 = vshll.u32 %v22846_v56, 16  ;;  %v22888_v54 = vld [vmem:[#allocation2 + $0xe0] sm:$0xff]  }
  0x7d   : > { %v5233_v24 = vsel %vm969_vm1, %v5228_v12, %v5232_v17  ;;  %v1020_v27 = vrot.slane %v1018_v18, 1  ;;  %v1050_v17 = vshll.u32 %v22852_v4, 16  ;;  %v5266_v18 = vshrl.u32 %v22846_v56, 16 }
  0x7e   : > { %v5248_v42 = vrot.slane %v5246_v36, 1  ;;  %v5264_v12 = vrot.slane %v5262_v63, 1 }
  0x7f   : > { %v1024_v37 = vor.u32 %v1022_v31, %v1020_v27  ;;  %v1021_v47 = vsel %vm969_vm1, %v1016_v26, %v1020_v27  ;;  %v21690_v26 = vld [vmem:[%s26366_s1 + $0x88] sm:$0xff]   ;;  %v22872_v31 = vld [vmem:[#allocation2 + $0x58] sm:$0xff]  }
  0x81   : > { %18773 = vmatmul.mubr.bf16.vlgmr.msra.gmra.mrb[0].mxu0 %v989_v41  ;;  %v5244_v41 = vor.u32 %v5242_v35, %v5240_v30  ;;  %v5272_v30 = vrot.slane %v5270_v19, 1  ;;  %v22875_v35 = vld [vmem:[#allocation2 + $0xd8] sm:$0xff]   ;;  %v22909_v19 = vld [vmem:[#allocation2 + $0x70] sm:$0xff]  }
  0x82   : > { %19205 = vmatmul.mubr.bf16.vlgmr.msra.gmra.mrb[0].mxu1 %v5209_v45  ;;  %18805 = vmatpush3.bf16.msra.mxu0 %v21667_v22  ;;  %v22819_v22 = vld [vmem:[#allocation2 + $0x38] sm:$0xff]   ;;  %v5282_v59 = vshrl.u32 %v22875_v35, 16 }
  0x83   : > { %18776 = vmatprep.mubr.bf16.mxu0 %v997_v53  ;;  %18806 = vmatprep.subr.bf16.mxu0 %v21672_v49  ;;  %v1026_v33 = vshll.u32 %v22819_v22, 16  ;;  %v1030_v40 = vshrl.u32 %v22819_v22, 16  ;;  %v21682_v45 = vld [vmem:[%s26366_s1 + $0x98] sm:$0xff]   ;;  %v1036_v53 = vrot.slane %v1034_v44, 1  ;;  %v5249_v57 = vsel %vm969_vm1, %v5244_v41, %v5248_v42 }
  0x84   : > { %19208 = vmatprep.mubr.bf16.mxu1 %v5217_v61  ;;  %v5258_v61 = vshrl.u32 %v22836_v46, 16  ;;  %19237 = vmatpush3.bf16.msra.mxu1 %v21689_v20  ;;  %v5278_v41 = vshll.u32 %v22875_v35, 16  ;;  %v1062_v44 = vshrl.u32 %v22872_v31, 16 }
  0x85   : > { %v1028_v38 = vrot.slane %v1026_v33, 1  ;;  %v1054_v33 = vshrl.u32 %v22852_v4, 16  ;;  %19238 = vmatprep.subr.bf16.mxu1 %v21690_v26 }
  0x86   : > { %18807 = vmatpush3.bf16.msra.mxu0 %v21672_v49  ;;  %v5250_v49 = vshrl.u32 %v22823_v28, 16  ;;  %v5260_v16 = vor.u32 %v5258_v61, %v5256_v62  ;;  %v5286_v61 = vshll.u32 %v22888_v54, 16 }
  0x87   : > { %18808 = vmatprep.subr.bf16.mxu0 %v21677_v9  ;;  %v1029_v52 = vsel %vm969_vm1, %v1024_v37, %v1028_v38  ;;  %v1032_v0 = vor.u32 %v1030_v40, %v1028_v38  ;;  %v5274_v37 = vshrl.u32 %v22858_v13, 16  ;;  %v22879_v38 = vld [vmem:[#allocation2 + $0x60] sm:$0xff]   ;;  %v1058_v40 = vshll.u32 %v22872_v31, 16 }
  0x88   : > { %v5265_v36 = vsel %vm969_vm1, %v5260_v16, %v5264_v12  ;;  %19239 = vmatpush3.bf16.msra.mxu1 %v21690_v26  ;;  %v22905_v16 = vld [vmem:[#allocation2 + $0xe8] sm:$0xff]  }
  0x89   : > { %18777 = vmatmul.mubr.bf16.gmra.mrb[4].mxu0 %v1005_v10  ;;  %v5252_v10 = vor.u32 %v5250_v49, %v5248_v42  ;;  %v1048_v42 = vor.u32 %v1046_v6, %v1044_v1  ;;  %v1060_v49 = vrot.slane %v1058_v40, 1  ;;  %v5294_v26 = vshll.u32 %v22905_v16, 16 }
  0x8a   : > { %19209 = vmatmul.mubr.bf16.gmra.mrb[4].mxu1 %v5225_v11  ;;  %18780 = vmatprep.mubr.bf16.mxu0 %v1013_v23  ;;  %v1040_v11 = vor.u32 %v1038_v55, %v1036_v53  ;;  %v1037_v23 = vsel %vm969_vm1, %v1032_v0, %v1036_v53  ;;  %v21694_v53 = vld [vmem:[%s26366_s1 + $0xa8] sm:$0xff]   ;;  %v5276_v55 = vor.u32 %v5274_v37, %v5272_v30  ;;  %v21697_v0 = vld [vmem:[%s26366_s1 + $0x98] sm:$0xff]  }
  0x8b   : > { %19212 = vmatprep.mubr.bf16.mxu1 %v5233_v24  ;;  %18809 = vmatpush3.bf16.msra.mxu0 %v21677_v9  ;;  %v21687_v9 = vld [vmem:[%s26366_s1 + $0xa0] sm:$0xff]   ;;  %v1052_v24 = vrot.slane %v1050_v17, 1  ;;  %v5257_v27 = vsel %vm969_vm1, %v5252_v10, %v5256_v62  ;;  %v21696_v62 = vld [vmem:[%s26366_s1 + $0x90] sm:$0xff]   ;;  %v5288_v10 = vrot.slane %v5286_v61, 1  ;;  %v5290_v17 = vshrl.u32 %v22888_v54, 16  ;;  %v22933_v61 = vld [vmem:[#allocation2 + $0xf8] sm:$0xff]  }
  0x8c   : > { %18810 = vmatprep.subr.bf16.mxu0 %v21682_v45  ;;  %v1045_v29 = vsel %vm969_vm1, %v1040_v11, %v1044_v1  ;;  %v1070_v1 = vshrl.u32 %v22879_v38, 16  ;;  %19240 = vmatprep.subr.bf16.mxu1 %v21696_v62  ;;  %v22902_v11 = vld [vmem:[#allocation2 + $0x68] sm:$0xff]   ;;  %v5296_v40 = vrot.slane %v5294_v26, 1  ;;  %v363_v26 = vld [vmem:[%s22554_s21 + $0x100] sm:$0xf] }
  0x8d   : > { %v1053_v63 = vsel %vm969_vm1, %v1048_v42, %v1052_v24  ;;  %19241 = vmatpush3.bf16.msra.mxu1 %v21696_v62  ;;  %v1078_v20 = vshrl.u32 %v22902_v11, 16  ;;  %v5292_v37 = vor.u32 %v5290_v17, %v5288_v10  ;;  %v21708_v17 = vld [vmem:[%s26366_s1 + $0xb8] sm:$0xff]   ;;  %436 = vst.msk [vmem:[#allocation2 + $0x100] sm:$0xf] %vm371_vm0, %v363_v26  ;;  %v5610_v26 = vrot.slane %v22814_v15, 1 }
  0x8e   : > { %19242 = vmatprep.subr.bf16.mxu1 %v21697_v0 }
  0x8f   : > { %18811 = vmatpush3.bf16.msra.mxu0 %v21682_v45  ;;  %v1066_v45 = vshll.u32 %v22879_v38, 16  ;;  %v5297_v62 = vsel %vm969_vm1, %v5292_v37, %v5296_v40 }
  0x90   : > { %18812 = vmatprep.subr.bf16.mxu0 %v21687_v9 }
  0x91   : > { %18781 = vmatmul.mubr.bf16.gmra.mrb[8].mxu0 %v1021_v47  ;;  %v5268_v47 = vor.u32 %v5266_v18, %v5264_v12  ;;  %v1074_v18 = vshll.u32 %v22902_v11, 16  ;;  %19243 = vmatpush3.bf16.msra.mxu1 %v21697_v0 }
  0x92   : > { %19213 = vmatmul.mubr.bf16.gmra.mrb[8].mxu1 %v5241_v48  ;;  %18784 = vmatprep.mubr.bf16.mxu0 %v1029_v52  ;;  %v1056_v48 = vor.u32 %v1054_v33, %v1052_v24  ;;  %v5280_v52 = vrot.slane %v5278_v41, 1  ;;  %v1064_v24 = vor.u32 %v1062_v44, %v1060_v49  ;;  %v5298_v41 = vshrl.u32 %v22905_v16, 16  ;;  %v21703_v44 = vld [vmem:[%s26366_s1 + $0xa0] sm:$0xff]  }
  0x93   : > { %19216 = vmatprep.mubr.bf16.mxu1 %v5249_v57  ;;  %18813 = vmatpush3.bf16.msra.mxu0 %v21687_v9  ;;  %v1068_v57 = vrot.slane %v1066_v45, 1  ;;  %v5273_v6 = vsel %vm969_vm1, %v5268_v47, %v5272_v30  ;;  %v1076_v33 = vrot.slane %v1074_v18, 1  ;;  %v21704_v47 = vld [vmem:[%s26366_s1 + $0xa8] sm:$0xff]  }
  0x94   : > { %18814 = vmatprep.subr.bf16.mxu0 %v21694_v53  ;;  %v1061_v9 = vsel %vm969_vm1, %v1056_v48, %v1060_v49  ;;  %v5281_v12 = vsel %vm969_vm1, %v5276_v55, %v5280_v52  ;;  %19244 = vmatprep.subr.bf16.mxu1 %v21703_v44 }
  0x95   : > { %v1072_v30 = vor.u32 %v1070_v1, %v1068_v57  ;;  %v1069_v48 = vsel %vm969_vm1, %v1064_v24, %v1068_v57  ;;  %19245 = vmatpush3.bf16.msra.mxu1 %v21703_v44  ;;  %v5300_v1 = vor.u32 %v5298_v41, %v5296_v40  ;;  %v5314_v41 = vshrl.u32 %v22933_v61, 16  ;;  %v1359_v44 = vld [vmem:[#allocation2] sm:$0xe] }
  0x96   : > { %19246 = vmatprep.subr.bf16.mxu1 %v21704_v47 }
  0x97   : > { %18815 = vmatpush3.bf16.msra.mxu0 %v21694_v53  ;;  %v1077_v55 = vsel %vm969_vm1, %v1072_v30, %v1076_v33  ;;  %v21710_v30 = vld [vmem:[%s26366_s1 + $0xb0] sm:$0xff]  }
  0x99   : > { %18785 = vmatmul.mubr.bf16.gmra.mrb[12].mxu0 %v1037_v23  ;;  %v21701_v23 = vld [vmem:[%s26366_s1 + $0xb0] sm:$0xff]   ;;  %19247 = vmatpush3.bf16.msra.mxu1 %v21704_v47 }
  0x9a   : > { %19217 = vmatmul.mubr.bf16.gmra.mrb[12].mxu1 %v5257_v27  ;;  %18788 = vmatprep.mubr.bf16.mxu0 %v1045_v29  ;;  %v22916_v27 = vld [vmem:[#allocation2 + $0xf0] sm:$0xff]   ;;  %v5284_v29 = vor.u32 %v5282_v59, %v5280_v52  ;;  %v22928_v52 = vld [vmem:[#allocation2 + $0x78] sm:$0xff]   ;;  %v1086_v59 = vshrl.u32 %v22909_v19, 16 }
  0x9b   : > { %19220 = vmatprep.mubr.bf16.mxu1 %v5265_v36  ;;  %v1082_v36 = vshll.u32 %v22909_v19, 16  ;;  %18816 = vmatprep.subr.bf16.mxu0 %v21701_v23  ;;  %v5302_v42 = vshll.u32 %v22916_v27, 16  ;;  %v1090_v0 = vshll.u32 %v22928_v52, 16  ;;  %v5306_v57 = vshrl.u32 %v22916_v27, 16 }
  0x9c   : > { %18817 = vmatpush3.bf16.msra.mxu0 %v21701_v23  ;;  %v5289_v53 = vsel %vm969_vm1, %v5284_v29, %v5288_v10  ;;  %v22939_v10 = vld [vmem:[#allocation2 + $0x80] ss:$0 sps:$4 sm:$0x11]   ;;  %19248 = vmatprep.subr.bf16.mxu1 %v21710_v30 }
  0x9d   : > { %v1084_v45 = vrot.slane %v1082_v36, 1  ;;  %v5304_v49 = vrot.slane %v5302_v42, 1  ;;  %v1092_v18 = vrot.slane %v1090_v0, 1  ;;  %v1098_v24 = vshll.u32 %v22939_v10, 16  ;;  %18818 = vmatprep.subr.bf16.mxu0 %v21708_v17  ;;  %v21711_v42 = vld [vmem:[%s26366_s1 + $0xb8] sm:$0xff]   ;;  %19249 = vmatpush3.bf16.msra.mxu1 %v21710_v30 }
  0x9e   : > { %19250 = vmatprep.subr.bf16.mxu1 %v21711_v42 }
  0x9f   : > { %v5305_v36 = vsel %vm969_vm1, %v5300_v1, %v5304_v49  ;;  %v1100_v47 = vrot.slane %v1098_v24, 1 }
  0xa0   : > { %18819 = vmatpush3.bf16.msra.mxu0 %v21708_v17 }
  0xa1   : > { %18789 = vmatmul.mubr.bf16.gmra.mrb[16].mxu0 %v1053_v63  ;;  %v1080_v63 = vor.u32 %v1078_v20, %v1076_v33  ;;  %v5308_v20 = vor.u32 %v5306_v57, %v5304_v49  ;;  %v1382_v33 = vrot.slane %v22753_v5, 1  ;;  %v1384_v5 = vrot.slane %v22764_v21, 1  ;;  %19251 = vmatpush3.bf16.msra.mxu1 %v21711_v42 }
  0xa2   : > { %19221 = vmatmul.mubr.bf16.gmra.mrb[16].mxu1 %v5273_v6  ;;  %18792 = vmatprep.mubr.bf16.mxu0 %v1061_v9  ;;  %v1088_v6 = vor.u32 %v1086_v59, %v1084_v45  ;;  %v5310_v9 = vshll.u32 %v22933_v61, 16  ;;  %v22967_v59 = vld [vmem:[%s26366_s1 + $0xc0] sm:$0xff]   ;;  %v5604_v21 = vrot.slane %v22779_v39, 1  ;;  %v1398_v42 = vrot.slane %v22841_v51, 1 }
  0xa3   : > { %19224 = vmatprep.mubr.bf16.mxu1 %v5281_v12  ;;  %v1094_v12 = vshrl.u32 %v22928_v52, 16  ;;  %v1085_v29 = vsel %vm969_vm1, %v1080_v63, %v1084_v45  ;;  %v1386_v63 = vrot.slane %v22774_v32, 1  ;;  %18852 = vmatprep.subr.bf16.mxu0 %v22967_v59  ;;  %v5620_v51 = vrot.slane %v22875_v35, 1 }
  0xa4   : > { %v5312_v23 = vrot.slane %v5310_v9, 1  ;;  %v1093_v37 = vsel %vm969_vm1, %v1088_v6, %v1092_v18  ;;  %v5606_v9 = vrot.slane %v22791_v50, 1  ;;  %v5622_v35 = vrot.slane %v22888_v54, 1 }
  0xa5   : > { %v1096_v40 = vor.u32 %v1094_v12, %v1092_v18  ;;  %v22977_v6 = vsel %vm1380_vm2, %v1384_v5, %v1386_v63  ;;  %v22991_v18 = vld [vmem:[#allocation2 + $0x100] ss:$0 sps:$4 sm:$0x11]  }
  0xa6   : > { %v5313_v45 = vsel %vm969_vm1, %v5308_v20, %v5312_v23  ;;  %v5316_v57 = vor.u32 %v5314_v41, %v5312_v23  ;;  %v22998_v20 = vsel %vm1380_vm2, %v5604_v21, %v5606_v9  ;;  %v5608_v23 = vrot.slane %v22800_v60, 1  ;;  %v21717_v60 = vld [vmem:[%s26366_s1 + $0xc0] sm:$0xff]  }
  0xa7   : > { %v1101_v17 = vsel %vm969_vm1, %v1096_v40, %v1100_v47  ;;  %v5318_v30 = vshll.u32 %v22991_v18, 16  ;;  %19284 = vmatprep.subr.bf16.mxu1 %v21717_v60  ;;  %v1400_v47 = vrot.slane %v22852_v4, 1 }
  0xa9   : > { %18793 = vmatmul.mubr.bf16.gmra.mrb[20].mxu0 %v1069_v48  ;;  %v16583_v48 = vcombine.low %v1359_v44, %v22750_v2  ;;  %v22972_v2 = vsel %vm1380_vm2, %v1382_v33, %v1384_v5  ;;  %v5320_v41 = vrot.slane %v5318_v30, 1  ;;  %v1402_v5 = vrot.slane %v22872_v31, 1  ;;  %v364_v30 = vld [vmem:[%s22554_s21 + $0x104] sm:$0xf] }
  0xaa   : > { %19225 = vmatmul.mubr.bf16.gmra.mrb[20].mxu1 %v5289_v53  ;;  %18796 = vmatprep.mubr.bf16.mxu0 %v1077_v55  ;;  %v5579_v53 = vld [vmem:[#allocation2 + $0x80] sm:$0xe]  ;;  %v5600_v55 = vrot.slane %v22760_v14, 1  ;;  %v1412_v14 = vrot.slane %v22939_v10, 1  ;;  %437 = vst.msk [vmem:[#allocation2 + $0x104] sm:$0xf] %vm371_vm0, %v364_v30 }
  0xab   : > { %19228 = vmatprep.mubr.bf16.mxu1 %v5297_v62  ;;  %v16918_v49 = vcombine.low %v5579_v53, %v22755_v7  ;;  %v5602_v62 = vrot.slane %v22769_v25, 1  ;;  %v1381_v0 = vrot.slane %v16583_v48, 1  ;;  %v1388_v7 = vrot.slane %v22783_v43, 1 }
  0xac   : > { %v1390_v43 = vrot.slane %v22797_v58, 1  ;;  %v1392_v58 = vrot.slane %v22806_v8, 1  ;;  %v23020_v8 = vsel %vm1380_vm2, %v5608_v23, %v5610_v26  ;;  %v5618_v48 = vrot.slane %v22858_v13, 1 }
  0xad   : > { %v5599_v1 = vrot.slane %v16918_v49, 1  ;;  %v1383_v32 = vsel %vm1380_vm2, %v1381_v0, %v1382_v33  ;;  %v22984_v12 = vsel %vm1380_vm2, %v5602_v62, %v5604_v21  ;;  %v22987_v39 = vsel %vm1380_vm2, %v1386_v63, %v1388_v7 }
  0xae   : > { %v23002_v24 = vsel %vm1380_vm2, %v1388_v7, %v1390_v43  ;;  %v23009_v33 = vsel %vm1380_vm2, %v5606_v9, %v5608_v23  ;;  %v23017_v40 = vsel %vm1380_vm2, %v1390_v43, %v1392_v58  ;;  %v1404_v13 = vrot.slane %v22879_v38, 1  ;;  %v21726_v23 = vld [vmem:[%s26366_s1 + $0xf0] sm:$0xff]  }
  0xaf   : > { %v5601_v50 = vsel %vm1380_vm2, %v5599_v1, %v5600_v55  ;;  %v23056_v63 = vsel %vm1380_vm2, %v1400_v47, %v1402_v5  ;;  %v23059_v31 = vsel %vm1380_vm2, %v5618_v48, %v5620_v51  ;;  %v1406_v21 = vrot.slane %v22902_v11, 1 }
  0xb0   : > { %v23063_v0 = vsel %vm1380_vm2, %v1402_v5, %v1404_v13  ;;  %v5624_v7 = vrot.slane %v22905_v16, 1  ;;  %v23069_v38 = vsel %vm1380_vm2, %v5620_v51, %v5622_v35  ;;  %v5626_v1 = vrot.slane %v22916_v27, 1  ;;  %v21740_v5 = vld [vmem:[#allocation2 + $0x38] sm:$0xff]  }
  0xb1   : > { %18797 = vmatmul.mubr.bf16.gmra.mrb[24].mxu0 %v1085_v29  ;;  %v1394_v29 = vrot.slane %v22819_v22, 1  ;;  %v5614_v22 = vrot.slane %v22836_v46, 1  ;;  %v5321_v46 = vsel %vm969_vm1, %v5316_v57, %v5320_v41  ;;  %v1408_v57 = vrot.slane %v22909_v19, 1  ;;  %v21736_v41 = vld [vmem:[%s26366_s1 + $0x108] sm:$0xff]   ;;  %v21742_v51 = vld [vmem:[#allocation2 + $0xb8] sm:$0xff]  }
  0xb2   : > { %19229 = vmatmul.mubr.bf16.gmra.mrb[24].mxu1 %v5305_v36  ;;  %18800 = vmatprep.mubr.bf16.mxu0 %v1093_v37  ;;  %v5612_v36 = vrot.slane %v22823_v28, 1  ;;  %v1396_v37 = vrot.slane %v22827_v34, 1  ;;  %v5603_v54 = vsel %vm1380_vm2, %v5600_v55, %v5602_v62  ;;  %v23078_v9 = vsel %vm1380_vm2, %v1404_v13, %v1406_v21  ;;  %v21713_v55 = vld [vmem:[%s26366_s1 + $0xc8] sm:$0xff]   ;;  %v21744_v13 = vld [vmem:[#allocation2 + $0xc0] sm:$0xff]  }
  0xb3   : > { %19232 = vmatprep.mubr.bf16.mxu1 %v5313_v45  ;;  %v23023_v15 = vsel %vm1380_vm2, %v1392_v58, %v1394_v29  ;;  %v5616_v45 = vrot.slane %v22846_v56, 1  ;;  %v23049_v56 = vsel %vm1380_vm2, %v1398_v42, %v1400_v47  ;;  %v23081_v11 = vsel %vm1380_vm2, %v5622_v35, %v5624_v7  ;;  %v21727_v58 = vld [vmem:[%s26366_s1 + $0xf8] sm:$0xff]   ;;  %v21738_v47 = vld [vmem:[#allocation2 + $0x30] sm:$0xff]   ;;  %v21758_v35 = vld [vmem:[%s26366_s1 + $0x128] sm:$0xff]  }
  0xb4   : > { %v23027_v28 = vsel %vm1380_vm2, %v5610_v26, %v5612_v36  ;;  %v23030_v34 = vsel %vm1380_vm2, %v1394_v29, %v1396_v37  ;;  %v23034_v44 = vsel %vm1380_vm2, %v5612_v36, %v5614_v22  ;;  %v23041_v53 = vsel %vm1380_vm2, %v1396_v37, %v1398_v42  ;;  %v21731_v26 = vld [vmem:[%s26366_s1 + $0x100] sm:$0xff]   ;;  %v366_v36 = vld [vmem:[%s22554_s21 + $0x10c] sm:$0xf]  ;;  %v21728_v37 = vld [vmem:[#allocation2 + $0x10] sm:$0xff]  }
  0xb5   : > { %v23046_v49 = vsel %vm1380_vm2, %v5614_v22, %v5616_v45  ;;  %v23052_v4 = vsel %vm1380_vm2, %v5616_v45, %v5618_v48  ;;  %v23084_v16 = vsel %vm1380_vm2, %v1406_v21, %v1408_v57  ;;  %v23087_v19 = vsel %vm1380_vm2, %v5624_v7, %v5626_v1  ;;  %v21753_v29 = vld [vmem:[%s26366_s1 + $0x100] sm:$0xff]   ;;  %439 = vst.msk [vmem:[#allocation2 + $0x10c] sm:$0xf] %vm371_vm0, %v366_v36  ;;  %v21735_v42 = vld [vmem:[#allocation2 + $0x28] sm:$0xff]   ;;  %v21760_v45 = vld [vmem:[%s26366_s1 + $0x110] sm:$0xff]  }
  0xb6   : > { %v1410_v27 = vrot.slane %v22928_v52, 1  ;;  %v5628_v25 = vrot.slane %v22933_v61, 1  ;;  %v5630_v62 = vrot.slane %v22991_v18, 1  ;;  %v21719_v18 = vld [vmem:[%s26366_s1 + $0xe8] sm:$0xff]   ;;  %v21734_v22 = vld [vmem:[#allocation2 + $0xa0] sm:$0xff]   ;;  %v21739_v48 = vld [vmem:[#allocation2 + $0xb0] sm:$0xff]  }
  0xb7   : > { %v21765_v21 = vld [vmem:[%s26366_s1 + $0x130] sm:$0xff]  }
  0xb8   : > { %v23101_v43 = vsel %vm1380_vm2, %v1408_v57, %v1410_v27  ;;  %v23104_v52 = vsel %vm1380_vm2, %v5626_v1, %v5628_v25  ;;  %v23107_v61 = vsel %vm1380_vm2, %v1410_v27, %v1412_v14  ;;  %v23111_v10 = vsel %vm1380_vm2, %v5628_v25, %v5630_v62  ;;  %v21745_v57 = vld [vmem:[#allocation2 + $0x48] sm:$0xff]   ;;  %v23230_v1 = vld [vmem:[#allocation2 + $0x18] sm:$0xff]   ;;  %v21749_v27 = vld [vmem:[#allocation2 + $0xd0] sm:$0xff]  }
  0xb9   : > { %18801 = vmatmul.mubr.bf16.gmra.mrb[28].mxu0 %v1101_v17  ;;  %v21720_v17 = vld [vmem:[%s26366_s1 + $0xd0] sm:$0xff]   ;;  %v2198_v25 = vshll.u32 %v23230_v1, 16  ;;  %v21772_v14 = vld [vmem:[%s26366_s1 + $0x138] sm:$0xff]  }
  0xba   : > { %19233 = vmatmul.mubr.bf16.gmra.mrb[28].mxu1 %v5321_v46  ;;  %18820 = vmatprep.mubr.bf16.mxu0 %v1383_v32  ;;  %v21718_v32 = vld [vmem:[%s26366_s1 + $0xc8] sm:$0xff]   ;;  %v21746_v46 = vld [vmem:[%s26366_s1 + $0x118] sm:$0xff]  }
  0xbb   : > { %19252 = vmatprep.mubr.bf16.mxu1 %v5601_v50  ;;  %v21724_v50 = vld [vmem:[%s26366_s1 + $0xe8] sm:$0xff]   ;;  %v21775_v62 = vld [vmem:[%s26366_s1 + $0x138] sm:$0xff]  }
  0xc1   : > { %18821 = vmatmul.mubr.bf16.vlgmr.msra.gmra.mrb[0].mxu0 %v22972_v2  ;;  %v21714_v2 = vld [vmem:[%s26366_s1 + $0xd0] sm:$0xff]  }
  0xc2   : > { %19253 = vmatmul.mubr.bf16.vlgmr.msra.gmra.mrb[0].mxu1 %v5603_v54  ;;  %18853 = vmatpush3.bf16.msra.mxu0 %v22967_v59  ;;  %v21715_v59 = vld [vmem:[%s26366_s1 + $0xd8] sm:$0xff]   ;;  %v21747_v54 = vld [vmem:[#allocation2 + $0xc8] sm:$0xff]  }
  0xc3   : > { %18824 = vmatprep.mubr.bf16.mxu0 %v22977_v6  ;;  %19256 = vmatprep.mubr.bf16.mxu1 %v22984_v12  ;;  %v21721_v6 = vld [vmem:[%s26366_s1 + $0xd8] sm:$0xff]   ;;  %v21716_v12 = vld [vmem:[%s26366_s1 + $0xe0] sm:$0xff]  }
  0xc4   : > { %18854 = vmatprep.subr.bf16.mxu0 %v21713_v55  ;;  %19285 = vmatpush3.bf16.msra.mxu1 %v21717_v60  ;;  %v21729_v60 = vld [vmem:[#allocation2 + $0x90] sm:$0xff]  }
  0xc5   : > { %19286 = vmatprep.subr.bf16.mxu1 %v21718_v32 }
  0xc6   : > { %18855 = vmatpush3.bf16.msra.mxu0 %v21713_v55 }
  0xc7   : > { %18856 = vmatprep.subr.bf16.mxu0 %v21714_v2 }
  0xc8   : > { %19287 = vmatpush3.bf16.msra.mxu1 %v21718_v32 }
  0xc9   : > { %18825 = vmatmul.mubr.bf16.gmra.mrb[4].mxu0 %v22987_v39  ;;  %19288 = vmatprep.subr.bf16.mxu1 %v21720_v17  ;;  %v21723_v39 = vld [vmem:[%s26366_s1 + $0xe0] sm:$0xff]  }
  0xca   : > { %19257 = vmatmul.mubr.bf16.gmra.mrb[4].mxu1 %v22998_v20  ;;  %18828 = vmatprep.mubr.bf16.mxu0 %v23002_v24  ;;  %v21722_v20 = vld [vmem:[%s26366_s1 + $0xf0] sm:$0xff]   ;;  %v21725_v24 = vld [vmem:[%s26366_s1 + $0xf8] sm:$0xff]  }
  0xcb   : > { %19260 = vmatprep.mubr.bf16.mxu1 %v23009_v33  ;;  %18857 = vmatpush3.bf16.msra.mxu0 %v21714_v2  ;;  %v365_v33 = vld [vmem:[%s22554_s21 + $0x108] sm:$0xf]  ;;  %v21750_v2 = vld [vmem:[#allocation2 + $0x58] sm:$0xff]  }
  0xcc   : > { %18858 = vmatprep.subr.bf16.mxu0 %v21715_v59  ;;  %19289 = vmatpush3.bf16.msra.mxu1 %v21720_v17  ;;  %438 = vst.msk [vmem:[#allocation2 + $0x108] sm:$0xf] %vm371_vm0, %v365_v33  ;;  %v23251_v17 = vrot.slane %v2198_v25, 1  ;;  %v23273_v33 = vld [vmem:[#allocation2 + $0xa8] sm:$0xff]   ;;  %v367_v25 = vld [vmem:[%s22554_s21 + $0x110] sm:$0xf] }
  0xcd   : > { %19290 = vmatprep.subr.bf16.mxu1 %v21721_v6  ;;  %440 = vst.msk [vmem:[#allocation2 + $0x110] sm:$0xf] %vm371_vm0, %v367_v25 }
  0xcf   : > { %18859 = vmatpush3.bf16.msra.mxu0 %v21715_v59 }
  0xd0   : > { %18860 = vmatprep.subr.bf16.mxu0 %v21716_v12  ;;  %19291 = vmatpush3.bf16.msra.mxu1 %v21721_v6  ;;  %v23257_v6 = vld [vmem:[%s26366_s1 + $0x140] sm:$0xff]  }
  0xd1   : > { %18829 = vmatmul.mubr.bf16.gmra.mrb[8].mxu0 %v23017_v40  ;;  %19292 = vmatprep.subr.bf16.mxu1 %v21723_v39  ;;  %v21730_v40 = vld [vmem:[#allocation2 + $0x18] sm:$0xff]  }
  0xd2   : > { %19261 = vmatmul.mubr.bf16.gmra.mrb[8].mxu1 %v23020_v8  ;;  %18832 = vmatprep.mubr.bf16.mxu0 %v23023_v15  ;;  %v21732_v8 = vld [vmem:[#allocation2 + $0x98] sm:$0xff]   ;;  %v21733_v15 = vld [vmem:[#allocation2 + $0x20] sm:$0xff]  }
  0xd3   : > { %19264 = vmatprep.mubr.bf16.mxu1 %v23027_v28  ;;  %18861 = vmatpush3.bf16.msra.mxu0 %v21716_v12  ;;  %v21754_v28 = vld [vmem:[%s26366_s1 + $0x108] sm:$0xff]   ;;  %v23259_v12 = vld [vmem:[#allocation2 + $0xa0] sm:$0xff]  }
  0xd4   : > { %18862 = vmatprep.subr.bf16.mxu0 %v21719_v18  ;;  %19293 = vmatpush3.bf16.msra.mxu1 %v21723_v39  ;;  %v21752_v39 = vld [vmem:[#allocation2 + $0xd8] sm:$0xff]   ;;  %v6422_v30 = vshll.u32 %v23259_v12, 16 }
  0xd5   : > { %19294 = vmatprep.subr.bf16.mxu1 %v21724_v50 }
  0xd7   : > { %18863 = vmatpush3.bf16.msra.mxu0 %v21719_v18  ;;  %v21755_v18 = vld [vmem:[#allocation2 + $0x60] sm:$0xff]  }
  0xd8   : > { %18864 = vmatprep.subr.bf16.mxu0 %v21722_v20  ;;  %19295 = vmatpush3.bf16.msra.mxu1 %v21724_v50 }
  0xd9   : > { %18833 = vmatmul.mubr.bf16.gmra.mrb[12].mxu0 %v23030_v34  ;;  %19296 = vmatprep.subr.bf16.mxu1 %v21726_v23  ;;  %v21741_v34 = vld [vmem:[%s26366_s1 + $0x110] sm:$0xff]  }
  0xda   : > { %19265 = vmatmul.mubr.bf16.gmra.mrb[12].mxu1 %v23034_v44  ;;  %18836 = vmatprep.mubr.bf16.mxu0 %v23041_v53  ;;  %v21737_v44 = vld [vmem:[#allocation2 + $0xa8] sm:$0xff]   ;;  %v21761_v53 = vld [vmem:[%s26366_s1 + $0x118] sm:$0xff]  }
  0xdb   : > { %19268 = vmatprep.mubr.bf16.mxu1 %v23046_v49  ;;  %18865 = vmatpush3.bf16.msra.mxu0 %v21722_v20  ;;  %v21743_v49 = vld [vmem:[#allocation2 + $0x40] sm:$0xff]   ;;  %v23262_v20 = vld [vmem:[#allocation2 + $0x28] sm:$0xff]  }
  0xdc   : > { %18866 = vmatprep.subr.bf16.mxu0 %v21725_v24  ;;  %19297 = vmatpush3.bf16.msra.mxu1 %v21726_v23  ;;  %v21756_v23 = vld [vmem:[#allocation2 + $0xe0] sm:$0xff]   ;;  %v2214_v36 = vshll.u32 %v23262_v20, 16 }
  0xdd   : > { %19298 = vmatprep.subr.bf16.mxu1 %v21727_v58 }
  0xdf   : > { %18867 = vmatpush3.bf16.msra.mxu0 %v21725_v24 }
  0xe0   : > { %19299 = vmatpush3.bf16.msra.mxu1 %v21727_v58  ;;  %18900 = vmatprep.subr.bf16.mxu0 %v21731_v26  ;;  %v23268_v58 = vld [vmem:[%s26366_s1 + $0x140] sm:$0xff]  }
  0xe1   : > { %18837 = vmatmul.mubr.bf16.gmra.mrb[16].mxu0 %v23049_v56  ;;  %19332 = vmatprep.subr.bf16.mxu1 %v21753_v29  ;;  %v21751_v56 = vld [vmem:[%s26366_s1 + $0x120] sm:$0xff]  }
  0xe2   : > { %19269 = vmatmul.mubr.bf16.gmra.mrb[16].mxu1 %v23052_v4  ;;  %18840 = vmatprep.mubr.bf16.mxu0 %v23056_v63  ;;  %v21767_v4 = vld [vmem:[%s26366_s1 + $0x120] sm:$0xff]   ;;  %v2057_v63 = vld [vmem:[#allocation2 + $0x10] sm:$0xf] }
  0xe3   : > { %19272 = vmatprep.mubr.bf16.mxu1 %v23059_v31  ;;  %v23213_v31 = vld [vmem:[#allocation2 + $0x14] sm:$0xf] }
  0xe4   : > { %v23225_v7 = vcombine.low %v2057_v63, %v23213_v31  ;;  %v23306_v63 = vld [vmem:[#allocation2 + $0x40] sm:$0xff]  }
  0xe6   : > { %v2191_v32 = vshrl.u32 %v23225_v7, 16 }
  0xe9   : > { %18841 = vmatmul.mubr.bf16.gmra.mrb[20].mxu0 %v23063_v0  ;;  %v21768_v0 = vld [vmem:[%s26366_s1 + $0x128] sm:$0xff]  }
  0xea   : > { %19273 = vmatmul.mubr.bf16.gmra.mrb[20].mxu1 %v23069_v38  ;;  %18844 = vmatprep.mubr.bf16.mxu0 %v23078_v9  ;;  %v21774_v38 = vld [vmem:[%s26366_s1 + $0x130] sm:$0xff]  }
  0xeb   : > { %19276 = vmatprep.mubr.bf16.mxu1 %v23081_v11  ;;  %v6274_v9 = vld [vmem:[#allocation2 + $0x90] sm:$0xf]  ;;  %v23232_v11 = vld [vmem:[#allocation2 + $0x94] sm:$0xf] }
  0xec   : > { %v23240_v55 = vcombine.low %v6274_v9, %v23232_v11 }
  0xee   : > { %v6407_v59 = vshrl.u32 %v23240_v55, 16  ;;  %v6409_v50 = vshll.u32 %v23240_v55, 16 }
  0xf1   : > { %18845 = vmatmul.mubr.bf16.gmra.mrb[24].mxu0 %v23084_v16  ;;  %v21748_v16 = vld [vmem:[#allocation2 + $0x50] sm:$0xff]  }
  0xf2   : > { %19277 = vmatmul.mubr.bf16.gmra.mrb[24].mxu1 %v23087_v19  ;;  %18848 = vmatprep.mubr.bf16.mxu0 %v23101_v43  ;;  %v2193_v19 = vshll.u32 %v23225_v7, 16  ;;  %v2202_v43 = vshrl.u32 %v23230_v1, 16 }
  0xf3   : > { %19280 = vmatprep.mubr.bf16.mxu1 %v23104_v52  ;;  %v23247_v52 = vld [vmem:[#allocation2 + $0x98] sm:$0xff]  }
  0xf4   : > { %v6414_v24 = vshll.u32 %v23247_v52, 16 }
  0xf9   : > { %18849 = vmatmul.mubr.bf16.gmra.mrb[28].mxu0 %v23107_v61  ;;  %v2195_v61 = vrot.slane %v2193_v19, 1 }
  0xfa   : > { %19281 = vmatmul.mubr.bf16.gmra.mrb[28].mxu1 %v23111_v10  ;;  %18868 = vmatprep.mubr.bf16.mxu0 %v21728_v37  ;;  %v23249_v10 = vld [vmem:[#allocation2 + $0x20] sm:$0xff]   ;;  %v23277_v37 = vld [vmem:[#allocation2 + $0x30] sm:$0xff]  }
  0xfb   : > { %19300 = vmatprep.mubr.bf16.mxu1 %v21729_v60  ;;  %v23279_v60 = vrot.slane %v6409_v50, 1  ;;  %v21770_v50 = vld [vmem:[#allocation2 + $0x100] sm:$0xff]  }
 0x101   : > { %18869 = vmatmul.mubr.bf16.vlgmr.msra.gmra.mrb[0].mxu0 %v21730_v40  ;;  %v23281_v40 = vrot.slane %v6414_v24, 1  ;;  %v23337_v24 = vor.u32 %v2202_v43, %v23251_v17  ;;  %v6820_v43 = vrot.slane %v23273_v33, 1 }
 0x102   : > { %19301 = vmatmul.mubr.bf16.vlgmr.msra.gmra.mrb[0].mxu1 %v21732_v8  ;;  %18901 = vmatpush3.bf16.msra.mxu0 %v21731_v26  ;;  %v6418_v26 = vshrl.u32 %v23247_v52, 16  ;;  %v23283_v8 = vld [vmem:[#allocation2 + $0xb0] sm:$0xff]  }
 0x103   : > { %18872 = vmatprep.mubr.bf16.mxu0 %v21733_v15  ;;  %19304 = vmatprep.mubr.bf16.mxu1 %v21734_v22  ;;  %v23285_v15 = vld [vmem:[#allocation2 + $0x38] sm:$0xff]  }
 0x104   : > { %18902 = vmatprep.subr.bf16.mxu0 %v21736_v41  ;;  %19333 = vmatpush3.bf16.msra.mxu1 %v21753_v29  ;;  %v2206_v29 = vshll.u32 %v23249_v10, 16 }
 0x105   : > { %19334 = vmatprep.subr.bf16.mxu1 %v21754_v28 }
 0x106   : > { %18903 = vmatpush3.bf16.msra.mxu0 %v21736_v41  ;;  %v23289_v41 = vld [vmem:[#allocation2 + $0xb8] sm:$0xff]  }
 0x107   : > { %18904 = vmatprep.subr.bf16.mxu0 %v21741_v34 }
 0x108   : > { %19335 = vmatpush3.bf16.msra.mxu1 %v21754_v28  ;;  %v21757_v28 = vld [vmem:[#allocation2 + $0x68] sm:$0xff]  }
 0x109   : > { %18873 = vmatmul.mubr.bf16.gmra.mrb[4].mxu0 %v21735_v42  ;;  %19336 = vmatprep.subr.bf16.mxu1 %v21760_v45  ;;  %v23293_v42 = vrot.slane %v6422_v30, 1  ;;  %v2601_v30 = vrot.slane %v23230_v1, 1 }
 0x10a   : > { %19305 = vmatmul.mubr.bf16.gmra.mrb[4].mxu1 %v21737_v44  ;;  %18876 = vmatprep.mubr.bf16.mxu0 %v21738_v47  ;;  %v21759_v47 = vld [vmem:[#allocation2 + $0xe8] sm:$0xff]   ;;  %v23429_v44 = vld [vmem:[#allocation2 + $0xf0] sm:$0xff]  }
 0x10b   : > { %19308 = vmatprep.mubr.bf16.mxu1 %v21739_v48  ;;  %18905 = vmatpush3.bf16.msra.mxu0 %v21741_v34  ;;  %v23291_v34 = vrot.slane %v2206_v29, 1  ;;  %v21762_v48 = vld [vmem:[#allocation2 + $0x70] sm:$0xff]  }
 0x10c   : > { %18906 = vmatprep.subr.bf16.mxu0 %v21746_v46  ;;  %19337 = vmatpush3.bf16.msra.mxu1 %v21760_v45  ;;  %v6430_v45 = vshll.u32 %v23273_v33, 16  ;;  %v2579_v29 = vld [vmem:[#allocation2 + $0x10] sm:$0xe] }
 0x10d   : > { %19338 = vmatprep.subr.bf16.mxu1 %v21761_v53 }
 0x10f   : > { %18907 = vmatpush3.bf16.msra.mxu0 %v21746_v46  ;;  %v23297_v46 = vrot.slane %v2214_v36, 1  ;;  %v6795_v36 = vld [vmem:[#allocation2 + $0x90] sm:$0xe] }
 0x110   : > { %18908 = vmatprep.subr.bf16.mxu0 %v21751_v56  ;;  %19339 = vmatpush3.bf16.msra.mxu1 %v21761_v53  ;;  %v2222_v53 = vshll.u32 %v23277_v37, 16 }
 0x111   : > { %18877 = vmatmul.mubr.bf16.gmra.mrb[8].mxu0 %v21740_v5  ;;  %19340 = vmatprep.subr.bf16.mxu1 %v21767_v4  ;;  %v21763_v5 = vld [vmem:[#allocation2 + $0xf0] sm:$0xff]  }
 0x112   : > { %19309 = vmatmul.mubr.bf16.gmra.mrb[8].mxu1 %v21742_v51  ;;  %18880 = vmatprep.mubr.bf16.mxu0 %v21743_v49  ;;  %v6438_v51 = vshll.u32 %v23283_v8, 16  ;;  %v2230_v49 = vshll.u32 %v23285_v15, 16 }
 0x113   : > { %19312 = vmatprep.mubr.bf16.mxu1 %v21744_v13  ;;  %18909 = vmatpush3.bf16.msra.mxu0 %v21751_v56  ;;  %v23304_v13 = vrot.slane %v6430_v45, 1 }
 0x114   : > { %18910 = vmatprep.subr.bf16.mxu0 %v21758_v35  ;;  %19341 = vmatpush3.bf16.msra.mxu1 %v21767_v4  ;;  %v6446_v4 = vshll.u32 %v23289_v41, 16 }
 0x115   : > { %19342 = vmatprep.subr.bf16.mxu1 %v21768_v0 }
 0x116   : > { %v23320_v19 = vrot.slane %v6446_v4, 1 }
 0x117   : > { %18911 = vmatpush3.bf16.msra.mxu0 %v21758_v35  ;;  %v2196_v35 = vor.u32 %v2195_v61, %v2191_v32  ;;  %v21766_v61 = vld [vmem:[#allocation2 + $0xf8] sm:$0xff]   ;;  %v6824_v32 = vrot.slane %v23289_v41, 1 }
 0x118   : > { %18912 = vmatprep.subr.bf16.mxu0 %v21765_v21  ;;  %19343 = vmatpush3.bf16.msra.mxu1 %v21768_v0  ;;  %v23308_v0 = vrot.slane %v2222_v53, 1  ;;  %v2603_v53 = vrot.slane %v23249_v10, 1 }
 0x119   : > { %18881 = vmatmul.mubr.bf16.gmra.mrb[12].mxu0 %v21745_v57  ;;  %19344 = vmatprep.subr.bf16.mxu1 %v21774_v38  ;;  %v23312_v57 = vld [vmem:[#allocation2 + $0xc0] sm:$0xff]  }
 0x11a   : > { %19313 = vmatmul.mubr.bf16.gmra.mrb[12].mxu1 %v21747_v54  ;;  %18884 = vmatprep.mubr.bf16.mxu0 %v21748_v16  ;;  %v23316_v54 = vrot.slane %v2230_v49, 1  ;;  %v23350_v4 = vsel %vm1380_vm2, %v2601_v30, %v2603_v53  ;;  %v23396_v16 = vld [vmem:[#allocation2 + $0x68] sm:$0xff]  }
 0x11b   : > { %19316 = vmatprep.mubr.bf16.mxu1 %v21749_v27  ;;  %18913 = vmatpush3.bf16.msra.mxu0 %v21765_v21  ;;  %v23322_v27 = vld [vmem:[#allocation2 + $0x48] sm:$0xff]  }
 0x11c   : > { %18914 = vmatprep.subr.bf16.mxu0 %v21772_v14  ;;  %19345 = vmatpush3.bf16.msra.mxu1 %v21774_v38  ;;  %v23314_v38 = vrot.slane %v6438_v51, 1  ;;  %v2605_v51 = vrot.slane %v23262_v20, 1  ;;  %v23403_v21 = vld [vmem:[#allocation2 + $0xe8] sm:$0xff]  }
 0x11d   : > { %19346 = vmatprep.subr.bf16.mxu1 %v21775_v62 }
 0x11e   : > { %v23359_v25 = vsel %vm1380_vm2, %v2603_v53, %v2605_v51 }
 0x11f   : > { %18915 = vmatpush3.bf16.msra.mxu0 %v21772_v14  ;;  %v21764_v14 = vld [vmem:[#allocation2 + $0x78] sm:$0xff]  }
 0x120   : > { %19347 = vmatpush3.bf16.msra.mxu1 %v21775_v62  ;;  %18948 = vmatprep.subr.bf16.mxu0 %v23257_v6 }
 0x121   : > { %18885 = vmatmul.mubr.bf16.gmra.mrb[16].mxu0 %v21750_v2  ;;  %19380 = vmatprep.subr.bf16.mxu1 %v23268_v58  ;;  %v21769_v2 = vld [vmem:[#allocation2 + $0x80] sm:$0xff]  }
 0x122   : > { %19317 = vmatmul.mubr.bf16.gmra.mrb[16].mxu1 %v21752_v39  ;;  %18888 = vmatprep.mubr.bf16.mxu0 %v21755_v18  ;;  %v23381_v18 = vld [vmem:[#allocation2 + $0x58] sm:$0xff]   ;;  %v23420_v39 = vld [vmem:[#allocation2 + $0x70] sm:$0xff]  }
 0x123   : > { %19320 = vmatprep.mubr.bf16.mxu1 %v21756_v23  ;;  %v23332_v23 = vsel %vm969_vm1, %v2196_v35, %v23251_v17  ;;  %v2607_v17 = vrot.slane %v23277_v37, 1  ;;  %v6822_v35 = vrot.slane %v23283_v8, 1 }
 0x125   : > { %v23378_v53 = vsel %vm1380_vm2, %v6820_v43, %v6822_v35  ;;  %v23406_v56 = vsel %vm1380_vm2, %v6822_v35, %v6824_v32 }
 0x126   : > { %26389 = vst [vmem:[#allocation5_spill] sm:$0xff] %v23378_v53  ;;  %26391 = vst [vmem:[#allocation7_spill] sm:$0xff] %v23406_v56 }
 0x129   : > { %18889 = vmatmul.mubr.bf16.gmra.mrb[20].mxu0 %v21757_v28  ;;  %v6816_v28 = vrot.slane %v23247_v52, 1 }
 0x12a   : > { %19321 = vmatmul.mubr.bf16.gmra.mrb[20].mxu1 %v21759_v47  ;;  %18892 = vmatprep.mubr.bf16.mxu0 %v21762_v48  ;;  %v16689_v47 = vcombine.low %v2579_v29, %v23213_v31  ;;  %v17024_v48 = vcombine.low %v6795_v36, %v23232_v11  ;;  %v23353_v31 = vld [vmem:[#allocation2 + $0xc8] sm:$0xff]   ;;  %v23365_v36 = vsel %vm1380_vm2, %v2605_v51, %v2607_v17 }
 0x12b   : > { %19324 = vmatprep.mubr.bf16.mxu1 %v21763_v5  ;;  %v6818_v5 = vrot.slane %v23259_v12, 1  ;;  %v21771_v51 = vld [vmem:[#allocation2 + $0x88] sm:$0xff]   ;;  %v6828_v45 = vrot.slane %v23353_v31, 1  ;;  %v6462_v53 = vshll.u32 %v23353_v31, 16 }
 0x12c   : > { %v2600_v1 = vrot.slane %v16689_v47, 1  ;;  %v6815_v49 = vrot.slane %v17024_v48, 1  ;;  %v23367_v47 = vld [vmem:[#allocation2 + $0x50] sm:$0xff]  }
 0x12d   : > { %v23356_v11 = vsel %vm1380_vm2, %v6816_v28, %v6818_v5  ;;  %v23362_v29 = vsel %vm1380_vm2, %v6818_v5, %v6820_v43  ;;  %v23369_v48 = vld [vmem:[#allocation2 + $0xd0] sm:$0xff]   ;;  %v2609_v5 = vrot.slane %v23285_v15, 1  ;;  %v21773_v43 = vld [vmem:[#allocation2 + $0x108] sm:$0xff]   ;;  %v2615_v7 = vrot.slane %v23367_v47, 1 }
 0x12e   : > { %v23375_v3 = vsel %vm1380_vm2, %v6815_v49, %v6816_v28  ;;  %v6826_v28 = vrot.slane %v23312_v57, 1  ;;  %v23394_v49 = vld [vmem:[#allocation2 + $0xe0] sm:$0xff]  }
 0x12f   : > { %v23399_v9 = vsel %vm1380_vm2, %v2607_v17, %v2609_v5  ;;  %v6420_v17 = vor.u32 %v6418_v26, %v23281_v40  ;;  %v6834_v26 = vrot.slane %v23394_v49, 1 }
 0x130   : > { %26390 = vst [vmem:[#allocation6_spill] sm:$0xff] %v23399_v9  ;;  %v23423_v62 = vsel %vm1380_vm2, %v6826_v28, %v6828_v45  ;;  %v6458_v9 = vshrl.u32 %v23312_v57, 16 }
 0x131   : > { %18893 = vmatmul.mubr.bf16.gmra.mrb[24].mxu0 %v21764_v14  ;;  %v23372_v14 = vsel %vm1380_vm2, %v2600_v1, %v2601_v30  ;;  %v2611_v30 = vrot.slane %v23306_v63, 1  ;;  %v2613_v1 = vrot.slane %v23322_v27, 1  ;;  %26395 = vst [vmem:[#allocation11_spill] sm:$0xff] %v23423_v62  ;;  %v23439_v62 = vld [vmem:[#allocation2 + $0xf8] sm:$0xff]  }
 0x132   : > { %19325 = vmatmul.mubr.bf16.gmra.mrb[24].mxu1 %v21766_v61  ;;  %18896 = vmatprep.mubr.bf16.mxu0 %v21769_v2  ;;  %v23383_v61 = vld [vmem:[#allocation2 + $0xd8] sm:$0xff]   ;;  %v23385_v2 = vld [vmem:[#allocation2 + $0x60] sm:$0xff]  }
 0x133   : > { %19328 = vmatprep.mubr.bf16.mxu1 %v21770_v50  ;;  %v6412_v50 = vor.u32 %v23279_v60, %v6407_v59  ;;  %v23409_v55 = vsel %vm1380_vm2, %v2609_v5, %v2611_v30  ;;  %v23412_v59 = vsel %vm1380_vm2, %v6824_v32, %v6826_v28  ;;  %v23415_v60 = vsel %vm1380_vm2, %v2611_v30, %v2613_v1  ;;  %v23431_v32 = vld [vmem:[#allocation2 + $0x78] sm:$0xff]  }
 0x134   : > { %26392 = vst [vmem:[#allocation8_spill] sm:$0xff] %v23409_v55  ;;  %26393 = vst [vmem:[#allocation9_spill] sm:$0xff] %v23412_v59  ;;  %v23426_v35 = vsel %vm1380_vm2, %v2613_v1, %v2615_v7  ;;  %v6830_v5 = vrot.slane %v23369_v48, 1  ;;  %v2617_v30 = vrot.slane %v23381_v18, 1  ;;  %v6832_v22 = vrot.slane %v23383_v61, 1  ;;  %v23446_v59 = vld [vmem:[#allocation2 + $0x80] sm:$0xff]  }
 0x135   : > { %26394 = vst [vmem:[#allocation10_spill] sm:$0xff] %v23415_v60  ;;  %26396 = vst [vmem:[#allocation12_spill] sm:$0xff] %v23426_v35  ;;  %v2619_v52 = vrot.slane %v23385_v2, 1  ;;  %v6417_v28 = vsel %vm969_vm1, %v6412_v50, %v23281_v40  ;;  %v2621_v35 = vrot.slane %v23396_v16, 1  ;;  %v6836_v60 = vrot.slane %v23403_v21, 1 }
 0x136   : > { %v23442_v1 = vsel %vm1380_vm2, %v6828_v45, %v6830_v5  ;;  %v23449_v55 = vsel %vm1380_vm2, %v2615_v7, %v2617_v30  ;;  %v23452_v56 = vsel %vm1380_vm2, %v6830_v5, %v6832_v22  ;;  %v23458_v50 = vsel %vm1380_vm2, %v6832_v22, %v6834_v26 }
 0x137   : > { %26397 = vst [vmem:[#allocation13_spill] sm:$0xff] %v23442_v1  ;;  %26398 = vst [vmem:[#allocation14_spill] sm:$0xff] %v23449_v55  ;;  %v23455_v40 = vsel %vm1380_vm2, %v2617_v30, %v2619_v52  ;;  %v23462_v45 = vsel %vm1380_vm2, %v2619_v52, %v2621_v35  ;;  %v2623_v7 = vrot.slane %v23420_v39, 1  ;;  %v6838_v5 = vrot.slane %v23429_v44, 1 }
 0x138   : > { %26399 = vst [vmem:[#allocation15_spill] sm:$0xff] %v23452_v56  ;;  %26400 = vst [vmem:[#allocation16_spill] sm:$0xff] %v23455_v40  ;;  %v26404_v30 = vshrl.u32 %v23249_v10, 16  ;;  %v26405_v22 = vshrl.u32 %v23259_v12, 16  ;;  %v2627_v12 = vrot.slane %v23446_v59, 1  ;;  %v2209_v55 = vsel %vm969_vm1, %v23337_v24, %v23291_v34 }
 0x139   : > { %18897 = vmatmul.mubr.bf16.gmra.mrb[28].mxu0 %v21771_v51  ;;  %26401 = vst [vmem:[#allocation17_spill] sm:$0xff] %v23458_v50  ;;  %26402 = vst [vmem:[#allocation18_spill] sm:$0xff] %v23462_v45  ;;  %v23465_v51 = vsel %vm1380_vm2, %v6834_v26, %v6836_v60  ;;  %v23477_v52 = vld [vmem:[#allocation2 + $0x90] ss:$0 sps:$4 sm:$0x11]   ;;  %v2625_v26 = vrot.slane %v23431_v32, 1  ;;  %v23488_v10 = vsel %vm1380_vm2, %v6836_v60, %v6838_v5 }
 0x13a   : > { %19329 = vmatmul.mubr.bf16.gmra.mrb[28].mxu1 %v21773_v43  ;;  %18916 = vmatprep.mubr.bf16.mxu0 %v23332_v23  ;;  %26403 = vst [vmem:[#allocation19_spill] sm:$0xff] %v23465_v51  ;;  %v2212_v40 = vor.u32 %v26404_v30, %v23291_v34  ;;  %v6428_v43 = vor.u32 %v26405_v22, %v23293_v42  ;;  %v23475_v23 = vld [vmem:[#allocation2 + $0x100] sm:$0xff]   ;;  %v23480_v51 = vld [vmem:[#allocation2 + $0x88] sm:$0xff]   ;;  %v23482_v45 = vld [vmem:[#allocation2 + $0x110] ss:$0 sps:$4 sm:$0x11]  }
 0x13b   : > { %19348 = vmatprep.mubr.bf16.mxu1 %v6417_v28  ;;  %v23485_v28 = vsel %vm1380_vm2, %v2621_v35, %v2623_v7  ;;  %26407 = vst [vmem:[#allocation21_spill] sm:$0xff] %v23488_v10  ;;  %v6840_v30 = vrot.slane %v23439_v62, 1  ;;  %v23492_v22 = vld [vmem:[#allocation2 + $0x108] sm:$0xff]   ;;  %v23495_v50 = vsel %vm1380_vm2, %v2623_v7, %v2625_v26  ;;  %v6842_v56 = vrot.slane %v23475_v23, 1 }
 0x13c   : > { %26406 = vst [vmem:[#allocation20_spill] sm:$0xff] %v23485_v28  ;;  %26408 = vst [vmem:[#allocation22_spill] sm:$0xff] %v23495_v50  ;;  %v6425_v35 = vsel %vm969_vm1, %v6420_v17, %v23293_v42  ;;  %v23507_v10 = vsel %vm1380_vm2, %v2625_v26, %v2627_v12  ;;  %v21786_v7 = vld [vmem:[%s26366_s1 + $0x148] sm:$0xff]   ;;  %v2629_v28 = vrot.slane %v23480_v51, 1  ;;  %v6844_v34 = vrot.slane %v23492_v22, 1 }
 0x13d   : > { %v23504_v60 = vsel %vm1380_vm2, %v6838_v5, %v6840_v30  ;;  %26410 = vst [vmem:[#allocation24_spill] sm:$0xff] %v23507_v10  ;;  %v23513_v50 = vsel %vm1380_vm2, %v6840_v30, %v6842_v56  ;;  %v2631_v24 = vrot.slane %v23477_v52, 1  ;;  %v2217_v42 = vsel %vm969_vm1, %v2212_v40, %v23297_v46  ;;  %v21791_v30 = vld [vmem:[%s26366_s1 + $0x150] sm:$0xff]   ;;  %v21804_v40 = vld [vmem:[%s26366_s1 + $0x148] sm:$0xff]  }
 0x13e   : > { %26409 = vst [vmem:[#allocation23_spill] sm:$0xff] %v23504_v60  ;;  %26411 = vst [vmem:[#allocation25_spill] sm:$0xff] %v23513_v50  ;;  %v6433_v17 = vsel %vm969_vm1, %v6428_v43, %v23304_v13  ;;  %v26412_v5 = vshll.u32 %v23306_v63, 16  ;;  %v6846_v10 = vrot.slane %v23482_v45, 1  ;;  %v26413_v50 = vshll.u32 %v23312_v57, 16 }
 0x13f   : > { %v23538_v43 = vsel %vm1380_vm2, %v2627_v12, %v2629_v28  ;;  %v2254_v57 = vshll.u32 %v23367_v47, 16 }
 0x140   : > { %v23524_v26 = vrot.slane %v26412_v5, 1  ;;  %v23532_v60 = vrot.slane %v26413_v50, 1  ;;  %v23541_v5 = vsel %vm1380_vm2, %v6842_v56, %v6844_v34  ;;  %v26414_v50 = vshrl.u32 %v23262_v20, 16 }
 0x141   : > { %18917 = vmatmul.mubr.bf16.vlgmr.msra.gmra.mrb[0].mxu0 %v2209_v55  ;;  %v23544_v55 = vsel %vm1380_vm2, %v2629_v28, %v2631_v24  ;;  %v23553_v12 = vsel %vm1380_vm2, %v6844_v34, %v6846_v10  ;;  %v26415_v56 = vshrl.u32 %v23273_v33, 16  ;;  %v26417_v20 = vshll.u32 %v23322_v27, 16 }
 0x142   : > { %19349 = vmatmul.mubr.bf16.vlgmr.msra.gmra.mrb[0].mxu1 %v6425_v35  ;;  %18949 = vmatpush3.bf16.msra.mxu0 %v23257_v6  ;;  %v2220_v1 = vor.u32 %v26414_v50, %v23297_v46  ;;  %v26416_v6 = vshrl.u32 %v23277_v37, 16  ;;  %v26418_v10 = vshrl.u32 %v23283_v8, 16  ;;  %v2250_v24 = vshrl.u32 %v23322_v27, 16  ;;  %v21796_v8 = vld [vmem:[%s26366_s1 + $0x158] sm:$0xff]  }
 0x143   : > { %18920 = vmatprep.mubr.bf16.mxu0 %v2217_v42  ;;  %19352 = vmatprep.mubr.bf16.mxu1 %v6433_v17  ;;  %v6436_v28 = vor.u32 %v26415_v56, %v23304_v13  ;;  %v23563_v46 = vrot.slane %v26417_v20, 1  ;;  %v6466_v33 = vshrl.u32 %v23353_v31, 16  ;;  %v6470_v37 = vshll.u32 %v23369_v48, 16  ;;  %v21810_v13 = vld [vmem:[%s26366_s1 + $0x150] sm:$0xff]  }
 0x144   : > { %v2228_v35 = vor.u32 %v26416_v6, %v23308_v0  ;;  %18950 = vmatprep.subr.bf16.mxu0 %v21786_v7  ;;  %v6444_v34 = vor.u32 %v26418_v10, %v23314_v38  ;;  %19381 = vmatpush3.bf16.msra.mxu1 %v23268_v58  ;;  %v2225_v42 = vsel %vm969_vm1, %v2220_v1, %v23308_v0  ;;  %v6464_v17 = vrot.slane %v6462_v53, 1 }
 0x145   : > { %19382 = vmatprep.subr.bf16.mxu1 %v21804_v40  ;;  %v2262_v27 = vshll.u32 %v23381_v18, 16  ;;  %v6441_v58 = vsel %vm969_vm1, %v6436_v28, %v23314_v38  ;;  %v23586_v56 = vrot.slane %v2254_v57, 1  ;;  %v2258_v6 = vshrl.u32 %v23367_v47, 16  ;;  %v21811_v38 = vld [vmem:[%s26366_s1 + $0x158] sm:$0xff]  }
 0x146   : > { %18951 = vmatpush3.bf16.msra.mxu0 %v21786_v7  ;;  %v2233_v50 = vsel %vm969_vm1, %v2228_v35, %v23316_v54  ;;  %v6449_v0 = vsel %vm969_vm1, %v6444_v34, %v23320_v19  ;;  %v6478_v53 = vshll.u32 %v23383_v61, 16  ;;  %v2270_v1 = vshll.u32 %v23385_v2, 16 }
 0x147   : > { %18952 = vmatprep.subr.bf16.mxu0 %v21791_v30  ;;  %v6472_v7 = vrot.slane %v6470_v37, 1  ;;  %v26419_v47 = vshrl.u32 %v23285_v15, 16  ;;  %v23599_v35 = vrot.slane %v2262_v27, 1  ;;  %v6474_v20 = vshrl.u32 %v23369_v48, 16  ;;  %v21801_v15 = vld [vmem:[%s26366_s1 + $0x160] sm:$0xff]  }
 0x148   : > { %19383 = vmatpush3.bf16.msra.mxu1 %v21804_v40  ;;  %v26420_v40 = vshrl.u32 %v23289_v41, 16  ;;  %v26421_v10 = vshrl.u32 %v23306_v63, 16  ;;  %v2266_v37 = vshrl.u32 %v23381_v18, 16  ;;  %v6480_v48 = vrot.slane %v6478_v53, 1  ;;  %v21817_v63 = vld [vmem:[%s26366_s1 + $0x160] sm:$0xff]  }
 0x149   : > { %18921 = vmatmul.mubr.bf16.gmra.mrb[4].mxu0 %v2225_v42  ;;  %19384 = vmatprep.subr.bf16.mxu1 %v21810_v13  ;;  %v2236_v28 = vor.u32 %v26419_v47, %v23316_v54  ;;  %v6460_v54 = vor.u32 %v6458_v9, %v23532_v60  ;;  %v23613_v42 = vrot.slane %v2270_v1, 1  ;;  %v6486_v41 = vshll.u32 %v23394_v49, 16 }
 0x14a   : > { %19353 = vmatmul.mubr.bf16.gmra.mrb[4].mxu1 %v6441_v58  ;;  %18924 = vmatprep.mubr.bf16.mxu0 %v2233_v50  ;;  %v6452_v57 = vor.u32 %v26420_v40, %v23320_v19  ;;  %v2244_v34 = vor.u32 %v26421_v10, %v23524_v26  ;;  %v6482_v18 = vshrl.u32 %v23383_v61, 16  ;;  %v2274_v27 = vshrl.u32 %v23385_v2, 16  ;;  %v21808_v58 = vld [vmem:[%s26366_s1 + $0x168] sm:$0xff]  }
 0x14b   : > { %19356 = vmatprep.mubr.bf16.mxu1 %v6449_v0  ;;  %18953 = vmatpush3.bf16.msra.mxu0 %v21791_v30  ;;  %v2241_v19 = vsel %vm969_vm1, %v2236_v28, %v23524_v26  ;;  %v2278_v30 = vshll.u32 %v23396_v16, 16  ;;  %v6465_v50 = vsel %vm969_vm1, %v6460_v54, %v6464_v17  ;;  %v6488_v61 = vrot.slane %v6486_v41, 1 }
 0x14c   : > { %18954 = vmatprep.subr.bf16.mxu0 %v21796_v8  ;;  %19385 = vmatpush3.bf16.msra.mxu1 %v21810_v13  ;;  %v6457_v9 = vsel %vm969_vm1, %v6452_v57, %v23532_v60  ;;  %v2249_v13 = vsel %vm969_vm1, %v2244_v34, %v23563_v46  ;;  %v6490_v26 = vshrl.u32 %v23394_v49, 16  ;;  %v2282_v60 = vshrl.u32 %v23396_v16, 16  ;;  %v23669_v34 = vld [vmem:[%s26366_s1 + $0x180] sm:$0xff]  }
 0x14d   : > { %19386 = vmatprep.subr.bf16.mxu1 %v21811_v38  ;;  %v2252_v2 = vor.u32 %v2250_v24, %v23563_v46  ;;  %v2280_v0 = vrot.slane %v2278_v30, 1  ;;  %v6494_v53 = vshll.u32 %v23403_v21, 16  ;;  %v6468_v1 = vor.u32 %v6466_v33, %v6464_v17  ;;  %v21824_v24 = vld [vmem:[%s26366_s1 + $0x170] sm:$0xff]  }
 0x14e   : > { %v2260_v49 = vor.u32 %v2258_v6, %v23586_v56  ;;  %v2286_v16 = vshll.u32 %v23420_v39, 16  ;;  %v6476_v47 = vor.u32 %v6474_v20, %v6472_v7  ;;  %v6498_v46 = vshrl.u32 %v23403_v21, 16  ;;  %v21822_v21 = vld [vmem:[%s26366_s1 + $0x178] sm:$0xff]  }
 0x14f   : > { %18955 = vmatpush3.bf16.msra.mxu0 %v21796_v8  ;;  %v21818_v8 = vld [vmem:[%s26366_s1 + $0x168] sm:$0xff]   ;;  %v2257_v31 = vsel %vm969_vm1, %v2252_v2, %v23586_v56  ;;  %v6473_v33 = vsel %vm969_vm1, %v6468_v1, %v6472_v7  ;;  %v6496_v28 = vrot.slane %v6494_v53, 1  ;;  %v6502_v20 = vshll.u32 %v23429_v44, 16  ;;  %v21825_v56 = vld [vmem:[%s26366_s1 + $0x178] sm:$0xff]  }
 0x150   : > { %18956 = vmatprep.subr.bf16.mxu0 %v21801_v15  ;;  %19387 = vmatpush3.bf16.msra.mxu1 %v21811_v38  ;;  %v21815_v38 = vld [vmem:[%s26366_s1 + $0x170] sm:$0xff]   ;;  %v2265_v17 = vsel %vm969_vm1, %v2260_v49, %v23599_v35  ;;  %v6481_v6 = vsel %vm969_vm1, %v6476_v47, %v6480_v48  ;;  %v2268_v7 = vor.u32 %v2266_v37, %v23599_v35  ;;  %v2288_v40 = vrot.slane %v2286_v16, 1  ;;  %v23676_v35 = vld [vmem:[%s26366_s1 + $0x180] sm:$0xff]  }
 0x151   : > { %18925 = vmatmul.mubr.bf16.gmra.mrb[8].mxu0 %v2241_v19  ;;  %19388 = vmatprep.subr.bf16.mxu1 %v21817_v63  ;;  %v2290_v57 = vshrl.u32 %v23420_v39, 16  ;;  %v2294_v10 = vshll.u32 %v23431_v32, 16  ;;  %v2276_v54 = vor.u32 %v2274_v27, %v23613_v42  ;;  %v6510_v41 = vshll.u32 %v23439_v62, 16 }
 0x152   : > { %19357 = vmatmul.mubr.bf16.gmra.mrb[8].mxu1 %v6457_v9  ;;  %18928 = vmatprep.mubr.bf16.mxu0 %v2249_v13  ;;  %v6492_v39 = vor.u32 %v6490_v26, %v6488_v61  ;;  %v2273_v37 = vsel %vm969_vm1, %v2268_v7, %v23613_v42  ;;  %v6506_v30 = vshrl.u32 %v23429_v44, 16  ;;  %v2298_v9 = vshrl.u32 %v23431_v32, 16  ;;  %v368_v7 = vld [vmem:[%s22554_s21 + $0x114] sm:$0xf] }
 0x153   : > { %19360 = vmatprep.mubr.bf16.mxu1 %v6465_v50  ;;  %18957 = vmatpush3.bf16.msra.mxu0 %v21801_v15  ;;  %v6484_v15 = vor.u32 %v6482_v18, %v6480_v48  ;;  %v2281_v48 = vsel %vm969_vm1, %v2276_v54, %v2280_v0  ;;  %v6504_v18 = vrot.slane %v6502_v20, 1  ;;  %v2284_v13 = vor.u32 %v2282_v60, %v2280_v0 }
 0x154   : > { %18958 = vmatprep.subr.bf16.mxu0 %v21808_v58  ;;  %19389 = vmatpush3.bf16.msra.mxu1 %v21817_v63  ;;  %v6497_v19 = vsel %vm969_vm1, %v6492_v39, %v6496_v28  ;;  %v2296_v27 = vrot.slane %v2294_v10, 1  ;;  %v2302_v42 = vshll.u32 %v23446_v59, 16  ;;  %v6514_v50 = vshrl.u32 %v23439_v62, 16  ;;  %441 = vst.msk [vmem:[#allocation2 + $0x114] sm:$0xf] %vm371_vm0, %v368_v7  ;;  %v21832_v39 = vld [vmem:[%s26366_s1 + $0x188] sm:$0xff]  }
 0x155   : > { %19390 = vmatprep.subr.bf16.mxu1 %v21818_v8  ;;  %v6489_v63 = vsel %vm969_vm1, %v6484_v15, %v6488_v61  ;;  %v6518_v61 = vshll.u32 %v23475_v23, 16  ;;  %v2306_v44 = vshrl.u32 %v23446_v59, 16  ;;  %v6500_v32 = vor.u32 %v6498_v46, %v6496_v28  ;;  %v23817_v7 = vld [vmem:[#allocation2 + $0xb8] sm:$0xff]  }
 0x156   : > { %v2292_v26 = vor.u32 %v2290_v57, %v2288_v40  ;;  %v6526_v60 = vshll.u32 %v23492_v22, 16  ;;  %v6508_v2 = vor.u32 %v6506_v30, %v6504_v18  ;;  %v2289_v0 = vsel %vm969_vm1, %v2284_v13, %v2288_v40  ;;  %v26428_v30 = vld [vmem:[#allocation11_spill] sm:$0xff]  ;;  %v21840_v13 = vld [vmem:[%s26366_s1 + $0x1b0] sm:$0xff]  }
 0x157   : > { %18959 = vmatpush3.bf16.msra.mxu0 %v21808_v58  ;;  %v6512_v58 = vrot.slane %v6510_v41, 1  ;;  %v6505_v53 = vsel %vm969_vm1, %v6500_v32, %v6504_v18  ;;  %v6522_v49 = vshrl.u32 %v23475_v23, 16  ;;  %v2300_v59 = vor.u32 %v2298_v9, %v2296_v27  ;;  %v21827_v41 = vld [vmem:[%s26366_s1 + $0x188] sm:$0xff]   ;;  %v26427_v18 = vld [vmem:[#allocation10_spill] sm:$0xff]  ;;  %v23779_v32 = vld [vmem:[%s26366_s1 + $0x1c0] sm:$0xff]  }
 0x158   : > { %18960 = vmatprep.subr.bf16.mxu0 %v21815_v38  ;;  %19391 = vmatpush3.bf16.msra.mxu1 %v21818_v8  ;;  %v2310_v8 = vshll.u32 %v23480_v51, 16  ;;  %v2297_v1 = vsel %vm969_vm1, %v2292_v26, %v2296_v27  ;;  %v2304_v16 = vrot.slane %v2302_v42, 1  ;;  %v2314_v46 = vshrl.u32 %v23480_v51, 16  ;;  %v21836_v9 = vld [vmem:[%s26366_s1 + $0x1b0] sm:$0xff]   ;;  %v21839_v27 = vld [vmem:[%s26366_s1 + $0x1b8] sm:$0xff]   ;;  %v23784_v26 = vld [vmem:[%s26366_s1 + $0x1c0] sm:$0xff]  }
 0x159   : > { %18929 = vmatmul.mubr.bf16.gmra.mrb[12].mxu0 %v2257_v31  ;;  %19392 = vmatprep.subr.bf16.mxu1 %v21824_v24  ;;  %v6513_v62 = vsel %vm969_vm1, %v6508_v2, %v6512_v58  ;;  %v6530_v31 = vshrl.u32 %v23492_v22, 16  ;;  %v6528_v23 = vrot.slane %v6526_v60, 1  ;;  %v370_v22 = vld [vmem:[%s22554_s21 + $0x11c] sm:$0xf]  ;;  %v3277_v60 = vld [vmem:[#allocation2 + $0x24] sm:$0xf] }
 0x15a   : > { %19361 = vmatmul.mubr.bf16.gmra.mrb[12].mxu1 %v6473_v33  ;;  %18932 = vmatprep.mubr.bf16.mxu0 %v2265_v17  ;;  %v2312_v47 = vrot.slane %v2310_v8, 1  ;;  %v6516_v33 = vor.u32 %v6514_v50, %v6512_v58  ;;  %v2308_v17 = vor.u32 %v2306_v44, %v2304_v16  ;;  %443 = vst.msk [vmem:[#allocation2 + $0x11c] sm:$0xf] %vm371_vm0, %v370_v22  ;;  %v26429_v58 = vld [vmem:[#allocation12_spill] sm:$0xff]  ;;  %v21841_v42 = vld [vmem:[%s26366_s1 + $0x1b8] sm:$0xff]   ;;  %v26430_v50 = vld [vmem:[#allocation13_spill] sm:$0xff] }
 0x15b   : > { %19364 = vmatprep.mubr.bf16.mxu1 %v6481_v6  ;;  %18961 = vmatpush3.bf16.msra.mxu0 %v21815_v38  ;;  %v6520_v38 = vrot.slane %v6518_v61, 1  ;;  %v6534_v6 = vshll.u32 %v23482_v45, 16  ;;  %v6532_v57 = vor.u32 %v6530_v31, %v6528_v23  ;;  %v26431_v61 = vld [vmem:[#allocation14_spill] sm:$0xff]  ;;  %v26432_v44 = vld [vmem:[#allocation15_spill] sm:$0xff]  ;;  %v3276_v8 = vld [vmem:[#allocation2 + $0x20] sm:$0xf] }
 0x15c   : > { %18962 = vmatprep.subr.bf16.mxu0 %v21822_v21  ;;  %19393 = vmatpush3.bf16.msra.mxu1 %v21824_v24  ;;  %v2318_v24 = vshll.u32 %v23477_v52, 16  ;;  %v369_v52 = vld [vmem:[%s22554_s21 + $0x118] sm:$0xf]  ;;  %v2316_v45 = vor.u32 %v2314_v46, %v2312_v47  ;;  %v26433_v2 = vld [vmem:[#allocation16_spill] sm:$0xff] }
 0x15d   : > { %19394 = vmatprep.subr.bf16.mxu1 %v21825_v56  ;;  %v6524_v28 = vor.u32 %v6522_v49, %v6520_v38  ;;  %v6521_v20 = vsel %vm969_vm1, %v6516_v33, %v6520_v38  ;;  %442 = vst.msk [vmem:[#allocation2 + $0x118] sm:$0xf] %vm371_vm0, %v369_v52  ;;  %v6536_v10 = vrot.slane %v6534_v6, 1  ;;  %v7490_v49 = vld [vmem:[#allocation2 + $0xa0] sm:$0xf]  ;;  %v23798_v38 = vld [vmem:[#allocation2 + $0xa8] sm:$0xff]  }
 0x15e   : > { %v2320_v40 = vrot.slane %v2318_v24, 1  ;;  %v23807_v33 = vld [vmem:[#allocation2 + $0xb0] sm:$0xff]   ;;  %v26437_v6 = vld [vmem:[#allocation20_spill] sm:$0xff] }
 0x15f   : > { %18963 = vmatpush3.bf16.msra.mxu0 %v21822_v21  ;;  %v2305_v21 = vsel %vm969_vm1, %v2300_v59, %v2304_v16  ;;  %v6529_v51 = vsel %vm969_vm1, %v6524_v28, %v6528_v23  ;;  %v6537_v54 = vsel %vm969_vm1, %v6532_v57, %v6536_v10  ;;  %v23795_v59 = vld [vmem:[#allocation2 + $0xa4] sm:$0xf]  ;;  %v26436_v16 = vld [vmem:[#allocation19_spill] sm:$0xff]  ;;  %v26439_v52 = vld [vmem:[#allocation22_spill] sm:$0xff] }
 0x160   : > { %19395 = vmatpush3.bf16.msra.mxu1 %v21825_v56  ;;  %18996 = vmatprep.subr.bf16.mxu0 %v23669_v34  ;;  %v2313_v56 = vsel %vm969_vm1, %v2308_v17, %v2312_v47  ;;  %v2321_v15 = vsel %vm969_vm1, %v2316_v45, %v2320_v40  ;;  %v23800_v47 = vld [vmem:[#allocation2 + $0x30] sm:$0xff]   ;;  %v23804_v24 = vcombine.low %v7490_v49, %v23795_v59  ;;  %v7630_v17 = vshll.u32 %v23798_v38, 16  ;;  %v23826_v57 = vld [vmem:[#allocation2 + $0x40] sm:$0xff]   ;;  %v26440_v10 = vld [vmem:[#allocation23_spill] sm:$0xff] }
 0x161   : > { %18933 = vmatmul.mubr.bf16.gmra.mrb[16].mxu0 %v2273_v37  ;;  %19428 = vmatprep.subr.bf16.mxu1 %v23676_v35  ;;  %v21833_v37 = vld [vmem:[%s26366_s1 + $0x1a8] sm:$0xff]   ;;  %v3425_v23 = vshll.u32 %v23800_v47, 16  ;;  %v21859_v28 = vld [vmem:[#allocation2 + $0x58] sm:$0xff]  }
 0x162   : > { %19365 = vmatmul.mubr.bf16.gmra.mrb[16].mxu1 %v6489_v63  ;;  %18936 = vmatprep.mubr.bf16.mxu0 %v2281_v48  ;;  %v26425_v63 = vld [vmem:[#allocation8_spill] sm:$0xff]  ;;  %v21838_v48 = vld [vmem:[%s26366_s1 + $0x1a8] sm:$0xff]  }
 0x163   : > { %19368 = vmatprep.mubr.bf16.mxu1 %v6497_v19  ;;  %v26426_v19 = vld [vmem:[#allocation9_spill] sm:$0xff] }
 0x169   : > { %18937 = vmatmul.mubr.bf16.gmra.mrb[20].mxu0 %v2289_v0  ;;  %v23789_v0 = vcombine.low %v3276_v8, %v3277_v60 }
 0x16a   : > { %19369 = vmatmul.mubr.bf16.gmra.mrb[20].mxu1 %v6505_v53  ;;  %18940 = vmatprep.mubr.bf16.mxu0 %v2297_v1  ;;  %v23791_v53 = vld [vmem:[#allocation2 + $0x28] sm:$0xff]  }
 0x16b   : > { %19372 = vmatprep.mubr.bf16.mxu1 %v6513_v62  ;;  %v26434_v1 = vld [vmem:[#allocation17_spill] sm:$0xff]  ;;  %v26435_v62 = vld [vmem:[#allocation18_spill] sm:$0xff]  ;;  %v3412_v46 = vshll.u32 %v23789_v0, 16  ;;  %v3417_v31 = vshll.u32 %v23791_v53, 16 }
 0x16d   : > { %v23821_v22 = vrot.slane %v3412_v46, 1  ;;  %v23823_v45 = vrot.slane %v3417_v31, 1  ;;  %v21843_v31 = vld [vmem:[#allocation2 + $0xa0] sm:$0xff]   ;;  %v23936_v46 = vld [vmem:[#allocation2 + $0xe8] sm:$0xff]  }
 0x171   : > { %18941 = vmatmul.mubr.bf16.gmra.mrb[24].mxu0 %v2305_v21  ;;  %v21882_v21 = vld [vmem:[%s26366_s1 + $0x1e8] sm:$0xff]  }
 0x172   : > { %19373 = vmatmul.mubr.bf16.gmra.mrb[24].mxu1 %v6521_v20  ;;  %18944 = vmatprep.mubr.bf16.mxu0 %v2313_v56  ;;  %v7625_v20 = vshll.u32 %v23804_v24, 16  ;;  %v23815_v56 = vld [vmem:[#allocation2 + $0x38] sm:$0xff]  }
 0x173   : > { %19376 = vmatprep.mubr.bf16.mxu1 %v6529_v51  ;;  %v26438_v51 = vld [vmem:[#allocation21_spill] sm:$0xff] }
 0x179   : > { %18945 = vmatmul.mubr.bf16.gmra.mrb[28].mxu0 %v2321_v15 }
 0x17a   : > { %19377 = vmatmul.mubr.bf16.gmra.mrb[28].mxu1 %v6537_v54  ;;  %18964 = vmatprep.mubr.bf16.mxu0 %v23372_v14  ;;  %v26423_v14 = vld [vmem:[#allocation6_spill] sm:$0xff]  ;;  %v23830_v54 = vrot.slane %v7630_v17, 1 }
 0x17b   : > { %19396 = vmatprep.mubr.bf16.mxu1 %v23375_v3  ;;  %v21828_v3 = vld [vmem:[%s26366_s1 + $0x190] sm:$0xff]  }
 0x181   : > { %18965 = vmatmul.mubr.bf16.vlgmr.msra.gmra.mrb[0].mxu0 %v23350_v4  ;;  %v21834_v4 = vld [vmem:[%s26366_s1 + $0x190] sm:$0xff]  }
 0x182   : > { %19397 = vmatmul.mubr.bf16.vlgmr.msra.gmra.mrb[0].mxu1 %v23356_v11  ;;  %18997 = vmatpush3.bf16.msra.mxu0 %v23669_v34  ;;  %v21829_v11 = vld [vmem:[%s26366_s1 + $0x198] sm:$0xff]  }
 0x183   : > { %18968 = vmatprep.mubr.bf16.mxu0 %v23359_v25  ;;  %19400 = vmatprep.mubr.bf16.mxu1 %v23362_v29  ;;  %v21835_v25 = vld [vmem:[%s26366_s1 + $0x198] sm:$0xff]   ;;  %v26422_v29 = vld [vmem:[#allocation5_spill] sm:$0xff] }
 0x184   : > { %18998 = vmatprep.subr.bf16.mxu0 %v21827_v41  ;;  %19429 = vmatpush3.bf16.msra.mxu1 %v23676_v35  ;;  %v26424_v34 = vld [vmem:[#allocation7_spill] sm:$0xff]  ;;  %v21830_v35 = vld [vmem:[%s26366_s1 + $0x1a0] sm:$0xff]  }
 0x185   : > { %19430 = vmatprep.subr.bf16.mxu1 %v21832_v39 }
 0x186   : > { %18999 = vmatpush3.bf16.msra.mxu0 %v21827_v41  ;;  %v23832_v41 = vrot.slane %v3425_v23, 1 }
 0x187   : > { %19000 = vmatprep.subr.bf16.mxu0 %v21828_v3 }
 0x188   : > { %19431 = vmatpush3.bf16.msra.mxu1 %v21832_v39  ;;  %v7638_v39 = vshll.u32 %v23807_v33, 16 }
 0x189   : > { %18969 = vmatmul.mubr.bf16.gmra.mrb[4].mxu0 %v23365_v36  ;;  %19432 = vmatprep.subr.bf16.mxu1 %v21834_v4  ;;  %v21837_v36 = vld [vmem:[%s26366_s1 + $0x1a0] sm:$0xff]  }
 0x18a   : > { %19401 = vmatmul.mubr.bf16.gmra.mrb[4].mxu1 %v26422_v29  ;;  %18972 = vmatprep.mubr.bf16.mxu0 %v26423_v14  ;;  %v7646_v29 = vshll.u32 %v23817_v7, 16  ;;  %v23843_v14 = vld [vmem:[#allocation2 + $0xc8] sm:$0xff]  }
 0x18b   : > { %19404 = vmatprep.mubr.bf16.mxu1 %v26424_v34  ;;  %19001 = vmatpush3.bf16.msra.mxu0 %v21828_v3  ;;  %v23835_v3 = vld [vmem:[#allocation2 + $0xc0] sm:$0xff]   ;;  %v3441_v34 = vshll.u32 %v23826_v57, 16 }
 0x18c   : > { %19002 = vmatprep.subr.bf16.mxu0 %v21829_v11  ;;  %19433 = vmatpush3.bf16.msra.mxu1 %v21834_v4  ;;  %v23837_v4 = vld [vmem:[#allocation2 + $0x48] sm:$0xff]  }
 0x18d   : > { %19434 = vmatprep.subr.bf16.mxu1 %v21835_v25  ;;  %v23871_v8 = vrot.slane %v3441_v34, 1  ;;  %v21846_v34 = vld [vmem:[#allocation2 + $0xa8] sm:$0xff]  }
 0x18f   : > { %19003 = vmatpush3.bf16.msra.mxu0 %v21829_v11  ;;  %v23839_v11 = vrot.slane %v7625_v20, 1 }
 0x190   : > { %19004 = vmatprep.subr.bf16.mxu0 %v21830_v35  ;;  %19435 = vmatpush3.bf16.msra.mxu1 %v21835_v25  ;;  %v3433_v25 = vshll.u32 %v23815_v56, 16 }
 0x191   : > { %18973 = vmatmul.mubr.bf16.gmra.mrb[8].mxu0 %v26425_v63  ;;  %19436 = vmatprep.subr.bf16.mxu1 %v21837_v36  ;;  %v23851_v63 = vrot.slane %v7638_v39, 1 }
 0x192   : > { %19405 = vmatmul.mubr.bf16.gmra.mrb[8].mxu1 %v26426_v19  ;;  %18976 = vmatprep.mubr.bf16.mxu0 %v26427_v18  ;;  %v26441_v19 = vld [vmem:[#allocation24_spill] sm:$0xff]  ;;  %v21857_v18 = vld [vmem:[#allocation2 + $0x50] sm:$0xff]  }
 0x193   : > { %19408 = vmatprep.mubr.bf16.mxu1 %v26428_v30  ;;  %19005 = vmatpush3.bf16.msra.mxu0 %v21830_v35  ;;  %v23846_v35 = vld [vmem:[#allocation2 + $0x50] sm:$0xff]   ;;  %v21854_v30 = vld [vmem:[#allocation2 + $0x48] sm:$0xff]  }
 0x194   : > { %19006 = vmatprep.subr.bf16.mxu0 %v21833_v37  ;;  %19437 = vmatpush3.bf16.msra.mxu1 %v21837_v36  ;;  %v7654_v36 = vshll.u32 %v23835_v3, 16 }
 0x195   : > { %19438 = vmatprep.subr.bf16.mxu1 %v21838_v48 }
 0x196   : > { %v23873_v60 = vrot.slane %v7654_v36, 1 }
 0x197   : > { %19007 = vmatpush3.bf16.msra.mxu0 %v21833_v37  ;;  %v23849_v37 = vld [vmem:[#allocation2 + $0xd0] sm:$0xff]  }
 0x198   : > { %19008 = vmatprep.subr.bf16.mxu0 %v21836_v9  ;;  %19439 = vmatpush3.bf16.msra.mxu1 %v21838_v48  ;;  %v3449_v48 = vshll.u32 %v23837_v4, 16 }
 0x199   : > { %18977 = vmatmul.mubr.bf16.gmra.mrb[12].mxu0 %v26429_v58  ;;  %19440 = vmatprep.subr.bf16.mxu1 %v21840_v13  ;;  %v26442_v58 = vld [vmem:[#allocation25_spill] sm:$0xff] }
 0x19a   : > { %19409 = vmatmul.mubr.bf16.gmra.mrb[12].mxu1 %v26430_v50  ;;  %18980 = vmatprep.mubr.bf16.mxu0 %v26431_v61  ;;  %v23865_v50 = vrot.slane %v7646_v29, 1  ;;  %v23878_v49 = vrot.slane %v3449_v48, 1  ;;  %v23961_v61 = vld [vmem:[#allocation2 + $0x70] sm:$0xff]  }
 0x19b   : > { %19412 = vmatprep.mubr.bf16.mxu1 %v26432_v44  ;;  %19009 = vmatpush3.bf16.msra.mxu0 %v21836_v9  ;;  %v23868_v44 = vld [vmem:[#allocation2 + $0xd8] sm:$0xff]   ;;  %v3828_v9 = vrot.slane %v23837_v4, 1 }
 0x19c   : > { %19010 = vmatprep.subr.bf16.mxu0 %v21839_v27  ;;  %19441 = vmatpush3.bf16.msra.mxu1 %v21840_v13  ;;  %v7662_v13 = vshll.u32 %v23843_v14, 16  ;;  %v7678_v20 = vshll.u32 %v23868_v44, 16 }
 0x19d   : > { %19442 = vmatprep.subr.bf16.mxu1 %v21841_v42 }
 0x19e   : > { %v23882_v17 = vrot.slane %v7662_v13, 1  ;;  %v23902_v36 = vrot.slane %v7678_v20, 1  ;;  %v26372_v13 = vrot.slane %v23791_v53, 1  ;;  %v23934_v20 = vld [vmem:[#allocation2 + $0x68] sm:$0xff]  }
 0x19f   : > { %19011 = vmatpush3.bf16.msra.mxu0 %v21839_v27  ;;  %v23859_v27 = vld [vmem:[#allocation2 + $0x58] sm:$0xff]  }
 0x1a0   : > { %19443 = vmatpush3.bf16.msra.mxu1 %v21841_v42  ;;  %19044 = vmatprep.subr.bf16.mxu0 %v23779_v32  ;;  %v23863_v42 = vrot.slane %v3433_v25, 1  ;;  %v3465_v23 = vshll.u32 %v23859_v27, 16  ;;  %v3832_v15 = vrot.slane %v23859_v27, 1 }
 0x1a1   : > { %18981 = vmatmul.mubr.bf16.gmra.mrb[16].mxu0 %v26433_v2  ;;  %19476 = vmatprep.subr.bf16.mxu1 %v23784_v26  ;;  %v3457_v2 = vshll.u32 %v23846_v35, 16 }
 0x1a2   : > { %19413 = vmatmul.mubr.bf16.gmra.mrb[16].mxu1 %v26434_v1  ;;  %18984 = vmatprep.mubr.bf16.mxu0 %v26435_v62  ;;  %v7670_v1 = vshll.u32 %v23849_v37, 16  ;;  %v21842_v62 = vld [vmem:[#allocation2 + $0x20] sm:$0xff]   ;;  %v23898_v29 = vrot.slane %v3465_v23, 1  ;;  %v3822_v23 = vrot.slane %v23800_v47, 1 }
 0x1a3   : > { %19416 = vmatprep.mubr.bf16.mxu1 %v26436_v16  ;;  %v3826_v16 = vrot.slane %v23826_v57, 1 }
 0x1a4   : > { %v23914_v39 = vsel %vm1380_vm2, %v26372_v13, %v3822_v23  ;;  %v21855_v13 = vld [vmem:[%s26366_s1 + $0x1d0] sm:$0xff]  }
 0x1a5   : > { %26443 = vst [vmem:[#allocation5_spill] sm:$0xff] %v23914_v39  ;;  %v23975_v40 = vsel %vm1380_vm2, %v3826_v16, %v3828_v9  ;;  %v21876_v39 = vld [vmem:[#allocation2 + $0x80] sm:$0xff]  }
 0x1a6   : > { %26447 = vst [vmem:[#allocation9_spill] sm:$0xff] %v23975_v40  ;;  %v21889_v40 = vld [vmem:[%s26366_s1 + $0x1f8] sm:$0xff]  }
 0x1a9   : > { %18985 = vmatmul.mubr.bf16.gmra.mrb[20].mxu0 %v26437_v6  ;;  %v23886_v6 = vld [vmem:[#allocation2 + $0x60] sm:$0xff]  }
 0x1aa   : > { %19417 = vmatmul.mubr.bf16.gmra.mrb[20].mxu1 %v26438_v51  ;;  %18988 = vmatprep.mubr.bf16.mxu0 %v26439_v52  ;;  %v23889_v51 = vld [vmem:[#allocation2 + $0xe0] sm:$0xff]   ;;  %v23891_v52 = vrot.slane %v3457_v2, 1  ;;  %v3473_v48 = vshll.u32 %v23886_v6, 16  ;;  %v21844_v2 = vld [vmem:[#allocation2 + $0x28] sm:$0xff]  }
 0x1ab   : > { %19420 = vmatprep.mubr.bf16.mxu1 %v26440_v10  ;;  %v23893_v10 = vrot.slane %v7670_v1, 1  ;;  %v26373_v1 = vrot.slane %v23798_v38, 1 }
 0x1b1   : > { %18989 = vmatmul.mubr.bf16.gmra.mrb[24].mxu0 %v26441_v19  ;;  %v7686_v19 = vshll.u32 %v23889_v51, 16 }
 0x1b2   : > { %19421 = vmatmul.mubr.bf16.gmra.mrb[24].mxu1 %v26442_v58  ;;  %18992 = vmatprep.mubr.bf16.mxu0 %v23538_v43  ;;  %v8011_v58 = vld [vmem:[#allocation2 + $0xa0] sm:$0xe]  ;;  %v21851_v43 = vld [vmem:[#allocation2 + $0xb8] sm:$0xff]  }
 0x1b3   : > { %19424 = vmatprep.mubr.bf16.mxu1 %v23541_v5  ;;  %v23924_v5 = vrot.slane %v7686_v19, 1  ;;  %v3824_v19 = vrot.slane %v23815_v56, 1 }
 0x1b9   : > { %18993 = vmatmul.mubr.bf16.gmra.mrb[28].mxu0 %v23544_v55  ;;  %v17130_v55 = vcombine.low %v8011_v58, %v23795_v59  ;;  %v21868_v59 = vld [vmem:[%s26366_s1 + $0x1c8] sm:$0xff]   ;;  %v23922_v58 = vrot.slane %v3473_v48, 1  ;;  %v21853_v48 = vld [vmem:[#allocation2 + $0xc0] sm:$0xff]  }
 0x1ba   : > { %19425 = vmatmul.mubr.bf16.gmra.mrb[28].mxu1 %v23553_v12  ;;  %19012 = vmatprep.mubr.bf16.mxu0 %v21842_v62  ;;  %v21847_v12 = vld [vmem:[#allocation2 + $0x30] sm:$0xff]  }
 0x1bb   : > { %19444 = vmatprep.mubr.bf16.mxu1 %v21843_v31  ;;  %v21848_v62 = vld [vmem:[#allocation2 + $0xb0] sm:$0xff]   ;;  %v8031_v25 = vrot.slane %v17130_v55, 1  ;;  %v21850_v31 = vld [vmem:[%s26366_s1 + $0x1c8] sm:$0xff]  }
 0x1bd   : > { %v23929_v55 = vsel %vm1380_vm2, %v8031_v25, %v26373_v1  ;;  %v21849_v25 = vld [vmem:[#allocation2 + $0x38] sm:$0xff]  }
 0x1be   : > { %26444 = vst [vmem:[#allocation6_spill] sm:$0xff] %v23929_v55  ;;  %v21875_v1 = vld [vmem:[%s26366_s1 + $0x1d8] sm:$0xff]  }
 0x1c1   : > { %19013 = vmatmul.mubr.bf16.vlgmr.msra.gmra.mrb[0].mxu0 %v21844_v2  ;;  %v21874_v2 = vld [vmem:[%s26366_s1 + $0x1d0] sm:$0xff]  }
 0x1c2   : > { %19445 = vmatmul.mubr.bf16.vlgmr.msra.gmra.mrb[0].mxu1 %v21846_v34  ;;  %19045 = vmatpush3.bf16.msra.mxu0 %v23779_v32  ;;  %v21852_v34 = vld [vmem:[#allocation2 + $0x40] sm:$0xff]   ;;  %v23948_v32 = vsel %vm1380_vm2, %v3822_v23, %v3824_v19  ;;  %v7694_v23 = vshll.u32 %v23936_v46, 16 }
 0x1c3   : > { %19016 = vmatprep.mubr.bf16.mxu0 %v21847_v12  ;;  %19448 = vmatprep.mubr.bf16.mxu1 %v21848_v62  ;;  %26445 = vst [vmem:[#allocation7_spill] sm:$0xff] %v23948_v32  ;;  %v23951_v12 = vsel %vm1380_vm2, %v3824_v19, %v3826_v16  ;;  %v21860_v62 = vld [vmem:[%s26366_s1 + $0x1d8] sm:$0xff]   ;;  %v21858_v19 = vld [vmem:[#allocation2 + $0xd0] sm:$0xff]   ;;  %v3489_v16 = vshll.u32 %v23961_v61, 16 }
 0x1c4   : > { %19046 = vmatprep.subr.bf16.mxu0 %v21850_v31  ;;  %19477 = vmatpush3.bf16.msra.mxu1 %v23784_v26  ;;  %26446 = vst [vmem:[#allocation8_spill] sm:$0xff] %v23951_v12  ;;  %v3481_v26 = vshll.u32 %v23934_v20, 16 }
 0x1c5   : > { %19478 = vmatprep.subr.bf16.mxu1 %v21868_v59  ;;  %v24013_v12 = vrot.slane %v3489_v16, 1  ;;  %v3836_v16 = vrot.slane %v23934_v20, 1 }
 0x1c6   : > { %19047 = vmatpush3.bf16.msra.mxu0 %v21850_v31  ;;  %v21865_v31 = vld [vmem:[%s26366_s1 + $0x1e0] sm:$0xff]  }
 0x1c7   : > { %19048 = vmatprep.subr.bf16.mxu0 %v21855_v13 }
 0x1c8   : > { %19479 = vmatpush3.bf16.msra.mxu1 %v21868_v59  ;;  %v21881_v59 = vld [vmem:[%s26366_s1 + $0x1e0] sm:$0xff]  }
 0x1c9   : > { %19017 = vmatmul.mubr.bf16.gmra.mrb[4].mxu0 %v21849_v25  ;;  %19480 = vmatprep.subr.bf16.mxu1 %v21874_v2  ;;  %v23971_v25 = vrot.slane %v3481_v26, 1  ;;  %v21872_v26 = vld [vmem:[%s26366_s1 + $0x1e8] sm:$0xff]  }
 0x1ca   : > { %19449 = vmatmul.mubr.bf16.gmra.mrb[4].mxu1 %v21851_v43  ;;  %19020 = vmatprep.mubr.bf16.mxu0 %v21852_v34  ;;  %v3830_v43 = vrot.slane %v23846_v35, 1  ;;  %v21856_v34 = vld [vmem:[#allocation2 + $0xc8] sm:$0xff]  }
 0x1cb   : > { %19452 = vmatprep.mubr.bf16.mxu1 %v21853_v48  ;;  %19049 = vmatpush3.bf16.msra.mxu0 %v21855_v13  ;;  %v23977_v48 = vld [vmem:[#allocation2 + $0xf0] sm:$0xff]  }
 0x1cc   : > { %19050 = vmatprep.subr.bf16.mxu0 %v21860_v62  ;;  %19481 = vmatpush3.bf16.msra.mxu1 %v21874_v2  ;;  %26448 = vst [vmem:[#allocation10_spill] sm:$0xff] %v23977_v48  ;;  %v23980_v13 = vsel %vm1380_vm2, %v3828_v9, %v3830_v43  ;;  %v23988_v2 = vrot.slane %v7694_v23, 1  ;;  %v21879_v9 = vld [vmem:[%s26366_s1 + $0x1f0] sm:$0xff]  }
 0x1cd   : > { %19482 = vmatprep.subr.bf16.mxu1 %v21875_v1  ;;  %26449 = vst [vmem:[#allocation11_spill] sm:$0xff] %v23980_v13  ;;  %v21888_v23 = vld [vmem:[%s26366_s1 + $0x1f0] sm:$0xff]   ;;  %v24002_v13 = vsel %vm1380_vm2, %v3830_v43, %v3832_v15  ;;  %v24017_v43 = vld [vmem:[#allocation2 + $0x78] sm:$0xff]  }
 0x1ce   : > { %26450 = vst [vmem:[#allocation12_spill] sm:$0xff] %v24002_v13  ;;  %26453 = vst [vmem:[#allocation15_spill] sm:$0xff] %v24017_v43  ;;  %v24033_v13 = vld [vmem:[#allocation2 + $0xf8] sm:$0xff]   ;;  %v3497_v32 = vshll.u32 %v24017_v43, 16 }
 0x1cf   : > { %19051 = vmatpush3.bf16.msra.mxu0 %v21860_v62  ;;  %v21863_v62 = vld [vmem:[#allocation2 + $0xe0] sm:$0xff]   ;;  %26454 = vst [vmem:[#allocation16_spill] sm:$0xff] %v24033_v13 }
 0x1d0   : > { %19052 = vmatprep.subr.bf16.mxu0 %v21865_v31  ;;  %19483 = vmatpush3.bf16.msra.mxu1 %v21875_v1  ;;  %v3834_v1 = vrot.slane %v23886_v6, 1 }
 0x1d1   : > { %19021 = vmatmul.mubr.bf16.gmra.mrb[8].mxu0 %v21854_v30  ;;  %19484 = vmatprep.subr.bf16.mxu1 %v21881_v59  ;;  %v7702_v30 = vshll.u32 %v23977_v48, 16  ;;  %v24060_v48 = vld [vmem:[#allocation2 + $0x90] sm:$0xff]  }
 0x1d2   : > { %19453 = vmatmul.mubr.bf16.gmra.mrb[8].mxu1 %v21856_v34  ;;  %19024 = vmatprep.mubr.bf16.mxu0 %v21857_v18  ;;  %v21861_v18 = vld [vmem:[#allocation2 + $0xd8] sm:$0xff]   ;;  %v21862_v34 = vld [vmem:[#allocation2 + $0x60] sm:$0xff]   ;;  %26460 = vst [vmem:[#allocation22_spill] sm:$0xff] %v24060_v48 }
 0x1d3   : > { %19456 = vmatprep.mubr.bf16.mxu1 %v21858_v19  ;;  %19053 = vmatpush3.bf16.msra.mxu0 %v21865_v31  ;;  %v24005_v19 = vsel %vm1380_vm2, %v3832_v15, %v3834_v1  ;;  %v21886_v31 = vld [vmem:[%s26366_s1 + $0x1f8] sm:$0xff]   ;;  %v24022_v15 = vld [vmem:[%s26366_s1 + $0x200] sm:$0xff]  }
 0x1d4   : > { %19054 = vmatprep.subr.bf16.mxu0 %v21872_v26  ;;  %19485 = vmatpush3.bf16.msra.mxu1 %v21881_v59  ;;  %26451 = vst [vmem:[#allocation13_spill] sm:$0xff] %v24005_v19  ;;  %v24015_v59 = vrot.slane %v7702_v30, 1  ;;  %v21864_v30 = vld [vmem:[#allocation2 + $0x68] sm:$0xff]   ;;  %v21869_v19 = vld [vmem:[#allocation2 + $0x70] sm:$0xff]  }
 0x1d5   : > { %19486 = vmatprep.subr.bf16.mxu1 %v21882_v21 }
 0x1d6   : > { %26452 = vst [vmem:[#allocation14_spill] sm:$0xff] %v24015_v59  ;;  %v24067_v59 = vld [vmem:[#allocation2 + $0x100] sm:$0xff]  }
 0x1d7   : > { %19055 = vmatpush3.bf16.msra.mxu0 %v21872_v26  ;;  %v24036_v26 = vsel %vm1380_vm2, %v3834_v1, %v3836_v16  ;;  %v3840_v1 = vrot.slane %v24017_v43, 1  ;;  %v21883_v43 = vld [vmem:[#allocation2 + $0x90] sm:$0xff]  }
 0x1d8   : > { %19056 = vmatprep.subr.bf16.mxu0 %v21879_v9  ;;  %19487 = vmatpush3.bf16.msra.mxu1 %v21882_v21  ;;  %26455 = vst [vmem:[#allocation17_spill] sm:$0xff] %v24036_v26  ;;  %v24042_v21 = vld [vmem:[#allocation2 + $0x80] sm:$0xff]   ;;  %v21873_v26 = vld [vmem:[#allocation2 + $0xf8] sm:$0xff]  }
 0x1d9   : > { %19025 = vmatmul.mubr.bf16.gmra.mrb[12].mxu0 %v21859_v28  ;;  %19488 = vmatprep.subr.bf16.mxu1 %v21888_v23  ;;  %v24029_v28 = vld [vmem:[%s26366_s1 + $0x200] sm:$0xff]  }
 0x1da   : > { %19457 = vmatmul.mubr.bf16.gmra.mrb[12].mxu1 %v21861_v18  ;;  %19028 = vmatprep.mubr.bf16.mxu0 %v21862_v34  ;;  %v3838_v18 = vrot.slane %v23961_v61, 1  ;;  %v21866_v34 = vld [vmem:[#allocation2 + $0xe8] sm:$0xff]  }
 0x1db   : > { %19460 = vmatprep.mubr.bf16.mxu1 %v21863_v62  ;;  %19057 = vmatpush3.bf16.msra.mxu0 %v21879_v9  ;;  %v21870_v62 = vld [vmem:[#allocation2 + $0xf0] sm:$0xff]  }
 0x1dc   : > { %19058 = vmatprep.subr.bf16.mxu0 %v21886_v31  ;;  %19489 = vmatpush3.bf16.msra.mxu1 %v21888_v23  ;;  %v24039_v9 = vsel %vm1380_vm2, %v3836_v16, %v3838_v18  ;;  %v7710_v23 = vshll.u32 %v24033_v13, 16  ;;  %v21871_v16 = vld [vmem:[#allocation2 + $0x78] sm:$0xff]  }
 0x1dd   : > { %19490 = vmatprep.subr.bf16.mxu1 %v21889_v40  ;;  %26456 = vst [vmem:[#allocation18_spill] sm:$0xff] %v24039_v9  ;;  %v3842_v9 = vrot.slane %v24042_v21, 1  ;;  %v21887_v13 = vld [vmem:[#allocation2 + $0x118] sm:$0xff]  }
 0x1df   : > { %19059 = vmatpush3.bf16.msra.mxu0 %v21886_v31  ;;  %v24054_v55 = vsel %vm1380_vm2, %v3840_v1, %v3842_v9 }
 0x1e0   : > { %19491 = vmatpush3.bf16.msra.mxu1 %v21889_v40  ;;  %19092 = vmatprep.subr.bf16.mxu0 %v24022_v15  ;;  %v24051_v40 = vsel %vm1380_vm2, %v3838_v18, %v3840_v1  ;;  %26458 = vst [vmem:[#allocation20_spill] sm:$0xff] %v24054_v55  ;;  %v21878_v18 = vld [vmem:[#allocation2 + $0x88] sm:$0xff]   ;;  %v3846_v1 = vrot.slane %v24060_v48, 1  ;;  %v7718_v48 = vshll.u32 %v24067_v59, 16 }
 0x1e1   : > { %19029 = vmatmul.mubr.bf16.gmra.mrb[16].mxu0 %v21864_v30  ;;  %19524 = vmatprep.subr.bf16.mxu1 %v24029_v28  ;;  %26457 = vst [vmem:[#allocation19_spill] sm:$0xff] %v24051_v40  ;;  %v21877_v30 = vld [vmem:[#allocation2 + $0x100] sm:$0xff]   ;;  %v3505_v40 = vshll.u32 %v24042_v21, 16  ;;  %v21880_v55 = vld [vmem:[#allocation2 + $0x108] sm:$0xff]  }
 0x1e2   : > { %19461 = vmatmul.mubr.bf16.gmra.mrb[16].mxu1 %v21866_v34  ;;  %19032 = vmatprep.mubr.bf16.mxu0 %v21869_v19  ;;  %v24056_v19 = vld [vmem:[#allocation2 + $0x88] sm:$0xff]   ;;  %v24058_v34 = vrot.slane %v3497_v32, 1 }
 0x1e3   : > { %19464 = vmatprep.mubr.bf16.mxu1 %v21870_v62  ;;  %v24062_v62 = vrot.slane %v7710_v23, 1  ;;  %v3844_v31 = vrot.slane %v24056_v19, 1  ;;  %v24076_v23 = vld [vmem:[#allocation2 + $0x98] sm:$0xff]  }
 0x1e4   : > { %26459 = vst [vmem:[#allocation21_spill] sm:$0xff] %v24058_v34  ;;  %v26465_v34 = vshrl.u32 %v23804_v24, 16 }
 0x1e5   : > { %26461 = vst [vmem:[#allocation23_spill] sm:$0xff] %v24062_v62  ;;  %v24070_v32 = vsel %vm1380_vm2, %v3842_v9, %v3844_v31  ;;  %v3848_v62 = vrot.slane %v24076_v23, 1  ;;  %v21885_v9 = vld [vmem:[#allocation2 + $0x98] sm:$0xff]  }
 0x1e6   : > { %26462 = vst [vmem:[#allocation24_spill] sm:$0xff] %v24070_v32  ;;  %v26464_v32 = vshrl.u32 %v23789_v0, 16 }
 0x1e9   : > { %19033 = vmatmul.mubr.bf16.gmra.mrb[20].mxu0 %v21871_v16  ;;  %v21884_v16 = vld [vmem:[#allocation2 + $0x110] sm:$0xff]  }
 0x1ea   : > { %19465 = vmatmul.mubr.bf16.gmra.mrb[20].mxu1 %v21873_v26  ;;  %19036 = vmatprep.mubr.bf16.mxu0 %v21876_v39  ;;  %v24073_v39 = vsel %vm1380_vm2, %v3844_v31, %v3846_v1  ;;  %v3415_v31 = vor.u32 %v23821_v22, %v26464_v32  ;;  %v24100_v22 = vrot.slane %v3505_v40, 1  ;;  %v24102_v32 = vrot.slane %v7718_v48, 1 }
 0x1eb   : > { %19468 = vmatprep.mubr.bf16.mxu1 %v21877_v30  ;;  %26463 = vst [vmem:[#allocation25_spill] sm:$0xff] %v24073_v39  ;;  %v24078_v30 = vld [vmem:[#allocation2 + $0xa0] ss:$0 sps:$4 sm:$0x11]   ;;  %v3513_v39 = vshll.u32 %v24056_v19, 16  ;;  %v26467_v48 = vshrl.u32 %v23798_v38, 16 }
 0x1ec   : > { %v3850_v26 = vrot.slane %v24078_v30, 1  ;;  %v3420_v0 = vsel %vm969_vm1, %v3415_v31, %v23823_v45 }
 0x1ed   : > { %v7636_v31 = vor.u32 %v26467_v48, %v23830_v54 }
 0x1f1   : > { %19037 = vmatmul.mubr.bf16.gmra.mrb[24].mxu0 %v21878_v18  ;;  %v24093_v18 = vsel %vm1380_vm2, %v3846_v1, %v3848_v62  ;;  %v24110_v1 = vrot.slane %v3513_v39, 1 }
 0x1f2   : > { %19469 = vmatmul.mubr.bf16.gmra.mrb[24].mxu1 %v21880_v55  ;;  %19040 = vmatprep.mubr.bf16.mxu0 %v21883_v43  ;;  %v7628_v55 = vor.u32 %v23839_v11, %v26465_v34  ;;  %v24090_v43 = vld [vmem:[#allocation2 + $0x108] sm:$0xff]   ;;  %v26466_v11 = vshrl.u32 %v23791_v53, 16 }
 0x1f3   : > { %19472 = vmatprep.mubr.bf16.mxu1 %v21884_v16  ;;  %v24096_v16 = vsel %vm1380_vm2, %v3848_v62, %v3850_v26  ;;  %v3509_v62 = vshrl.u32 %v24042_v21, 16  ;;  %v7722_v26 = vshrl.u32 %v24067_v59, 16  ;;  %v7726_v40 = vshll.u32 %v24090_v43, 16 }
 0x1f4   : > { %v7633_v24 = vsel %vm969_vm1, %v7628_v55, %v23830_v54  ;;  %v3423_v34 = vor.u32 %v26466_v11, %v23823_v45  ;;  %v26469_v45 = vshrl.u32 %v23807_v33, 16  ;;  %v7641_v11 = vsel %vm969_vm1, %v7636_v31, %v23851_v63  ;;  %v21918_v54 = vld [vmem:[%s26366_s1 + $0x208] sm:$0xff]  }
 0x1f5   : > { %v26472_v31 = vshrl.u32 %v23826_v57, 16  ;;  %v21910_v57 = vld [vmem:[%s26366_s1 + $0x218] sm:$0xff]  }
 0x1f6   : > { %v3428_v39 = vsel %vm969_vm1, %v3423_v34, %v23832_v41  ;;  %v26471_v34 = vshrl.u32 %v23817_v7, 16 }
 0x1f8   : > { %v7652_v48 = vor.u32 %v26471_v34, %v23865_v50  ;;  %v26480_v34 = vshrl.u32 %v23886_v6, 16  ;;  %v21936_v6 = vld [vmem:[%s26366_s1 + $0x238] sm:$0xff]  }
 0x1f9   : > { %19041 = vmatmul.mubr.bf16.gmra.mrb[28].mxu0 %v21885_v9  ;;  %v26468_v9 = vshrl.u32 %v23800_v47, 16 }
 0x1fa   : > { %19473 = vmatmul.mubr.bf16.gmra.mrb[28].mxu1 %v21887_v13  ;;  %19060 = vmatprep.mubr.bf16.mxu0 %v3420_v0  ;;  %v7644_v13 = vor.u32 %v26469_v45, %v23851_v63  ;;  %v21900_v0 = vld [vmem:[%s26366_s1 + $0x208] sm:$0xff]   ;;  %v26470_v63 = vshrl.u32 %v23815_v56, 16  ;;  %v21915_v45 = vld [vmem:[%s26366_s1 + $0x220] sm:$0xff]  }
 0x1fb   : > { %19492 = vmatprep.mubr.bf16.mxu1 %v7633_v24  ;;  %v3431_v55 = vor.u32 %v26468_v9, %v23832_v41  ;;  %v21905_v41 = vld [vmem:[%s26366_s1 + $0x210] sm:$0xff]   ;;  %v3447_v9 = vor.u32 %v26472_v31, %v23871_v8 }
 0x1fc   : > { %v7649_v33 = vsel %vm969_vm1, %v7644_v13, %v23865_v50  ;;  %v3439_v24 = vor.u32 %v26470_v63, %v23863_v42  ;;  %v26475_v13 = vshrl.u32 %v23843_v14, 16  ;;  %v26479_v63 = vshrl.u32 %v23868_v44, 16  ;;  %v21938_v31 = vld [vmem:[%s26366_s1 + $0x230] sm:$0xff]  }
 0x1fd   : > { %v3436_v47 = vsel %vm969_vm1, %v3431_v55, %v23863_v42  ;;  %v21924_v55 = vld [vmem:[%s26366_s1 + $0x210] sm:$0xff]   ;;  %v7657_v42 = vsel %vm969_vm1, %v7652_v48, %v23873_v60  ;;  %v3452_v50 = vsel %vm969_vm1, %v3447_v9, %v23878_v49  ;;  %v3479_v48 = vor.u32 %v26480_v34, %v23922_v58 }
 0x1fe   : > { %v3444_v7 = vsel %vm969_vm1, %v3439_v24, %v23871_v8  ;;  %v26474_v8 = vshrl.u32 %v23837_v4, 16  ;;  %v26477_v4 = vshrl.u32 %v23849_v37, 16  ;;  %v21932_v37 = vld [vmem:[%s26366_s1 + $0x228] sm:$0xff]   ;;  %v7684_v24 = vor.u32 %v26479_v63, %v23902_v36 }
 0x1ff   : > { %v3484_v9 = vsel %vm969_vm1, %v3479_v48, %v23971_v25 }
 0x201   : > { %19061 = vmatmul.mubr.bf16.vlgmr.msra.gmra.mrb[0].mxu0 %v3428_v39  ;;  %v7668_v39 = vor.u32 %v26475_v13, %v23882_v17 }
 0x202   : > { %19493 = vmatmul.mubr.bf16.vlgmr.msra.gmra.mrb[0].mxu1 %v7641_v11  ;;  %19093 = vmatpush3.bf16.msra.mxu0 %v24022_v15  ;;  %v26473_v15 = vshrl.u32 %v23835_v3, 16  ;;  %v21925_v3 = vld [vmem:[%s26366_s1 + $0x218] sm:$0xff]  }
 0x203   : > { %19064 = vmatprep.mubr.bf16.mxu0 %v3436_v47  ;;  %19496 = vmatprep.mubr.bf16.mxu1 %v7649_v33 }
 0x204   : > { %19094 = vmatprep.subr.bf16.mxu0 %v21900_v0  ;;  %v7660_v56 = vor.u32 %v26473_v15, %v23873_v60  ;;  %19525 = vmatpush3.bf16.msra.mxu1 %v24029_v28  ;;  %v3455_v60 = vor.u32 %v26474_v8, %v23878_v49  ;;  %v7676_v49 = vor.u32 %v26477_v4, %v23893_v10  ;;  %v24241_v15 = vld [vmem:[%s26368_s3] sm:$0xff]  }
 0x205   : > { %19526 = vmatprep.subr.bf16.mxu1 %v21918_v54  ;;  %v3511_v4 = vor.u32 %v3509_v62, %v24100_v22 }
 0x206   : > { %19095 = vmatpush3.bf16.msra.mxu0 %v21900_v0  ;;  %v7665_v28 = vsel %vm969_vm1, %v7660_v56, %v23882_v17  ;;  %v26476_v0 = vshrl.u32 %v23846_v35, 16  ;;  %v3460_v14 = vsel %vm969_vm1, %v3455_v60, %v23891_v52  ;;  %v21922_v17 = vld [vmem:[%s26366_s1 + $0x228] sm:$0xff]   ;;  %v7673_v35 = vsel %vm969_vm1, %v7668_v39, %v23893_v10 }
 0x207   : > { %19096 = vmatprep.subr.bf16.mxu0 %v21905_v41  ;;  %v7681_v33 = vsel %vm969_vm1, %v7676_v49, %v23902_v36  ;;  %v7689_v36 = vsel %vm969_vm1, %v7684_v24, %v23924_v5  ;;  %v26483_v56 = vshrl.u32 %v23936_v46, 16  ;;  %v26488_v46 = vld [vmem:[#allocation21_spill] sm:$0xff]  ;;  %v7724_v49 = vor.u32 %v7722_v26, %v24102_v32 }
 0x208   : > { %19527 = vmatpush3.bf16.msra.mxu1 %v21918_v54  ;;  %v3463_v11 = vor.u32 %v26476_v0, %v23891_v52  ;;  %v21931_v54 = vld [vmem:[%s26366_s1 + $0x220] sm:$0xff]   ;;  %v26478_v52 = vshrl.u32 %v23859_v27, 16  ;;  %v26481_v27 = vshrl.u32 %v23889_v51, 16  ;;  %v21939_v51 = vld [vmem:[%s26366_s1 + $0x238] sm:$0xff]   ;;  %v3516_v26 = vsel %vm969_vm1, %v3511_v4, %v24110_v1 }
 0x209   : > { %19065 = vmatmul.mubr.bf16.gmra.mrb[4].mxu0 %v3444_v7  ;;  %19528 = vmatprep.subr.bf16.mxu1 %v21924_v55  ;;  %v7700_v7 = vor.u32 %v26483_v56, %v23988_v2  ;;  %v26492_v0 = vld [vmem:[#allocation16_spill] sm:$0xff] }
 0x20a   : > { %19497 = vmatmul.mubr.bf16.gmra.mrb[4].mxu1 %v7657_v42  ;;  %19068 = vmatprep.mubr.bf16.mxu0 %v3452_v50  ;;  %v3468_v47 = vsel %vm969_vm1, %v3463_v11, %v23898_v29  ;;  %v3471_v10 = vor.u32 %v26478_v52, %v23898_v29  ;;  %v7692_v29 = vor.u32 %v26481_v27, %v23924_v5  ;;  %v26482_v5 = vshrl.u32 %v23934_v20, 16  ;;  %v26485_v50 = vld [vmem:[#allocation14_spill] sm:$0xff]  ;;  %v24295_v27 = vld [vmem:[#allocation2 + $0x120] ss:$0 sps:$4 sm:$0x11]  }
 0x20b   : > { %19500 = vmatprep.mubr.bf16.mxu1 %v7665_v28  ;;  %19097 = vmatpush3.bf16.msra.mxu0 %v21905_v41  ;;  %v21929_v41 = vld [vmem:[%s26366_s1 + $0x230] sm:$0xff]   ;;  %v7705_v8 = vsel %vm969_vm1, %v7700_v7, %v26485_v50  ;;  %v26493_v11 = vshrl.u32 %v26492_v0, 16  ;;  %v7730_v52 = vshrl.u32 %v24090_v43, 16  ;;  %v22290_v56 = vld [vmem:[#allocation2 + $0x24] sm:$0xf] }
 0x20c   : > { %19098 = vmatprep.subr.bf16.mxu0 %v21910_v57  ;;  %19529 = vmatpush3.bf16.msra.mxu1 %v21924_v55  ;;  %v3476_v44 = vsel %vm969_vm1, %v3471_v10, %v23922_v58  ;;  %v7697_v55 = vsel %vm969_vm1, %v7692_v29, %v23988_v2  ;;  %v3487_v58 = vor.u32 %v26482_v5, %v23971_v25  ;;  %v3529_v10 = vshll.u32 %v24076_v23, 16  ;;  %v22293_v4 = vld [vmem:[#allocation2 + $0xc0] sm:$0xff]  }
 0x20d   : > { %19530 = vmatprep.subr.bf16.mxu1 %v21925_v3 }
 0x20e   : > { %v3492_v25 = vsel %vm969_vm1, %v3487_v58, %v24013_v12  ;;  %v7750_v58 = vshll.u32 %v24295_v27, 16 }
 0x20f   : > { %19099 = vmatpush3.bf16.msra.mxu0 %v21910_v57  ;;  %v26484_v57 = vshrl.u32 %v23961_v61, 16  ;;  %v26489_v61 = vld [vmem:[#allocation23_spill] sm:$0xff] }
 0x210   : > { %19100 = vmatprep.subr.bf16.mxu0 %v21915_v45  ;;  %19531 = vmatpush3.bf16.msra.mxu1 %v21925_v3  ;;  %v26486_v3 = vld [vmem:[#allocation10_spill] sm:$0xff] }
 0x211   : > { %19069 = vmatmul.mubr.bf16.gmra.mrb[8].mxu0 %v3460_v14  ;;  %19532 = vmatprep.subr.bf16.mxu1 %v21931_v54  ;;  %v3495_v42 = vor.u32 %v26484_v57, %v24013_v12  ;;  %v26487_v28 = vshrl.u32 %v26486_v3, 16  ;;  %v26490_v12 = vld [vmem:[#allocation15_spill] sm:$0xff]  ;;  %v7728_v14 = vrot.slane %v7726_v40, 1 }
 0x212   : > { %19501 = vmatmul.mubr.bf16.gmra.mrb[8].mxu1 %v7673_v35  ;;  %19072 = vmatprep.mubr.bf16.mxu0 %v3468_v47  ;;  %v26491_v13 = vshrl.u32 %v26490_v12, 16  ;;  %v26494_v35 = vld [vmem:[#allocation22_spill] sm:$0xff] }
 0x213   : > { %19504 = vmatprep.mubr.bf16.mxu1 %v7681_v33  ;;  %19101 = vmatpush3.bf16.msra.mxu0 %v21915_v45  ;;  %v7708_v20 = vor.u32 %v26487_v28, %v26485_v50  ;;  %v3500_v2 = vsel %vm969_vm1, %v3495_v42, %v26488_v46  ;;  %v24260_v45 = vld [vmem:[#allocation2 + $0x110] sm:$0xff]   ;;  %v3521_v47 = vshll.u32 %v26494_v35, 16  ;;  %v3517_v33 = vshrl.u32 %v24056_v19, 16 }
 0x214   : > { %19102 = vmatprep.subr.bf16.mxu0 %v21922_v17  ;;  %19533 = vmatpush3.bf16.msra.mxu1 %v21931_v54  ;;  %v3503_v39 = vor.u32 %v26491_v13, %v26488_v46  ;;  %v7716_v54 = vor.u32 %v26493_v11, %v26489_v61  ;;  %v7734_v21 = vshll.u32 %v24260_v45, 16  ;;  %v3525_v40 = vshrl.u32 %v26494_v35, 16  ;;  %v26496_v46 = vld [vmem:[#allocation6_spill] sm:$0xff] }
 0x215   : > { %19534 = vmatprep.subr.bf16.mxu1 %v21932_v37  ;;  %v7713_v60 = vsel %vm969_vm1, %v7708_v20, %v26489_v61  ;;  %v3523_v63 = vrot.slane %v3521_v47, 1  ;;  %v3519_v24 = vor.u32 %v3517_v33, %v24110_v1  ;;  %v26497_v13 = vrot.slane %v23798_v38, 1  ;;  %v26501_v33 = vld [vmem:[#allocation9_spill] sm:$0xff] }
 0x216   : > { %v7721_v62 = vsel %vm969_vm1, %v7716_v54, %v24102_v32  ;;  %v7732_v32 = vor.u32 %v7730_v52, %v7728_v14  ;;  %v7736_v34 = vrot.slane %v7734_v21, 1  ;;  %v26498_v54 = vld [vmem:[#allocation5_spill] sm:$0xff]  ;;  %v22295_v52 = vld [vmem:[#allocation2 + $0xd0] sm:$0xff]  }
 0x217   : > { %19103 = vmatpush3.bf16.msra.mxu0 %v21922_v17  ;;  %v24277_v17 = vld [vmem:[#allocation2 + $0x118] sm:$0xff]   ;;  %v3527_v48 = vor.u32 %v3525_v40, %v3523_v63  ;;  %v8042_v21 = vrot.slane %v22295_v52, 1 }
 0x218   : > { %19104 = vmatprep.subr.bf16.mxu0 %v21929_v41  ;;  %19535 = vmatpush3.bf16.msra.mxu1 %v21932_v37  ;;  %v3508_v37 = vsel %vm969_vm1, %v3503_v39, %v24100_v22  ;;  %v7738_v22 = vshrl.u32 %v24260_v45, 16  ;;  %v7742_v19 = vshll.u32 %v24277_v17, 16  ;;  %v7746_v5 = vshrl.u32 %v24277_v17, 16 }
 0x219   : > { %19073 = vmatmul.mubr.bf16.gmra.mrb[12].mxu0 %v3476_v44  ;;  %19536 = vmatprep.subr.bf16.mxu1 %v21938_v31 }
 0x21a   : > { %19505 = vmatmul.mubr.bf16.gmra.mrb[12].mxu1 %v7689_v36  ;;  %19076 = vmatprep.mubr.bf16.mxu0 %v3484_v9  ;;  %v7740_v29 = vor.u32 %v7738_v22, %v7736_v34  ;;  %v7744_v44 = vrot.slane %v7742_v19, 1  ;;  %v3524_v36 = vsel %vm969_vm1, %v3519_v24, %v3523_v63  ;;  %v7737_v9 = vsel %vm969_vm1, %v7732_v32, %v7736_v34  ;;  %v22297_v22 = vld [vmem:[#allocation2 + $0xe0] sm:$0xff]   ;;  %v22298_v63 = vld [vmem:[#allocation2 + $0xe8] sm:$0xff]  }
 0x21b   : > { %19508 = vmatprep.mubr.bf16.mxu1 %v7697_v55  ;;  %19105 = vmatpush3.bf16.msra.mxu0 %v21929_v41  ;;  %v7729_v41 = vsel %vm969_vm1, %v7724_v49, %v7728_v14  ;;  %v3537_v55 = vshll.u32 %v24078_v30, 16  ;;  %v8038_v49 = vrot.slane %v22293_v4, 1  ;;  %v22294_v14 = vld [vmem:[#allocation2 + $0xc8] sm:$0xff]   ;;  %v8046_v19 = vrot.slane %v22297_v22, 1 }
 0x21c   : > { %19106 = vmatprep.subr.bf16.mxu0 %v21936_v6  ;;  %19537 = vmatpush3.bf16.msra.mxu1 %v21938_v31  ;;  %v3531_v31 = vrot.slane %v3529_v10, 1  ;;  %v7745_v57 = vsel %vm969_vm1, %v7740_v29, %v7744_v44  ;;  %v7748_v3 = vor.u32 %v7746_v5, %v7744_v44  ;;  %v8040_v35 = vrot.slane %v22294_v14, 1  ;;  %v26502_v10 = vld [vmem:[#allocation11_spill] sm:$0xff]  ;;  %v22299_v29 = vld [vmem:[#allocation2 + $0xf0] sm:$0xff]  }
 0x21d   : > { %19538 = vmatprep.subr.bf16.mxu1 %v21939_v51  ;;  %v3539_v50 = vrot.slane %v3537_v55, 1  ;;  %v8048_v24 = vrot.slane %v22298_v63, 1  ;;  %v8050_v44 = vrot.slane %v22299_v29, 1  ;;  %v26507_v55 = vld [vmem:[#allocation19_spill] sm:$0xff]  ;;  %v8056_v5 = vrot.slane %v24090_v43, 1 }
 0x21e   : > { %v3532_v1 = vsel %vm969_vm1, %v3527_v48, %v3531_v31  ;;  %v8041_v38 = vsel %vm1380_vm2, %v8038_v49, %v8040_v35  ;;  %v8043_v40 = vsel %vm1380_vm2, %v8040_v35, %v8042_v21  ;;  %v26504_v48 = vld [vmem:[#allocation13_spill] sm:$0xff]  ;;  %v8062_v43 = vrot.slane %v24295_v27, 1 }
 0x21f   : > { %19107 = vmatpush3.bf16.msra.mxu0 %v21936_v6  ;;  %v3798_v6 = vld [vmem:[#allocation2 + $0x20] sm:$0xe]  ;;  %v8049_v34 = vsel %vm1380_vm2, %v8046_v19, %v8048_v24  ;;  %v21947_v27 = vld [vmem:[%s26368_s3 + $0x28] sm:$0xff]  }
 0x220   : > { %19539 = vmatpush3.bf16.msra.mxu1 %v21939_v51  ;;  %19572 = vmatprep.subr.bf16.mxu0 %v24241_v15  ;;  %v3533_v51 = vshrl.u32 %v24076_v23, 16  ;;  %v16795_v7 = vcombine.low %v3798_v6, %v22290_v56  ;;  %v7752_v23 = vrot.slane %v7750_v58, 1  ;;  %v8052_v6 = vrot.slane %v26492_v0, 1  ;;  %v26509_v0 = vld [vmem:[#allocation24_spill] sm:$0xff] }
 0x221   : > { %19077 = vmatmul.mubr.bf16.gmra.mrb[16].mxu0 %v3492_v25  ;;  %v26495_v25 = vrot.slane %v23791_v53, 1  ;;  %v26499_v53 = vld [vmem:[#allocation7_spill] sm:$0xff] }
 0x222   : > { %19509 = vmatmul.mubr.bf16.gmra.mrb[16].mxu1 %v7705_v8  ;;  %19080 = vmatprep.mubr.bf16.mxu0 %v3500_v2  ;;  %v3535_v42 = vor.u32 %v3533_v51, %v3531_v31  ;;  %v3819_v28 = vrot.slane %v16795_v7, 1  ;;  %v7753_v20 = vsel %vm969_vm1, %v7748_v3, %v7752_v23  ;;  %v22291_v2 = vld [vmem:[#allocation2 + $0xb0] sm:$0xff]   ;;  %v26505_v31 = vld [vmem:[#allocation17_spill] sm:$0xff]  ;;  %v26508_v7 = vld [vmem:[#allocation20_spill] sm:$0xff] }
 0x223   : > { %19512 = vmatprep.mubr.bf16.mxu1 %v7713_v60  ;;  %v8034_v61 = vrot.slane %v22291_v2, 1  ;;  %v22292_v60 = vld [vmem:[#allocation2 + $0xb8] sm:$0xff]   ;;  %v26506_v51 = vld [vmem:[#allocation18_spill] sm:$0xff]  ;;  %v26510_v3 = vld [vmem:[#allocation25_spill] sm:$0xff] }
 0x224   : > { %v3540_v30 = vsel %vm969_vm1, %v3535_v42, %v3539_v50  ;;  %v3821_v8 = vsel %vm1380_vm2, %v3819_v28, %v26495_v25  ;;  %v8036_v12 = vrot.slane %v22292_v60, 1  ;;  %v8060_v42 = vrot.slane %v24277_v17, 1  ;;  %v21944_v17 = vld [vmem:[%s26368_s3 + $0x10] sm:$0xff]  }
 0x225   : > { %v8035_v39 = vsel %vm1380_vm2, %v26497_v13, %v8034_v61  ;;  %v21948_v28 = vld [vmem:[%s26368_s3 + $0x30] sm:$0xff]  }
 0x226   : > { %v8037_v11 = vsel %vm1380_vm2, %v8034_v61, %v8036_v12  ;;  %v8039_v47 = vsel %vm1380_vm2, %v8036_v12, %v8038_v49  ;;  %v8063_v23 = vsel %vm1380_vm2, %v8060_v42, %v8062_v43  ;;  %v21951_v25 = vld [vmem:[#allocation3 + $0x8] sm:$0xff]  }
 0x229   : > { %19081 = vmatmul.mubr.bf16.gmra.mrb[20].mxu0 %v3508_v37  ;;  %v26500_v37 = vld [vmem:[#allocation8_spill] sm:$0xff] }
 0x22a   : > { %19513 = vmatmul.mubr.bf16.gmra.mrb[20].mxu1 %v7721_v62  ;;  %19084 = vmatprep.mubr.bf16.mxu0 %v3516_v26  ;;  %v22296_v62 = vld [vmem:[#allocation2 + $0xd8] sm:$0xff]  }
 0x22b   : > { %19516 = vmatprep.mubr.bf16.mxu1 %v7729_v41  ;;  %v8044_v26 = vrot.slane %v22296_v62, 1  ;;  %v26503_v41 = vld [vmem:[#allocation12_spill] sm:$0xff] }
 0x22d   : > { %v8047_v32 = vsel %vm1380_vm2, %v8044_v26, %v8046_v19 }
 0x231   : > { %19085 = vmatmul.mubr.bf16.gmra.mrb[24].mxu0 %v3524_v36  ;;  %v8051_v36 = vsel %vm1380_vm2, %v8048_v24, %v8050_v44 }
 0x232   : > { %19517 = vmatmul.mubr.bf16.gmra.mrb[24].mxu1 %v7737_v9  ;;  %19088 = vmatprep.mubr.bf16.mxu0 %v3532_v1  ;;  %v8053_v9 = vsel %vm1380_vm2, %v8050_v44, %v8052_v6  ;;  %v8054_v1 = vrot.slane %v24067_v59, 1 }
 0x233   : > { %19520 = vmatprep.mubr.bf16.mxu1 %v7745_v57  ;;  %v8058_v57 = vrot.slane %v24260_v45, 1  ;;  %v21943_v45 = vld [vmem:[%s26368_s3 + $0x8] sm:$0xff]  }
 0x234   : > { %v8055_v58 = vsel %vm1380_vm2, %v8052_v6, %v8054_v1  ;;  %v8057_v56 = vsel %vm1380_vm2, %v8054_v1, %v8056_v5 }
 0x235   : > { %v8059_v50 = vsel %vm1380_vm2, %v8056_v5, %v8058_v57  ;;  %v8061_v59 = vsel %vm1380_vm2, %v8058_v57, %v8060_v42 }
 0x239   : > { %19089 = vmatmul.mubr.bf16.gmra.mrb[28].mxu0 %v3540_v30  ;;  %v21949_v30 = vld [vmem:[%s26368_s3 + $0x38] sm:$0xff]  }
 0x23a   : > { %19521 = vmatmul.mubr.bf16.gmra.mrb[28].mxu1 %v7753_v20  ;;  %19108 = vmatprep.mubr.bf16.mxu0 %v3821_v8  ;;  %v21950_v20 = vld [vmem:[#allocation3] sm:$0xff]  }
 0x23b   : > { %19540 = vmatprep.mubr.bf16.mxu1 %v26496_v46  ;;  %v21952_v8 = vld [vmem:[%s26368_s3] sm:$0xff]  }
 0x23c   : > { %20004 = vmatprep.subr.bf16.mxu1 %v21952_v8  ;;  %v24377_v46 = vld [vmem:[%s26367_s2] ss:$0 sm:$0xff] }
 0x241   : > { %19109 = vmatmul.mubr.bf16.vlgmr.msra.gmra.mrb[0].mxu0 %v26498_v54 }
 0x242   : > { %19541 = vmatmul.mubr.bf16.vlgmr.msra.gmra.mrb[0].mxu1 %v8035_v39  ;;  %19112 = vmatprep.mubr.bf16.mxu0 %v26499_v53  ;;  %v21955_v53 = vld [vmem:[%s26368_s3 + $0x8] sm:$0xff]  }
 0x243   : > { %19544 = vmatprep.mubr.bf16.mxu1 %v8037_v11  ;;  %19573 = vmatpush3.bf16.msra.mxu0 %v24241_v15  ;;  %v8045_v15 = vsel %vm1380_vm2, %v8042_v21, %v8044_v26 }
 0x244   : > { %19574 = vmatprep.subr.bf16.mxu0 %v21943_v45  ;;  %20005 = vmatpush3.bf16.msra.mxu1 %v21952_v8 }
 0x245   : > { %20006 = vmatprep.subr.bf16.mxu1 %v21955_v53 }
 0x247   : > { %19575 = vmatpush3.bf16.msra.mxu0 %v21943_v45 }
 0x248   : > { %19576 = vmatprep.subr.bf16.mxu0 %v21944_v17  ;;  %20007 = vmatpush3.bf16.msra.mxu1 %v21955_v53 }
 0x249   : > { %19113 = vmatmul.mubr.bf16.gmra.mrb[4].mxu0 %v26500_v37 }
 0x24a   : > { %19545 = vmatmul.mubr.bf16.gmra.mrb[4].mxu1 %v8039_v47  ;;  %19116 = vmatprep.mubr.bf16.mxu0 %v26501_v33 }
 0x24b   : > { %19548 = vmatprep.mubr.bf16.mxu1 %v8041_v38  ;;  %19577 = vmatpush3.bf16.msra.mxu0 %v21944_v17 }
 0x251   : > { %19117 = vmatmul.mubr.bf16.gmra.mrb[8].mxu0 %v26502_v10 }
 0x252   : > { %19549 = vmatmul.mubr.bf16.gmra.mrb[8].mxu1 %v8043_v40  ;;  %19120 = vmatprep.mubr.bf16.mxu0 %v26503_v41 }
 0x253   : > { %19552 = vmatprep.mubr.bf16.mxu1 %v8045_v15 }
 0x259   : > { %19121 = vmatmul.mubr.bf16.gmra.mrb[12].mxu0 %v26504_v48 }
 0x25a   : > { %19553 = vmatmul.mubr.bf16.gmra.mrb[12].mxu1 %v8047_v32  ;;  %19124 = vmatprep.mubr.bf16.mxu0 %v26505_v31 }
 0x25b   : > { %19556 = vmatprep.mubr.bf16.mxu1 %v8049_v34 }
 0x261   : > { %19125 = vmatmul.mubr.bf16.gmra.mrb[16].mxu0 %v26506_v51 }
 0x262   : > { %19557 = vmatmul.mubr.bf16.gmra.mrb[16].mxu1 %v8051_v36  ;;  %19128 = vmatprep.mubr.bf16.mxu0 %v26507_v55  ;;  %v4627_v55 = vld [vmem:[#allocation3 + $0x10] sm:$0xf] }
 0x263   : > { %19560 = vmatprep.mubr.bf16.mxu1 %v8053_v9 }
 0x269   : > { %19129 = vmatmul.mubr.bf16.gmra.mrb[20].mxu0 %v26508_v7 }
 0x26a   : > { %19561 = vmatmul.mubr.bf16.gmra.mrb[20].mxu1 %v8055_v58  ;;  %19132 = vmatprep.mubr.bf16.mxu0 %v26509_v0 }
 0x26b   : > { %19564 = vmatprep.mubr.bf16.mxu1 %v8057_v56 }
 0x271   : > { %19133 = vmatmul.mubr.bf16.gmra.mrb[24].mxu0 %v26510_v3  ;;  %v26511_v3 = vmov 0 }
 0x272   : > { %19565 = vmatmul.mubr.bf16.gmra.mrb[24].mxu1 %v8059_v50  ;;  %19136 = vmatprep.mubr.bf16.mxu0 %v24093_v18  ;;  %v21945_v18 = vld [vmem:[%s26368_s3 + $0x18] sm:$0xff]   ;;  %v26512_v3 = vsel %vm24406_vm13, 4294967295, %v26511_v3 }
 0x273   : > { %19568 = vmatprep.mubr.bf16.mxu1 %v8061_v59  ;;  %19578 = vmatprep.subr.bf16.mxu0 %v21945_v18  ;;  %26513 = vst [vmem:[#allocation14_spill] sm:$0xff] %v26512_v3 }
 0x274   : > { %19579 = vmatpush3.bf16.msra.mxu0 %v21945_v18 }
 0x279   : > { %19137 = vmatmul.mubr.bf16.gmra.mrb[28].mxu0 %v24096_v16  ;;  %v21946_v16 = vld [vmem:[%s26368_s3 + $0x20] sm:$0xff]  }
 0x27a   : > { %19569 = vmatmul.mubr.bf16.gmra.mrb[28].mxu1 %v8063_v23  ;;  %19580 = vmatprep.subr.bf16.mxu0 %v21946_v16 }
 0x27b   : > { %19581 = vmatpush3.bf16.msra.mxu0 %v21946_v16  ;;  %19588 = vmatprep.mubr.bf16.mxu0 %v21950_v20 }
 0x27c   : > { %19582 = vmatprep.subr.bf16.mxu0 %v21947_v27 }
 0x27f   : > { %19583 = vmatpush3.bf16.msra.mxu0 %v21947_v27 }
 0x280   : > { %19584 = vmatprep.subr.bf16.mxu0 %v21948_v28 }
 0x283   : > { %19585 = vmatpush3.bf16.msra.mxu0 %v21948_v28 }
 0x284   : > { %19586 = vmatprep.subr.bf16.mxu0 %v21949_v30 }
 0x287   : > { %19587 = vmatpush3.bf16.msra.mxu0 %v21949_v30 }
 0x28a   : > { %19589 = vmatmul.mubr.bf16.vlgmr.msra.gmra.mrb[32].mxu0 %v21951_v25 }
 0x314   : > { %v19110_v2 = vpop.f32.mrb[0].mxu0 }
 0x315   : > { %v20436_v61 = vadd.f32 %v19110_v2, %v24377_v46  ;;  %v19542_v60 = vpop.f32.mrb[0].mxu1  ;;  %v3950_v12 = vpop.f32.mrb[1].mxu0  ;;  %v22302_v2 = vld [vmem:[%s26368_s3 + $0x80] sm:$0xff]  }
 0x316   : > { %v20468_v13 = vadd.f32 %v19542_v60, %v24377_v46  ;;  %v20437_v39 = vadd.f32 %v24377_v46, %v3950_v12  ;;  %v8162_v11 = vpop.f32.mrb[1].mxu1  ;;  %v19111_v54 = vpop.f32.mrb[2].mxu0 }
 0x317   : > { %vm4111_vm4 = vcmp.ge.f32.partialorder %v20436_v61, 0.0  ;;  %v4143_v4 = vmul.f32 0.2, %v20436_v61  ;;  %v20469_v49 = vadd.f32 %v24377_v46, %v8162_v11  ;;  %v20438_v14 = vadd.f32 %v19111_v54, %v24377_v46  ;;  %v19543_v35 = vpop.f32.mrb[2].mxu1  ;;  %v24387_v47 = vpop.f32.mrb[3].mxu0 }
 0x318   : > { %vm8323_vm5 = vcmp.ge.f32.partialorder %v20468_v13, 0.0  ;;  %v8355_v38 = vmul.f32 0.2, %v20468_v13  ;;  %vm4109_vm6 = vcmp.ge.f32.partialorder %v20437_v39, 0.0  ;;  %v4141_v37 = vmul.f32 0.2, %v20437_v39 }
 0x319   : > { %v4175_v33 = vsel %vm4111_vm4, %v20436_v61, %v4143_v4  ;;  %vm8321_vm9 = vcmp.ge.f32.partialorder %v20469_v49, 0.0  ;;  %v8353_v52 = vmul.f32 0.2, %v20469_v49  ;;  %vm4112_vm10 = vcmp.ge.f32.partialorder %v20438_v14, 0.0  ;;  %v8165_v21 = vpop.f32.mrb[3].mxu1 }
 0x31a   : > { %v17782_v62 = vpack.c.bf16 %v4175_v33, %v4175_v33  ;;  %v8387_v26 = vsel %vm8323_vm5, %v20468_v13, %v8355_v38  ;;  %v4173_v40 = vsel %vm4109_vm6, %v20437_v39, %v4141_v37  ;;  %v4144_v15 = vmul.f32 0.2, %v20438_v14  ;;  %vm24463_vm5 = vmand %vm4661_vm12, %vm4301_vm7 }
 0x31b   : > { %v17814_v10 = vpack.c.bf16 %v8387_v26, %v8387_v26  ;;  %v17780_v41 = vpack.c.bf16 %v4173_v40, %v4173_v40  ;;  %v8385_v22 = vsel %vm8321_vm9, %v20469_v49, %v8353_v52  ;;  %v20470_v19 = vadd.f32 %v19543_v35, %v24377_v46 }
 0x31c   : > { %v4322_v63 = vshrl.u32 %v17782_v62, 16  ;;  %v17812_v24 = vpack.c.bf16 %v8385_v22, %v8385_v22  ;;  %v4176_v32 = vsel %vm4112_vm10, %v20438_v14, %v4144_v15  ;;  %v19114_v34 = vpop.f32.mrb[4].mxu0  ;;  %v4325_v48 = vshll.u32 %v17782_v62, 16  ;;  %vm24550_vm10 = vmand %vm4661_vm12, %vm4625_vm11 }
 0x31d   : > { %v8531_v31 = vshrl.u32 %v17814_v10, 16  ;;  %v8534_v29 = vshll.u32 %v17814_v10, 16  ;;  %v4305_v44 = vshrl.u32 %v17780_v41, 16  ;;  %v19546_v6 = vpop.f32.mrb[4].mxu1  ;;  %v24390_v36 = vpop.f32.mrb[5].mxu0  ;;  %v4308_v51 = vshll.u32 %v17780_v41, 16 }
 0x31e   : > { %v4324_v9 = vrot.slane %v4322_v63, 7  ;;  %v8514_v1 = vshrl.u32 %v17812_v24, 16  ;;  %v17783_v5 = vpack.c.bf16 %v4176_v32, %v4176_v32  ;;  %v24392_v58 = vpop.f32.mrb[5].mxu1  ;;  %v24394_v56 = vpop.f32.mrb[6].mxu0  ;;  %v8517_v57 = vshll.u32 %v17812_v24, 16  ;;  %v22020_v32 = vld [vmem:[%s26368_s3 + $0xa0] sm:$0xff]  }
 0x31f   : > { %v24396_v7 = vrot.slane %v8531_v31, 7  ;;  %v24398_v0 = vrot.slane %v4305_v44, 7  ;;  %v8356_v42 = vmul.f32 0.2, %v20470_v19  ;;  %v24400_v50 = vpop.f32.mrb[6].mxu1  ;;  %vm8324_vm14 = vcmp.ge.f32.partialorder %v20470_v19, 0.0 }
 0x320   : > { %v24402_v59 = vor.u32 %v4325_v48, %v4324_v9  ;;  %v24410_v43 = vrot.slane %v8514_v1, 7  ;;  %v4331_v23 = vshrl.u32 %v17783_v5, 16  ;;  %v24412_v45 = vpop.f32.mrb[7].mxu0  ;;  %v24414_v17 = vpop.f32.mrb[7].mxu1  ;;  %v4329_v18 = vrot.slane %v4324_v9, 4 }
 0x321   : > { %v24417_v16 = vor.u32 %v8534_v29, %v24396_v7  ;;  %v8538_v27 = vrot.slane %v24396_v7, 4  ;;  %v4310_v28 = vor.u32 %v4308_v51, %v24398_v0  ;;  %v4311_v30 = vrot.slane %v24398_v0, 4 }
 0x322   : > { %v24423_v20 = vor.u32 %v8517_v57, %v24410_v43  ;;  %v24425_v25 = vrot.slane %v4331_v23, 7  ;;  %v4334_v8 = vshll.u32 %v17783_v5, 16  ;;  %v8388_v60 = vsel %vm8324_vm14, %v20470_v19, %v8356_v42 }
 0x323   : > { %v4628_v61 = vsel %vm24406_vm13, %v4310_v28, %v4627_v55  ;;  %v20439_v12 = vadd.f32 %v24377_v46, %v24387_v47  ;;  %v20471_v13 = vadd.f32 %v24377_v46, %v8165_v21  ;;  %v8520_v39 = vrot.slane %v24410_v43, 4 }
 0x324   : > { %26514 = vst [vmem:[#allocation10_spill] sm:$0xff] %v24423_v20  ;;  %4629 = vst [vmem:[#allocation3 + $0x10] sm:$0xf] %v4628_v61  ;;  %v4336_v11 = vor.u32 %v4334_v8, %v24425_v25  ;;  %v17815_v54 = vpack.c.bf16 %v8388_v60, %v8388_v60  ;;  %v20440_v53 = vadd.f32 %v19114_v34, %v24377_v46  ;;  %v24441_v4 = vpop.f32.mrb[8].mxu0  ;;  %v4338_v47 = vrot.slane %v24425_v25, 4 }
 0x325   : > { %vm4110_vm0 = vcmp.ge.f32.partialorder %v20439_v12, 0.0  ;;  %v4142_v49 = vmul.f32 0.2, %v20439_v12  ;;  %vm8322_vm3 = vcmp.ge.f32.partialorder %v20471_v13, 0.0  ;;  %v8354_v14 = vmul.f32 0.2, %v20471_v13 }
 0x326   : > { %v4337_v35 = vsel %vm24429_vm15, %v4329_v18, %v4336_v11  ;;  %v8540_v38 = vshrl.u32 %v17815_v54, 16  ;;  %vm4115_vm4 = vcmp.ge.f32.partialorder %v20440_v53, 0.0  ;;  %v24446_v37 = vpop.f32.mrb[8].mxu1  ;;  %v24448_v33 = vpop.f32.mrb[9].mxu0  ;;  %v4147_v62 = vmul.f32 0.2, %v20440_v53 }
 0x327   : > { %4632 = vst [vmem:[#allocation3 + $0x1c] sm:$0xf] %v4337_v35  ;;  %v4174_v52 = vsel %vm4110_vm0, %v20439_v12, %v4142_v49  ;;  %v8386_v21 = vsel %vm8322_vm3, %v20471_v13, %v8354_v14  ;;  %v20472_v26 = vadd.f32 %v19546_v6, %v24377_v46  ;;  %v24451_v40 = vpop.f32.mrb[9].mxu1  ;;  %v24453_v15 = vpop.f32.mrb[10].mxu0  ;;  %v8543_v41 = vshll.u32 %v17815_v54, 16  ;;  %v21958_v14 = vld [vmem:[%s26368_s3 + $0x10] sm:$0xff]  }
 0x328   : > { %v24455_v10 = vrot.slane %v8540_v38, 7  ;;  %v17781_v22 = vpack.c.bf16 %v4174_v52, %v4174_v52  ;;  %v17813_v19 = vpack.c.bf16 %v8386_v21, %v8386_v21  ;;  %v24457_v63 = vpop.f32.mrb[10].mxu1  ;;  %v24459_v24 = vpop.f32.mrb[11].mxu0  ;;  %v4179_v34 = vsel %vm4115_vm4, %v20440_v53, %v4147_v62  ;;  %20008 = vmatprep.subr.bf16.mxu1 %v21958_v14 }
 0x329   : > { %vm8327_vm6 = vcmp.ge.f32.partialorder %v20472_v26, 0.0  ;;  %v8359_v48 = vmul.f32 0.2, %v20472_v26  ;;  %v20441_v31 = vadd.f32 %v24377_v46, %v24390_v36  ;;  %v24470_v29 = vpop.f32.mrb[11].mxu1  ;;  %v20473_v51 = vadd.f32 %v24377_v46, %v24392_v58  ;;  %20009 = vmatpush3.bf16.msra.mxu1 %v21958_v14 }
 0x32a   : > { %v8545_v44 = vor.u32 %v8543_v41, %v24455_v10  ;;  %v8547_v6 = vrot.slane %v24455_v10, 4  ;;  %v4313_v9 = vshrl.u32 %v17781_v22, 16  ;;  %v4316_v1 = vshll.u32 %v17781_v22, 16 }
 0x32b   : > { %v8879_v55 = vld [vmem:[#allocation3 + $0x10] sm:$0x1]  ;;  %v8522_v5 = vshrl.u32 %v17813_v19, 16  ;;  %v17786_v7 = vpack.c.bf16 %v4179_v34, %v4179_v34  ;;  %v8391_v57 = vsel %vm8327_vm6, %v20472_v26, %v8359_v48  ;;  %v8525_v61 = vshll.u32 %v17813_v19, 16 }
 0x32c   : > { %v8880_v42 = vsel %vm24463_vm5, 0, %v8879_v55  ;;  %v8546_v36 = vsel %vm24429_vm15, %v8538_v27, %v8545_v44  ;;  %v4315_v23 = vrot.slane %v4313_v9, 7  ;;  %v17818_v18 = vpack.c.bf16 %v8391_v57, %v8391_v57  ;;  %v24480_v28 = vpop.f32.mrb[12].mxu0 }
 0x32d   : > { %8881 = vst [vmem:[#allocation3 + $0x10] sm:$0x1] %v8880_v42  ;;  %8838 = vst [vmem:[#allocation3 + $0x9c] sm:$0xf] %v8546_v36  ;;  %v8524_v8 = vrot.slane %v8522_v5, 7  ;;  %v4358_v58 = vshrl.u32 %v17786_v7, 16  ;;  %v20443_v5 = vadd.f32 %v24377_v46, %v24412_v45  ;;  %v20475_v42 = vadd.f32 %v24377_v46, %v24414_v17 }
 0x32e   : > { %v4361_v60 = vshll.u32 %v17786_v7, 16  ;;  %v24482_v12 = vpop.f32.mrb[12].mxu1  ;;  %v24484_v13 = vpop.f32.mrb[13].mxu0  ;;  %v4318_v11 = vor.u32 %v4316_v1, %v4315_v23  ;;  %v4320_v54 = vrot.slane %v4315_v23, 4  ;;  %v8567_v53 = vshrl.u32 %v17818_v18, 16  ;;  %v21993_v17 = vld [vmem:[%s26368_s3 + $0x48] sm:$0xff]  }
 0x32f   : > { %vm4113_vm7 = vcmp.ge.f32.partialorder %v20441_v31, 0.0  ;;  %v24486_v49 = vpop.f32.mrb[13].mxu1  ;;  %v24488_v27 = vpop.f32.mrb[14].mxu0  ;;  %v8527_v35 = vor.u32 %v8525_v61, %v8524_v8  ;;  %v8529_v38 = vrot.slane %v8524_v8, 4  ;;  %v24493_v52 = vrot.slane %v4358_v58, 7 }
 0x330   : > { %v4145_v21 = vmul.f32 0.2, %v20441_v31  ;;  %v24495_v62 = vpop.f32.mrb[14].mxu1  ;;  %v24497_v26 = vpop.f32.mrb[15].mxu0  ;;  %v4319_v41 = vsel %vm24429_vm15, %v4311_v30, %v4318_v11  ;;  %v4328_v22 = vsel %vm24429_vm15, %v4320_v54, %v24402_v59  ;;  %v24506_v19 = vrot.slane %v8567_v53, 7 }
 0x331   : > { %v8570_v34 = vshll.u32 %v17818_v18, 16  ;;  %v24508_v48 = vpop.f32.mrb[15].mxu1  ;;  %4630 = vst [vmem:[#allocation3 + $0x14] sm:$0xf] %v4319_v41  ;;  %4631 = vst [vmem:[#allocation3 + $0x18] sm:$0xf] %v4328_v22  ;;  %v8528_v0 = vsel %vm24429_vm15, %v8520_v39, %v8527_v35  ;;  %v8537_v30 = vsel %vm24429_vm15, %v8529_v38, %v24417_v16  ;;  %v24518_v44 = vor.u32 %v4361_v60, %v24493_v52 }
 0x332   : > { %vm8325_vm8 = vcmp.ge.f32.partialorder %v20473_v51, 0.0  ;;  %8836 = vst [vmem:[#allocation3 + $0x94] sm:$0xf] %v8528_v0  ;;  %8837 = vst [vmem:[#allocation3 + $0x98] sm:$0xf] %v8537_v30  ;;  %v4365_v59 = vrot.slane %v24493_v52, 4  ;;  %v4177_v43 = vsel %vm4113_vm7, %v20441_v31, %v4145_v21  ;;  %v20442_v1 = vadd.f32 %v24394_v56, %v24377_v46 }
 0x333   : > { %v24522_v9 = vor.u32 %v8570_v34, %v24506_v19  ;;  %v8357_v55 = vmul.f32 0.2, %v20473_v51  ;;  %v17784_v39 = vpack.c.bf16 %v4177_v43, %v4177_v43  ;;  %v20474_v16 = vadd.f32 %v24400_v50, %v24377_v46 }
 0x334   : > { %v8574_v7 = vrot.slane %v24506_v19, 4  ;;  %v24536_v31 = vadd.f32 %v24441_v4, %v24377_v46  ;;  %v24538_v36 = vpop.f32.mrb[16].mxu0  ;;  %vm4116_vm9 = vcmp.ge.f32.partialorder %v20442_v1, 0.0  ;;  %v24542_v50 = vadd.f32 %v24446_v37, %v24377_v46 }
 0x335   : > { %v8389_v57 = vsel %vm8325_vm8, %v20473_v51, %v8357_v55  ;;  %v4340_v23 = vshrl.u32 %v17784_v39, 16  ;;  %v24544_v45 = vpop.f32.mrb[16].mxu1  ;;  %v24546_v18 = vpop.f32.mrb[17].mxu0  ;;  %v4343_v4 = vshll.u32 %v17784_v39, 16  ;;  %v4148_v51 = vmul.f32 0.2, %v20442_v1 }
 0x336   : > { %v17816_v56 = vpack.c.bf16 %v8389_v57, %v8389_v57  ;;  %vm8328_vm14 = vcmp.ge.f32.partialorder %v20474_v16, 0.0  ;;  %v8360_v8 = vmul.f32 0.2, %v20474_v16  ;;  %vm4114_vm0 = vcmp.ge.f32.partialorder %v20443_v5, 0.0  ;;  %v24556_v60 = vpop.f32.mrb[17].mxu1  ;;  %v24559_v38 = vpop.f32.mrb[18].mxu0 }
 0x337   : > { %v24554_v61 = vrot.slane %v4340_v23, 7  ;;  %v4146_v37 = vmul.f32 0.2, %v20443_v5  ;;  %v4180_v53 = vsel %vm4116_vm9, %v20442_v1, %v4148_v51  ;;  %v8358_v35 = vmul.f32 0.2, %v20475_v42  ;;  %v24566_v0 = vpop.f32.mrb[18].mxu1 }
 0x338   : > { %v8549_v58 = vshrl.u32 %v17816_v56, 16  ;;  %v8883_v11 = vld [vmem:[#allocation3 + $0x18] sm:$0x1]  ;;  %v8552_v54 = vshll.u32 %v17816_v56, 16  ;;  %v8392_v14 = vsel %vm8328_vm14, %v20474_v16, %v8360_v8  ;;  %vm8326_vm11 = vcmp.ge.f32.partialorder %v20475_v42, 0.0  ;;  %v24571_v1 = vpop.f32.mrb[19].mxu0 }
 0x339   : > { %v8884_v21 = vsel %vm24550_vm10, 0, %v8883_v11  ;;  %v8931_v41 = vld [vmem:[#allocation3 + $0x98] sm:$0x1]  ;;  %v4345_v22 = vor.u32 %v4343_v4, %v24554_v61  ;;  %v17787_v43 = vpack.c.bf16 %v4180_v53, %v4180_v53  ;;  %v17819_v55 = vpack.c.bf16 %v8392_v14, %v8392_v14  ;;  %v24573_v16 = vpop.f32.mrb[19].mxu1  ;;  %v21953_v57 = vld [vmem:[#allocation3 + $0x10] sm:$0xff]  }
 0x33a   : > { %v24564_v34 = vrot.slane %v8549_v58, 7  ;;  %8885 = vst [vmem:[#allocation3 + $0x18] sm:$0x1] %v8884_v21  ;;  %v8932_v30 = vsel %vm24550_vm10, 0, %v8931_v41  ;;  %v4178_v39 = vsel %vm4114_vm0, %v20443_v5, %v4146_v37  ;;  %v4347_v56 = vrot.slane %v24554_v61, 4  ;;  %19592 = vmatprep.mubr.bf16.mxu0 %v21953_v57 }
 0x33b   : > { %8933 = vst [vmem:[#allocation3 + $0x98] sm:$0x1] %v8932_v30  ;;  %v4346_v23 = vsel %vm24429_vm15, %v4338_v47, %v4345_v22  ;;  %v17785_v51 = vpack.c.bf16 %v4178_v39, %v4178_v39  ;;  %v4367_v8 = vshrl.u32 %v17787_v43, 16  ;;  %v4370_v58 = vshll.u32 %v17787_v43, 16 }
 0x33c   : > { %v8554_v4 = vor.u32 %v8552_v54, %v24564_v34  ;;  %4633 = vst [vmem:[#allocation3 + $0x20] sm:$0xf] %v4346_v23  ;;  %v8576_v5 = vshrl.u32 %v17819_v55, 16  ;;  %v8579_v37 = vshll.u32 %v17819_v55, 16  ;;  %v24581_v11 = vpop.f32.mrb[20].mxu0  ;;  %v8390_v61 = vsel %vm8326_vm11, %v20475_v42, %v8358_v35 }
 0x33d   : > { %v4349_v53 = vshrl.u32 %v17785_v51, 16  ;;  %v4352_v47 = vshll.u32 %v17785_v51, 16  ;;  %v24588_v14 = vpop.f32.mrb[20].mxu1  ;;  %v24590_v54 = vpop.f32.mrb[21].mxu0  ;;  %v24592_v21 = vrot.slane %v4367_v8, 7  ;;  %v17817_v22 = vpack.c.bf16 %v8390_v61, %v8390_v61  ;;  %v21961_v51 = vld [vmem:[%s26368_s3 + $0x18] sm:$0xff]  }
 0x33e   : > { %v8555_v25 = vsel %vm24429_vm15, %v8547_v6, %v8554_v4  ;;  %v24594_v41 = vrot.slane %v8576_v5, 7  ;;  %vm4119_vm12 = vcmp.ge.f32.partialorder %v24536_v31, 0.0  ;;  %v24597_v10 = vpop.f32.mrb[21].mxu1  ;;  %v24599_v30 = vpop.f32.mrb[22].mxu0  ;;  %v4151_v43 = vmul.f32 0.2, %v24536_v31  ;;  %20010 = vmatprep.subr.bf16.mxu1 %v21961_v51 }
 0x33f   : > { %8839 = vst [vmem:[#allocation3 + $0xa0] sm:$0xf] %v8555_v25  ;;  %v4351_v6 = vrot.slane %v4349_v53, 7  ;;  %vm8331_vm3 = vcmp.ge.f32.partialorder %v24542_v50, 0.0  ;;  %v8363_v42 = vmul.f32 0.2, %v24542_v50  ;;  %v4372_v55 = vor.u32 %v4370_v58, %v24592_v21  ;;  %20011 = vmatpush3.bf16.msra.mxu1 %v21961_v51 }
 0x340   : > { %v8556_v35 = vrot.slane %v24564_v34, 4  ;;  %v8581_v57 = vor.u32 %v8579_v37, %v24594_v41  ;;  %v24608_v23 = vpop.f32.mrb[22].mxu1  ;;  %v24610_v4 = vpop.f32.mrb[23].mxu0  ;;  %v8558_v25 = vshrl.u32 %v17817_v22, 16  ;;  %v8561_v53 = vshll.u32 %v17817_v22, 16 }
 0x341   : > { %v4354_v8 = vor.u32 %v4352_v47, %v4351_v6  ;;  %v4356_v5 = vrot.slane %v4351_v6, 4  ;;  %v21954_v61 = vld [vmem:[#allocation3 + $0x18] sm:$0xff]   ;;  %v4373_v34 = vsel %vm24429_vm15, %v4365_v59, %v4372_v55  ;;  %v4183_v37 = vsel %vm4119_vm12, %v24536_v31, %v4151_v43  ;;  %v24629_v22 = vpop.f32.mrb[23].mxu1 }
 0x342   : > { %v8582_v58 = vsel %vm24429_vm15, %v8574_v7, %v8581_v57  ;;  %v8395_v47 = vsel %vm8331_vm3, %v24542_v50, %v8363_v42  ;;  %4636 = vst [vmem:[#allocation3 + $0x2c] sm:$0xf] %v4373_v34  ;;  %v8560_v7 = vrot.slane %v8558_v25, 7  ;;  %v17790_v6 = vpack.c.bf16 %v4183_v37, %v4183_v37  ;;  %19593 = vmatmul.mubr.bf16.gmra.mrb[36].mxu0 %v21954_v61  ;;  %v21964_v31 = vld [vmem:[%s26368_s3 + $0x40] sm:$0xff]  }
 0x343   : > { %v8886_v52 = vld [vmem:[#allocation3 + $0x20] sm:$0x1]  ;;  %8842 = vst [vmem:[#allocation3 + $0xac] sm:$0xf] %v8582_v58  ;;  %v4355_v19 = vsel %vm24429_vm15, %v4347_v56, %v4354_v8  ;;  %v4364_v59 = vsel %vm24429_vm15, %v4356_v5, %v24518_v44  ;;  %v17822_v43 = vpack.c.bf16 %v8395_v47, %v8395_v47  ;;  %v20445_v56 = vadd.f32 %v24377_v46, %v24448_v33 }
 0x344   : > { %v8887_v50 = vsel %vm24463_vm5, 0, %v8886_v52  ;;  %4634 = vst [vmem:[#allocation3 + $0x24] sm:$0xf] %v4355_v19  ;;  %4635 = vst [vmem:[#allocation3 + $0x28] sm:$0xf] %v4364_v59  ;;  %v20477_v44 = vadd.f32 %v24377_v46, %v24451_v40  ;;  %v24645_v42 = vpop.f32.mrb[24].mxu0  ;;  %v8563_v57 = vor.u32 %v8561_v53, %v8560_v7  ;;  %19620 = vmatprep.subr.bf16.mxu0 %v21964_v31 }
 0x345   : > { %8888 = vst [vmem:[#allocation3 + $0x20] sm:$0x1] %v8887_v50  ;;  %v8565_v51 = vrot.slane %v8560_v7, 4  ;;  %v4394_v8 = vshrl.u32 %v17790_v6, 16  ;;  %v4397_v5 = vshll.u32 %v17790_v6, 16  ;;  %v24647_v25 = vpop.f32.mrb[24].mxu1  ;;  %19621 = vmatpush3.bf16.msra.mxu0 %v21964_v31 }
 0x346   : > { %v8934_v55 = vld [vmem:[#allocation3 + $0xa0] sm:$0x1]  ;;  %v8603_v34 = vshrl.u32 %v17822_v43, 16  ;;  %v8606_v58 = vshll.u32 %v17822_v43, 16  ;;  %vm4117_vm4 = vcmp.ge.f32.partialorder %v20445_v56, 0.0  ;;  %v24651_v33 = vpop.f32.mrb[25].mxu0  ;;  %v8564_v53 = vsel %vm24429_vm15, %v8556_v35, %v8563_v57 }
 0x347   : > { %v8935_v61 = vsel %vm24463_vm5, 0, %v8934_v55  ;;  %v24653_v40 = vpop.f32.mrb[25].mxu1  ;;  %v8573_v37 = vsel %vm24429_vm15, %v8565_v51, %v24522_v9  ;;  %v24660_v47 = vrot.slane %v4394_v8, 7  ;;  %v4149_v52 = vmul.f32 0.2, %v20445_v56  ;;  %v24662_v19 = vpop.f32.mrb[26].mxu0 }
 0x348   : > { %8936 = vst [vmem:[#allocation3 + $0xa0] sm:$0x1] %v8935_v61  ;;  %v24664_v59 = vpop.f32.mrb[26].mxu1  ;;  %v21966_v7 = vld [vmem:[%s26368_s3 + $0x48] sm:$0xff]   ;;  %8840 = vst [vmem:[#allocation3 + $0xa4] sm:$0xf] %v8564_v53  ;;  %v20446_v9 = vadd.f32 %v24453_v15, %v24377_v46  ;;  %v20478_v51 = vadd.f32 %v24457_v63, %v24377_v46 }
 0x349   : > { %8841 = vst [vmem:[#allocation3 + $0xa8] sm:$0xf] %v8573_v37  ;;  %v24669_v6 = vrot.slane %v8603_v34, 7  ;;  %vm8329_vm6 = vcmp.ge.f32.partialorder %v20477_v44, 0.0  ;;  %v8361_v35 = vmul.f32 0.2, %v20477_v44  ;;  %v24679_v55 = vor.u32 %v4397_v5, %v24660_v47  ;;  %19622 = vmatprep.subr.bf16.mxu0 %v21966_v7 }
 0x34a   : > { %v24673_v31 = vpop.f32.mrb[27].mxu0  ;;  %v24675_v50 = vpop.f32.mrb[27].mxu1  ;;  %v4181_v57 = vsel %vm4117_vm4, %v20445_v56, %v4149_v52  ;;  %19623 = vmatpush3.bf16.msra.mxu0 %v21966_v7  ;;  %vm4120_vm7 = vcmp.ge.f32.partialorder %v20446_v9, 0.0  ;;  %v4152_v43 = vmul.f32 0.2, %v20446_v9  ;;  %vm8332_vm8 = vcmp.ge.f32.partialorder %v20478_v51, 0.0 }
 0x34b   : > { %26521 = vst [vmem:[#allocation21_spill] sm:$0xff] %v24675_v50  ;;  %v24686_v61 = vor.u32 %v8606_v58, %v24669_v6  ;;  %v17788_v15 = vpack.c.bf16 %v4181_v57, %v4181_v57  ;;  %v8393_v34 = vsel %vm8329_vm6, %v20477_v44, %v8361_v35  ;;  %v8889_v53 = vld [vmem:[#allocation3 + $0x28] sm:$0x1]  ;;  %v8364_v63 = vmul.f32 0.2, %v20478_v51 }
 0x34c   : > { %v17820_v37 = vpack.c.bf16 %v8393_v34, %v8393_v34  ;;  %v8890_v56 = vsel %vm24550_vm10, 0, %v8889_v53  ;;  %v21956_v39 = vld [vmem:[#allocation3 + $0x20] sm:$0xff]   ;;  %v4184_v58 = vsel %vm4120_vm7, %v20446_v9, %v4152_v43  ;;  %v20447_v44 = vadd.f32 %v24377_v46, %v24459_v24  ;;  %v24696_v53 = vpop.f32.mrb[28].mxu0 }
 0x34d   : > { %v4376_v5 = vshrl.u32 %v17788_v15, 16  ;;  %v4379_v52 = vshll.u32 %v17788_v15, 16  ;;  %8891 = vst [vmem:[#allocation3 + $0x28] sm:$0x1] %v8890_v56  ;;  %v17791_v35 = vpack.c.bf16 %v4184_v58, %v4184_v58  ;;  %v8396_v57 = vsel %vm8332_vm8, %v20478_v51, %v8364_v63  ;;  %19596 = vmatprep.mubr.bf16.mxu0 %v21956_v39  ;;  %26522 = vst [vmem:[#allocation23_spill] sm:$0xff] %v24696_v53  ;;  %v24698_v15 = vpop.f32.mrb[28].mxu1 }
 0x34e   : > { %v8585_v8 = vshrl.u32 %v17820_v37, 16  ;;  %v8588_v3 = vshll.u32 %v17820_v37, 16  ;;  %v20479_v34 = vadd.f32 %v24377_v46, %v24470_v29  ;;  %26523 = vst [vmem:[#allocation15_spill] sm:$0xff] %v24698_v15  ;;  %v21969_v37 = vld [vmem:[%s26368_s3 + $0x50] sm:$0xff]   ;;  %v17823_v24 = vpack.c.bf16 %v8396_v57, %v8396_v57  ;;  %v24709_v63 = vpop.f32.mrb[29].mxu0  ;;  %v24711_v58 = vpop.f32.mrb[29].mxu1 }
 0x34f   : > { %v24692_v7 = vrot.slane %v4376_v5, 7  ;;  %vm4118_vm9 = vcmp.ge.f32.partialorder %v20447_v44, 0.0  ;;  %v4150_v56 = vmul.f32 0.2, %v20447_v44  ;;  %v8610_v29 = vrot.slane %v24669_v6, 4  ;;  %26524 = vst [vmem:[#allocation16_spill] sm:$0xff] %v24709_v63  ;;  %19624 = vmatprep.subr.bf16.mxu0 %v21969_v37 }
 0x350   : > { %v8937_v9 = vld [vmem:[#allocation3 + $0xa8] sm:$0x1]  ;;  %v24703_v43 = vrot.slane %v8585_v8, 7  ;;  %v4403_v5 = vshrl.u32 %v17791_v35, 16  ;;  %26525 = vst [vmem:[#allocation22_spill] sm:$0xff] %v24711_v58  ;;  %v21971_v8 = vld [vmem:[%s26368_s3 + $0x58] sm:$0xff]   ;;  %19625 = vmatpush3.bf16.msra.mxu0 %v21969_v37 }
 0x351   : > { %v8938_v51 = vsel %vm24550_vm10, 0, %v8937_v9  ;;  %v4381_v39 = vor.u32 %v4379_v52, %v24692_v7  ;;  %v4406_v9 = vshll.u32 %v17791_v35, 16  ;;  %v8612_v15 = vshrl.u32 %v17823_v24, 16  ;;  %v24718_v6 = vpop.f32.mrb[30].mxu0  ;;  %v24720_v52 = vpop.f32.mrb[30].mxu1  ;;  %19626 = vmatprep.subr.bf16.mxu0 %v21971_v8 }
 0x352   : > { %8939 = vst [vmem:[#allocation3 + $0xa8] sm:$0x1] %v8938_v51  ;;  %v8590_v20 = vor.u32 %v8588_v3, %v24703_v43  ;;  %26526 = vst [vmem:[#allocation6_spill] sm:$0xff] %v24720_v52  ;;  %v26527_v63 = vrot.slane %v24592_v21, 4  ;;  %v24726_v53 = vrot.slane %v4403_v5, 7  ;;  %v8615_v50 = vshll.u32 %v17823_v24, 16 }
 0x353   : > { %v4182_v51 = vsel %vm4118_vm9, %v20447_v44, %v4150_v56  ;;  %v24729_v57 = vpop.f32.mrb[31].mxu0  ;;  %v24731_v3 = vpop.f32.mrb[31].mxu1  ;;  %v26528_v35 = vrot.slane %v24594_v41, 4  ;;  %v24737_v21 = vrot.slane %v8612_v15, 7  ;;  %vm8330_vm14 = vcmp.ge.f32.partialorder %v20479_v34, 0.0  ;;  %v21965_v24 = vld [vmem:[%s26368_s3 + $0x20] sm:$0xff]  }
 0x354   : > { %v4382_v58 = vsel %vm24429_vm15, %v26527_v63, %v4381_v39  ;;  %v17789_v52 = vpack.c.bf16 %v4182_v51, %v4182_v51  ;;  %v21974_v44 = vld [vmem:[%s26368_s3 + $0x60] sm:$0xff]   ;;  %v4408_v41 = vor.u32 %v4406_v9, %v24726_v53  ;;  %v8362_v39 = vmul.f32 0.2, %v20479_v34  ;;  %v21957_v15 = vld [vmem:[#allocation3 + $0x28] sm:$0xff]   ;;  %20012 = vmatprep.subr.bf16.mxu1 %v21965_v24  ;;  %19627 = vmatpush3.bf16.msra.mxu0 %v21971_v8 }
 0x355   : > { %4637 = vst [vmem:[#allocation3 + $0x30] sm:$0xf] %v4382_v58  ;;  %v8591_v37 = vsel %vm24429_vm15, %v26528_v35, %v8590_v20  ;;  %v20448_v20 = vadd.f32 %v24480_v28, %v24377_v46  ;;  %v8617_v63 = vor.u32 %v8615_v50, %v24737_v21  ;;  %v26529_v35 = vrot.slane %v24660_v47, 4  ;;  %19597 = vmatmul.mubr.bf16.gmra.mrb[40].mxu0 %v21957_v15  ;;  %v21970_v47 = vld [vmem:[%s26368_s3 + $0x28] sm:$0xff]  }
 0x356   : > { %8843 = vst [vmem:[#allocation3 + $0xb0] sm:$0xf] %v8591_v37  ;;  %v4385_v58 = vshrl.u32 %v17789_v52, 16  ;;  %v4388_v51 = vshll.u32 %v17789_v52, 16  ;;  %v8394_v9 = vsel %vm8330_vm14, %v20479_v34, %v8362_v39  ;;  %20013 = vmatpush3.bf16.msra.mxu1 %v21965_v24  ;;  %v20480_v8 = vadd.f32 %v24482_v12, %v24377_v46  ;;  %19628 = vmatprep.subr.bf16.mxu0 %v21974_v44  ;;  %v21976_v34 = vld [vmem:[%s26368_s3 + $0x68] sm:$0xff]  }
 0x357   : > { %v4409_v37 = vsel %vm24429_vm15, %v26529_v35, %v4408_v41  ;;  %vm4123_vm0 = vcmp.ge.f32.partialorder %v20448_v20, 0.0  ;;  %v4155_v56 = vmul.f32 0.2, %v20448_v20  ;;  %v8618_v28 = vsel %vm24429_vm15, %v8610_v29, %v8617_v63  ;;  %20014 = vmatprep.subr.bf16.mxu1 %v21970_v47 }
 0x358   : > { %4640 = vst [vmem:[#allocation3 + $0x3c] sm:$0xf] %v4409_v37  ;;  %v4387_v50 = vrot.slane %v4385_v58, 7  ;;  %v17821_v5 = vpack.c.bf16 %v8394_v9, %v8394_v9  ;;  %v8619_v52 = vrot.slane %v24737_v21, 4  ;;  %8846 = vst [vmem:[#allocation3 + $0xbc] sm:$0xf] %v8618_v28  ;;  %v20449_v29 = vadd.f32 %v24377_v46, %v24484_v13  ;;  %19629 = vmatpush3.bf16.msra.mxu0 %v21974_v44 }
 0x359   : > { %v4187_v24 = vsel %vm4123_vm0, %v20448_v20, %v4155_v56  ;;  %v20481_v41 = vadd.f32 %v24377_v46, %v24486_v49  ;;  %v24773_v63 = vadd.f32 %v24488_v27, %v24377_v46  ;;  %vm8335_vm11 = vcmp.ge.f32.partialorder %v20480_v8, 0.0  ;;  %19630 = vmatprep.subr.bf16.mxu0 %v21976_v34  ;;  %v21979_v9 = vld [vmem:[%s26368_s3 + $0x70] sm:$0xff]  }
 0x35a   : > { %v4390_v12 = vor.u32 %v4388_v51, %v4387_v50  ;;  %v4392_v39 = vrot.slane %v4387_v50, 4  ;;  %v8594_v15 = vshrl.u32 %v17821_v5, 16  ;;  %v8597_v35 = vshll.u32 %v17821_v5, 16  ;;  %20015 = vmatpush3.bf16.msra.mxu1 %v21970_v47  ;;  %v21975_v5 = vld [vmem:[%s26368_s3 + $0x30] sm:$0xff]  }
 0x35b   : > { %v17794_v37 = vpack.c.bf16 %v4187_v24, %v4187_v24  ;;  %v8367_v56 = vmul.f32 0.2, %v20480_v8  ;;  %v26530_v20 = vrot.slane %v24692_v7, 4  ;;  %vm4121_vm12 = vcmp.ge.f32.partialorder %v20449_v29, 0.0  ;;  %20016 = vmatprep.subr.bf16.mxu1 %v21975_v5 }
 0x35c   : > { %v8892_v58 = vld [vmem:[#allocation3 + $0x30] sm:$0x1]  ;;  %v4400_v27 = vsel %vm24429_vm15, %v4392_v39, %v24679_v55  ;;  %v8596_v44 = vrot.slane %v8594_v15, 7  ;;  %v21980_v55 = vld [vmem:[%s26368_s3 + $0x38] sm:$0xff]   ;;  %v4153_v39 = vmul.f32 0.2, %v20449_v29  ;;  %19631 = vmatpush3.bf16.msra.mxu0 %v21976_v34 }
 0x35d   : > { %v8893_v13 = vsel %vm24463_vm5, 0, %v8892_v58  ;;  %v8940_v49 = vld [vmem:[#allocation3 + $0xb0] sm:$0x1]  ;;  %v4391_v51 = vsel %vm24429_vm15, %v26530_v20, %v4390_v12  ;;  %4639 = vst [vmem:[#allocation3 + $0x38] sm:$0xf] %v4400_v27  ;;  %v4430_v28 = vshrl.u32 %v17794_v37, 16  ;;  %v8399_v50 = vsel %vm8335_vm11, %v20480_v8, %v8367_v56  ;;  %19632 = vmatprep.subr.bf16.mxu0 %v21979_v9 }
 0x35e   : > { %8894 = vst [vmem:[#allocation3 + $0x30] sm:$0x1] %v8893_v13  ;;  %v8941_v7 = vsel %vm24463_vm5, 0, %v8940_v49  ;;  %4638 = vst [vmem:[#allocation3 + $0x34] sm:$0xf] %v4391_v51  ;;  %v8599_v47 = vor.u32 %v8597_v35, %v8596_v44  ;;  %v8601_v24 = vrot.slane %v8596_v44, 4  ;;  %v17826_v12 = vpack.c.bf16 %v8399_v50, %v8399_v50  ;;  %20017 = vmatpush3.bf16.msra.mxu1 %v21975_v5 }
 0x35f   : > { %8942 = vst [vmem:[#allocation3 + $0xb0] sm:$0x1] %v8941_v7  ;;  %v24796_v15 = vrot.slane %v4430_v28, 7  ;;  %v4433_v58 = vshll.u32 %v17794_v37, 16  ;;  %vm8333_vm3 = vcmp.ge.f32.partialorder %v20481_v41, 0.0  ;;  %v26531_v8 = vrot.slane %v24703_v43, 4  ;;  %20018 = vmatprep.subr.bf16.mxu1 %v21980_v55 }
 0x360   : > { %v8365_v13 = vmul.f32 0.2, %v20481_v41  ;;  %v8609_v35 = vsel %vm24429_vm15, %v8601_v24, %v24686_v61  ;;  %v8639_v49 = vshrl.u32 %v17826_v12, 16  ;;  %vm4124_vm4 = vcmp.ge.f32.partialorder %v24773_v63, 0.0  ;;  %v21981_v34 = vld [vmem:[%s26368_s3 + $0x78] sm:$0xff]   ;;  %19633 = vmatpush3.bf16.msra.mxu0 %v21979_v9  ;;  %v21988_v7 = vld [vmem:[%s26368_s3 + $0x40] sm:$0xff]  }
 0x361   : > { %v8600_v56 = vsel %vm24429_vm15, %v26531_v8, %v8599_v47  ;;  %8845 = vst [vmem:[#allocation3 + $0xb8] sm:$0xf] %v8609_v35  ;;  %v4437_v37 = vrot.slane %v24796_v15, 4  ;;  %v8642_v43 = vshll.u32 %v17826_v12, 16  ;;  %v4185_v20 = vsel %vm4121_vm12, %v20449_v29, %v4153_v39  ;;  %v24833_v39 = vld [vmem:[%s26367_s2] ss:$0 sm:$0xff]  ;;  %19634 = vmatprep.subr.bf16.mxu0 %v21981_v34 }
 0x362   : > { %8844 = vst [vmem:[#allocation3 + $0xb4] sm:$0xf] %v8600_v56  ;;  %v8397_v51 = vsel %vm8333_vm3, %v20481_v41, %v8365_v13  ;;  %v24811_v27 = vrot.slane %v8639_v49, 7  ;;  %v17792_v44 = vpack.c.bf16 %v4185_v20, %v4185_v20  ;;  %v4156_v5 = vmul.f32 0.2, %v24773_v63  ;;  %20019 = vmatpush3.bf16.msra.mxu1 %v21980_v55 }
 0x363   : > { %v17824_v61 = vpack.c.bf16 %v8397_v51, %v8397_v51  ;;  %v24818_v28 = vor.u32 %v4433_v58, %v24796_v15  ;;  %v20482_v50 = vadd.f32 %v24495_v62, %v24377_v46  ;;  %v20451_v29 = vadd.f32 %v24377_v46, %v24497_v26  ;;  %20052 = vmatprep.subr.bf16.mxu1 %v21988_v7 }
 0x364   : > { %v20483_v41 = vadd.f32 %v24377_v46, %v24508_v48  ;;  %v8895_v47 = vld [vmem:[#allocation3 + $0x38] sm:$0x1]  ;;  %v24827_v9 = vor.u32 %v8642_v43, %v24811_v27  ;;  %v8646_v24 = vrot.slane %v24811_v27, 4  ;;  %v4412_v12 = vshrl.u32 %v17792_v44, 16  ;;  %19635 = vmatpush3.bf16.msra.mxu0 %v21981_v34 }
 0x365   : > { %v20452_v62 = vadd.f32 %v24833_v39, %v24538_v36  ;;  %v21959_v26 = vld [vmem:[#allocation3 + $0x30] sm:$0xff]   ;;  %v8896_v46 = vsel %vm24550_vm10, 0, %v8895_v47  ;;  %v4415_v48 = vshll.u32 %v17792_v44, 16  ;;  %v8621_v55 = vshrl.u32 %v17824_v61, 16 }
 0x366   : > { %v4188_v58 = vsel %vm4124_vm4, %v24773_v63, %v4156_v5  ;;  %8897 = vst [vmem:[#allocation3 + $0x38] sm:$0x1] %v8896_v46  ;;  %v24842_v13 = vrot.slane %v4412_v12, 7  ;;  %vm8336_vm6 = vcmp.ge.f32.partialorder %v20482_v50, 0.0  ;;  %v8368_v56 = vmul.f32 0.2, %v20482_v50  ;;  %19600 = vmatprep.mubr.bf16.mxu0 %v21959_v26 }
 0x367   : > { %v17795_v8 = vpack.c.bf16 %v4188_v58, %v4188_v58  ;;  %v24844_v36 = vrot.slane %v8621_v55, 7  ;;  %v8624_v35 = vshll.u32 %v17824_v61, 16  ;;  %vm4122_vm7 = vcmp.ge.f32.partialorder %v20451_v29, 0.0 }
 0x368   : > { %v4154_v49 = vmul.f32 0.2, %v20451_v29  ;;  %v8943_v43 = vld [vmem:[#allocation3 + $0xb8] sm:$0x1]  ;;  %v4417_v20 = vor.u32 %v4415_v48, %v24842_v13  ;;  %v4419_v51 = vrot.slane %v24842_v13, 4  ;;  %vm8334_vm8 = vcmp.ge.f32.partialorder %v20483_v41, 0.0 }
 0x369   : > { %v4439_v44 = vshrl.u32 %v17795_v8, 16  ;;  %v8944_v63 = vsel %vm24550_vm10, 0, %v8943_v43  ;;  %v8626_v5 = vor.u32 %v8624_v35, %v24844_v36  ;;  %v4442_v7 = vshll.u32 %v17795_v8, 16 }
 0x36a   : > { %v8400_v34 = vsel %vm8336_vm6, %v20482_v50, %v8368_v56  ;;  %8945 = vst [vmem:[#allocation3 + $0xb8] sm:$0x1] %v8944_v63  ;;  %v26532_v61 = vrot.slane %v24726_v53, 4  ;;  %v4186_v46 = vsel %vm4122_vm7, %v20451_v29, %v4154_v49  ;;  %v8628_v55 = vrot.slane %v24844_v36, 4 }
 0x36b   : > { %v24856_v12 = vrot.slane %v4439_v44, 7  ;;  %v17827_v26 = vpack.c.bf16 %v8400_v34, %v8400_v34  ;;  %v8627_v48 = vsel %vm24429_vm15, %v8619_v52, %v8626_v5  ;;  %v17793_v58 = vpack.c.bf16 %v4186_v46, %v4186_v46 }
 0x36c   : > { %v4418_v47 = vsel %vm24429_vm15, %v26532_v61, %v4417_v20  ;;  %v8366_v50 = vmul.f32 0.2, %v20483_v41  ;;  %8847 = vst [vmem:[#allocation3 + $0xc0] sm:$0xf] %v8627_v48  ;;  %vm4127_vm9 = vcmp.ge.f32.partialorder %v20452_v62, 0.0  ;;  %v20484_v43 = vadd.f32 %v24833_v39, %v24544_v45 }
 0x36d   : > { %4641 = vst [vmem:[#allocation3 + $0x40] sm:$0xf] %v4418_v47  ;;  %v4444_v53 = vor.u32 %v4442_v7, %v24856_v12  ;;  %v4446_v13 = vrot.slane %v24856_v12, 4  ;;  %v8648_v8 = vshrl.u32 %v17827_v26, 16  ;;  %v8651_v56 = vshll.u32 %v17827_v26, 16  ;;  %v21960_v20 = vld [vmem:[#allocation3 + $0x38] sm:$0xff]  }
 0x36e   : > { %v4421_v35 = vshrl.u32 %v17793_v58, 16  ;;  %v8398_v29 = vsel %vm8334_vm8, %v20483_v41, %v8366_v50  ;;  %v4159_v49 = vmul.f32 0.2, %v20452_v62  ;;  %v4424_v63 = vshll.u32 %v17793_v58, 16  ;;  %19601 = vmatmul.mubr.bf16.gmra.mrb[44].mxu0 %v21960_v20 }
 0x36f   : > { %v4445_v21 = vsel %vm24429_vm15, %v4437_v37, %v4444_v53  ;;  %v24870_v52 = vrot.slane %v8648_v8, 7  ;;  %v17825_v36 = vpack.c.bf16 %v8398_v29, %v8398_v29  ;;  %v20453_v41 = vadd.f32 %v24833_v39, %v24546_v18 }
 0x370   : > { %4644 = vst [vmem:[#allocation3 + $0x4c] sm:$0xf] %v4445_v21  ;;  %v4423_v44 = vrot.slane %v4421_v35, 7  ;;  %v4191_v5 = vsel %vm4127_vm9, %v20452_v62, %v4159_v49  ;;  %v20485_v37 = vadd.f32 %v24833_v39, %v24556_v60  ;;  %vm8339_vm14 = vcmp.ge.f32.partialorder %v20484_v43, 0.0 }
 0x371   : > { %v8653_v7 = vor.u32 %v8651_v56, %v24870_v52  ;;  %v8630_v15 = vshrl.u32 %v17825_v36, 16  ;;  %v8633_v34 = vshll.u32 %v17825_v36, 16  ;;  %v17798_v26 = vpack.c.bf16 %v4191_v5, %v4191_v5 }
 0x372   : > { %v4426_v61 = vor.u32 %v4424_v63, %v4423_v44  ;;  %v4428_v47 = vrot.slane %v4423_v44, 4  ;;  %v8371_v18 = vmul.f32 0.2, %v20484_v43  ;;  %vm4125_vm0 = vcmp.ge.f32.partialorder %v20453_v41, 0.0 }
 0x373   : > { %v8654_v62 = vsel %vm24429_vm15, %v8646_v24, %v8653_v7  ;;  %v8632_v46 = vrot.slane %v8630_v15, 7  ;;  %v8946_v58 = vld [vmem:[#allocation3 + $0xc0] sm:$0x1]  ;;  %v4466_v53 = vshrl.u32 %v17798_v26, 16  ;;  %v4469_v56 = vshll.u32 %v17798_v26, 16 }
 0x374   : > { %v8898_v45 = vld [vmem:[#allocation3 + $0x40] sm:$0x1]  ;;  %8850 = vst [vmem:[#allocation3 + $0xcc] sm:$0xf] %v8654_v62  ;;  %v4427_v60 = vsel %vm24429_vm15, %v4419_v51, %v4426_v61  ;;  %v4436_v50 = vsel %vm24429_vm15, %v4428_v47, %v24818_v28  ;;  %v8947_v27 = vsel %vm24463_vm5, 0, %v8946_v58  ;;  %v8403_v29 = vsel %vm8339_vm14, %v20484_v43, %v8371_v18 }
 0x375   : > { %v8899_v48 = vsel %vm24463_vm5, 0, %v8898_v45  ;;  %4642 = vst [vmem:[#allocation3 + $0x44] sm:$0xf] %v4427_v60  ;;  %4643 = vst [vmem:[#allocation3 + $0x48] sm:$0xf] %v4436_v50  ;;  %v8635_v24 = vor.u32 %v8633_v34, %v8632_v46  ;;  %v8637_v8 = vrot.slane %v8632_v46, 4  ;;  %v24900_v21 = vpack.c.bf16 %v8403_v29, %v8403_v29 }
 0x376   : > { %8900 = vst [vmem:[#allocation3 + $0x40] sm:$0x1] %v8899_v48  ;;  %8948 = vst [vmem:[#allocation3 + $0xc0] sm:$0x1] %v8947_v27  ;;  %v24892_v35 = vrot.slane %v4466_v53, 7  ;;  %vm8337_vm11 = vcmp.ge.f32.partialorder %v20485_v37, 0.0  ;;  %v20454_v63 = vadd.f32 %v24833_v39, %v24559_v38  ;;  %v20455_v38 = vadd.f32 %v24833_v39, %v24571_v1 }
 0x377   : > { %v4157_v51 = vmul.f32 0.2, %v20453_v41  ;;  %v8636_v28 = vsel %vm24429_vm15, %v8628_v55, %v8635_v24  ;;  %v8645_v49 = vsel %vm24429_vm15, %v8637_v8, %v24827_v9  ;;  %v8369_v36 = vmul.f32 0.2, %v20485_v37 }
 0x378   : > { %v8655_v20 = vrot.slane %v24870_v52, 4  ;;  %8848 = vst [vmem:[#allocation3 + $0xc4] sm:$0xf] %v8636_v28  ;;  %8849 = vst [vmem:[#allocation3 + $0xc8] sm:$0xf] %v8645_v49  ;;  %v24904_v44 = vor.u32 %v4469_v56, %v24892_v35  ;;  %v4473_v55 = vrot.slane %v24892_v35, 4  ;;  %v20486_v52 = vadd.f32 %v24833_v39, %v24566_v0 }
 0x379   : > { %v4189_v43 = vsel %vm4125_vm0, %v20453_v41, %v4157_v51  ;;  %v8675_v5 = vshrl.u32 %v24900_v21, 16  ;;  %v8401_v7 = vsel %vm8337_vm11, %v20485_v37, %v8369_v36  ;;  %vm4128_vm12 = vcmp.ge.f32.partialorder %v20454_v63, 0.0 }
 0x37a   : > { %v17796_v9 = vpack.c.bf16 %v4189_v43, %v4189_v43  ;;  %v17828_v15 = vpack.c.bf16 %v8401_v7, %v8401_v7  ;;  %v4160_v34 = vmul.f32 0.2, %v20454_v63  ;;  %v8678_v47 = vshll.u32 %v24900_v21, 16  ;;  %v22006_v21 = vld [vmem:[%s26368_s3 + $0x80] sm:$0xff]  }
 0x37b   : > { %v24913_v61 = vrot.slane %v8675_v5, 7  ;;  %vm8340_vm3 = vcmp.ge.f32.partialorder %v20486_v52, 0.0  ;;  %v8372_v53 = vmul.f32 0.2, %v20486_v52  ;;  %vm4126_vm4 = vcmp.ge.f32.partialorder %v20455_v38, 0.0  ;;  %19668 = vmatprep.subr.bf16.mxu0 %v22006_v21 }
 0x37c   : > { %v4448_v41 = vshrl.u32 %v17796_v9, 16  ;;  %v8901_v26 = vld [vmem:[#allocation3 + $0x48] sm:$0x1]  ;;  %v4451_v45 = vshll.u32 %v17796_v9, 16  ;;  %v8657_v62 = vshrl.u32 %v17828_v15, 16  ;;  %v8660_v46 = vshll.u32 %v17828_v15, 16 }
 0x37d   : > { %v4192_v18 = vsel %vm4128_vm12, %v20454_v63, %v4160_v34  ;;  %v21962_v37 = vld [vmem:[#allocation3 + $0x40] sm:$0xff]   ;;  %v8902_v48 = vsel %vm24550_vm10, 0, %v8901_v26  ;;  %v8682_v58 = vrot.slane %v24913_v61, 4  ;;  %v4158_v8 = vmul.f32 0.2, %v20455_v38 }
 0x37e   : > { %v24921_v0 = vrot.slane %v4448_v41, 7  ;;  %8903 = vst [vmem:[#allocation3 + $0x48] sm:$0x1] %v8902_v48  ;;  %v24923_v60 = vrot.slane %v8657_v62, 7  ;;  %v17799_v50 = vpack.c.bf16 %v4192_v18, %v4192_v18  ;;  %19604 = vmatprep.mubr.bf16.mxu0 %v21962_v37  ;;  %v20487_v56 = vadd.f32 %v24833_v39, %v24573_v16 }
 0x37f   : > { %v8949_v1 = vld [vmem:[#allocation3 + $0xc8] sm:$0x1]  ;;  %v8404_v16 = vsel %vm8340_vm3, %v20486_v52, %v8372_v53  ;;  %v4190_v63 = vsel %vm4126_vm4, %v20455_v38, %v4158_v8  ;;  %v20488_v34 = vadd.f32 %v24833_v39, %v24588_v14  ;;  %v8680_v48 = vor.u32 %v8678_v47, %v24913_v61 }
 0x380   : > { %v4453_v27 = vor.u32 %v4451_v45, %v24921_v0  ;;  %v4455_v24 = vrot.slane %v24921_v0, 4  ;;  %v8950_v29 = vsel %vm24550_vm10, 0, %v8949_v1  ;;  %v8662_v51 = vor.u32 %v8660_v46, %v24923_v60 }
 0x381   : > { %v8664_v28 = vrot.slane %v24923_v60, 4  ;;  %v4475_v49 = vshrl.u32 %v17799_v50, 16  ;;  %8951 = vst [vmem:[#allocation3 + $0xc8] sm:$0x1] %v8950_v29  ;;  %v4478_v43 = vshll.u32 %v17799_v50, 16  ;;  %v17831_v7 = vpack.c.bf16 %v8404_v16, %v8404_v16 }
 0x382   : > { %v4454_v36 = vsel %vm24429_vm15, %v4446_v13, %v4453_v27  ;;  %v8663_v5 = vsel %vm24429_vm15, %v8655_v20, %v8662_v51  ;;  %v17797_v15 = vpack.c.bf16 %v4190_v63, %v4190_v63  ;;  %vm8338_vm6 = vcmp.ge.f32.partialorder %v20487_v56, 0.0 }
 0x383   : > { %4645 = vst [vmem:[#allocation3 + $0x50] sm:$0xf] %v4454_v36  ;;  %v24944_v9 = vrot.slane %v4475_v49, 7  ;;  %8851 = vst [vmem:[#allocation3 + $0xd0] sm:$0xf] %v8663_v5  ;;  %v20456_v13 = vadd.f32 %v24833_v39, %v24581_v11  ;;  %v8684_v38 = vshrl.u32 %v17831_v7, 16  ;;  %v20457_v35 = vadd.f32 %v24833_v39, %v24590_v54 }
 0x384   : > { %v8370_v12 = vmul.f32 0.2, %v20487_v56  ;;  %v8687_v20 = vshll.u32 %v17831_v7, 16  ;;  %v4457_v26 = vshrl.u32 %v17797_v15, 16  ;;  %v4460_v45 = vshll.u32 %v17797_v15, 16 }
 0x385   : > { %v4480_v52 = vor.u32 %v4478_v43, %v24944_v9  ;;  %v4482_v41 = vrot.slane %v24944_v9, 4  ;;  %vm4131_vm7 = vcmp.ge.f32.partialorder %v20456_v13, 0.0  ;;  %v21963_v46 = vld [vmem:[#allocation3 + $0x48] sm:$0xff]   ;;  %v24956_v11 = vrot.slane %v8684_v38, 7 }
 0x386   : > { %v8402_v62 = vsel %vm8338_vm6, %v20487_v56, %v8370_v12  ;;  %v4163_v14 = vmul.f32 0.2, %v20456_v13  ;;  %v4459_v0 = vrot.slane %v4457_v26, 7  ;;  %vm8343_vm8 = vcmp.ge.f32.partialorder %v20488_v34, 0.0  ;;  %19605 = vmatmul.mubr.bf16.gmra.mrb[48].mxu0 %v21963_v46 }
 0x387   : > { %v4481_v18 = vsel %vm24429_vm15, %v4473_v55, %v4480_v52  ;;  %v17829_v37 = vpack.c.bf16 %v8402_v62, %v8402_v62  ;;  %v8375_v50 = vmul.f32 0.2, %v20488_v34  ;;  %v8689_v53 = vor.u32 %v8687_v20, %v24956_v11 }
 0x388   : > { %4648 = vst [vmem:[#allocation3 + $0x5c] sm:$0xf] %v4481_v18  ;;  %v4462_v55 = vor.u32 %v4460_v45, %v4459_v0  ;;  %v4464_v56 = vrot.slane %v4459_v0, 4  ;;  %v4195_v29 = vsel %vm4131_vm7, %v20456_v13, %v4163_v14  ;;  %vm4129_vm9 = vcmp.ge.f32.partialorder %v20457_v35, 0.0 }
 0x389   : > { %v8666_v1 = vshrl.u32 %v17829_v37, 16  ;;  %v8669_v27 = vshll.u32 %v17829_v37, 16  ;;  %v8407_v51 = vsel %vm8343_vm8, %v20488_v34, %v8375_v50  ;;  %v8690_v21 = vsel %vm24429_vm15, %v8682_v58, %v8689_v53 }
 0x38a   : > { %v8904_v8 = vld [vmem:[#allocation3 + $0x50] sm:$0x1]  ;;  %v17802_v43 = vpack.c.bf16 %v4195_v29, %v4195_v29  ;;  %8854 = vst [vmem:[#allocation3 + $0xdc] sm:$0xf] %v8690_v21  ;;  %v4463_v16 = vsel %vm24429_vm15, %v4455_v24, %v4462_v55  ;;  %v4472_v63 = vsel %vm24429_vm15, %v4464_v56, %v24904_v44  ;;  %v17834_v5 = vpack.c.bf16 %v8407_v51, %v8407_v51 }
 0x38b   : > { %v8905_v47 = vsel %vm24463_vm5, 0, %v8904_v8  ;;  %v8952_v49 = vld [vmem:[#allocation3 + $0xd0] sm:$0x1]  ;;  %v8668_v36 = vrot.slane %v8666_v1, 7  ;;  %4646 = vst [vmem:[#allocation3 + $0x54] sm:$0xf] %v4463_v16  ;;  %v20489_v38 = vadd.f32 %v24833_v39, %v24597_v10  ;;  %v20458_v45 = vadd.f32 %v24833_v39, %v24599_v30 }
 0x38c   : > { %8906 = vst [vmem:[#allocation3 + $0x50] sm:$0x1] %v8905_v47  ;;  %v8953_v54 = vsel %vm24463_vm5, 0, %v8952_v49  ;;  %4647 = vst [vmem:[#allocation3 + $0x58] sm:$0xf] %v4472_v63  ;;  %v4502_v7 = vshrl.u32 %v17802_v43, 16  ;;  %v20490_v60 = vadd.f32 %v24833_v39, %v24608_v23  ;;  %v20491_v53 = vadd.f32 %v24833_v39, %v24629_v22 }
 0x38d   : > { %8954 = vst [vmem:[#allocation3 + $0xd0] sm:$0x1] %v8953_v54  ;;  %v8671_v61 = vor.u32 %v8669_v27, %v8668_v36  ;;  %v8673_v58 = vrot.slane %v8668_v36, 4  ;;  %v4505_v15 = vshll.u32 %v17802_v43, 16  ;;  %v8711_v12 = vshrl.u32 %v17834_v5, 16 }
 0x38e   : > { %v8714_v13 = vshll.u32 %v17834_v5, 16  ;;  %v4161_v34 = vmul.f32 0.2, %v20457_v35  ;;  %v24982_v52 = vrot.slane %v4502_v7, 7  ;;  %vm8341_vm14 = vcmp.ge.f32.partialorder %v20489_v38, 0.0 }
 0x38f   : > { %v8672_v24 = vsel %vm24429_vm15, %v8664_v28, %v8671_v61  ;;  %v8681_v44 = vsel %vm24429_vm15, %v8673_v58, %v8680_v48  ;;  %v24986_v20 = vrot.slane %v8711_v12, 7  ;;  %v8691_v28 = vrot.slane %v24956_v11, 4 }
 0x390   : > { %8852 = vst [vmem:[#allocation3 + $0xd4] sm:$0xf] %v8672_v24  ;;  %8853 = vst [vmem:[#allocation3 + $0xd8] sm:$0xf] %v8681_v44  ;;  %v4193_v26 = vsel %vm4129_vm9, %v20457_v35, %v4161_v34  ;;  %v24994_v62 = vor.u32 %v4505_v15, %v24982_v52  ;;  %v4509_v10 = vrot.slane %v24982_v52, 4  ;;  %vm4132_vm0 = vcmp.ge.f32.partialorder %v20458_v45, 0.0 }
 0x391   : > { %v17800_v46 = vpack.c.bf16 %v4193_v26, %v4193_v26  ;;  %v24998_v18 = vor.u32 %v8714_v13, %v24986_v20  ;;  %v8373_v37 = vmul.f32 0.2, %v20489_v38  ;;  %v4164_v30 = vmul.f32 0.2, %v20458_v45 }
 0x392   : > { %vm8344_vm11 = vcmp.ge.f32.partialorder %v20490_v60, 0.0  ;;  %v8376_v50 = vmul.f32 0.2, %v20490_v60  ;;  %v20459_v11 = vadd.f32 %v24833_v39, %v24610_v4  ;;  %v8718_v49 = vrot.slane %v24986_v20, 4 }
 0x393   : > { %v4484_v14 = vshrl.u32 %v17800_v46, 16  ;;  %v4487_v48 = vshll.u32 %v17800_v46, 16  ;;  %v8907_v0 = vld [vmem:[#allocation3 + $0x58] sm:$0x1]  ;;  %v8405_v23 = vsel %vm8341_vm14, %v20489_v38, %v8373_v37  ;;  %v4196_v8 = vsel %vm4132_vm0, %v20458_v45, %v4164_v30  ;;  %v21967_v55 = vld [vmem:[#allocation3 + $0x50] sm:$0xff]  }
 0x394   : > { %v8908_v1 = vsel %vm24550_vm10, 0, %v8907_v0  ;;  %v17832_v35 = vpack.c.bf16 %v8405_v23, %v8405_v23  ;;  %v17803_v56 = vpack.c.bf16 %v4196_v8, %v4196_v8  ;;  %v8408_v29 = vsel %vm8344_vm11, %v20490_v60, %v8376_v50  ;;  %19608 = vmatprep.mubr.bf16.mxu0 %v21967_v55 }
 0x395   : > { %v25006_v27 = vrot.slane %v4484_v14, 7  ;;  %8909 = vst [vmem:[#allocation3 + $0x58] sm:$0x1] %v8908_v1  ;;  %vm4130_vm12 = vcmp.ge.f32.partialorder %v20459_v11, 0.0  ;;  %v4162_v51 = vmul.f32 0.2, %v20459_v11  ;;  %v17835_v16 = vpack.c.bf16 %v8408_v29, %v8408_v29 }
 0x396   : > { %v8693_v21 = vshrl.u32 %v17832_v35, 16  ;;  %v8696_v43 = vshll.u32 %v17832_v35, 16  ;;  %v4511_v54 = vshrl.u32 %v17803_v56, 16  ;;  %v4514_v61 = vshll.u32 %v17803_v56, 16 }
 0x397   : > { %v8955_v47 = vld [vmem:[#allocation3 + $0xd8] sm:$0x1]  ;;  %v4489_v4 = vor.u32 %v4487_v48, %v25006_v27  ;;  %v4491_v22 = vrot.slane %v25006_v27, 4  ;;  %v4194_v58 = vsel %vm4130_vm12, %v20459_v11, %v4162_v51  ;;  %v8720_v15 = vshrl.u32 %v17835_v16, 16 }
 0x398   : > { %v8956_v36 = vsel %vm24550_vm10, 0, %v8955_v47  ;;  %v25017_v5 = vrot.slane %v8693_v21, 7  ;;  %v25020_v7 = vrot.slane %v4511_v54, 7  ;;  %v17801_v12 = vpack.c.bf16 %v4194_v58, %v4194_v58 }
 0x399   : > { %8957 = vst [vmem:[#allocation3 + $0xd8] sm:$0x1] %v8956_v36  ;;  %v4490_v63 = vsel %vm24429_vm15, %v4482_v41, %v4489_v4  ;;  %vm8342_vm3 = vcmp.ge.f32.partialorder %v20491_v53, 0.0  ;;  %v8723_v34 = vshll.u32 %v17835_v16, 16  ;;  %v8374_v24 = vmul.f32 0.2, %v20491_v53 }
 0x39a   : > { %4649 = vst [vmem:[#allocation3 + $0x60] sm:$0xf] %v4490_v63  ;;  %v8698_v13 = vor.u32 %v8696_v43, %v25017_v5  ;;  %v20460_v9 = vadd.f32 %v24833_v39, %v24645_v42  ;;  %v8700_v41 = vrot.slane %v25017_v5, 4  ;;  %v4516_v44 = vor.u32 %v4514_v61, %v25020_v7 }
 0x39b   : > { %v25027_v52 = vrot.slane %v8720_v15, 7  ;;  %v4493_v38 = vshrl.u32 %v17801_v12, 16  ;;  %v4518_v26 = vrot.slane %v25020_v7, 4  ;;  %v4496_v45 = vshll.u32 %v17801_v12, 16 }
 0x39c   : > { %v8699_v20 = vsel %vm24429_vm15, %v8691_v28, %v8698_v13  ;;  %v8406_v60 = vsel %vm8342_vm3, %v20491_v53, %v8374_v24  ;;  %v21968_v46 = vld [vmem:[#allocation3 + $0x58] sm:$0xff]   ;;  %v4517_v37 = vsel %vm24429_vm15, %v4509_v10, %v4516_v44  ;;  %vm4135_vm4 = vcmp.ge.f32.partialorder %v20460_v9, 0.0 }
 0x39d   : > { %8855 = vst [vmem:[#allocation3 + $0xe0] sm:$0xf] %v8699_v20  ;;  %v8725_v42 = vor.u32 %v8723_v34, %v25027_v52  ;;  %v4495_v14 = vrot.slane %v4493_v38, 7  ;;  %4652 = vst [vmem:[#allocation3 + $0x6c] sm:$0xf] %v4517_v37  ;;  %v17833_v48 = vpack.c.bf16 %v8406_v60, %v8406_v60  ;;  %v20492_v0 = vadd.f32 %v24833_v39, %v24647_v25 }
 0x39e   : > { %v4167_v30 = vmul.f32 0.2, %v20460_v9  ;;  %v20461_v28 = vadd.f32 %v24833_v39, %v24651_v33  ;;  %19609 = vmatmul.mubr.bf16.gmra.mrb[52].mxu0 %v21968_v46  ;;  %v20493_v10 = vadd.f32 %v24833_v39, %v24653_v40  ;;  %v8727_v51 = vrot.slane %v25027_v52, 4 }
 0x39f   : > { %v8726_v23 = vsel %vm24429_vm15, %v8718_v49, %v8725_v42  ;;  %v4498_v50 = vor.u32 %v4496_v45, %v4495_v14  ;;  %v4500_v11 = vrot.slane %v4495_v14, 4  ;;  %v8702_v1 = vshrl.u32 %v17833_v48, 16 }
 0x3a0   : > { %8858 = vst [vmem:[#allocation3 + $0xec] sm:$0xf] %v8726_v23  ;;  %v8705_v27 = vshll.u32 %v17833_v48, 16  ;;  %v4199_v35 = vsel %vm4135_vm4, %v20460_v9, %v4167_v30  ;;  %vm8347_vm6 = vcmp.ge.f32.partialorder %v20492_v0, 0.0  ;;  %v8379_v56 = vmul.f32 0.2, %v20492_v0 }
 0x3a1   : > { %v8910_v53 = vld [vmem:[#allocation3 + $0x60] sm:$0x1]  ;;  %v4499_v33 = vsel %vm24429_vm15, %v4491_v22, %v4498_v50  ;;  %v4508_v8 = vsel %vm24429_vm15, %v4500_v11, %v24994_v62  ;;  %v17806_v55 = vpack.c.bf16 %v4199_v35, %v4199_v35  ;;  %v8704_v40 = vrot.slane %v8702_v1, 7 }
 0x3a2   : > { %v8911_v25 = vsel %vm24463_vm5, 0, %v8910_v53  ;;  %4650 = vst [vmem:[#allocation3 + $0x64] sm:$0xf] %v4499_v33  ;;  %4651 = vst [vmem:[#allocation3 + $0x68] sm:$0xf] %v4508_v8  ;;  %vm4133_vm7 = vcmp.ge.f32.partialorder %v20461_v28, 0.0  ;;  %v8411_v36 = vsel %vm8347_vm6, %v20492_v0, %v8379_v56  ;;  %v20462_v15 = vadd.f32 %v24833_v39, %v24662_v19 }
 0x3a3   : > { %8912 = vst [vmem:[#allocation3 + $0x60] sm:$0x1] %v8911_v25  ;;  %v4165_v29 = vmul.f32 0.2, %v20461_v28  ;;  %v4538_v47 = vshrl.u32 %v17806_v55, 16  ;;  %vm8345_vm8 = vcmp.ge.f32.partialorder %v20493_v10, 0.0  ;;  %v8707_v21 = vor.u32 %v8705_v27, %v8704_v40 }
 0x3a4   : > { %v8377_v49 = vmul.f32 0.2, %v20493_v10  ;;  %v8958_v4 = vld [vmem:[#allocation3 + $0xe0] sm:$0x1]  ;;  %v8709_v22 = vrot.slane %v8704_v40, 4  ;;  %v25056_v16 = vpack.c.bf16 %v8411_v36, %v8411_v36  ;;  %v4541_v12 = vshll.u32 %v17806_v55, 16 }
 0x3a5   : > { %v4197_v43 = vsel %vm4133_vm7, %v20461_v28, %v4165_v29  ;;  %v8959_v62 = vsel %vm24463_vm5, 0, %v8958_v4  ;;  %v25054_v54 = vrot.slane %v4538_v47, 7  ;;  %v8708_v5 = vsel %vm24429_vm15, %v8700_v41, %v8707_v21  ;;  %v26534_v4 = vld [vmem:[#allocation23_spill] sm:$0xff] }
 0x3a6   : > { %v17804_v63 = vpack.c.bf16 %v4197_v43, %v4197_v43  ;;  %8960 = vst [vmem:[#allocation3 + $0xe0] sm:$0x1] %v8959_v62  ;;  %v8717_v61 = vsel %vm24429_vm15, %v8709_v22, %v24998_v18  ;;  %v8409_v58 = vsel %vm8345_vm8, %v20493_v10, %v8377_v49  ;;  %8856 = vst [vmem:[#allocation3 + $0xe4] sm:$0xf] %v8708_v5  ;;  %v8747_v34 = vshrl.u32 %v25056_v16, 16  ;;  %v26533_v10 = vld [vmem:[#allocation21_spill] sm:$0xff] }
 0x3a7   : > { %8857 = vst [vmem:[#allocation3 + $0xe8] sm:$0xf] %v8717_v61  ;;  %v4545_v13 = vrot.slane %v25054_v54, 4  ;;  %v8750_v24 = vshll.u32 %v25056_v16, 16  ;;  %v17836_v41 = vpack.c.bf16 %v8409_v58, %v8409_v58  ;;  %vm4136_vm9 = vcmp.ge.f32.partialorder %v20462_v15, 0.0  ;;  %v26535_v22 = vld [vmem:[#allocation15_spill] sm:$0xff] }
 0x3a8   : > { %v4520_v9 = vshrl.u32 %v17804_v63, 16  ;;  %v4523_v44 = vshll.u32 %v17804_v63, 16  ;;  %v25068_v20 = vrot.slane %v8747_v34, 7  ;;  %v4168_v18 = vmul.f32 0.2, %v20462_v15 }
 0x3a9   : > { %v8913_v38 = vld [vmem:[#allocation3 + $0x68] sm:$0x1]  ;;  %v20494_v19 = vadd.f32 %v24833_v39, %v24664_v59  ;;  %v20463_v45 = vadd.f32 %v24833_v39, %v24673_v31  ;;  %v8729_v42 = vshrl.u32 %v17836_v41, 16  ;;  %v8732_v14 = vshll.u32 %v17836_v41, 16 }
 0x3aa   : > { %v21972_v60 = vld [vmem:[#allocation3 + $0x60] sm:$0xff]   ;;  %v8914_v46 = vsel %vm24550_vm10, 0, %v8913_v38  ;;  %v25076_v37 = vrot.slane %v4520_v9, 7  ;;  %v25079_v48 = vor.u32 %v4541_v12, %v25054_v54  ;;  %v8754_v30 = vrot.slane %v25068_v20, 4 }
 0x3ab   : > { %8915 = vst [vmem:[#allocation3 + $0x68] sm:$0x1] %v8914_v46  ;;  %v4200_v0 = vsel %vm4136_vm9, %v20462_v15, %v4168_v18  ;;  %vm8348_vm14 = vcmp.ge.f32.partialorder %v20494_v19, 0.0  ;;  %19612 = vmatprep.mubr.bf16.mxu0 %v21972_v60  ;;  %v25084_v28 = vrot.slane %v8729_v42, 7  ;;  %v8380_v50 = vmul.f32 0.2, %v20494_v19 }
 0x3ac   : > { %v4525_v59 = vor.u32 %v4523_v44, %v25076_v37  ;;  %v4527_v31 = vrot.slane %v25076_v37, 4  ;;  %v17807_v23 = vpack.c.bf16 %v4200_v0, %v4200_v0  ;;  %vm4134_vm0 = vcmp.ge.f32.partialorder %v20463_v45, 0.0  ;;  %v26536_v60 = vld [vmem:[#allocation16_spill] sm:$0xff] }
 0x3ad   : > { %v4166_v11 = vmul.f32 0.2, %v20463_v45  ;;  %v20495_v53 = vadd.f32 %v24833_v39, %v26533_v10  ;;  %v8734_v35 = vor.u32 %v8732_v14, %v25084_v28  ;;  %v8736_v25 = vrot.slane %v25084_v28, 4 }
 0x3ae   : > { %v8961_v1 = vld [vmem:[#allocation3 + $0xe8] sm:$0x1]  ;;  %v4526_v27 = vsel %vm24429_vm15, %v4518_v26, %v4525_v59  ;;  %v4547_v33 = vshrl.u32 %v17807_v23, 16  ;;  %v4550_v55 = vshll.u32 %v17807_v23, 16  ;;  %v8412_v40 = vsel %vm8348_vm14, %v20494_v19, %v8380_v50 }
 0x3af   : > { %v8962_v8 = vsel %vm24550_vm10, 0, %v8961_v1  ;;  %4653 = vst [vmem:[#allocation3 + $0x70] sm:$0xf] %v4526_v27  ;;  %v4198_v56 = vsel %vm4134_vm0, %v20463_v45, %v4166_v11  ;;  %v8735_v7 = vsel %vm24429_vm15, %v8727_v51, %v8734_v35  ;;  %v17839_v29 = vpack.c.bf16 %v8412_v40, %v8412_v40  ;;  %v26537_v40 = vld [vmem:[#allocation22_spill] sm:$0xff] }
 0x3b0   : > { %8963 = vst [vmem:[#allocation3 + $0xe8] sm:$0x1] %v8962_v8  ;;  %v25101_v26 = vrot.slane %v4547_v33, 7  ;;  %v17805_v47 = vpack.c.bf16 %v4198_v56, %v4198_v56  ;;  %8859 = vst [vmem:[#allocation3 + $0xf0] sm:$0xf] %v8735_v7  ;;  %vm8346_vm11 = vcmp.ge.f32.partialorder %v20495_v53, 0.0  ;;  %v20464_v21 = vadd.f32 %v24833_v39, %v26534_v4 }
 0x3b1   : > { %v8378_v49 = vmul.f32 0.2, %v20495_v53  ;;  %v20496_v36 = vadd.f32 %v24833_v39, %v26535_v22  ;;  %v8756_v62 = vshrl.u32 %v17839_v29, 16  ;;  %v8759_v54 = vshll.u32 %v17839_v29, 16 }
 0x3b2   : > { %v4552_v43 = vor.u32 %v4550_v55, %v25101_v26  ;;  %v4554_v52 = vrot.slane %v25101_v26, 4  ;;  %v21973_v51 = vld [vmem:[#allocation3 + $0x68] sm:$0xff]   ;;  %v4529_v63 = vshrl.u32 %v17805_v47, 16  ;;  %v4532_v5 = vshll.u32 %v17805_v47, 16  ;;  %v22301_v55 = vld [vmem:[%s26367_s2] ss:$0 sm:$0xff] }
 0x3b3   : > { %v8410_v61 = vsel %vm8346_vm11, %v20495_v53, %v8378_v49  ;;  %vm4139_vm12 = vcmp.ge.f32.partialorder %v20464_v21, 0.0  ;;  %v25111_v15 = vrot.slane %v8756_v62, 7  ;;  %v4171_v34 = vmul.f32 0.2, %v20464_v21  ;;  %19613 = vmatmul.mubr.bf16.gmra.mrb[56].mxu0 %v21973_v51  ;;  %v26538_v47 = vld [vmem:[#allocation6_spill] sm:$0xff] }
 0x3b4   : > { %v4553_v58 = vsel %vm24429_vm15, %v4545_v13, %v4552_v43  ;;  %v17837_v12 = vpack.c.bf16 %v8410_v61, %v8410_v61  ;;  %v8752_v9 = vor.u32 %v8750_v24, %v25068_v20  ;;  %v4531_v44 = vrot.slane %v4529_v63, 7 }
 0x3b5   : > { %4656 = vst [vmem:[#allocation3 + $0x7c] sm:$0xf] %v4553_v58  ;;  %vm8351_vm3 = vcmp.ge.f32.partialorder %v20496_v36, 0.0  ;;  %v8383_v41 = vmul.f32 0.2, %v20496_v36  ;;  %v8761_v18 = vor.u32 %v8759_v54, %v25111_v15  ;;  %v20465_v13 = vadd.f32 %v24833_v39, %v26536_v60 }
 0x3b6   : > { %v8916_v38 = vld [vmem:[#allocation3 + $0x70] sm:$0x1]  ;;  %v8738_v19 = vshrl.u32 %v17837_v12, 16  ;;  %v8741_v45 = vshll.u32 %v17837_v12, 16  ;;  %v4534_v42 = vor.u32 %v4532_v5, %v4531_v44  ;;  %v4536_v14 = vrot.slane %v4531_v44, 4 }
 0x3b7   : > { %v8917_v46 = vsel %vm24463_vm5, 0, %v8916_v38  ;;  %v4203_v16 = vsel %vm4139_vm12, %v20464_v21, %v4171_v34  ;;  %v8964_v24 = vld [vmem:[#allocation3 + $0xf0] sm:$0x1]  ;;  %v8762_v0 = vsel %vm24429_vm15, %v8754_v30, %v8761_v18  ;;  %v8415_v50 = vsel %vm8351_vm3, %v20496_v36, %v8383_v41 }
 0x3b8   : > { %8918 = vst [vmem:[#allocation3 + $0x70] sm:$0x1] %v8917_v46  ;;  %v8740_v59 = vrot.slane %v8738_v19, 7  ;;  %v17810_v23 = vpack.c.bf16 %v4203_v16, %v4203_v16  ;;  %v8965_v39 = vsel %vm24463_vm5, 0, %v8964_v24  ;;  %8862 = vst [vmem:[#allocation3 + $0xfc] sm:$0xf] %v8762_v0  ;;  %v4535_v11 = vsel %vm24429_vm15, %v4527_v31, %v4534_v42 }
 0x3b9   : > { %v4544_v20 = vsel %vm24429_vm15, %v4536_v14, %v25079_v48  ;;  %v17842_v10 = vpack.c.bf16 %v8415_v50, %v8415_v50  ;;  %8966 = vst [vmem:[#allocation3 + $0xf0] sm:$0x1] %v8965_v39  ;;  %4654 = vst [vmem:[#allocation3 + $0x74] sm:$0xf] %v4535_v11  ;;  %vm4137_vm4 = vcmp.ge.f32.partialorder %v20465_v13, 0.0  ;;  %v20497_v56 = vadd.f32 %v22301_v55, %v26537_v40 }
 0x3ba   : > { %4655 = vst [vmem:[#allocation3 + $0x78] sm:$0xf] %v4544_v20  ;;  %v8743_v30 = vor.u32 %v8741_v45, %v8740_v59  ;;  %v8745_v53 = vrot.slane %v8740_v59, 4  ;;  %v4574_v1 = vshrl.u32 %v17810_v23, 16  ;;  %v4577_v27 = vshll.u32 %v17810_v23, 16 }
 0x3bb   : > { %v8783_v35 = vshrl.u32 %v17842_v10, 16  ;;  %v8786_v33 = vshll.u32 %v17842_v10, 16  ;;  %v4169_v8 = vmul.f32 0.2, %v20465_v13  ;;  %v20466_v28 = vadd.f32 %v22301_v55, %v24718_v6  ;;  %v9368_v19 = vld [vmem:[#allocation3] sm:$0xf] }
 0x3bc   : > { %v8744_v37 = vsel %vm24429_vm15, %v8736_v25, %v8743_v30  ;;  %v8753_v48 = vsel %vm24429_vm15, %v8745_v53, %v8752_v9  ;;  %v25142_v31 = vrot.slane %v4574_v1, 7  ;;  %v20498_v25 = vadd.f32 %v22301_v55, %v26538_v47  ;;  %v25166_v45 = vld [vmem:[#allocation3 + $0x4] sm:$0xf]  ;;  %v4663_v50 = vld [vmem:[#allocation3 + $0x90] sm:$0x1] }
 0x3bd   : > { %8860 = vst [vmem:[#allocation3 + $0xf4] sm:$0xf] %v8744_v37  ;;  %8861 = vst [vmem:[#allocation3 + $0xf8] sm:$0xf] %v8753_v48  ;;  %v25148_v7 = vrot.slane %v8783_v35, 7  ;;  %v4201_v29 = vsel %vm4137_vm4, %v20465_v13, %v4169_v8  ;;  %v8763_v49 = vrot.slane %v25111_v15, 4  ;;  %v20467_v61 = vadd.f32 %v22301_v55, %v24729_v57 }
 0x3be   : > { %v25154_v4 = vor.u32 %v4577_v27, %v25142_v31  ;;  %v17808_v21 = vpack.c.bf16 %v4201_v29, %v4201_v29  ;;  %vm8349_vm6 = vcmp.ge.f32.partialorder %v20497_v56, 0.0  ;;  %v4581_v22 = vrot.slane %v25142_v31, 4  ;;  %v8867_v1 = vld [vmem:[#allocation3 + $0x110] sm:$0x1]  ;;  %v25182_v35 = vld [vmem:[#allocation3 + $0x8] sm:$0xff]  }
 0x3bf   : > { %v25158_v36 = vor.u32 %v8786_v33, %v25148_v7  ;;  %v8381_v43 = vmul.f32 0.2, %v20497_v56  ;;  %vm4140_vm7 = vcmp.ge.f32.partialorder %v20466_v28, 0.0  ;;  %v4172_v51 = vmul.f32 0.2, %v20466_v28  ;;  %v25184_v48 = vld [vmem:[#allocation3 + $0x10] sm:$0xff]  }
 0x3c0   : > { %v4556_v62 = vshrl.u32 %v17808_v21, 16  ;;  %v4559_v54 = vshll.u32 %v17808_v21, 16  ;;  %vm8352_vm8 = vcmp.ge.f32.partialorder %v20498_v25, 0.0  ;;  %v8384_v5 = vmul.f32 0.2, %v20498_v25  ;;  %v21977_v44 = vld [vmem:[#allocation3 + $0x70] sm:$0xff]  }
 0x3c1   : > { %v8919_v6 = vld [vmem:[#allocation3 + $0x78] sm:$0x1]  ;;  %v8413_v63 = vsel %vm8349_vm6, %v20497_v56, %v8381_v43  ;;  %v20499_v58 = vadd.f32 %v22301_v55, %v24731_v3  ;;  %v4204_v9 = vsel %vm4140_vm7, %v20466_v28, %v4172_v51  ;;  %vm4138_vm9 = vcmp.ge.f32.partialorder %v20467_v61, 0.0  ;;  %19616 = vmatprep.mubr.bf16.mxu0 %v21977_v44 }
 0x3c2   : > { %v8920_v15 = vsel %vm24550_vm10, 0, %v8919_v6  ;;  %v25164_v12 = vrot.slane %v4556_v62, 7  ;;  %v17840_v34 = vpack.c.bf16 %v8413_v63, %v8413_v63  ;;  %v17811_v41 = vpack.c.bf16 %v4204_v9, %v4204_v9  ;;  %v25201_v63 = vld [vmem:[#allocation3 + $0x18] sm:$0xff]   ;;  %v25203_v9 = vld [vmem:[#allocation3 + $0x20] sm:$0xff]  }
 0x3c3   : > { %8921 = vst [vmem:[#allocation3 + $0x78] sm:$0x1] %v8920_v15  ;;  %v8416_v38 = vsel %vm8352_vm8, %v20498_v25, %v8384_v5  ;;  %v4170_v18 = vmul.f32 0.2, %v20467_v61  ;;  %v8790_v57 = vrot.slane %v25148_v7, 4  ;;  %vm8350_vm14 = vcmp.ge.f32.partialorder %v20499_v58, 0.0 }
 0x3c4   : > { %v8967_v60 = vld [vmem:[#allocation3 + $0xf8] sm:$0x1]  ;;  %v4561_v3 = vor.u32 %v4559_v54, %v25164_v12  ;;  %v4563_v13 = vrot.slane %v25164_v12, 4  ;;  %v8765_v46 = vshrl.u32 %v17840_v34, 16  ;;  %v8768_v14 = vshll.u32 %v17840_v34, 16 }
 0x3c5   : > { %v8968_v42 = vsel %vm24550_vm10, 0, %v8967_v60  ;;  %v4583_v16 = vshrl.u32 %v17811_v41, 16  ;;  %v17843_v24 = vpack.c.bf16 %v8416_v38, %v8416_v38  ;;  %v4586_v23 = vshll.u32 %v17811_v41, 16 }
 0x3c6   : > { %8969 = vst [vmem:[#allocation3 + $0xf8] sm:$0x1] %v8968_v42  ;;  %v4562_v0 = vsel %vm24429_vm15, %v4554_v52, %v4561_v3  ;;  %v25177_v59 = vrot.slane %v8765_v46, 7  ;;  %v4202_v39 = vsel %vm4138_vm9, %v20467_v61, %v4170_v18  ;;  %v8382_v27 = vmul.f32 0.2, %v20499_v58  ;;  %v25216_v42 = vld [vmem:[#allocation3 + $0x28] sm:$0xff]  }
 0x3c7   : > { %4657 = vst [vmem:[#allocation3 + $0x80] sm:$0xf] %v4562_v0  ;;  %v4585_v11 = vrot.slane %v4583_v16, 7  ;;  %v8792_v20 = vshrl.u32 %v17843_v24, 16  ;;  %v17809_v10 = vpack.c.bf16 %v4202_v39, %v4202_v39  ;;  %v8795_v53 = vshll.u32 %v17843_v24, 16 }
 0x3c8   : > { %v8770_v30 = vor.u32 %v8768_v14, %v25177_v59  ;;  %v17212_v26 = vcombine.low %v9368_v19, %v25166_v45  ;;  %v8414_v56 = vsel %vm8350_vm14, %v20499_v58, %v8382_v27  ;;  %v9509_v54 = vshll.u32 %v25182_v35, 16 }
 0x3c9   : > { %v4588_v52 = vor.u32 %v4586_v23, %v4585_v11  ;;  %v4590_v33 = vrot.slane %v4585_v11, 4  ;;  %v8794_v8 = vrot.slane %v8792_v20, 7  ;;  %v4565_v37 = vshrl.u32 %v17809_v10, 16 }
 0x3ca   : > { %v8771_v55 = vsel %vm24429_vm15, %v8763_v49, %v8770_v30  ;;  %v4568_v40 = vshll.u32 %v17809_v10, 16  ;;  %v21978_v7 = vld [vmem:[#allocation3 + $0x78] sm:$0xff]   ;;  %v9502_v29 = vshrl.u32 %v17212_v26, 16  ;;  %v17841_v62 = vpack.c.bf16 %v8414_v56, %v8414_v56  ;;  %v26540_v30 = vld [vmem:[#allocation10_spill] sm:$0xff] }
 0x3cb   : > { %8863 = vst [vmem:[#allocation3 + $0x100] sm:$0xf] %v8771_v55  ;;  %v4589_v28 = vsel %vm24429_vm15, %v4581_v22, %v4588_v52  ;;  %v4664_v47 = vsel %vm24463_vm5, %v4590_v33, %v4663_v50  ;;  %v8797_v25 = vor.u32 %v8795_v53, %v8794_v8  ;;  %v8799_v21 = vrot.slane %v8794_v8, 4  ;;  %19617 = vmatmul.mubr.bf16.gmra.mrb[60].mxu0 %v21978_v7  ;;  %v25238_v55 = vld [vmem:[#allocation3 + $0x30] sm:$0xff]  }
 0x3cc   : > { %4660 = vst [vmem:[#allocation3 + $0x8c] sm:$0xf] %v4589_v28  ;;  %4665 = vst [vmem:[#allocation3 + $0x90] sm:$0x1] %v4664_v47  ;;  %v4567_v43 = vrot.slane %v4565_v37, 7  ;;  %v9504_v49 = vshll.u32 %v17212_v26, 16 }
 0x3cd   : > { %v8798_v51 = vsel %vm24429_vm15, %v8790_v57, %v8797_v25  ;;  %v8868_v31 = vsel %vm24463_vm5, %v8799_v21, %v8867_v1  ;;  %v9513_v22 = vshrl.u32 %v25182_v35, 16  ;;  %v9517_v6 = vshll.u32 %v25184_v48, 16  ;;  %v22013_v56 = vld [vmem:[%s26368_s3 + $0x90] sm:$0xff]  }
 0x3ce   : > { %v8922_v5 = vld [vmem:[#allocation3 + $0x80] sm:$0x1]  ;;  %8866 = vst [vmem:[#allocation3 + $0x10c] sm:$0xf] %v8798_v51  ;;  %8869 = vst [vmem:[#allocation3 + $0x110] sm:$0x1] %v8868_v31  ;;  %v4570_v61 = vor.u32 %v4568_v40, %v4567_v43 }
 0x3cf   : > { %v4572_v58 = vrot.slane %v4567_v43, 4  ;;  %v8774_v15 = vshrl.u32 %v17841_v62, 16  ;;  %v8777_v34 = vshll.u32 %v17841_v62, 16  ;;  %v8923_v44 = vsel %vm24463_vm5, 0, %v8922_v5  ;;  %v25240_v40 = vld [vmem:[#allocation3 + $0x38] sm:$0xff]  }
 0x3d0   : > { %v26539_v41 = vmov 0   ;;  %v9506_v38 = vrot.slane %v9504_v49, 1  ;;  %v9511_v18 = vrot.slane %v9509_v54, 1  ;;  %v9519_v19 = vrot.slane %v9517_v6, 1  ;;  %8924 = vst [vmem:[#allocation3 + $0x80] sm:$0x1] %v8923_v44 }
 0x3d1   : > { %8874 = vst [vmem:[#allocation3 + $0x110] sm:$0xf] %v26539_v41  ;;  %v4571_v60 = vsel %vm24429_vm15, %v4563_v13, %v4570_v61  ;;  %v4580_v57 = vsel %vm24429_vm15, %v4572_v58, %v25154_v4  ;;  %v8776_v3 = vrot.slane %v8774_v15, 7  ;;  %v9521_v46 = vshrl.u32 %v25184_v48, 16  ;;  %v22011_v13 = vld [vmem:[%s26368_s3 + $0x88] sm:$0xff]   ;;  %v22018_v49 = vld [vmem:[%s26368_s3 + $0x98] sm:$0xff]  }
 0x3d2   : > { %v8772_v14 = vrot.slane %v25177_v59, 4  ;;  %4658 = vst [vmem:[#allocation3 + $0x84] sm:$0xf] %v4571_v60  ;;  %4659 = vst [vmem:[#allocation3 + $0x88] sm:$0xf] %v4580_v57  ;;  %v9507_v16 = vor.u32 %v9506_v38, %v9502_v29  ;;  %v9515_v24 = vor.u32 %v9513_v22, %v9511_v18  ;;  %v9525_v12 = vshll.u32 %v25201_v63, 16 }
 0x3d3   : > { %v8970_v0 = vld [vmem:[#allocation3 + $0x100] sm:$0x1]  ;;  %v8779_v23 = vor.u32 %v8777_v34, %v8776_v3  ;;  %v8781_v4 = vrot.slane %v8776_v3, 4  ;;  %v9523_v50 = vor.u32 %v9521_v46, %v9519_v19  ;;  %v9533_v39 = vshll.u32 %v25203_v9, 16  ;;  %v8833_v59 = vld [vmem:[#allocation3 + $0x90] sm:$0xf] }
 0x3d4   : > { %v8971_v11 = vsel %vm24463_vm5, 0, %v8970_v0  ;;  %v9512_v20 = vsel %vm969_vm1, %v9507_v16, %v9511_v18  ;;  %v9527_v10 = vrot.slane %v9525_v12, 1  ;;  %v8834_v1 = vsel %vm24406_vm13, %v26540_v30, %v8833_v59  ;;  %v25263_v15 = vld [vmem:[#allocation3 + $0x40] sm:$0xff]   ;;  %v25274_v60 = vld [vmem:[#allocation3 + $0x48] sm:$0xff]  }
 0x3d5   : > { %8972 = vst [vmem:[#allocation3 + $0x100] sm:$0x1] %v8971_v11  ;;  %v8780_v27 = vsel %vm24429_vm15, %v8772_v14, %v8779_v23  ;;  %v8789_v26 = vsel %vm24429_vm15, %v8781_v4, %v25158_v36  ;;  %19636 = vmatprep.mubr.bf16.mxu0 %v9512_v20  ;;  %v9520_v52 = vsel %vm969_vm1, %v9515_v24, %v9519_v19  ;;  %8835 = vst [vmem:[#allocation3 + $0x90] sm:$0xf] %v8834_v1  ;;  %v22025_v3 = vld [vmem:[%s26368_s3 + $0xa8] sm:$0xff]   ;;  %v22303_v46 = vld [vmem:[%s26368_s3 + $0x40] sm:$0xff]  }
 0x3d6   : > { %8864 = vst [vmem:[#allocation3 + $0x104] sm:$0xf] %v8780_v27  ;;  %8865 = vst [vmem:[#allocation3 + $0x108] sm:$0xf] %v8789_v26  ;;  %19637 = vmatmul.mubr.bf16.vlgmr.msra.gmra.mrb[32].mxu0 %v9520_v52  ;;  %v9528_v33 = vsel %vm969_vm1, %v9523_v50, %v9527_v10  ;;  %v9535_v8 = vrot.slane %v9533_v39, 1  ;;  %v9541_v37 = vshll.u32 %v25216_v42, 16 }
 0x3d7   : > { %19640 = vmatprep.mubr.bf16.mxu0 %v9528_v33  ;;  %19669 = vmatpush3.bf16.msra.mxu0 %v22302_v2  ;;  %v9537_v36 = vshrl.u32 %v25203_v9, 16  ;;  %v9529_v28 = vshrl.u32 %v25201_v63, 16  ;;  %v9549_v43 = vshll.u32 %v25238_v55, 16  ;;  %v9557_v22 = vshll.u32 %v25240_v40, 16  ;;  %v21998_v16 = vld [vmem:[%s26368_s3 + $0x50] sm:$0xff]   ;;  %v21992_v4 = vld [vmem:[#allocation3 + $0x98] sm:$0xff]  }
 0x3d8   : > { %19670 = vmatprep.subr.bf16.mxu0 %v22011_v13  ;;  %v9543_v21 = vrot.slane %v9541_v37, 1  ;;  %v9553_v34 = vshrl.u32 %v25238_v55, 16  ;;  %v9545_v44 = vshrl.u32 %v25216_v42, 16  ;;  %v9565_v19 = vshll.u32 %v25263_v15, 16  ;;  %v25288_v23 = vld [vmem:[#allocation3 + $0x50] sm:$0xff]   ;;  %v21994_v59 = vld [vmem:[#allocation3 + $0xa0] sm:$0xff]  }
 0x3d9   : > { %v8925_v7 = vld [vmem:[#allocation3 + $0x88] sm:$0x1]  ;;  %v21982_v29 = vld [vmem:[#allocation3 + $0x80] sm:$0xff]   ;;  %v9539_v25 = vor.u32 %v9537_v36, %v9535_v8  ;;  %v9531_v62 = vor.u32 %v9529_v28, %v9527_v10  ;;  %v9551_v58 = vrot.slane %v9549_v43, 1  ;;  %v9559_v18 = vrot.slane %v9557_v22, 1  ;;  %v22003_v39 = vld [vmem:[%s26368_s3 + $0x58] sm:$0xff]  }
 0x3da   : > { %v8926_v47 = vsel %vm24550_vm10, 0, %v8925_v7  ;;  %20020 = vmatprep.mubr.bf16.mxu1 %v21982_v29  ;;  %v9547_v57 = vor.u32 %v9545_v44, %v9543_v21  ;;  %v9573_v0 = vshll.u32 %v25274_v60, 16  ;;  %v9569_v50 = vshrl.u32 %v25263_v15, 16  ;;  %v22027_v11 = vld [vmem:[%s26368_s3 + $0xb0] sm:$0xff]   ;;  %v25298_v10 = vld [vmem:[#allocation3 + $0x58] sm:$0xff]   ;;  %v25316_v36 = vld [vmem:[#allocation3 + $0x60] sm:$0xff]  }
 0x3db   : > { %8927 = vst [vmem:[#allocation3 + $0x88] sm:$0x1] %v8926_v47  ;;  %19671 = vmatpush3.bf16.msra.mxu0 %v22011_v13  ;;  %v9536_v31 = vsel %vm969_vm1, %v9531_v62, %v9535_v8  ;;  %v9544_v61 = vsel %vm969_vm1, %v9539_v25, %v9543_v21  ;;  %v9555_v38 = vor.u32 %v9553_v34, %v9551_v58  ;;  %v9567_v13 = vrot.slane %v9565_v19, 1  ;;  %v22032_v8 = vld [vmem:[%s26368_s3 + $0xb8] sm:$0xff]   ;;  %v22009_v2 = vld [vmem:[%s26368_s3 + $0x60] sm:$0xff]   ;;  %v21997_v21 = vld [vmem:[#allocation3 + $0xa8] sm:$0xff]  }
 0x3dc   : > { %19672 = vmatprep.subr.bf16.mxu0 %v22013_v56  ;;  %v8928_v54 = vld [vmem:[#allocation3 + $0x90] sm:$0x1]  ;;  %v9552_v14 = vsel %vm969_vm1, %v9547_v57, %v9551_v58  ;;  %v9561_v20 = vshrl.u32 %v25240_v40, 16  ;;  %v26384_v30 = vrot.slane %v25184_v48, 1  ;;  %v9916_v53 = vrot.slane %v25201_v63, 1  ;;  %v22016_v62 = vld [vmem:[%s26368_s3 + $0x68] sm:$0xff]  }
 0x3dd   : > { %v8973_v51 = vld [vmem:[#allocation3 + $0x108] sm:$0x1]  ;;  %v8929_v6 = vsel %vm24463_vm5, 0, %v8928_v54  ;;  %v9560_v12 = vsel %vm969_vm1, %v9555_v38, %v9559_v18  ;;  %v9571_v1 = vor.u32 %v9569_v50, %v9567_v13  ;;  %v9575_v27 = vrot.slane %v9573_v0, 1  ;;  %v25349_v34 = vld [vmem:[#allocation3 + $0x70] sm:$0xff]  }
 0x3de   : > { %v8974_v5 = vsel %vm24550_vm10, 0, %v8973_v51  ;;  %19641 = vmatmul.mubr.bf16.gmra.mrb[36].mxu0 %v9536_v31  ;;  %8930 = vst [vmem:[#allocation3 + $0x90] sm:$0x1] %v8929_v6  ;;  %v9581_v26 = vshll.u32 %v25288_v23, 16  ;;  %v9563_v52 = vor.u32 %v9561_v20, %v9559_v18  ;;  %v25306_v33 = vsel %vm1380_vm2, %v26384_v30, %v9916_v53  ;;  %v25339_v51 = vld [vmem:[#allocation3 + $0x68] sm:$0xff]  }
 0x3df   : > { %8975 = vst [vmem:[#allocation3 + $0x108] sm:$0x1] %v8974_v5  ;;  %19644 = vmatprep.mubr.bf16.mxu0 %v9544_v61  ;;  %19673 = vmatpush3.bf16.msra.mxu0 %v22013_v56  ;;  %v9918_v63 = vrot.slane %v25203_v9, 1  ;;  %v9920_v56 = vrot.slane %v25216_v42, 1  ;;  %v9576_v7 = vsel %vm969_vm1, %v9571_v1, %v9575_v27  ;;  %v9589_v28 = vshll.u32 %v25298_v10, 16  ;;  %v25331_v42 = vld [vmem:[%s26368_s3 + $0xc0] sm:$0xff]  }
 0x3e0   : > { %19674 = vmatprep.subr.bf16.mxu0 %v22018_v49  ;;  %v9568_v37 = vsel %vm969_vm1, %v9563_v52, %v9567_v13  ;;  %v9583_v29 = vrot.slane %v9581_v26, 1  ;;  %v9922_v25 = vrot.slane %v25238_v55, 1  ;;  %v9585_v43 = vshrl.u32 %v25288_v23, 16  ;;  %v21999_v61 = vld [vmem:[#allocation3 + $0xb0] sm:$0xff]   ;;  %v25384_v20 = vld [vmem:[#allocation3 + $0x84] sm:$0xf] }
 0x3e1   : > { %v25322_v9 = vsel %vm1380_vm2, %v9916_v53, %v9918_v63  ;;  %v25325_v47 = vsel %vm1380_vm2, %v9918_v63, %v9920_v56  ;;  %v9577_v54 = vshrl.u32 %v25274_v60, 16  ;;  %v9591_v22 = vrot.slane %v9589_v28, 1  ;;  %v22023_v44 = vld [vmem:[%s26368_s3 + $0x70] sm:$0xff]   ;;  %v22029_v13 = vld [vmem:[%s26368_s3 + $0x78] sm:$0xff]  }
 0x3e2   : > { %v21986_v41 = vld [vmem:[#allocation3 + $0x88] sm:$0xff]   ;;  %v25342_v55 = vsel %vm1380_vm2, %v9920_v56, %v9922_v25  ;;  %v9587_v31 = vor.u32 %v9585_v43, %v9583_v29  ;;  %v9597_v6 = vshll.u32 %v25316_v36, 16  ;;  %v9605_v18 = vshll.u32 %v25339_v51, 16  ;;  %v25401_v56 = vld [vmem:[%s26368_s3 + $0x80] sm:$0xff]  }
 0x3e3   : > { %19675 = vmatpush3.bf16.msra.mxu0 %v22018_v49  ;;  %20021 = vmatmul.mubr.bf16.vlgmr.msra.gmra.mrb[32].mxu1 %v21986_v41  ;;  %v9924_v49 = vrot.slane %v25240_v40, 1  ;;  %v9579_v58 = vor.u32 %v9577_v54, %v9575_v27  ;;  %v9926_v40 = vrot.slane %v25263_v15, 1  ;;  %v9930_v57 = vrot.slane %v25288_v23, 1  ;;  %v9890_v27 = vld [vmem:[#allocation3] sm:$0xe]  ;;  %v22008_v54 = vld [vmem:[#allocation3 + $0xc8] sm:$0xff]  }
 0x3e4   : > { %19676 = vmatprep.subr.bf16.mxu0 %v22020_v32  ;;  %20053 = vmatpush3.bf16.msra.mxu1 %v22303_v46  ;;  %v9592_v15 = vsel %vm969_vm1, %v9587_v31, %v9591_v22  ;;  %v9599_v38 = vrot.slane %v9597_v6, 1  ;;  %v22002_v46 = vld [vmem:[#allocation3 + $0xb8] sm:$0xff]   ;;  %v9607_v50 = vrot.slane %v9605_v18, 1  ;;  %v25410_v43 = vld [vmem:[#allocation3 + $0xa0] sm:$0xff]   ;;  %v25417_v6 = vld [vmem:[#allocation3 + $0xb0] sm:$0xff]  }
 0x3e5   : > { %v21990_v24 = vld [vmem:[#allocation3 + $0x90] sm:$0xff]   ;;  %20054 = vmatprep.subr.bf16.mxu1 %v21993_v17  ;;  %v25346_v5 = vsel %vm1380_vm2, %v9922_v25, %v9924_v49  ;;  %v25358_v41 = vsel %vm1380_vm2, %v9924_v49, %v9926_v40  ;;  %v25433_v18 = vld [vmem:[#allocation3 + $0xc8] sm:$0xff]  }
 0x3e6   : > { %19645 = vmatmul.mubr.bf16.gmra.mrb[40].mxu0 %v9552_v14  ;;  %20024 = vmatprep.mubr.bf16.mxu1 %v21990_v24  ;;  %v9601_v14 = vshrl.u32 %v25316_v36, 16  ;;  %v9593_v24 = vshrl.u32 %v25298_v10, 16 }
 0x3e7   : > { %19648 = vmatprep.mubr.bf16.mxu0 %v9560_v12  ;;  %19677 = vmatpush3.bf16.msra.mxu0 %v22020_v32  ;;  %v9928_v32 = vrot.slane %v25274_v60, 1  ;;  %v25365_v60 = vld [vmem:[#allocation3 + $0x78] sm:$0xff]   ;;  %v25372_v12 = vld [vmem:[#allocation3 + $0x80] ss:$0 sps:$4 sm:$0x11]  }
 0x3e8   : > { %19678 = vmatprep.subr.bf16.mxu0 %v22025_v3  ;;  %20055 = vmatpush3.bf16.msra.mxu1 %v21993_v17  ;;  %v9584_v17 = vsel %vm969_vm1, %v9579_v58, %v9583_v29  ;;  %v9621_v1 = vshll.u32 %v25365_v60, 16  ;;  %v9938_v29 = vrot.slane %v25349_v34, 1  ;;  %v9940_v28 = vrot.slane %v25365_v60, 1 }
 0x3e9   : > { %20056 = vmatprep.subr.bf16.mxu1 %v21998_v16  ;;  %v25363_v19 = vsel %vm1380_vm2, %v9926_v40, %v9928_v32  ;;  %v25378_v0 = vsel %vm1380_vm2, %v9928_v32, %v9930_v57  ;;  %v9629_v25 = vshll.u32 %v25372_v12, 16  ;;  %v22010_v40 = vld [vmem:[#allocation3 + $0xd0] sm:$0xff]   ;;  %v17253_v32 = vcombine.low %v9890_v27, %v25166_v45 }
 0x3ea   : > { %v9623_v31 = vrot.slane %v9621_v1, 1  ;;  %v25423_v58 = vsel %vm1380_vm2, %v9938_v29, %v9940_v28  ;;  %v9912_v27 = vrot.slane %v25182_v35, 1 }
 0x3eb   : > { %19679 = vmatpush3.bf16.msra.mxu0 %v22025_v3  ;;  %20025 = vmatmul.mubr.bf16.gmra.mrb[36].mxu1 %v21992_v4  ;;  %v9932_v3 = vrot.slane %v25298_v10, 1  ;;  %v9603_v4 = vor.u32 %v9601_v14, %v9599_v38  ;;  %v9936_v10 = vrot.slane %v25339_v51, 1 }
 0x3ec   : > { %19680 = vmatprep.subr.bf16.mxu0 %v22027_v11  ;;  %20028 = vmatprep.mubr.bf16.mxu1 %v21994_v59  ;;  %v9595_v59 = vor.u32 %v9593_v24, %v9591_v22  ;;  %v25415_v22 = vld [vmem:[#allocation3 + $0x90] sm:$0xff]  }
 0x3ed   : > { %20057 = vmatpush3.bf16.msra.mxu1 %v21998_v16  ;;  %v9613_v16 = vshll.u32 %v25349_v34, 16  ;;  %v25381_v23 = vsel %vm1380_vm2, %v9930_v57, %v9932_v3  ;;  %v25435_v57 = vld [vmem:[#allocation3 + $0xd0] sm:$0xff]  }
 0x3ee   : > { %19649 = vmatmul.mubr.bf16.gmra.mrb[44].mxu0 %v9568_v37  ;;  %20058 = vmatprep.subr.bf16.mxu1 %v22003_v39  ;;  %v9600_v52 = vsel %vm969_vm1, %v9595_v59, %v9599_v38  ;;  %v13584_v37 = vld [vmem:[#allocation3 + $0x80] sm:$0xe]  ;;  %v9625_v38 = vshrl.u32 %v25365_v60, 16  ;;  %v9631_v60 = vrot.slane %v9629_v25, 1  ;;  %v25453_v59 = vld [vmem:[#allocation3 + $0xf8] sm:$0xff]  }
 0x3ef   : > { %19652 = vmatprep.mubr.bf16.mxu0 %v9576_v7  ;;  %19681 = vmatpush3.bf16.msra.mxu0 %v22027_v11  ;;  %v22004_v11 = vld [vmem:[#allocation3 + $0xc0] sm:$0xff]   ;;  %v9615_v53 = vrot.slane %v9613_v16, 1  ;;  %v25403_v7 = vld [vmem:[#allocation3 + $0x98] sm:$0xff]   ;;  %v17556_v49 = vcombine.low %v13584_v37, %v25384_v20  ;;  %v13615_v37 = vrot.slane %v25417_v6, 1  ;;  %v13633_v30 = vrot.slane %v25453_v59, 1 }
 0x3f0   : > { %19682 = vmatprep.subr.bf16.mxu0 %v22032_v8  ;;  %v25476_v25 = vld [vmem:[#allocation3 + $0x100] ss:$0 sps:$4 sm:$0x11]  }
 0x3f1   : > { %20059 = vmatpush3.bf16.msra.mxu1 %v22003_v39  ;;  %v9934_v39 = vrot.slane %v25316_v36, 1  ;;  %v9617_v36 = vshrl.u32 %v25349_v34, 16  ;;  %v13604_v14 = vrot.slane %v17556_v49, 1 }
 0x3f2   : > { %20060 = vmatprep.subr.bf16.mxu1 %v22009_v2 }
 0x3f3   : > { %19683 = vmatpush3.bf16.msra.mxu0 %v22032_v8  ;;  %20029 = vmatmul.mubr.bf16.gmra.mrb[40].mxu1 %v21997_v21  ;;  %v25389_v26 = vsel %vm1380_vm2, %v9932_v3, %v9934_v39  ;;  %v9609_v8 = vshrl.u32 %v25339_v51, 16  ;;  %v25394_v63 = vsel %vm1380_vm2, %v9934_v39, %v9936_v10  ;;  %v25408_v21 = vld [vmem:[#allocation3 + $0x88] sm:$0xff]   ;;  %v9619_v51 = vor.u32 %v9617_v36, %v9615_v53  ;;  %v25437_v3 = vld [vmem:[#allocation3 + $0xd8] sm:$0xff]  }
 0x3f4   : > { %19716 = vmatprep.subr.bf16.mxu0 %v25331_v42  ;;  %20032 = vmatprep.mubr.bf16.mxu1 %v21999_v61  ;;  %v25420_v61 = vsel %vm1380_vm2, %v9936_v10, %v9938_v29  ;;  %v13605_v16 = vrot.slane %v25408_v21, 1  ;;  %v25449_v39 = vld [vmem:[#allocation3 + $0xe8] sm:$0xff]  }
 0x3f5   : > { %20061 = vmatpush3.bf16.msra.mxu1 %v22009_v2  ;;  %v9608_v2 = vsel %vm969_vm1, %v9603_v4, %v9607_v50  ;;  %v9611_v34 = vor.u32 %v9609_v8, %v9607_v50  ;;  %v9624_v24 = vsel %vm969_vm1, %v9619_v51, %v9623_v31  ;;  %v13609_v4 = vrot.slane %v25403_v7, 1 }
 0x3f6   : > { %19653 = vmatmul.mubr.bf16.gmra.mrb[48].mxu0 %v9584_v17  ;;  %20062 = vmatprep.subr.bf16.mxu1 %v22016_v62  ;;  %v25426_v17 = vld [vmem:[#allocation3 + $0xb8] sm:$0xff]   ;;  %v9911_v50 = vrot.slane %v17253_v32, 1  ;;  %v25456_v10 = vsel %vm1380_vm2, %v13604_v14, %v13605_v16  ;;  %v13623_v51 = vrot.slane %v25435_v57, 1 }
 0x3f7   : > { %19656 = vmatprep.mubr.bf16.mxu0 %v9592_v15  ;;  %v9942_v15 = vrot.slane %v25372_v12, 1  ;;  %v25445_v12 = vld [vmem:[#allocation3 + $0xe0] sm:$0xff]   ;;  %v22015_v14 = vld [vmem:[#allocation3 + $0xd8] sm:$0xff]  }
 0x3f9   : > { %20063 = vmatpush3.bf16.msra.mxu1 %v22016_v62  ;;  %v25412_v62 = vld [vmem:[#allocation3 + $0xa8] sm:$0xff]   ;;  %v25441_v45 = vsel %vm1380_vm2, %v9940_v28, %v9942_v15  ;;  %v13617_v28 = vrot.slane %v25426_v17, 1  ;;  %v13627_v15 = vrot.slane %v25445_v12, 1 }
 0x3fa   : > { %20064 = vmatprep.subr.bf16.mxu1 %v22023_v44  ;;  %v13613_v1 = vrot.slane %v25412_v62, 1 }
 0x3fb   : > { %20033 = vmatmul.mubr.bf16.gmra.mrb[44].mxu1 %v22002_v46  ;;  %v9616_v46 = vsel %vm969_vm1, %v9611_v34, %v9615_v53  ;;  %v13611_v53 = vrot.slane %v25410_v43, 1  ;;  %v25485_v34 = vsel %vm1380_vm2, %v13615_v37, %v13617_v28 }
 0x3fc   : > { %20036 = vmatprep.mubr.bf16.mxu1 %v22004_v11  ;;  %v25451_v11 = vld [vmem:[#allocation3 + $0xf0] sm:$0xff]   ;;  %v25479_v49 = vsel %vm1380_vm2, %v13613_v1, %v13615_v37 }
 0x3fd   : > { %20065 = vmatpush3.bf16.msra.mxu1 %v22023_v44  ;;  %v25428_v44 = vld [vmem:[#allocation3 + $0xc0] sm:$0xff]   ;;  %v25469_v36 = vsel %vm1380_vm2, %v13609_v4, %v13611_v53  ;;  %v25472_v29 = vsel %vm1380_vm2, %v13611_v53, %v13613_v1  ;;  %v9627_v1 = vor.u32 %v9625_v38, %v9623_v31  ;;  %v13635_v38 = vrot.slane %v25476_v25, 1 }
 0x3fe   : > { %19657 = vmatmul.mubr.bf16.gmra.mrb[52].mxu0 %v9600_v52  ;;  %20066 = vmatprep.subr.bf16.mxu1 %v22029_v13  ;;  %v13619_v35 = vrot.slane %v25428_v44, 1  ;;  %v22017_v53 = vld [vmem:[#allocation3 + $0xe0] sm:$0xff]  }
 0x3ff   : > { %19660 = vmatprep.mubr.bf16.mxu0 %v9608_v2  ;;  %v13063_v2 = vld [vmem:[#allocation3 + $0x80] sm:$0xf] }
 0x400   : > { %v25488_v32 = vsel %vm1380_vm2, %v13617_v28, %v13619_v35 }
 0x401   : > { %20067 = vmatpush3.bf16.msra.mxu1 %v22029_v13  ;;  %v13607_v13 = vrot.slane %v25415_v22, 1 }
 0x402   : > { %20100 = vmatprep.subr.bf16.mxu1 %v25401_v56 }
 0x403   : > { %20037 = vmatmul.mubr.bf16.gmra.mrb[48].mxu1 %v22008_v54  ;;  %v25462_v52 = vsel %vm1380_vm2, %v13605_v16, %v13607_v13  ;;  %v25465_v8 = vsel %vm1380_vm2, %v13607_v13, %v13609_v4  ;;  %v13621_v54 = vrot.slane %v25433_v18, 1  ;;  %v13631_v4 = vrot.slane %v25451_v11, 1 }
 0x404   : > { %20040 = vmatprep.mubr.bf16.mxu1 %v22010_v40  ;;  %v13625_v40 = vrot.slane %v25437_v3, 1 }
 0x405   : > { %v25493_v16 = vsel %vm1380_vm2, %v13619_v35, %v13621_v54  ;;  %v17515_v35 = vcombine.low %v13063_v2, %v25384_v20  ;;  %v25516_v31 = vsel %vm1380_vm2, %v13631_v4, %v13633_v30  ;;  %v22022_v20 = vld [vmem:[#allocation3 + $0xe8] sm:$0xff]   ;;  %v22024_v2 = vld [vmem:[#allocation3 + $0xf0] sm:$0xff]  }
 0x406   : > { %19661 = vmatmul.mubr.bf16.gmra.mrb[56].mxu0 %v9616_v46  ;;  %v13629_v46 = vrot.slane %v25449_v39, 1  ;;  %v25499_v13 = vsel %vm1380_vm2, %v13623_v51, %v13625_v40  ;;  %v25503_v37 = vsel %vm1380_vm2, %v13625_v40, %v13627_v15  ;;  %v25520_v40 = vsel %vm1380_vm2, %v13633_v30, %v13635_v38  ;;  %v22051_v30 = vld [vmem:[%s26368_s3 + $0xd0] sm:$0xff]   ;;  %v22028_v38 = vld [vmem:[#allocation3 + $0xf8] sm:$0xff]  }
 0x407   : > { %19664 = vmatprep.mubr.bf16.mxu0 %v9624_v24  ;;  %v25496_v24 = vsel %vm1380_vm2, %v13621_v54, %v13623_v51  ;;  %26542 = vst [vmem:[#allocation5_spill] sm:$0xff] %v25499_v13  ;;  %v9913_v54 = vsel %vm1380_vm2, %v9911_v50, %v9912_v27  ;;  %v9632_v13 = vsel %vm969_vm1, %v9627_v1, %v9631_v60  ;;  %v22050_v60 = vld [vmem:[%s26368_s3 + $0xc8] sm:$0xff]  }
 0x408   : > { %v25506_v28 = vsel %vm1380_vm2, %v13627_v15, %v13629_v46  ;;  %v25512_v51 = vsel %vm1380_vm2, %v13629_v46, %v13631_v4  ;;  %v13198_v15 = vshll.u32 %v17515_v35, 16  ;;  %v13203_v46 = vshll.u32 %v25408_v21, 16 }
 0x409   : > { %v13196_v4 = vshrl.u32 %v17515_v35, 16  ;;  %v13207_v35 = vshrl.u32 %v25408_v21, 16  ;;  %v22056_v21 = vld [vmem:[%s26368_s3 + $0xe0] sm:$0xff]  }
 0x40a   : > { %v13200_v50 = vrot.slane %v13198_v15, 1  ;;  %v13205_v1 = vrot.slane %v13203_v46, 1  ;;  %v13215_v15 = vshrl.u32 %v25415_v22, 16 }
 0x40b   : > { %20041 = vmatmul.mubr.bf16.gmra.mrb[52].mxu1 %v22015_v14  ;;  %v26543_v14 = vrot.slane %v25184_v48, 1 }
 0x40c   : > { %20044 = vmatprep.mubr.bf16.mxu1 %v22017_v53  ;;  %v13201_v53 = vor.u32 %v13200_v50, %v13196_v4  ;;  %v22102_v50 = vld [vmem:[#allocation3 + $0x28] sm:$0xff]   ;;  %v13209_v46 = vor.u32 %v13207_v35, %v13205_v1  ;;  %v22111_v35 = vld [vmem:[#allocation3 + $0x40] sm:$0xff]  }
 0x40e   : > { %19665 = vmatmul.mubr.bf16.gmra.mrb[60].mxu0 %v9632_v13  ;;  %v9915_v13 = vsel %vm1380_vm2, %v9912_v27, %v26543_v14  ;;  %v13206_v48 = vsel %vm969_vm1, %v13201_v53, %v13205_v1  ;;  %v13227_v14 = vshll.u32 %v25410_v43, 16 }
 0x40f   : > { %19684 = vmatprep.mubr.bf16.mxu0 %v9913_v54  ;;  %v13211_v54 = vshll.u32 %v25415_v22, 16 }
 0x411   : > { %v13213_v27 = vrot.slane %v13211_v54, 1  ;;  %v11135_v54 = vrot.slane %v22102_v50, 1  ;;  %v22112_v50 = vld [vmem:[#allocation3 + $0x48] sm:$0xff]  }
 0x413   : > { %20045 = vmatmul.mubr.bf16.gmra.mrb[56].mxu1 %v22022_v20  ;;  %v13219_v20 = vshll.u32 %v25403_v7, 16  ;;  %v13214_v22 = vsel %vm969_vm1, %v13209_v46, %v13213_v27 }
 0x414   : > { %20048 = vmatprep.mubr.bf16.mxu1 %v22024_v2  ;;  %v22101_v2 = vld [vmem:[#allocation3 + $0x20] sm:$0xff]  }
 0x415   : > { %v13221_v4 = vrot.slane %v13219_v20, 1  ;;  %v11133_v1 = vrot.slane %v22101_v2, 1  ;;  %v13231_v2 = vshrl.u32 %v25410_v43, 16 }
 0x416   : > { %19685 = vmatmul.mubr.bf16.vlgmr.msra.gmra.mrb[32].mxu0 %v9915_v13  ;;  %v22106_v13 = vld [vmem:[#allocation3 + $0x30] sm:$0xff]  }
 0x417   : > { %19688 = vmatprep.mubr.bf16.mxu0 %v25306_v33  ;;  %19717 = vmatpush3.bf16.msra.mxu0 %v25331_v42  ;;  %v22055_v33 = vld [vmem:[%s26368_s3 + $0xd8] sm:$0xff]   ;;  %v25570_v20 = vsel %vm1380_vm2, %v11133_v1, %v11135_v54 }
 0x418   : > { %19718 = vmatprep.subr.bf16.mxu0 %v22050_v60  ;;  %v25539_v42 = vld [vmem:[#allocation3 + $0x18] sm:$0xff]  }
 0x419   : > { %v26385_v53 = vrot.slane %v25539_v42, 1 }
 0x41b   : > { %19719 = vmatpush3.bf16.msra.mxu0 %v22050_v60  ;;  %20049 = vmatmul.mubr.bf16.gmra.mrb[60].mxu1 %v22028_v38  ;;  %v13217_v60 = vor.u32 %v13215_v15, %v13213_v27  ;;  %v22060_v27 = vld [vmem:[%s26368_s3 + $0xe8] sm:$0xff]   ;;  %v25567_v15 = vsel %vm1380_vm2, %v26385_v53, %v11133_v1  ;;  %v22061_v1 = vld [vmem:[%s26368_s3 + $0xf0] sm:$0xff]   ;;  %v13251_v53 = vshll.u32 %v25426_v17, 16 }
 0x41c   : > { %19720 = vmatprep.subr.bf16.mxu0 %v22051_v30  ;;  %20068 = vmatprep.mubr.bf16.mxu1 %v13206_v48  ;;  %v13229_v48 = vrot.slane %v13227_v14, 1 }
 0x41d   : > { %v13222_v38 = vsel %vm969_vm1, %v13217_v60, %v13221_v4  ;;  %v13223_v60 = vshrl.u32 %v25403_v7, 16 }
 0x41e   : > { %19689 = vmatmul.mubr.bf16.gmra.mrb[36].mxu0 %v25322_v9  ;;  %v22038_v9 = vld [vmem:[%s26368_s3 + $0x88] sm:$0xff]  }
 0x41f   : > { %19692 = vmatprep.mubr.bf16.mxu0 %v25325_v47  ;;  %19721 = vmatpush3.bf16.msra.mxu0 %v22051_v30  ;;  %v22107_v47 = vld [vmem:[#allocation3 + $0x38] sm:$0xff]   ;;  %v13235_v30 = vshll.u32 %v25412_v62, 16 }
 0x420   : > { %19722 = vmatprep.subr.bf16.mxu0 %v22055_v33  ;;  %v11139_v46 = vrot.slane %v22107_v47, 1  ;;  %v11141_v47 = vrot.slane %v22111_v35, 1 }
 0x421   : > { %v13237_v14 = vrot.slane %v13235_v30, 1  ;;  %v11143_v30 = vrot.slane %v22112_v50, 1  ;;  %v13247_v50 = vshrl.u32 %v25417_v6, 16 }
 0x423   : > { %19723 = vmatpush3.bf16.msra.mxu0 %v22055_v33  ;;  %20069 = vmatmul.mubr.bf16.vlgmr.msra.gmra.mrb[32].mxu1 %v13214_v22  ;;  %v22041_v33 = vld [vmem:[%s26368_s3 + $0x90] sm:$0xff]   ;;  %v13243_v22 = vshll.u32 %v25417_v6, 16  ;;  %v25599_v35 = vsel %vm1380_vm2, %v11141_v47, %v11143_v30  ;;  %v13259_v6 = vshll.u32 %v25428_v44, 16 }
 0x424   : > { %19724 = vmatprep.subr.bf16.mxu0 %v22056_v21  ;;  %20072 = vmatprep.mubr.bf16.mxu1 %v13222_v38  ;;  %v13233_v38 = vor.u32 %v13231_v2, %v13229_v48  ;;  %26547 = vst [vmem:[#allocation11_spill] sm:$0xff] %v25599_v35 }
 0x425   : > { %20101 = vmatpush3.bf16.msra.mxu1 %v25401_v56  ;;  %v11137_v56 = vrot.slane %v22106_v13, 1  ;;  %v22116_v13 = vld [vmem:[#allocation3 + $0x50] sm:$0xff]  }
 0x426   : > { %20102 = vmatprep.subr.bf16.mxu1 %v22038_v9  ;;  %19693 = vmatmul.mubr.bf16.gmra.mrb[40].mxu0 %v25342_v55  ;;  %v13225_v55 = vor.u32 %v13223_v60, %v13221_v4  ;;  %v13238_v4 = vsel %vm969_vm1, %v13233_v38, %v13237_v14  ;;  %v25596_v60 = vsel %vm1380_vm2, %v11139_v46, %v11141_v47  ;;  %v22128_v47 = vld [vmem:[#allocation3 + $0x70] sm:$0xff]  }
 0x427   : > { %19696 = vmatprep.mubr.bf16.mxu0 %v25346_v5  ;;  %19725 = vmatpush3.bf16.msra.mxu0 %v22056_v21  ;;  %v25581_v43 = vsel %vm1380_vm2, %v11135_v54, %v11137_v56  ;;  %v25584_v7 = vsel %vm1380_vm2, %v11137_v56, %v11139_v46  ;;  %v22044_v5 = vld [vmem:[%s26368_s3 + $0x98] sm:$0xff]   ;;  %v22121_v56 = vld [vmem:[#allocation3 + $0x60] sm:$0xff]   ;;  %26546 = vst [vmem:[#allocation9_spill] sm:$0xff] %v25596_v60  ;;  %v13239_v46 = vshrl.u32 %v25412_v62, 16 }
 0x428   : > { %19726 = vmatprep.subr.bf16.mxu0 %v22060_v27  ;;  %26544 = vst [vmem:[#allocation7_spill] sm:$0xff] %v25581_v43  ;;  %26545 = vst [vmem:[#allocation8_spill] sm:$0xff] %v25584_v7  ;;  %v22117_v21 = vld [vmem:[#allocation3 + $0x58] sm:$0xff]   ;;  %v13230_v2 = vsel %vm969_vm1, %v13225_v55, %v13229_v48  ;;  %v22123_v48 = vld [vmem:[#allocation3 + $0x68] sm:$0xff]  }
 0x429   : > { %20103 = vmatpush3.bf16.msra.mxu1 %v22038_v9  ;;  %v13245_v9 = vrot.slane %v13243_v22, 1  ;;  %v22066_v54 = vld [vmem:[%s26368_s3 + $0xf8] sm:$0xff]   ;;  %v22048_v22 = vld [vmem:[%s26368_s3 + $0xa0] sm:$0xff]   ;;  %v11147_v38 = vrot.slane %v22117_v21, 1  ;;  %v13241_v62 = vor.u32 %v13239_v46, %v13237_v14 }
 0x42a   : > { %20104 = vmatprep.subr.bf16.mxu1 %v22041_v33  ;;  %v22135_v46 = vld [vmem:[#allocation3 + $0x80] sm:$0xff]  }
 0x42b   : > { %19727 = vmatpush3.bf16.msra.mxu0 %v22060_v27  ;;  %20073 = vmatmul.mubr.bf16.gmra.mrb[36].mxu1 %v13230_v2  ;;  %v11145_v27 = vrot.slane %v22116_v13, 1  ;;  %v13253_v13 = vrot.slane %v13251_v53, 1  ;;  %v11151_v2 = vrot.slane %v22123_v48, 1  ;;  %v13275_v53 = vshll.u32 %v25435_v57, 16  ;;  %v22058_v48 = vld [vmem:[%s26368_s3 + $0xb0] sm:$0xff]  }
 0x42c   : > { %19728 = vmatprep.subr.bf16.mxu0 %v22061_v1  ;;  %20076 = vmatprep.mubr.bf16.mxu1 %v13238_v4  ;;  %v22053_v4 = vld [vmem:[%s26368_s3 + $0xa8] sm:$0xff]  }
 0x42d   : > { %20105 = vmatpush3.bf16.msra.mxu1 %v22041_v33  ;;  %v25609_v55 = vsel %vm1380_vm2, %v11143_v30, %v11145_v27  ;;  %v13249_v33 = vor.u32 %v13247_v50, %v13245_v9  ;;  %v25618_v21 = vsel %vm1380_vm2, %v11145_v27, %v11147_v38  ;;  %v11149_v30 = vrot.slane %v22121_v56, 1 }
 0x42e   : > { %19697 = vmatmul.mubr.bf16.gmra.mrb[44].mxu0 %v25358_v41  ;;  %20106 = vmatprep.subr.bf16.mxu1 %v22044_v5  ;;  %26548 = vst [vmem:[#allocation12_spill] sm:$0xff] %v25609_v55  ;;  %v25615_v41 = vld [vmem:[%s26368_s3 + $0x100] sm:$0xff]   ;;  %26549 = vst [vmem:[#allocation13_spill] sm:$0xff] %v25618_v21  ;;  %v13246_v50 = vsel %vm969_vm1, %v13241_v62, %v13245_v9  ;;  %v13261_v56 = vrot.slane %v13259_v6, 1  ;;  %v22137_v21 = vld [vmem:[#allocation3 + $0x88] sm:$0xff]   ;;  %v11153_v9 = vrot.slane %v22128_v47, 1 }
 0x42f   : > { %19700 = vmatprep.mubr.bf16.mxu0 %v25363_v19  ;;  %19729 = vmatpush3.bf16.msra.mxu0 %v22061_v1  ;;  %v13267_v19 = vshll.u32 %v25433_v18, 16  ;;  %v22130_v1 = vld [vmem:[#allocation3 + $0x78] sm:$0xff]   ;;  %v25627_v27 = vsel %vm1380_vm2, %v11147_v38, %v11149_v30  ;;  %v25630_v14 = vsel %vm1380_vm2, %v11149_v30, %v11151_v2  ;;  %v13263_v38 = vshrl.u32 %v25428_v44, 16  ;;  %v22153_v55 = vld [vmem:[#allocation3 + $0xb0] sm:$0xff]  }
 0x430   : > { %19730 = vmatprep.subr.bf16.mxu0 %v22066_v54  ;;  %26550 = vst [vmem:[#allocation17_spill] sm:$0xff] %v25627_v27  ;;  %26551 = vst [vmem:[#allocation18_spill] sm:$0xff] %v25630_v14  ;;  %v11155_v30 = vrot.slane %v22130_v1, 1  ;;  %v13283_v6 = vshll.u32 %v25437_v3, 16  ;;  %v13291_v47 = vshll.u32 %v25445_v12, 16  ;;  %v11157_v1 = vrot.slane %v22135_v46, 1 }
 0x431   : > { %20107 = vmatpush3.bf16.msra.mxu1 %v22044_v5  ;;  %v13254_v5 = vsel %vm969_vm1, %v13249_v33, %v13253_v13  ;;  %v13269_v62 = vrot.slane %v13267_v19, 1  ;;  %v13277_v33 = vrot.slane %v13275_v53, 1  ;;  %v13265_v44 = vor.u32 %v13263_v38, %v13261_v56  ;;  %v22150_v19 = vld [vmem:[#allocation3 + $0xa0] sm:$0xff]  }
 0x432   : > { %20108 = vmatprep.subr.bf16.mxu1 %v22048_v22  ;;  %v11159_v53 = vrot.slane %v22137_v21, 1  ;;  %v13279_v27 = vshrl.u32 %v25435_v57, 16  ;;  %v25654_v38 = vsel %vm1380_vm2, %v11155_v30, %v11157_v1  ;;  %v13271_v21 = vshrl.u32 %v25433_v18, 16 }
 0x433   : > { %19731 = vmatpush3.bf16.msra.mxu0 %v22066_v54  ;;  %20077 = vmatmul.mubr.bf16.gmra.mrb[40].mxu1 %v13246_v50  ;;  %v13255_v54 = vshrl.u32 %v25426_v17, 16  ;;  %v25642_v50 = vsel %vm1380_vm2, %v11151_v2, %v11153_v9  ;;  %v25647_v17 = vsel %vm1380_vm2, %v11153_v9, %v11155_v30  ;;  %v14280_v2 = vld [vmem:[#allocation3 + $0x94] sm:$0xf]  ;;  %v22155_v9 = vld [vmem:[#allocation3 + $0xb8] sm:$0xff]   ;;  %26554 = vst [vmem:[#allocation24_spill] sm:$0xff] %v25654_v38  ;;  %v25662_v60 = vrot.slane %v13283_v6, 1 }
 0x434   : > { %19764 = vmatprep.subr.bf16.mxu0 %v25615_v41  ;;  %20080 = vmatprep.mubr.bf16.mxu1 %v13254_v5  ;;  %26552 = vst [vmem:[#allocation19_spill] sm:$0xff] %v25642_v50  ;;  %v22142_v5 = vld [vmem:[#allocation3 + $0x90] ss:$0 sps:$4 sm:$0x11]   ;;  %26553 = vst [vmem:[#allocation20_spill] sm:$0xff] %v25647_v17  ;;  %v22152_v50 = vld [vmem:[#allocation3 + $0xa8] sm:$0xff]   ;;  %v25657_v17 = vsel %vm1380_vm2, %v11157_v1, %v11159_v53  ;;  %v13281_v57 = vor.u32 %v13279_v27, %v13277_v33 }
 0x435   : > { %20109 = vmatpush3.bf16.msra.mxu1 %v22048_v22  ;;  %v22148_v22 = vld [vmem:[#allocation3 + $0x98] sm:$0xff]   ;;  %v13257_v14 = vor.u32 %v13255_v54, %v13253_v13  ;;  %26555 = vst [vmem:[#allocation25_spill] sm:$0xff] %v25657_v17  ;;  %v22156_v13 = vld [vmem:[#allocation3 + $0xc0] sm:$0xff]   ;;  %v11161_v46 = vrot.slane %v22142_v5, 1  ;;  %v13270_v54 = vsel %vm969_vm1, %v13265_v44, %v13269_v62  ;;  %v22159_v1 = vld [vmem:[#allocation3 + $0xd0] sm:$0xff]   ;;  %v13293_v18 = vrot.slane %v13291_v47, 1 }
 0x436   : > { %19701 = vmatmul.mubr.bf16.gmra.mrb[48].mxu0 %v25378_v0  ;;  %20110 = vmatprep.subr.bf16.mxu1 %v22053_v4  ;;  %v22064_v0 = vld [vmem:[%s26368_s3 + $0xb8] sm:$0xff]   ;;  %v25667_v30 = vld [vmem:[%s26368_s3 + $0xc0] sm:$0xff]   ;;  %v22165_v5 = vld [vmem:[#allocation3 + $0xe8] sm:$0xff]   ;;  %v14821_v7 = vrot.slane %v22148_v22, 1  ;;  %v14823_v43 = vrot.slane %v22150_v19, 1  ;;  %v14825_v47 = vrot.slane %v22152_v50, 1 }
 0x437   : > { %19704 = vmatprep.mubr.bf16.mxu0 %v25381_v23  ;;  %v14800_v23 = vld [vmem:[#allocation3 + $0x90] sm:$0xe]  ;;  %v13262_v35 = vsel %vm969_vm1, %v13257_v14, %v13261_v56  ;;  %v22161_v17 = vld [vmem:[#allocation3 + $0xd8] sm:$0xff]   ;;  %v13273_v14 = vor.u32 %v13271_v21, %v13269_v62  ;;  %v13299_v56 = vshll.u32 %v25449_v39, 16  ;;  %v25671_v27 = vsel %vm1380_vm2, %v11159_v53, %v11161_v46  ;;  %v22173_v53 = vld [vmem:[#allocation3 + $0x100] sm:$0xff]  }
 0x438   : > { %v17662_v38 = vcombine.low %v14800_v23, %v14280_v2  ;;  %v22168_v6 = vld [vmem:[#allocation3 + $0xf0] sm:$0xff]   ;;  %v22170_v62 = vld [vmem:[#allocation3 + $0xf8] sm:$0xff]   ;;  %v14827_v23 = vrot.slane %v22153_v55, 1  ;;  %v13286_v21 = vsel %vm969_vm1, %v13281_v57, %v25662_v60  ;;  %v14831_v22 = vrot.slane %v22156_v13, 1  ;;  %v22175_v19 = vld [vmem:[#allocation3 + $0x108] sm:$0xff]  }
 0x439   : > { %20111 = vmatpush3.bf16.msra.mxu1 %v22053_v4  ;;  %v22158_v4 = vld [vmem:[#allocation3 + $0xc8] sm:$0xff]   ;;  %v13278_v2 = vsel %vm969_vm1, %v13273_v14, %v13277_v33  ;;  %v22179_v33 = vld [vmem:[#allocation3 + $0x110] ss:$0 sps:$4 sm:$0x11]   ;;  %v14837_v13 = vrot.slane %v22161_v17, 1  ;;  %v14843_v57 = vrot.slane %v22168_v6, 1 }
 0x43a   : > { %20112 = vmatprep.subr.bf16.mxu1 %v22058_v48  ;;  %v14820_v44 = vrot.slane %v17662_v38, 1  ;;  %v25688_v55 = vsel %vm1380_vm2, %v14825_v47, %v14827_v23  ;;  %v14845_v14 = vrot.slane %v22170_v62, 1  ;;  %v13295_v6 = vshrl.u32 %v25445_v12, 16 }
 0x43b   : > { %20081 = vmatmul.mubr.bf16.gmra.mrb[44].mxu1 %v13262_v35  ;;  %v22163_v35 = vld [vmem:[#allocation3 + $0xe0] sm:$0xff]   ;;  %v13287_v62 = vshrl.u32 %v25437_v3, 16 }
 0x43c   : > { %20084 = vmatprep.mubr.bf16.mxu1 %v13270_v54  ;;  %v25679_v46 = vsel %vm1380_vm2, %v14820_v44, %v14821_v7 }
 0x43d   : > { %20113 = vmatpush3.bf16.msra.mxu1 %v22058_v48  ;;  %v14829_v48 = vrot.slane %v22155_v9, 1  ;;  %v14833_v9 = vrot.slane %v22158_v4, 1 }
 0x43e   : > { %19705 = vmatmul.mubr.bf16.gmra.mrb[52].mxu0 %v25389_v26  ;;  %20114 = vmatprep.subr.bf16.mxu1 %v22064_v0  ;;  %v25682_v26 = vsel %vm1380_vm2, %v14821_v7, %v14823_v43  ;;  %v14835_v7 = vrot.slane %v22159_v1, 1 }
 0x43f   : > { %19708 = vmatprep.mubr.bf16.mxu0 %v25394_v63  ;;  %v25685_v63 = vsel %vm1380_vm2, %v14823_v43, %v14825_v47  ;;  %v25691_v50 = vsel %vm1380_vm2, %v14827_v23, %v14829_v48  ;;  %v25695_v38 = vsel %vm1380_vm2, %v14829_v48, %v14831_v22  ;;  %v25698_v54 = vsel %vm1380_vm2, %v14831_v22, %v14833_v9 }
 0x440   : > { %v14841_v43 = vrot.slane %v22165_v5, 1  ;;  %v25701_v44 = vsel %vm1380_vm2, %v14833_v9, %v14835_v7  ;;  %v25704_v4 = vsel %vm1380_vm2, %v14835_v7, %v14837_v13  ;;  %v14847_v23 = vrot.slane %v22173_v53, 1 }
 0x441   : > { %20115 = vmatpush3.bf16.msra.mxu1 %v22064_v0  ;;  %v14839_v0 = vrot.slane %v22163_v35, 1  ;;  %v25716_v35 = vsel %vm1380_vm2, %v14843_v57, %v14845_v14  ;;  %v14849_v5 = vrot.slane %v22175_v19, 1  ;;  %v13297_v53 = vor.u32 %v13295_v6, %v13293_v18  ;;  %v22218_v6 = vld [vmem:[#allocation3 + $0x38] sm:$0xff]  }
 0x442   : > { %20148 = vmatprep.subr.bf16.mxu1 %v25667_v30  ;;  %v25713_v1 = vsel %vm1380_vm2, %v14841_v43, %v14843_v57  ;;  %v13301_v22 = vrot.slane %v13299_v56, 1  ;;  %v13307_v9 = vshll.u32 %v25451_v11, 16  ;;  %v13289_v19 = vor.u32 %v13287_v62, %v25662_v60  ;;  %v25739_v57 = vld [vmem:[#allocation3 + $0x28] sm:$0xff]   ;;  %v22068_v62 = vld [vmem:[#allocation3 + $0x20] sm:$0xff]  }
 0x443   : > { %20085 = vmatmul.mubr.bf16.gmra.mrb[48].mxu1 %v13278_v2  ;;  %v25707_v47 = vsel %vm1380_vm2, %v14837_v13, %v14839_v0  ;;  %v25710_v17 = vsel %vm1380_vm2, %v14839_v0, %v14841_v43  ;;  %v25721_v2 = vsel %vm1380_vm2, %v14845_v14, %v14847_v23  ;;  %v25726_v48 = vsel %vm1380_vm2, %v14847_v23, %v14849_v5  ;;  %v22062_v13 = vld [vmem:[#allocation3 + $0x10] sm:$0xff]  }
 0x444   : > { %20088 = vmatprep.mubr.bf16.mxu1 %v13286_v21  ;;  %v14851_v21 = vrot.slane %v22179_v33, 1  ;;  %v13302_v3 = vsel %vm969_vm1, %v13297_v53, %v13301_v22  ;;  %v13309_v7 = vrot.slane %v13307_v9, 1  ;;  %v13303_v33 = vshrl.u32 %v25449_v39, 16  ;;  %v22085_v9 = vld [vmem:[%s26368_s3 + $0x110] sm:$0xff]  }
 0x445   : > { %v13311_v56 = vshrl.u32 %v25451_v11, 16  ;;  %v13323_v23 = vshll.u32 %v25476_v25, 16  ;;  %v13319_v11 = vshrl.u32 %v25453_v59, 16  ;;  %v12354_v25 = vrot.slane %v22218_v6, 1  ;;  %v22074_v6 = vld [vmem:[#allocation3 + $0x40] sm:$0xff]  }
 0x446   : > { %19709 = vmatmul.mubr.bf16.gmra.mrb[56].mxu0 %v25420_v61  ;;  %v25731_v12 = vsel %vm1380_vm2, %v14849_v5, %v14851_v21  ;;  %v13294_v61 = vsel %vm969_vm1, %v13289_v19, %v13293_v18  ;;  %v13305_v43 = vor.u32 %v13303_v33, %v13301_v22  ;;  %v22217_v18 = vld [vmem:[#allocation3 + $0x30] sm:$0xff]   ;;  %v22067_v5 = vld [vmem:[#allocation3 + $0x18] sm:$0xff]   ;;  %v12350_v21 = vrot.slane %v25739_v57, 1  ;;  %v22222_v19 = vld [vmem:[#allocation3 + $0x40] sm:$0xff]  }
 0x447   : > { %19712 = vmatprep.mubr.bf16.mxu0 %v25423_v58  ;;  %v13315_v58 = vshll.u32 %v25453_v59, 16  ;;  %v13313_v60 = vor.u32 %v13311_v56, %v13309_v7  ;;  %v12352_v53 = vrot.slane %v22217_v18, 1  ;;  %v13325_v22 = vrot.slane %v13323_v23, 1  ;;  %v22071_v56 = vld [vmem:[#allocation3 + $0x30] sm:$0xff]   ;;  %v22090_v57 = vld [vmem:[%s26368_s3 + $0x120] sm:$0xff]   ;;  %v22093_v23 = vld [vmem:[%s26368_s3 + $0x128] sm:$0xff]  }
 0x448   : > { %v13310_v14 = vsel %vm969_vm1, %v13305_v43, %v13309_v7  ;;  %v12356_v33 = vrot.slane %v22222_v19, 1  ;;  %v11807_v18 = vld [vmem:[#allocation3 + $0x24] sm:$0xf]  ;;  %v22100_v19 = vld [vmem:[%s26368_s3 + $0x138] sm:$0xff]  }
 0x449   : > { %v13317_v0 = vrot.slane %v13315_v58, 1  ;;  %v25757_v7 = vsel %vm1380_vm2, %v12352_v53, %v12354_v25 }
 0x44b   : > { %20089 = vmatmul.mubr.bf16.gmra.mrb[52].mxu1 %v13294_v61  ;;  %v13318_v39 = vsel %vm969_vm1, %v13313_v60, %v13317_v0  ;;  %v25754_v61 = vsel %vm1380_vm2, %v12350_v21, %v12352_v53  ;;  %v13321_v59 = vor.u32 %v13319_v11, %v13317_v0  ;;  %v25765_v0 = vsel %vm1380_vm2, %v12354_v25, %v12356_v33  ;;  %v22078_v53 = vld [vmem:[%s26368_s3 + $0xd8] sm:$0xff]  }
 0x44c   : > { %20092 = vmatprep.mubr.bf16.mxu1 %v13302_v3  ;;  %v22223_v3 = vld [vmem:[#allocation3 + $0x48] sm:$0xff]   ;;  %v22077_v25 = vld [vmem:[#allocation3 + $0x50] sm:$0xff]  }
 0x44d   : > { %v13326_v58 = vsel %vm969_vm1, %v13321_v59, %v13325_v22  ;;  %v12358_v60 = vrot.slane %v22223_v3, 1  ;;  %v22228_v22 = vld [vmem:[#allocation3 + $0x58] sm:$0xff]   ;;  %v22232_v59 = vld [vmem:[#allocation3 + $0x60] sm:$0xff]  }
 0x44e   : > { %19713 = vmatmul.mubr.bf16.gmra.mrb[60].mxu0 %v25441_v45  ;;  %v22083_v45 = vld [vmem:[%s26368_s3 + $0x108] sm:$0xff]  }
 0x44f   : > { %19732 = vmatprep.mubr.bf16.mxu0 %v22062_v13  ;;  %v22088_v13 = vld [vmem:[%s26368_s3 + $0x118] sm:$0xff]   ;;  %v25768_v43 = vsel %vm1380_vm2, %v12356_v33, %v12358_v60  ;;  %v12364_v33 = vrot.slane %v22232_v59, 1 }
 0x450   : > { %v22098_v59 = vld [vmem:[%s26368_s3 + $0xf8] sm:$0xff]  }
 0x453   : > { %20093 = vmatmul.mubr.bf16.gmra.mrb[56].mxu1 %v13310_v14  ;;  %v22073_v14 = vld [vmem:[#allocation3 + $0x38] sm:$0xff]  }
 0x454   : > { %20096 = vmatprep.mubr.bf16.mxu1 %v13318_v39 }
 0x456   : > { %19733 = vmatmul.mubr.bf16.vlgmr.msra.gmra.mrb[32].mxu0 %v22067_v5  ;;  %v12328_v5 = vld [vmem:[#allocation3 + $0x20] sm:$0xe] }
 0x457   : > { %19736 = vmatprep.mubr.bf16.mxu0 %v22068_v62  ;;  %19765 = vmatpush3.bf16.msra.mxu0 %v25615_v41  ;;  %v22070_v41 = vld [vmem:[#allocation3 + $0x28] sm:$0xff]   ;;  %v17465_v39 = vcombine.low %v12328_v5, %v11807_v18  ;;  %v22079_v18 = vld [vmem:[#allocation3 + $0x58] sm:$0xff]  }
 0x458   : > { %19766 = vmatprep.subr.bf16.mxu0 %v22083_v45  ;;  %v22095_v62 = vld [vmem:[%s26368_s3 + $0x130] sm:$0xff]  }
 0x459   : > { %v12349_v11 = vrot.slane %v17465_v39, 1  ;;  %v22246_v5 = vld [vmem:[#allocation3 + $0x88] sm:$0xff]   ;;  %v22081_v39 = vld [vmem:[#allocation3 + $0x60] sm:$0xff]  }
 0x45b   : > { %19767 = vmatpush3.bf16.msra.mxu0 %v22083_v45  ;;  %20097 = vmatmul.mubr.bf16.gmra.mrb[60].mxu1 %v13326_v58  ;;  %v22075_v45 = vld [vmem:[%s26368_s3 + $0xd0] sm:$0xff]   ;;  %v22082_v58 = vld [vmem:[%s26368_s3 + $0xe0] sm:$0xff]  }
 0x45c   : > { %19768 = vmatprep.subr.bf16.mxu0 %v22085_v9  ;;  %20116 = vmatprep.mubr.bf16.mxu1 %v25456_v10  ;;  %v22072_v10 = vld [vmem:[%s26368_s3 + $0xc8] sm:$0xff]  }
 0x45e   : > { %19737 = vmatmul.mubr.bf16.gmra.mrb[36].mxu0 %v22070_v41  ;;  %v25808_v41 = vld [vmem:[%s26368_s3 + $0x140] sm:$0xff]  }
 0x45f   : > { %19740 = vmatprep.mubr.bf16.mxu0 %v22071_v56  ;;  %19769 = vmatpush3.bf16.msra.mxu0 %v22085_v9  ;;  %v22239_v56 = vld [vmem:[#allocation3 + $0x78] sm:$0xff]  }
 0x460   : > { %19770 = vmatprep.subr.bf16.mxu0 %v22088_v13 }
 0x463   : > { %19771 = vmatpush3.bf16.msra.mxu0 %v22088_v13  ;;  %20117 = vmatmul.mubr.bf16.vlgmr.msra.gmra.mrb[32].mxu1 %v25462_v52  ;;  %v22227_v52 = vld [vmem:[#allocation3 + $0x50] sm:$0xff]  }
 0x464   : > { %19772 = vmatprep.subr.bf16.mxu0 %v22090_v57  ;;  %20120 = vmatprep.mubr.bf16.mxu1 %v25465_v8  ;;  %v25789_v8 = vsel %vm1380_vm2, %v12349_v11, %v12350_v21  ;;  %v12360_v9 = vrot.slane %v22227_v52, 1  ;;  %v22233_v21 = vld [vmem:[#allocation3 + $0x68] sm:$0xff]  }
 0x465   : > { %20149 = vmatpush3.bf16.msra.mxu1 %v25667_v30  ;;  %v22076_v30 = vld [vmem:[#allocation3 + $0x48] sm:$0xff]  }
 0x466   : > { %20150 = vmatprep.subr.bf16.mxu1 %v22072_v10  ;;  %19741 = vmatmul.mubr.bf16.gmra.mrb[40].mxu0 %v22073_v14  ;;  %v25800_v3 = vsel %vm1380_vm2, %v12358_v60, %v12360_v9  ;;  %v12366_v60 = vrot.slane %v22233_v21, 1  ;;  %v22092_v52 = vld [vmem:[%s26368_s3 + $0xf0] sm:$0xff]  }
 0x467   : > { %19744 = vmatprep.mubr.bf16.mxu0 %v22074_v6  ;;  %19773 = vmatpush3.bf16.msra.mxu0 %v22090_v57  ;;  %26556 = vst [vmem:[#allocation21_spill] sm:$0xff] %v25800_v3  ;;  %v22087_v57 = vld [vmem:[%s26368_s3 + $0xe8] sm:$0xff]  }
 0x468   : > { %19774 = vmatprep.subr.bf16.mxu0 %v22093_v23  ;;  %v25820_v14 = vsel %vm1380_vm2, %v12364_v33, %v12366_v60 }
 0x469   : > { %20151 = vmatpush3.bf16.msra.mxu1 %v22072_v10  ;;  %26559 = vst [vmem:[#allocation16_spill] sm:$0xff] %v25820_v14 }
 0x46a   : > { %20152 = vmatprep.subr.bf16.mxu1 %v22075_v45 }
 0x46b   : > { %19775 = vmatpush3.bf16.msra.mxu0 %v22093_v23  ;;  %20121 = vmatmul.mubr.bf16.gmra.mrb[36].mxu1 %v25469_v36  ;;  %v12362_v36 = vrot.slane %v22228_v22, 1  ;;  %v22244_v23 = vld [vmem:[#allocation3 + $0x80] sm:$0xff]  }
 0x46c   : > { %19776 = vmatprep.subr.bf16.mxu0 %v22095_v62  ;;  %20124 = vmatprep.mubr.bf16.mxu1 %v25472_v29  ;;  %v22237_v29 = vld [vmem:[#allocation3 + $0x70] sm:$0xff]   ;;  %v22257_v22 = vld [vmem:[#allocation3 + $0xa0] ss:$0 sps:$4 sm:$0x11]  }
 0x46d   : > { %20153 = vmatpush3.bf16.msra.mxu1 %v22075_v45  ;;  %v25811_v13 = vsel %vm1380_vm2, %v12360_v9, %v12362_v36  ;;  %v25817_v10 = vsel %vm1380_vm2, %v12362_v36, %v12364_v33  ;;  %v12368_v6 = vrot.slane %v22237_v29, 1  ;;  %v12370_v45 = vrot.slane %v22239_v56, 1  ;;  %v10587_v9 = vld [vmem:[#allocation3 + $0x10] sm:$0xf]  ;;  %v15496_v29 = vld [vmem:[#allocation3 + $0xa4] sm:$0xf] }
 0x46e   : > { %19745 = vmatmul.mubr.bf16.gmra.mrb[44].mxu0 %v22076_v30  ;;  %20154 = vmatprep.subr.bf16.mxu1 %v22078_v53  ;;  %26557 = vst [vmem:[#allocation23_spill] sm:$0xff] %v25811_v13  ;;  %26558 = vst [vmem:[#allocation15_spill] sm:$0xff] %v25817_v10  ;;  %v22253_v30 = vld [vmem:[#allocation3 + $0x98] sm:$0xff]   ;;  %v22086_v36 = vld [vmem:[#allocation3 + $0x70] sm:$0xff]  }
 0x46f   : > { %19748 = vmatprep.mubr.bf16.mxu0 %v22077_v25  ;;  %19777 = vmatpush3.bf16.msra.mxu0 %v22095_v62  ;;  %v25829_v11 = vsel %vm1380_vm2, %v12366_v60, %v12368_v6  ;;  %v22251_v62 = vld [vmem:[#allocation3 + $0x90] sm:$0xff]   ;;  %v22084_v25 = vld [vmem:[#allocation3 + $0x68] sm:$0xff]   ;;  %v22268_v60 = vld [vmem:[#allocation3 + $0xb8] sm:$0xff]  }
 0x470   : > { %19778 = vmatprep.subr.bf16.mxu0 %v22100_v19  ;;  %26560 = vst [vmem:[#allocation22_spill] sm:$0xff] %v25829_v11  ;;  %v22264_v33 = vld [vmem:[#allocation3 + $0xa8] sm:$0xff]   ;;  %v22266_v56 = vld [vmem:[#allocation3 + $0xb0] sm:$0xff]   ;;  %v22281_v11 = vld [vmem:[#allocation3 + $0x100] sm:$0xff]   ;;  %v16041_v13 = vrot.slane %v22268_v60, 1 }
 0x471   : > { %20155 = vmatpush3.bf16.msra.mxu1 %v22078_v53  ;;  %v12372_v53 = vrot.slane %v22244_v23, 1  ;;  %v12376_v23 = vrot.slane %v22251_v62, 1  ;;  %v16039_v10 = vrot.slane %v22266_v56, 1 }
 0x472   : > { %20156 = vmatprep.subr.bf16.mxu1 %v22082_v58 }
 0x473   : > { %19779 = vmatpush3.bf16.msra.mxu0 %v22100_v19  ;;  %20125 = vmatmul.mubr.bf16.gmra.mrb[40].mxu1 %v25479_v49  ;;  %v25832_v49 = vsel %vm1380_vm2, %v12368_v6, %v12370_v45  ;;  %v25834_v19 = vld [vmem:[#allocation3 + $0x14] sm:$0xf]  ;;  %v25840_v21 = vsel %vm1380_vm2, %v12370_v45, %v12372_v53  ;;  %v22274_v45 = vld [vmem:[#allocation3 + $0xd8] sm:$0xff]  }
 0x474   : > { %19812 = vmatprep.subr.bf16.mxu0 %v25808_v41  ;;  %20128 = vmatprep.mubr.bf16.mxu1 %v25485_v34  ;;  %26561 = vst [vmem:[#allocation6_spill] sm:$0xff] %v25832_v49  ;;  %v12374_v34 = vrot.slane %v22246_v5, 1  ;;  %26562 = vst [vmem:[#allocation10_spill] sm:$0xff] %v25840_v21  ;;  %v12378_v5 = vrot.slane %v22253_v30, 1  ;;  %v17318_v6 = vcombine.low %v10587_v9, %v25834_v19  ;;  %v22277_v30 = vld [vmem:[#allocation3 + $0xe8] sm:$0xff]   ;;  %v22278_v9 = vld [vmem:[#allocation3 + $0xf0] sm:$0xff]  }
 0x475   : > { %20157 = vmatpush3.bf16.msra.mxu1 %v22082_v58  ;;  %v22280_v49 = vld [vmem:[#allocation3 + $0xf8] sm:$0xff]  }
 0x476   : > { %19749 = vmatmul.mubr.bf16.gmra.mrb[48].mxu0 %v22079_v18  ;;  %20158 = vmatprep.subr.bf16.mxu1 %v22087_v57  ;;  %v25843_v58 = vsel %vm1380_vm2, %v12372_v53, %v12374_v34  ;;  %v22271_v18 = vld [vmem:[#allocation3 + $0xc8] sm:$0xff]   ;;  %v12380_v53 = vrot.slane %v22257_v22, 1  ;;  %v25854_v21 = vsel %vm1380_vm2, %v12374_v34, %v12376_v23  ;;  %v25857_v62 = vsel %vm1380_vm2, %v12376_v23, %v12378_v5 }
 0x477   : > { %19752 = vmatprep.mubr.bf16.mxu0 %v22081_v39  ;;  %26563 = vst [vmem:[#allocation14_spill] sm:$0xff] %v25843_v58  ;;  %v22272_v39 = vld [vmem:[#allocation3 + $0xd0] sm:$0xff]   ;;  %v16016_v58 = vld [vmem:[#allocation3 + $0xa0] sm:$0xe]  ;;  %26564 = vst [vmem:[#allocation26_spill] sm:$0xff] %v25854_v21  ;;  %v10723_v34 = vshll.u32 %v17318_v6, 16 }
 0x478   : > { %v25860_v22 = vsel %vm1380_vm2, %v12378_v5, %v12380_v53  ;;  %v25862_v21 = vld [vmem:[#allocation3 + $0x108] sm:$0xff]   ;;  %v16045_v23 = vrot.slane %v22271_v18, 1  ;;  %v25872_v5 = vsel %vm1380_vm2, %v16039_v10, %v16041_v13  ;;  %v22089_v18 = vld [vmem:[#allocation3 + $0x78] sm:$0xff]   ;;  %v16059_v53 = vrot.slane %v22281_v11, 1 }
 0x479   : > { %20159 = vmatpush3.bf16.msra.mxu1 %v22087_v57  ;;  %v22269_v57 = vld [vmem:[#allocation3 + $0xc0] sm:$0xff]   ;;  %26565 = vst [vmem:[#allocation27_spill] sm:$0xff] %v25862_v21 }
 0x47a   : > { %20160 = vmatprep.subr.bf16.mxu1 %v22092_v52  ;;  %v16043_v3 = vrot.slane %v22269_v57, 1 }
 0x47b   : > { %20129 = vmatmul.mubr.bf16.gmra.mrb[44].mxu1 %v25488_v32  ;;  %v25851_v32 = vld [vmem:[%s26368_s3 + $0x100] sm:$0xff]  }
 0x47c   : > { %20132 = vmatprep.mubr.bf16.mxu1 %v25493_v16  ;;  %v17768_v16 = vcombine.low %v16016_v58, %v15496_v29  ;;  %v16047_v58 = vrot.slane %v22272_v39, 1  ;;  %v25875_v56 = vsel %vm1380_vm2, %v16041_v13, %v16043_v3  ;;  %v16053_v39 = vrot.slane %v22277_v30, 1  ;;  %v22091_v13 = vld [vmem:[#allocation3 + $0x80] sm:$0xff]  }
 0x47d   : > { %20161 = vmatpush3.bf16.msra.mxu1 %v22092_v52  ;;  %v22275_v52 = vld [vmem:[#allocation3 + $0xe0] sm:$0xff]  }
 0x47e   : > { %19753 = vmatmul.mubr.bf16.gmra.mrb[52].mxu0 %v22084_v25  ;;  %20162 = vmatprep.subr.bf16.mxu1 %v22098_v59  ;;  %v16037_v25 = vrot.slane %v22264_v33, 1  ;;  %v16036_v14 = vrot.slane %v17768_v16, 1  ;;  %v25881_v60 = vsel %vm1380_vm2, %v16045_v23, %v16047_v58  ;;  %v26567_v16 = vld [vmem:[#allocation5_spill] sm:$0xff] }
 0x47f   : > { %19756 = vmatprep.mubr.bf16.mxu0 %v22086_v36  ;;  %v16049_v36 = vrot.slane %v22274_v45, 1  ;;  %v16055_v45 = vrot.slane %v22278_v9, 1  ;;  %v10721_v9 = vshrl.u32 %v17318_v6, 16 }
 0x480   : > { %v25866_v29 = vsel %vm1380_vm2, %v16036_v14, %v16037_v25  ;;  %v25869_v33 = vsel %vm1380_vm2, %v16037_v25, %v16039_v10  ;;  %v16051_v14 = vrot.slane %v22275_v52, 1  ;;  %v16057_v10 = vrot.slane %v22280_v49, 1 }
 0x481   : > { %20163 = vmatpush3.bf16.msra.mxu1 %v22098_v59  ;;  %v25878_v59 = vsel %vm1380_vm2, %v16043_v3, %v16045_v23  ;;  %v25884_v57 = vsel %vm1380_vm2, %v16047_v58, %v16049_v36  ;;  %v10725_v25 = vrot.slane %v10723_v34, 1  ;;  %v22304_v3 = vld [vmem:[#allocation3 + $0x18] sm:$0xff]   ;;  %v26387_v58 = vrot.slane %v25862_v21, 1 }
 0x482   : > { %20196 = vmatprep.subr.bf16.mxu1 %v25851_v32  ;;  %26566 = vst [vmem:[#allocation28_spill] sm:$0xff] %v25878_v59  ;;  %v10728_v59 = vshll.u32 %v22304_v3, 16  ;;  %v25889_v23 = vsel %vm1380_vm2, %v16049_v36, %v16051_v14  ;;  %v25893_v52 = vsel %vm1380_vm2, %v16051_v14, %v16053_v39  ;;  %v25899_v11 = vsel %vm1380_vm2, %v16055_v45, %v16057_v10  ;;  %v22305_v14 = vld [vmem:[#allocation3 + $0x20] sm:$0xff]  }
 0x483   : > { %20133 = vmatmul.mubr.bf16.gmra.mrb[48].mxu1 %v25496_v24  ;;  %v25896_v24 = vsel %vm1380_vm2, %v16053_v39, %v16055_v45  ;;  %v25902_v49 = vsel %vm1380_vm2, %v16057_v10, %v16059_v53  ;;  %v25907_v30 = vsel %vm1380_vm2, %v16059_v53, %v26387_v58  ;;  %v10726_v34 = vor.u32 %v10725_v25, %v10721_v9  ;;  %v22094_v39 = vld [vmem:[#allocation3 + $0x88] sm:$0xff]   ;;  %v22307_v25 = vld [vmem:[#allocation3 + $0x30] sm:$0xff]  }
 0x484   : > { %20136 = vmatprep.mubr.bf16.mxu1 %v26567_v16  ;;  %v10730_v36 = vrot.slane %v10728_v59, 1  ;;  %v22306_v16 = vld [vmem:[#allocation3 + $0x28] sm:$0xff]   ;;  %v10740_v21 = vshrl.u32 %v22305_v14, 16  ;;  %v10732_v53 = vshrl.u32 %v22304_v3, 16  ;;  %v10752_v59 = vshll.u32 %v22307_v25, 16  ;;  %v22308_v3 = vld [vmem:[#allocation3 + $0x38] sm:$0xff]  }
 0x486   : > { %19757 = vmatmul.mubr.bf16.gmra.mrb[56].mxu0 %v22089_v18  ;;  %v10736_v18 = vshll.u32 %v22305_v14, 16  ;;  %v10731_v45 = vsel %vm969_vm1, %v10726_v34, %v10730_v36  ;;  %v10734_v9 = vor.u32 %v10732_v53, %v10730_v36  ;;  %v10754_v14 = vrot.slane %v10752_v59, 1  ;;  %v22310_v59 = vld [vmem:[#allocation3 + $0x48] sm:$0xff]  }
 0x487   : > { %19760 = vmatprep.mubr.bf16.mxu0 %v22091_v13  ;;  %v10744_v13 = vshll.u32 %v22306_v16, 16  ;;  %v10756_v36 = vshrl.u32 %v22307_v25, 16 }
 0x488   : > { %v10738_v10 = vrot.slane %v10736_v18, 1  ;;  %v10748_v18 = vshrl.u32 %v22306_v16, 16 }
 0x489   : > { %v10746_v6 = vrot.slane %v10744_v13, 1  ;;  %v22099_v13 = vld [vmem:[#allocation3 + $0x90] sm:$0xff]  }
 0x48a   : > { %v10742_v58 = vor.u32 %v10740_v21, %v10738_v10  ;;  %v10760_v21 = vshll.u32 %v22308_v3, 16 }
 0x48b   : > { %20137 = vmatmul.mubr.bf16.gmra.mrb[52].mxu1 %v25503_v37  ;;  %v22127_v37 = vld [vmem:[%s26368_s3 + $0x148] sm:$0xff]   ;;  %v10750_v53 = vor.u32 %v10748_v18, %v10746_v6 }
 0x48c   : > { %20140 = vmatprep.mubr.bf16.mxu1 %v25506_v28  ;;  %v10739_v28 = vsel %vm969_vm1, %v10734_v9, %v10738_v10  ;;  %v10747_v34 = vsel %vm969_vm1, %v10742_v58, %v10746_v6  ;;  %v10776_v9 = vshll.u32 %v22310_v59, 16 }
 0x48d   : > { %v10755_v58 = vsel %vm969_vm1, %v10750_v53, %v10754_v14  ;;  %v22312_v53 = vld [vmem:[#allocation3 + $0x58] sm:$0xff]  }
 0x48e   : > { %19761 = vmatmul.mubr.bf16.gmra.mrb[60].mxu0 %v22094_v39  ;;  %v10758_v39 = vor.u32 %v10756_v36, %v10754_v14  ;;  %v22311_v36 = vld [vmem:[#allocation3 + $0x50] sm:$0xff]  }
 0x48f   : > { %19780 = vmatprep.mubr.bf16.mxu0 %v10731_v45  ;;  %v22309_v45 = vld [vmem:[#allocation3 + $0x40] sm:$0xff]   ;;  %v10784_v18 = vshll.u32 %v22311_v36, 16 }
 0x490   : > { %v10768_v10 = vshll.u32 %v22309_v45, 16  ;;  %v10772_v6 = vshrl.u32 %v22309_v45, 16 }
 0x492   : > { %v10770_v25 = vrot.slane %v10768_v10, 1 }
 0x493   : > { %20141 = vmatmul.mubr.bf16.gmra.mrb[56].mxu1 %v25512_v51  ;;  %v22129_v51 = vld [vmem:[%s26368_s3 + $0x150] sm:$0xff]  }
 0x494   : > { %20144 = vmatprep.mubr.bf16.mxu1 %v25516_v31  ;;  %v10762_v31 = vrot.slane %v10760_v21, 1  ;;  %v10774_v14 = vor.u32 %v10772_v6, %v10770_v25  ;;  %v10778_v21 = vrot.slane %v10776_v9, 1 }
 0x496   : > { %19781 = vmatmul.mubr.bf16.vlgmr.msra.gmra.mrb[32].mxu0 %v10739_v28  ;;  %v10763_v16 = vsel %vm969_vm1, %v10758_v39, %v10762_v31  ;;  %v22103_v28 = vld [vmem:[#allocation3 + $0x98] sm:$0xff]   ;;  %v22105_v39 = vld [vmem:[#allocation3 + $0xa0] sm:$0xff]   ;;  %v10779_v45 = vsel %vm969_vm1, %v10774_v14, %v10778_v21 }
 0x497   : > { %19784 = vmatprep.mubr.bf16.mxu0 %v10747_v34  ;;  %19813 = vmatpush3.bf16.msra.mxu0 %v25808_v41  ;;  %v22134_v41 = vld [vmem:[%s26368_s3 + $0x158] sm:$0xff]   ;;  %v22109_v34 = vld [vmem:[%s26368_s3 + $0x108] sm:$0xff]  }
 0x498   : > { %19814 = vmatprep.subr.bf16.mxu0 %v22127_v37 }
 0x49b   : > { %19815 = vmatpush3.bf16.msra.mxu0 %v22127_v37  ;;  %20145 = vmatmul.mubr.bf16.gmra.mrb[60].mxu1 %v25520_v40  ;;  %v22136_v40 = vld [vmem:[%s26368_s3 + $0x160] sm:$0xff]   ;;  %v10764_v37 = vshrl.u32 %v22308_v3, 16 }
 0x49c   : > { %19816 = vmatprep.subr.bf16.mxu0 %v22129_v51  ;;  %20164 = vmatprep.mubr.bf16.mxu1 %v22099_v13  ;;  %v10786_v13 = vrot.slane %v10784_v18, 1  ;;  %v22110_v18 = vld [vmem:[#allocation3 + $0xb0] sm:$0xff]  }
 0x49d   : > { %v10766_v10 = vor.u32 %v10764_v37, %v10762_v31  ;;  %v22114_v31 = vld [vmem:[%s26368_s3 + $0x110] sm:$0xff]   ;;  %v22119_v37 = vld [vmem:[%s26368_s3 + $0x118] sm:$0xff]  }
 0x49e   : > { %19785 = vmatmul.mubr.bf16.gmra.mrb[36].mxu0 %v10755_v58  ;;  %v10788_v58 = vshrl.u32 %v22311_v36, 16 }
 0x49f   : > { %19788 = vmatprep.mubr.bf16.mxu0 %v10763_v16  ;;  %19817 = vmatpush3.bf16.msra.mxu0 %v22129_v51  ;;  %v22141_v51 = vld [vmem:[%s26368_s3 + $0x168] sm:$0xff]   ;;  %v10771_v3 = vsel %vm969_vm1, %v10766_v10, %v10770_v25  ;;  %v10780_v16 = vshrl.u32 %v22310_v59, 16 }
 0x4a0   : > { %19818 = vmatprep.subr.bf16.mxu0 %v22134_v41  ;;  %v22108_v25 = vld [vmem:[#allocation3 + $0xa8] sm:$0xff]   ;;  %v10790_v9 = vor.u32 %v10788_v58, %v10786_v13 }
 0x4a1   : > { %v22314_v10 = vld [vmem:[#allocation3 + $0x68] sm:$0xff]  }
 0x4a3   : > { %19819 = vmatpush3.bf16.msra.mxu0 %v22134_v41  ;;  %20165 = vmatmul.mubr.bf16.vlgmr.msra.gmra.mrb[32].mxu1 %v22103_v28  ;;  %v10792_v41 = vshll.u32 %v22312_v53, 16  ;;  %v22313_v28 = vld [vmem:[#allocation3 + $0x60] sm:$0xff]  }
 0x4a4   : > { %19820 = vmatprep.subr.bf16.mxu0 %v22136_v40  ;;  %20168 = vmatprep.mubr.bf16.mxu1 %v22105_v39  ;;  %v10800_v14 = vshll.u32 %v22313_v28, 16 }
 0x4a5   : > { %20197 = vmatpush3.bf16.msra.mxu1 %v25851_v32  ;;  %v22143_v32 = vld [vmem:[%s26368_s3 + $0x170] sm:$0xff]   ;;  %v10794_v6 = vrot.slane %v10792_v41, 1 }
 0x4a6   : > { %20198 = vmatprep.subr.bf16.mxu1 %v22109_v34  ;;  %19789 = vmatmul.mubr.bf16.gmra.mrb[40].mxu0 %v10771_v3  ;;  %v10802_v39 = vrot.slane %v10800_v14, 1  ;;  %v10808_v3 = vshll.u32 %v22314_v10, 16 }
 0x4a7   : > { %19792 = vmatprep.mubr.bf16.mxu0 %v10779_v45  ;;  %19821 = vmatpush3.bf16.msra.mxu0 %v22136_v40  ;;  %v10782_v40 = vor.u32 %v10780_v16, %v10778_v21  ;;  %v10795_v36 = vsel %vm969_vm1, %v10790_v9, %v10794_v6  ;;  %v22125_v21 = vld [vmem:[%s26368_s3 + $0x120] sm:$0xff]   ;;  %v22315_v16 = vld [vmem:[#allocation3 + $0x70] sm:$0xff]   ;;  %v22132_v9 = vld [vmem:[%s26368_s3 + $0x128] sm:$0xff]  }
 0x4a8   : > { %19822 = vmatprep.subr.bf16.mxu0 %v22141_v51  ;;  %v25961_v45 = vld [vmem:[%s26368_s3 + $0x180] sm:$0xff]   ;;  %v10810_v58 = vrot.slane %v10808_v3, 1 }
 0x4a9   : > { %20199 = vmatpush3.bf16.msra.mxu1 %v22109_v34  ;;  %v22149_v34 = vld [vmem:[%s26368_s3 + $0x178] sm:$0xff]   ;;  %v10787_v59 = vsel %vm969_vm1, %v10782_v40, %v10786_v13 }
 0x4aa   : > { %20200 = vmatprep.subr.bf16.mxu1 %v22114_v31  ;;  %v22113_v13 = vld [vmem:[#allocation3 + $0xb8] sm:$0xff]  }
 0x4ab   : > { %19823 = vmatpush3.bf16.msra.mxu0 %v22141_v51  ;;  %20169 = vmatmul.mubr.bf16.gmra.mrb[36].mxu1 %v22108_v25  ;;  %v10804_v51 = vshrl.u32 %v22313_v28, 16  ;;  %v10816_v25 = vshll.u32 %v22315_v16, 16 }
 0x4ac   : > { %19824 = vmatprep.subr.bf16.mxu0 %v22143_v32  ;;  %20172 = vmatprep.mubr.bf16.mxu1 %v22110_v18  ;;  %v22316_v18 = vld [vmem:[#allocation3 + $0x78] sm:$0xff]  }
 0x4ad   : > { %20201 = vmatpush3.bf16.msra.mxu1 %v22114_v31  ;;  %v10796_v31 = vshrl.u32 %v22312_v53, 16  ;;  %v10806_v41 = vor.u32 %v10804_v51, %v10802_v39  ;;  %v10818_v14 = vrot.slane %v10816_v25, 1  ;;  %v10824_v40 = vshll.u32 %v22316_v18, 16 }
 0x4ae   : > { %19793 = vmatmul.mubr.bf16.gmra.mrb[44].mxu0 %v10787_v59  ;;  %20202 = vmatprep.subr.bf16.mxu1 %v22119_v37  ;;  %v22139_v59 = vld [vmem:[%s26368_s3 + $0x130] sm:$0xff]  }
 0x4af   : > { %19796 = vmatprep.mubr.bf16.mxu0 %v10795_v36  ;;  %19825 = vmatpush3.bf16.msra.mxu0 %v22143_v32  ;;  %v22115_v32 = vld [vmem:[#allocation3 + $0xc0] sm:$0xff]   ;;  %v10798_v28 = vor.u32 %v10796_v31, %v10794_v6  ;;  %v10811_v53 = vsel %vm969_vm1, %v10806_v41, %v10810_v58  ;;  %v10820_v6 = vshrl.u32 %v22315_v16, 16  ;;  %v22118_v36 = vld [vmem:[#allocation3 + $0xc8] sm:$0xff]   ;;  %v10826_v51 = vrot.slane %v10824_v40, 1  ;;  %v22146_v31 = vld [vmem:[%s26368_s3 + $0x138] sm:$0xff]  }
 0x4b0   : > { %19826 = vmatprep.subr.bf16.mxu0 %v22149_v34 }
 0x4b1   : > { %20203 = vmatpush3.bf16.msra.mxu1 %v22119_v37  ;;  %v10803_v37 = vsel %vm969_vm1, %v10798_v28, %v10802_v39  ;;  %v10822_v3 = vor.u32 %v10820_v6, %v10818_v14  ;;  %v22317_v39 = vld [vmem:[#allocation3 + $0x80] sm:$0xff]  }
 0x4b2   : > { %20204 = vmatprep.subr.bf16.mxu1 %v22125_v21  ;;  %v25980_v28 = vld [vmem:[%s26368_s3 + $0x140] sm:$0xff]  }
 0x4b3   : > { %19827 = vmatpush3.bf16.msra.mxu0 %v22149_v34  ;;  %20173 = vmatmul.mubr.bf16.gmra.mrb[40].mxu1 %v22113_v13  ;;  %v10812_v34 = vshrl.u32 %v22314_v10, 16  ;;  %v22120_v13 = vld [vmem:[#allocation3 + $0xd0] sm:$0xff]   ;;  %v10827_v10 = vsel %vm969_vm1, %v10822_v3, %v10826_v51 }
 0x4b4   : > { %19860 = vmatprep.subr.bf16.mxu0 %v25961_v45  ;;  %20176 = vmatprep.mubr.bf16.mxu1 %v22115_v32 }
 0x4b5   : > { %20205 = vmatpush3.bf16.msra.mxu1 %v22125_v21  ;;  %v10832_v21 = vshll.u32 %v22317_v39, 16  ;;  %v10814_v41 = vor.u32 %v10812_v34, %v10810_v58  ;;  %v10828_v58 = vshrl.u32 %v22316_v18, 16 }
 0x4b6   : > { %19797 = vmatmul.mubr.bf16.gmra.mrb[48].mxu0 %v10803_v37  ;;  %20206 = vmatprep.subr.bf16.mxu1 %v22132_v9  ;;  %v10836_v37 = vshrl.u32 %v22317_v39, 16  ;;  %v11109_v39 = vld [vmem:[#allocation3 + $0x10] sm:$0xe] }
 0x4b7   : > { %19800 = vmatprep.mubr.bf16.mxu0 %v10811_v53  ;;  %v10819_v25 = vsel %vm969_vm1, %v10814_v41, %v10818_v14  ;;  %v10834_v16 = vrot.slane %v10832_v21, 1  ;;  %v22124_v53 = vld [vmem:[#allocation3 + $0xd8] sm:$0xff]   ;;  %v10830_v6 = vor.u32 %v10828_v58, %v10826_v51  ;;  %v17359_v18 = vcombine.low %v11109_v39, %v25834_v19  ;;  %v14279_v41 = vld [vmem:[#allocation3 + $0x90] sm:$0xf] }
 0x4b9   : > { %20207 = vmatpush3.bf16.msra.mxu1 %v22132_v9  ;;  %v22318_v9 = vld [vmem:[#allocation3 + $0x88] sm:$0xff]   ;;  %v10838_v40 = vor.u32 %v10836_v37, %v10834_v16  ;;  %v10835_v34 = vsel %vm969_vm1, %v10830_v6, %v10834_v16  ;;  %v11130_v51 = vrot.slane %v17359_v18, 1  ;;  %v22320_v37 = vld [vmem:[#allocation3 + $0x94] sm:$0xf] }
 0x4ba   : > { %20208 = vmatprep.subr.bf16.mxu1 %v22139_v59  ;;  %v10840_v32 = vshll.u32 %v22318_v9, 16  ;;  %v17621_v58 = vcombine.low %v14279_v41, %v22320_v37  ;;  %v22167_v18 = vld [vmem:[%s26368_s3 + $0x190] sm:$0xff]   ;;  %v26570_v37 = vld [vmem:[#allocation8_spill] sm:$0xff] }
 0x4bb   : > { %20177 = vmatmul.mubr.bf16.gmra.mrb[44].mxu1 %v22118_v36  ;;  %v22319_v36 = vld [vmem:[#allocation3 + $0x90] ss:$0 sps:$4 sm:$0x11]  }
 0x4bc   : > { %20180 = vmatprep.mubr.bf16.mxu1 %v22120_v13  ;;  %v10842_v14 = vrot.slane %v10840_v32, 1  ;;  %v10848_v3 = vshll.u32 %v22319_v36, 16  ;;  %v14414_v19 = vshll.u32 %v17621_v58, 16  ;;  %v22321_v36 = vld [vmem:[#allocation3 + $0x98] sm:$0xff]  }
 0x4bd   : > { %20209 = vmatpush3.bf16.msra.mxu1 %v22139_v59  ;;  %v22126_v59 = vld [vmem:[#allocation3 + $0xe0] sm:$0xff]  }
 0x4be   : > { %19801 = vmatmul.mubr.bf16.gmra.mrb[52].mxu0 %v10819_v25  ;;  %20210 = vmatprep.subr.bf16.mxu1 %v22146_v31  ;;  %v10843_v21 = vsel %vm969_vm1, %v10838_v40, %v10842_v14  ;;  %v10850_v13 = vrot.slane %v10848_v3, 1  ;;  %v22131_v25 = vld [vmem:[#allocation3 + $0xe8] sm:$0xff]   ;;  %v14416_v6 = vrot.slane %v14414_v19, 1  ;;  %v14419_v3 = vshll.u32 %v22321_v36, 16  ;;  %v22172_v19 = vld [vmem:[%s26368_s3 + $0x1a0] sm:$0xff]  }
 0x4bf   : > { %19804 = vmatprep.mubr.bf16.mxu0 %v10827_v10  ;;  %v22133_v10 = vld [vmem:[#allocation3 + $0xf0] sm:$0xff]  }
 0x4c1   : > { %20211 = vmatpush3.bf16.msra.mxu1 %v22146_v31  ;;  %v10844_v31 = vshrl.u32 %v22318_v9, 16  ;;  %v22138_v9 = vld [vmem:[#allocation3 + $0xf8] sm:$0xff]  }
 0x4c2   : > { %20244 = vmatprep.subr.bf16.mxu1 %v25980_v28 }
 0x4c3   : > { %20181 = vmatmul.mubr.bf16.gmra.mrb[48].mxu1 %v22124_v53  ;;  %v10846_v32 = vor.u32 %v10844_v31, %v10842_v14  ;;  %v26568_v53 = vrot.slane %v25539_v42, 1  ;;  %v22166_v14 = vld [vmem:[%s26368_s3 + $0x188] sm:$0xff]  }
 0x4c4   : > { %20184 = vmatprep.mubr.bf16.mxu1 %v22126_v59  ;;  %v22140_v59 = vld [vmem:[#allocation3 + $0x100] sm:$0xff]   ;;  %v22145_v31 = vld [vmem:[#allocation3 + $0x108] sm:$0xff]  }
 0x4c5   : > { %v10851_v16 = vsel %vm969_vm1, %v10846_v32, %v10850_v13  ;;  %v11132_v40 = vsel %vm1380_vm2, %v11130_v51, %v26568_v53  ;;  %v14421_v13 = vrot.slane %v14419_v3, 1  ;;  %v26569_v32 = vld [vmem:[#allocation7_spill] sm:$0xff]  ;;  %v14423_v51 = vshrl.u32 %v22321_v36, 16 }
 0x4c6   : > { %19805 = vmatmul.mubr.bf16.gmra.mrb[56].mxu0 %v10835_v34  ;;  %v14412_v34 = vshrl.u32 %v17621_v58, 16  ;;  %v22324_v53 = vld [vmem:[#allocation3 + $0xb0] sm:$0xff]   ;;  %v22325_v36 = vld [vmem:[#allocation3 + $0xb8] sm:$0xff]  }
 0x4c7   : > { %19808 = vmatprep.mubr.bf16.mxu0 %v10843_v21  ;;  %v22322_v21 = vld [vmem:[#allocation3 + $0xa0] sm:$0xff]   ;;  %v14451_v3 = vshll.u32 %v22325_v36, 16 }
 0x4c8   : > { %v14417_v42 = vor.u32 %v14416_v6, %v14412_v34  ;;  %v14427_v39 = vshll.u32 %v22322_v21, 16 }
 0x4ca   : > { %v14422_v41 = vsel %vm969_vm1, %v14417_v42, %v14421_v13  ;;  %v22176_v42 = vld [vmem:[%s26368_s3 + $0x1a8] sm:$0xff]  }
 0x4cb   : > { %20185 = vmatmul.mubr.bf16.gmra.mrb[52].mxu1 %v22131_v25  ;;  %v14429_v25 = vrot.slane %v14427_v39, 1  ;;  %v26571_v39 = vld [vmem:[#allocation9_spill] sm:$0xff] }
 0x4cc   : > { %20188 = vmatprep.mubr.bf16.mxu1 %v22133_v10 }
 0x4ce   : > { %19809 = vmatmul.mubr.bf16.gmra.mrb[60].mxu0 %v10851_v16 }
 0x4cf   : > { %19828 = vmatprep.mubr.bf16.mxu0 %v11132_v40  ;;  %v14443_v40 = vshll.u32 %v22324_v53, 16 }
 0x4d1   : > { %v14445_v34 = vrot.slane %v14443_v40, 1 }
 0x4d3   : > { %20189 = vmatmul.mubr.bf16.gmra.mrb[56].mxu1 %v22138_v9  ;;  %v14425_v9 = vor.u32 %v14423_v51, %v14421_v13  ;;  %v26572_v13 = vld [vmem:[#allocation11_spill] sm:$0xff] }
 0x4d4   : > { %20192 = vmatprep.mubr.bf16.mxu1 %v22140_v59  ;;  %v22154_v59 = vld [vmem:[%s26368_s3 + $0x148] sm:$0xff]  }
 0x4d5   : > { %v14430_v6 = vsel %vm969_vm1, %v14425_v9, %v14429_v25  ;;  %v22164_v9 = vld [vmem:[%s26368_s3 + $0x160] sm:$0xff]  }
 0x4d6   : > { %19829 = vmatmul.mubr.bf16.vlgmr.msra.gmra.mrb[32].mxu0 %v25567_v15  ;;  %v22323_v15 = vld [vmem:[#allocation3 + $0xa8] sm:$0xff]  }
 0x4d7   : > { %19832 = vmatprep.mubr.bf16.mxu0 %v25570_v20  ;;  %19861 = vmatpush3.bf16.msra.mxu0 %v25961_v45  ;;  %v14435_v10 = vshll.u32 %v22323_v15, 16  ;;  %v22171_v20 = vld [vmem:[%s26368_s3 + $0x198] sm:$0xff]   ;;  %v14431_v45 = vshrl.u32 %v22322_v21, 16  ;;  %v14447_v21 = vshrl.u32 %v22324_v53, 16 }
 0x4d8   : > { %19862 = vmatprep.subr.bf16.mxu0 %v22166_v14 }
 0x4d9   : > { %v14433_v58 = vor.u32 %v14431_v45, %v14429_v25  ;;  %v14437_v16 = vrot.slane %v14435_v10, 1  ;;  %v14453_v25 = vrot.slane %v14451_v3, 1  ;;  %v22326_v10 = vld [vmem:[#allocation3 + $0xc0] sm:$0xff]   ;;  %v22328_v3 = vld [vmem:[#allocation3 + $0xd0] sm:$0xff]  }
 0x4da   : > { %v14463_v40 = vshrl.u32 %v22326_v10, 16 }
 0x4db   : > { %19863 = vmatpush3.bf16.msra.mxu0 %v22166_v14  ;;  %20193 = vmatmul.mubr.bf16.gmra.mrb[60].mxu1 %v22145_v31  ;;  %v14438_v14 = vsel %vm969_vm1, %v14433_v58, %v14437_v16  ;;  %v14439_v31 = vshrl.u32 %v22323_v15, 16  ;;  %v22327_v58 = vld [vmem:[#allocation3 + $0xc8] sm:$0xff]  }
 0x4dc   : > { %19864 = vmatprep.subr.bf16.mxu0 %v22167_v18  ;;  %20212 = vmatprep.mubr.bf16.mxu1 %v14422_v41  ;;  %v14449_v41 = vor.u32 %v14447_v21, %v14445_v34  ;;  %v14467_v53 = vshll.u32 %v22327_v58, 16  ;;  %v26041_v21 = vld [vmem:[%s26368_s3 + $0x1c0] sm:$0xff]  }
 0x4dd   : > { %v14441_v45 = vor.u32 %v14439_v31, %v14437_v16  ;;  %v22182_v16 = vld [vmem:[%s26368_s3 + $0x1b8] sm:$0xff]  }
 0x4de   : > { %19833 = vmatmul.mubr.bf16.gmra.mrb[36].mxu0 %v26569_v32  ;;  %v22160_v32 = vld [vmem:[%s26368_s3 + $0x158] sm:$0xff]   ;;  %v14454_v51 = vsel %vm969_vm1, %v14449_v41, %v14453_v25 }
 0x4df   : > { %19836 = vmatprep.mubr.bf16.mxu0 %v26570_v37  ;;  %19865 = vmatpush3.bf16.msra.mxu0 %v22167_v18  ;;  %v22157_v18 = vld [vmem:[%s26368_s3 + $0x150] sm:$0xff]   ;;  %v14446_v15 = vsel %vm969_vm1, %v14441_v45, %v14445_v34  ;;  %v14469_v34 = vrot.slane %v14467_v53, 1  ;;  %v22329_v41 = vld [vmem:[#allocation3 + $0xd8] sm:$0xff]   ;;  %v14471_v45 = vshrl.u32 %v22327_v58, 16 }
 0x4e0   : > { %19866 = vmatprep.subr.bf16.mxu0 %v22171_v20  ;;  %v22331_v58 = vld [vmem:[#allocation3 + $0xe8] sm:$0xff]  }
 0x4e3   : > { %19867 = vmatpush3.bf16.msra.mxu0 %v22171_v20  ;;  %20213 = vmatmul.mubr.bf16.vlgmr.msra.gmra.mrb[32].mxu1 %v14430_v6  ;;  %v14459_v20 = vshll.u32 %v22326_v10, 16  ;;  %v26574_v6 = vld [vmem:[#allocation13_spill] sm:$0xff]  ;;  %v14483_v10 = vshll.u32 %v22329_v41, 16 }
 0x4e4   : > { %19868 = vmatprep.subr.bf16.mxu0 %v22172_v19  ;;  %20216 = vmatprep.mubr.bf16.mxu1 %v14438_v14 }
 0x4e5   : > { %20245 = vmatpush3.bf16.msra.mxu1 %v25980_v28  ;;  %v22177_v28 = vld [vmem:[%s26368_s3 + $0x1b0] sm:$0xff]   ;;  %v14461_v37 = vrot.slane %v14459_v20, 1  ;;  %v26575_v20 = vld [vmem:[#allocation17_spill] sm:$0xff] }
 0x4e6   : > { %20246 = vmatprep.subr.bf16.mxu1 %v22154_v59  ;;  %19837 = vmatmul.mubr.bf16.gmra.mrb[40].mxu0 %v26571_v39 }
 0x4e7   : > { %19840 = vmatprep.mubr.bf16.mxu0 %v26572_v13  ;;  %19869 = vmatpush3.bf16.msra.mxu0 %v22172_v19  ;;  %v26573_v19 = vld [vmem:[#allocation12_spill] sm:$0xff]  ;;  %v14465_v14 = vor.u32 %v14463_v40, %v14461_v37  ;;  %v22180_v40 = vld [vmem:[%s26368_s3 + $0x178] sm:$0xff]  }
 0x4e8   : > { %19870 = vmatprep.subr.bf16.mxu0 %v22176_v42 }
 0x4e9   : > { %20247 = vmatpush3.bf16.msra.mxu1 %v22154_v59  ;;  %v14455_v59 = vshrl.u32 %v22325_v36, 16  ;;  %v22169_v36 = vld [vmem:[%s26368_s3 + $0x168] sm:$0xff]   ;;  %v14470_v31 = vsel %vm969_vm1, %v14465_v14, %v14469_v34 }
 0x4ea   : > { %20248 = vmatprep.subr.bf16.mxu1 %v22157_v18 }
 0x4eb   : > { %19871 = vmatpush3.bf16.msra.mxu0 %v22176_v42  ;;  %20217 = vmatmul.mubr.bf16.gmra.mrb[36].mxu1 %v14446_v15  ;;  %v14475_v42 = vshll.u32 %v22328_v3, 16  ;;  %v14457_v39 = vor.u32 %v14455_v59, %v14453_v25  ;;  %v14479_v25 = vshrl.u32 %v22328_v3, 16  ;;  %v26577_v3 = vld [vmem:[#allocation19_spill] sm:$0xff] }
 0x4ec   : > { %19872 = vmatprep.subr.bf16.mxu0 %v22177_v28  ;;  %20220 = vmatprep.mubr.bf16.mxu1 %v14454_v51  ;;  %v14485_v51 = vrot.slane %v14483_v10, 1 }
 0x4ed   : > { %20249 = vmatpush3.bf16.msra.mxu1 %v22157_v18  ;;  %v14462_v18 = vsel %vm969_vm1, %v14457_v39, %v14461_v37  ;;  %v14477_v13 = vrot.slane %v14475_v42, 1  ;;  %v22330_v37 = vld [vmem:[#allocation3 + $0xe0] sm:$0xff]   ;;  %v14487_v42 = vshrl.u32 %v22329_v41, 16 }
 0x4ee   : > { %19841 = vmatmul.mubr.bf16.gmra.mrb[44].mxu0 %v26573_v19  ;;  %20250 = vmatprep.subr.bf16.mxu1 %v22160_v32  ;;  %v14491_v53 = vshll.u32 %v22330_v37, 16  ;;  %v14495_v14 = vshrl.u32 %v22330_v37, 16  ;;  %v26578_v39 = vld [vmem:[#allocation20_spill] sm:$0xff]  ;;  %v14503_v37 = vshrl.u32 %v22331_v58, 16 }
 0x4ef   : > { %19844 = vmatprep.mubr.bf16.mxu0 %v26574_v6  ;;  %19873 = vmatpush3.bf16.msra.mxu0 %v22177_v28  ;;  %v22174_v28 = vld [vmem:[%s26368_s3 + $0x170] sm:$0xff]   ;;  %v14481_v15 = vor.u32 %v14479_v25, %v14477_v13  ;;  %v14499_v6 = vshll.u32 %v22331_v58, 16  ;;  %v14489_v10 = vor.u32 %v14487_v42, %v14485_v51 }
 0x4f0   : > { %19874 = vmatprep.subr.bf16.mxu0 %v22182_v16  ;;  %v14493_v59 = vrot.slane %v14491_v53, 1  ;;  %v26580_v53 = vld [vmem:[#allocation25_spill] sm:$0xff] }
 0x4f1   : > { %20251 = vmatpush3.bf16.msra.mxu1 %v22160_v32  ;;  %v26576_v32 = vld [vmem:[#allocation18_spill] sm:$0xff] }
 0x4f2   : > { %20252 = vmatprep.subr.bf16.mxu1 %v22164_v9  ;;  %v14494_v25 = vsel %vm969_vm1, %v14489_v10, %v14493_v59 }
 0x4f3   : > { %19875 = vmatpush3.bf16.msra.mxu0 %v22182_v16  ;;  %20221 = vmatmul.mubr.bf16.gmra.mrb[40].mxu1 %v14462_v18  ;;  %v14473_v16 = vor.u32 %v14471_v45, %v14469_v34  ;;  %v26063_v34 = vld [vmem:[%s26368_s3 + $0x180] sm:$0xff]   ;;  %v14501_v18 = vrot.slane %v14499_v6, 1 }
 0x4f4   : > { %19908 = vmatprep.subr.bf16.mxu0 %v26041_v21  ;;  %20224 = vmatprep.mubr.bf16.mxu1 %v14470_v31  ;;  %v22332_v31 = vld [vmem:[#allocation3 + $0xf0] sm:$0xff]   ;;  %v22333_v45 = vld [vmem:[#allocation3 + $0xf8] sm:$0xff]  }
 0x4f5   : > { %20253 = vmatpush3.bf16.msra.mxu1 %v22164_v9  ;;  %v14478_v19 = vsel %vm969_vm1, %v14473_v16, %v14477_v13  ;;  %v14486_v9 = vsel %vm969_vm1, %v14481_v15, %v14485_v51  ;;  %v14507_v13 = vshll.u32 %v22332_v31, 16  ;;  %v14511_v41 = vshrl.u32 %v22332_v31, 16  ;;  %v26579_v15 = vld [vmem:[#allocation24_spill] sm:$0xff] }
 0x4f6   : > { %19845 = vmatmul.mubr.bf16.gmra.mrb[48].mxu0 %v26575_v20  ;;  %20254 = vmatprep.subr.bf16.mxu1 %v22169_v36  ;;  %v14519_v58 = vshrl.u32 %v22333_v45, 16 }
 0x4f7   : > { %19848 = vmatprep.mubr.bf16.mxu0 %v26576_v32  ;;  %v14515_v32 = vshll.u32 %v22333_v45, 16 }
 0x4f9   : > { %20255 = vmatpush3.bf16.msra.mxu1 %v22169_v36  ;;  %v14497_v36 = vor.u32 %v14495_v14, %v14493_v59  ;;  %v14517_v51 = vrot.slane %v14515_v32, 1  ;;  %v22183_v32 = vld [vmem:[#allocation3 + $0x28] sm:$0xff]  }
 0x4fa   : > { %20256 = vmatprep.subr.bf16.mxu1 %v22174_v28 }
 0x4fb   : > { %20225 = vmatmul.mubr.bf16.gmra.mrb[44].mxu1 %v14478_v19  ;;  %v14502_v20 = vsel %vm969_vm1, %v14497_v36, %v14501_v18  ;;  %v14521_v10 = vor.u32 %v14519_v58, %v14517_v51  ;;  %v22197_v58 = vld [vmem:[#allocation3 + $0x70] sm:$0xff]  }
 0x4fc   : > { %20228 = vmatprep.mubr.bf16.mxu1 %v14486_v9  ;;  %v14505_v9 = vor.u32 %v14503_v37, %v14501_v18 }
 0x4fd   : > { %20257 = vmatpush3.bf16.msra.mxu1 %v22174_v28  ;;  %v14509_v28 = vrot.slane %v14507_v13, 1 }
 0x4fe   : > { %19849 = vmatmul.mubr.bf16.gmra.mrb[52].mxu0 %v26577_v3  ;;  %20258 = vmatprep.subr.bf16.mxu1 %v22180_v40  ;;  %v22335_v3 = vld [vmem:[#allocation3 + $0x108] sm:$0xff]  }
 0x4ff   : > { %19852 = vmatprep.mubr.bf16.mxu0 %v26578_v39  ;;  %v14513_v16 = vor.u32 %v14511_v41, %v14509_v28  ;;  %v14510_v59 = vsel %vm969_vm1, %v14505_v9, %v14509_v28  ;;  %v14531_v42 = vshll.u32 %v22335_v3, 16  ;;  %v22178_v39 = vld [vmem:[#allocation3 + $0x20] sm:$0xff]  }
 0x500   : > { %v22199_v41 = vld [vmem:[%s26368_s3 + $0x1c8] sm:$0xff]  }
 0x501   : > { %20259 = vmatpush3.bf16.msra.mxu1 %v22180_v40  ;;  %v22334_v40 = vld [vmem:[#allocation3 + $0x100] sm:$0xff]   ;;  %v14518_v6 = vsel %vm969_vm1, %v14513_v16, %v14517_v51  ;;  %v14533_v13 = vrot.slane %v14531_v42, 1  ;;  %v22186_v51 = vld [vmem:[#allocation3 + $0x38] sm:$0xff]  }
 0x502   : > { %20292 = vmatprep.subr.bf16.mxu1 %v26063_v34  ;;  %v14523_v19 = vshll.u32 %v22334_v40, 16  ;;  %v14527_v36 = vshrl.u32 %v22334_v40, 16  ;;  %v22204_v40 = vld [vmem:[%s26368_s3 + $0x1d8] sm:$0xff]   ;;  %v22188_v9 = vld [vmem:[%s26368_s3 + $0x188] sm:$0xff]  }
 0x503   : > { %20229 = vmatmul.mubr.bf16.gmra.mrb[48].mxu1 %v14494_v25  ;;  %v22336_v25 = vld [vmem:[#allocation3 + $0x110] ss:$0 sps:$4 sm:$0x11]   ;;  %v22193_v42 = vld [vmem:[#allocation3 + $0x60] sm:$0xff]  }
 0x504   : > { %20232 = vmatprep.mubr.bf16.mxu1 %v14502_v20  ;;  %v14525_v14 = vrot.slane %v14523_v19, 1  ;;  %v14539_v20 = vshll.u32 %v22336_v25, 16  ;;  %v22187_v19 = vld [vmem:[#allocation3 + $0x40] sm:$0xff]  }
 0x506   : > { %19853 = vmatmul.mubr.bf16.gmra.mrb[56].mxu0 %v26579_v15  ;;  %v14529_v31 = vor.u32 %v14527_v36, %v14525_v14  ;;  %v14526_v18 = vsel %vm969_vm1, %v14521_v10, %v14525_v14  ;;  %v14535_v15 = vshrl.u32 %v22335_v3, 16  ;;  %v14541_v37 = vrot.slane %v14539_v20, 1  ;;  %v22191_v14 = vld [vmem:[%s26368_s3 + $0x190] sm:$0xff]   ;;  %v22216_v3 = vld [vmem:[%s26368_s3 + $0x1f8] sm:$0xff]   ;;  %v26139_v20 = vld [vmem:[%s26368_s3 + $0x1c0] sm:$0xff]  }
 0x507   : > { %19856 = vmatprep.mubr.bf16.mxu0 %v26580_v53  ;;  %v22201_v53 = vld [vmem:[%s26368_s3 + $0x1d0] sm:$0xff]   ;;  %v22200_v10 = vld [vmem:[#allocation3 + $0x78] sm:$0xff]  }
 0x508   : > { %v14534_v28 = vsel %vm969_vm1, %v14529_v31, %v14533_v13  ;;  %v14537_v45 = vor.u32 %v14535_v15, %v14533_v13  ;;  %v22195_v36 = vld [vmem:[#allocation3 + $0x68] sm:$0xff]   ;;  %v11806_v13 = vld [vmem:[#allocation3 + $0x20] sm:$0xf] }
 0x509   : > { %v22208_v31 = vld [vmem:[%s26368_s3 + $0x1b0] sm:$0xff]  }
 0x50a   : > { %v14542_v16 = vsel %vm969_vm1, %v14537_v45, %v14541_v37 }
 0x50b   : > { %20233 = vmatmul.mubr.bf16.gmra.mrb[52].mxu1 %v14510_v59  ;;  %v22189_v59 = vld [vmem:[#allocation3 + $0x48] sm:$0xff]  }
 0x50c   : > { %20236 = vmatprep.mubr.bf16.mxu1 %v14518_v6  ;;  %v22190_v6 = vld [vmem:[#allocation3 + $0x50] sm:$0xff]  }
 0x50e   : > { %19857 = vmatmul.mubr.bf16.gmra.mrb[60].mxu0 %v25671_v27  ;;  %v22184_v27 = vld [vmem:[#allocation3 + $0x30] sm:$0xff]  }
 0x50f   : > { %19876 = vmatprep.mubr.bf16.mxu0 %v22178_v39  ;;  %v22198_v39 = vld [vmem:[%s26368_s3 + $0x1a0] sm:$0xff]  }
 0x513   : > { %20237 = vmatmul.mubr.bf16.gmra.mrb[56].mxu1 %v14526_v18  ;;  %v22337_v18 = vld [vmem:[#allocation3 + $0x24] sm:$0xf] }
 0x514   : > { %20240 = vmatprep.mubr.bf16.mxu1 %v14534_v28  ;;  %v17424_v25 = vcombine.low %v11806_v13, %v22337_v18 }
 0x516   : > { %19877 = vmatmul.mubr.bf16.vlgmr.msra.gmra.mrb[32].mxu0 %v22183_v32  ;;  %v11942_v28 = vshll.u32 %v17424_v25, 16 }
 0x517   : > { %19880 = vmatprep.mubr.bf16.mxu0 %v22184_v27  ;;  %19909 = vmatpush3.bf16.msra.mxu0 %v26041_v21  ;;  %v22206_v21 = vld [vmem:[%s26368_s3 + $0x1e0] sm:$0xff]   ;;  %v11940_v27 = vshrl.u32 %v17424_v25, 16 }
 0x518   : > { %19910 = vmatprep.subr.bf16.mxu0 %v22199_v41  ;;  %v11944_v32 = vrot.slane %v11942_v28, 1  ;;  %v22344_v25 = vld [vmem:[#allocation3 + $0x58] sm:$0xff]  }
 0x519   : > { %v11995_v28 = vshll.u32 %v22344_v25, 16 }
 0x51a   : > { %v11945_v45 = vor.u32 %v11944_v32, %v11940_v27  ;;  %v22219_v32 = vld [vmem:[#allocation3 + $0xa8] sm:$0xff]  }
 0x51b   : > { %19911 = vmatpush3.bf16.msra.mxu0 %v22199_v41  ;;  %20241 = vmatmul.mubr.bf16.gmra.mrb[60].mxu1 %v14542_v16  ;;  %v22338_v41 = vld [vmem:[#allocation3 + $0x28] sm:$0xff]   ;;  %v11997_v27 = vrot.slane %v11995_v28, 1  ;;  %v22231_v28 = vld [vmem:[#allocation3 + $0xd0] sm:$0xff]  }
 0x51c   : > { %19912 = vmatprep.subr.bf16.mxu0 %v22201_v53  ;;  %20260 = vmatprep.mubr.bf16.mxu1 %v25679_v46  ;;  %v22209_v46 = vld [vmem:[%s26368_s3 + $0x1e8] sm:$0xff]   ;;  %v11947_v15 = vshll.u32 %v22338_v41, 16 }
 0x51e   : > { %19881 = vmatmul.mubr.bf16.gmra.mrb[36].mxu0 %v22186_v51  ;;  %v11949_v37 = vrot.slane %v11947_v15, 1  ;;  %v22210_v51 = vld [vmem:[#allocation3 + $0x98] sm:$0xff]  }
 0x51f   : > { %19884 = vmatprep.mubr.bf16.mxu0 %v22187_v19  ;;  %19913 = vmatpush3.bf16.msra.mxu0 %v22201_v53  ;;  %v22339_v53 = vld [vmem:[#allocation3 + $0x30] sm:$0xff]  }
 0x520   : > { %19914 = vmatprep.subr.bf16.mxu0 %v22204_v40  ;;  %v11955_v16 = vshll.u32 %v22339_v53, 16 }
 0x523   : > { %19915 = vmatpush3.bf16.msra.mxu0 %v22204_v40  ;;  %20261 = vmatmul.mubr.bf16.vlgmr.msra.gmra.mrb[32].mxu1 %v25682_v26  ;;  %v22211_v26 = vld [vmem:[%s26368_s3 + $0x1f0] sm:$0xff]   ;;  %v22340_v40 = vld [vmem:[#allocation3 + $0x38] sm:$0xff]  }
 0x524   : > { %19916 = vmatprep.subr.bf16.mxu0 %v22206_v21  ;;  %20264 = vmatprep.mubr.bf16.mxu1 %v25685_v63  ;;  %v22194_v63 = vld [vmem:[%s26368_s3 + $0x198] sm:$0xff]   ;;  %v11963_v19 = vshll.u32 %v22340_v40, 16 }
 0x525   : > { %20293 = vmatpush3.bf16.msra.mxu1 %v26063_v34  ;;  %v22192_v34 = vld [vmem:[#allocation3 + $0x58] sm:$0xff]  }
 0x526   : > { %20294 = vmatprep.subr.bf16.mxu1 %v22188_v9  ;;  %19885 = vmatmul.mubr.bf16.gmra.mrb[40].mxu0 %v22189_v59 }
 0x527   : > { %19888 = vmatprep.mubr.bf16.mxu0 %v22190_v6  ;;  %19917 = vmatpush3.bf16.msra.mxu0 %v22206_v21  ;;  %v11959_v21 = vshrl.u32 %v22339_v53, 16  ;;  %v22341_v6 = vld [vmem:[#allocation3 + $0x40] sm:$0xff]   ;;  %v22221_v53 = vld [vmem:[#allocation3 + $0xb0] sm:$0xff]  }
 0x528   : > { %19918 = vmatprep.subr.bf16.mxu0 %v22209_v46 }
 0x529   : > { %20295 = vmatpush3.bf16.msra.mxu1 %v22188_v9  ;;  %v11951_v9 = vshrl.u32 %v22338_v41, 16  ;;  %v22225_v41 = vld [vmem:[%s26368_s3 + $0x1c8] sm:$0xff]  }
 0x52a   : > { %20296 = vmatprep.subr.bf16.mxu1 %v22191_v14 }
 0x52b   : > { %19919 = vmatpush3.bf16.msra.mxu0 %v22209_v46  ;;  %20265 = vmatmul.mubr.bf16.gmra.mrb[36].mxu1 %v25688_v55  ;;  %v26120_v55 = vld [vmem:[%s26368_s3 + $0x200] sm:$0xff]   ;;  %v11965_v46 = vrot.slane %v11963_v19, 1 }
 0x52c   : > { %19920 = vmatprep.subr.bf16.mxu0 %v22211_v26  ;;  %20268 = vmatprep.mubr.bf16.mxu1 %v25691_v50  ;;  %v22203_v50 = vld [vmem:[%s26368_s3 + $0x1a8] sm:$0xff]  }
 0x52d   : > { %20297 = vmatpush3.bf16.msra.mxu1 %v22191_v14  ;;  %v11971_v14 = vshll.u32 %v22341_v6, 16 }
 0x52e   : > { %19889 = vmatmul.mubr.bf16.gmra.mrb[44].mxu0 %v22192_v34  ;;  %20298 = vmatprep.subr.bf16.mxu1 %v22194_v63 }
 0x52f   : > { %19892 = vmatprep.mubr.bf16.mxu0 %v22193_v42  ;;  %19921 = vmatpush3.bf16.msra.mxu0 %v22211_v26  ;;  %v11953_v26 = vor.u32 %v11951_v9, %v11949_v37  ;;  %v11973_v34 = vrot.slane %v11971_v14, 1 }
 0x530   : > { %19922 = vmatprep.subr.bf16.mxu0 %v22216_v3 }
 0x531   : > { %20299 = vmatpush3.bf16.msra.mxu1 %v22194_v63 }
 0x532   : > { %20300 = vmatprep.subr.bf16.mxu1 %v22198_v39 }
 0x533   : > { %19923 = vmatpush3.bf16.msra.mxu0 %v22216_v3  ;;  %20269 = vmatmul.mubr.bf16.gmra.mrb[40].mxu1 %v25695_v38  ;;  %v22214_v38 = vld [vmem:[%s26368_s3 + $0x1b8] sm:$0xff]   ;;  %v22342_v3 = vld [vmem:[#allocation3 + $0x48] sm:$0xff]  }
 0x534   : > { %19956 = vmatprep.subr.bf16.mxu0 %v26120_v55  ;;  %20272 = vmatprep.mubr.bf16.mxu1 %v25698_v54  ;;  %v22202_v54 = vld [vmem:[#allocation3 + $0x80] sm:$0xff]   ;;  %v11979_v42 = vshll.u32 %v22342_v3, 16 }
 0x535   : > { %20301 = vmatpush3.bf16.msra.mxu1 %v22198_v39  ;;  %v11975_v39 = vshrl.u32 %v22341_v6, 16  ;;  %v22224_v6 = vld [vmem:[#allocation3 + $0xb8] sm:$0xff]  }
 0x536   : > { %19893 = vmatmul.mubr.bf16.gmra.mrb[48].mxu0 %v22195_v36  ;;  %20302 = vmatprep.subr.bf16.mxu1 %v22203_v50 }
 0x537   : > { %19896 = vmatprep.mubr.bf16.mxu0 %v22197_v58  ;;  %v11977_v36 = vor.u32 %v11975_v39, %v11973_v34  ;;  %v22343_v58 = vld [vmem:[#allocation3 + $0x50] sm:$0xff]  }
 0x539   : > { %20303 = vmatpush3.bf16.msra.mxu1 %v22203_v50  ;;  %v11967_v50 = vshrl.u32 %v22340_v40, 16  ;;  %v22230_v40 = vld [vmem:[%s26368_s3 + $0x1d0] sm:$0xff]  }
 0x53a   : > { %20304 = vmatprep.subr.bf16.mxu1 %v22208_v31 }
 0x53b   : > { %20273 = vmatmul.mubr.bf16.gmra.mrb[44].mxu1 %v25701_v44  ;;  %v22205_v44 = vld [vmem:[#allocation3 + $0x88] sm:$0xff]   ;;  %v11969_v13 = vor.u32 %v11967_v50, %v11965_v46 }
 0x53c   : > { %20276 = vmatprep.mubr.bf16.mxu1 %v25704_v4  ;;  %v22207_v4 = vld [vmem:[#allocation3 + $0x90] sm:$0xff]  }
 0x53d   : > { %20305 = vmatpush3.bf16.msra.mxu1 %v22208_v31  ;;  %v11987_v31 = vshll.u32 %v22343_v58, 16 }
 0x53e   : > { %19897 = vmatmul.mubr.bf16.gmra.mrb[52].mxu0 %v22200_v10  ;;  %20306 = vmatprep.subr.bf16.mxu1 %v22214_v38  ;;  %v11974_v10 = vsel %vm969_vm1, %v11969_v13, %v11973_v34  ;;  %v22226_v34 = vld [vmem:[#allocation3 + $0xc0] sm:$0xff]   ;;  %v22229_v13 = vld [vmem:[#allocation3 + $0xc8] sm:$0xff]  }
 0x53f   : > { %19900 = vmatprep.mubr.bf16.mxu0 %v22202_v54  ;;  %v11989_v18 = vrot.slane %v11987_v31, 1 }
 0x541   : > { %20307 = vmatpush3.bf16.msra.mxu1 %v22214_v38  ;;  %v22215_v38 = vld [vmem:[#allocation3 + $0xa0] sm:$0xff]  }
 0x542   : > { %20340 = vmatprep.subr.bf16.mxu1 %v26139_v20 }
 0x543   : > { %20277 = vmatmul.mubr.bf16.gmra.mrb[48].mxu1 %v25707_v47  ;;  %v11950_v47 = vsel %vm969_vm1, %v11945_v45, %v11949_v37  ;;  %v22345_v45 = vld [vmem:[#allocation3 + $0x60] sm:$0xff]  }
 0x544   : > { %20280 = vmatprep.mubr.bf16.mxu1 %v25710_v17  ;;  %v11957_v17 = vrot.slane %v11955_v16, 1  ;;  %v12003_v37 = vshll.u32 %v22345_v45, 16 }
 0x546   : > { %19901 = vmatmul.mubr.bf16.gmra.mrb[56].mxu0 %v22205_v44  ;;  %v11961_v59 = vor.u32 %v11959_v21, %v11957_v17  ;;  %v11991_v44 = vshrl.u32 %v22343_v58, 16  ;;  %v12005_v19 = vrot.slane %v12003_v37, 1  ;;  %v22346_v21 = vld [vmem:[#allocation3 + $0x68] sm:$0xff]   ;;  %v22241_v58 = vld [vmem:[%s26368_s3 + $0x1e0] sm:$0xff]  }
 0x547   : > { %19904 = vmatprep.mubr.bf16.mxu0 %v22207_v4  ;;  %v11983_v4 = vshrl.u32 %v22342_v3, 16  ;;  %v12011_v9 = vshll.u32 %v22346_v21, 16 }
 0x548   : > { %v11966_v63 = vsel %vm969_vm1, %v11961_v59, %v11965_v46  ;;  %v11993_v15 = vor.u32 %v11991_v44, %v11989_v18  ;;  %v12007_v59 = vshrl.u32 %v22345_v45, 16  ;;  %v11999_v46 = vshrl.u32 %v22344_v25, 16  ;;  %v22248_v25 = vld [vmem:[%s26368_s3 + $0x1e8] sm:$0xff]  }
 0x54a   : > { %v12009_v14 = vor.u32 %v12007_v59, %v12005_v19  ;;  %v12001_v3 = vor.u32 %v11999_v46, %v11997_v27  ;;  %v26209_v46 = vld [vmem:[%s26368_s3 + $0x200] sm:$0xff]  }
 0x54b   : > { %20281 = vmatmul.mubr.bf16.gmra.mrb[52].mxu1 %v25713_v1  ;;  %v22243_v1 = vld [vmem:[%s26368_s3 + $0x208] sm:$0xff]  }
 0x54c   : > { %20284 = vmatprep.mubr.bf16.mxu1 %v25716_v35  ;;  %v11958_v35 = vsel %vm969_vm1, %v11953_v26, %v11957_v17  ;;  %v11998_v17 = vsel %vm969_vm1, %v11993_v15, %v11997_v27  ;;  %v12013_v26 = vrot.slane %v12011_v9, 1  ;;  %v12006_v39 = vsel %vm969_vm1, %v12001_v3, %v12005_v19  ;;  %v22255_v27 = vld [vmem:[%s26368_s3 + $0x1f0] sm:$0xff]   ;;  %v22236_v19 = vld [vmem:[#allocation3 + $0xe0] sm:$0xff]  }
 0x54e   : > { %19905 = vmatmul.mubr.bf16.gmra.mrb[60].mxu0 %v22210_v51  ;;  %v22256_v51 = vld [vmem:[%s26368_s3 + $0x228] sm:$0xff]  }
 0x54f   : > { %19924 = vmatprep.mubr.bf16.mxu0 %v11950_v47 }
 0x553   : > { %20285 = vmatmul.mubr.bf16.gmra.mrb[56].mxu1 %v25721_v2  ;;  %v22245_v2 = vld [vmem:[%s26368_s3 + $0x210] sm:$0xff]  }
 0x554   : > { %20288 = vmatprep.mubr.bf16.mxu1 %v25726_v48  ;;  %v11981_v48 = vrot.slane %v11979_v42, 1  ;;  %v22265_v42 = vld [vmem:[%s26368_s3 + $0x238] sm:$0xff]  }
 0x556   : > { %19925 = vmatmul.mubr.bf16.vlgmr.msra.gmra.mrb[32].mxu0 %v11958_v35  ;;  %v11982_v54 = vsel %vm969_vm1, %v11977_v36, %v11981_v48  ;;  %v11985_v16 = vor.u32 %v11983_v4, %v11981_v48  ;;  %v22347_v35 = vld [vmem:[#allocation3 + $0x70] sm:$0xff]   ;;  %v22348_v36 = vld [vmem:[#allocation3 + $0x78] sm:$0xff]  }
 0x557   : > { %19928 = vmatprep.mubr.bf16.mxu0 %v11966_v63  ;;  %19957 = vmatpush3.bf16.msra.mxu0 %v26120_v55  ;;  %v22250_v55 = vld [vmem:[%s26368_s3 + $0x218] sm:$0xff]   ;;  %v12019_v63 = vshll.u32 %v22347_v35, 16  ;;  %v12027_v48 = vshll.u32 %v22348_v36, 16  ;;  %v12023_v31 = vshrl.u32 %v22347_v35, 16  ;;  %v12031_v37 = vshrl.u32 %v22348_v36, 16  ;;  %v22240_v35 = vld [vmem:[#allocation3 + $0xe8] sm:$0xff]  }
 0x558   : > { %19958 = vmatprep.subr.bf16.mxu0 %v22243_v1  ;;  %v11990_v47 = vsel %vm969_vm1, %v11985_v16, %v11989_v18 }
 0x559   : > { %v12021_v50 = vrot.slane %v12019_v63, 1 }
 0x55b   : > { %19959 = vmatpush3.bf16.msra.mxu0 %v22243_v1  ;;  %20289 = vmatmul.mubr.bf16.gmra.mrb[60].mxu1 %v25731_v12  ;;  %v22252_v12 = vld [vmem:[%s26368_s3 + $0x220] sm:$0xff]   ;;  %v22235_v1 = vld [vmem:[%s26368_s3 + $0x1d8] sm:$0xff]  }
 0x55c   : > { %19960 = vmatprep.subr.bf16.mxu0 %v22245_v2  ;;  %20308 = vmatprep.mubr.bf16.mxu1 %v22215_v38  ;;  %v12015_v38 = vshrl.u32 %v22346_v21, 16 }
 0x55e   : > { %19929 = vmatmul.mubr.bf16.gmra.mrb[36].mxu0 %v11974_v10  ;;  %v12029_v10 = vrot.slane %v12027_v48, 1  ;;  %v12017_v44 = vor.u32 %v12015_v38, %v12013_v26  ;;  %v22247_v38 = vld [vmem:[#allocation3 + $0xf8] sm:$0xff]  }
 0x55f   : > { %19932 = vmatprep.mubr.bf16.mxu0 %v11982_v54  ;;  %19961 = vmatpush3.bf16.msra.mxu0 %v22245_v2  ;;  %v12014_v2 = vsel %vm969_vm1, %v12009_v14, %v12013_v26  ;;  %v22349_v54 = vld [vmem:[#allocation3 + $0x80] sm:$0xff]   ;;  %v22352_v14 = vld [vmem:[#allocation3 + $0x98] sm:$0xff]  }
 0x560   : > { %19962 = vmatprep.subr.bf16.mxu0 %v22250_v55  ;;  %v12035_v18 = vshll.u32 %v22349_v54, 16  ;;  %v12039_v45 = vshrl.u32 %v22349_v54, 16  ;;  %v12033_v21 = vor.u32 %v12031_v37, %v12029_v10  ;;  %v12059_v26 = vshll.u32 %v22352_v14, 16 }
 0x561   : > { %v12063_v48 = vshrl.u32 %v22352_v14, 16 }
 0x563   : > { %19963 = vmatpush3.bf16.msra.mxu0 %v22250_v55  ;;  %20309 = vmatmul.mubr.bf16.vlgmr.msra.gmra.mrb[32].mxu1 %v22219_v32  ;;  %v12025_v55 = vor.u32 %v12023_v31, %v12021_v50  ;;  %v12037_v32 = vrot.slane %v12035_v18, 1  ;;  %v15495_v31 = vld [vmem:[#allocation3 + $0xa0] sm:$0xf] }
 0x564   : > { %19964 = vmatprep.subr.bf16.mxu0 %v22252_v12  ;;  %20312 = vmatprep.mubr.bf16.mxu1 %v22221_v53  ;;  %v22234_v53 = vld [vmem:[#allocation3 + $0xd8] sm:$0xff]  }
 0x565   : > { %20341 = vmatpush3.bf16.msra.mxu1 %v26139_v20  ;;  %v22258_v20 = vld [vmem:[%s26368_s3 + $0x230] sm:$0xff]   ;;  %v12030_v4 = vsel %vm969_vm1, %v12025_v55, %v12029_v10  ;;  %v12041_v16 = vor.u32 %v12039_v45, %v12037_v32  ;;  %v12038_v9 = vsel %vm969_vm1, %v12033_v21, %v12037_v32  ;;  %v22354_v10 = vld [vmem:[#allocation3 + $0xa4] sm:$0xf]  ;;  %v22357_v21 = vld [vmem:[#allocation3 + $0xb8] sm:$0xff]  }
 0x566   : > { %20342 = vmatprep.subr.bf16.mxu1 %v22225_v41  ;;  %19933 = vmatmul.mubr.bf16.gmra.mrb[40].mxu0 %v11990_v47  ;;  %v22351_v47 = vld [vmem:[#allocation3 + $0x90] sm:$0xff]   ;;  %v17727_v54 = vcombine.low %v15495_v31, %v22354_v10 }
 0x567   : > { %19936 = vmatprep.mubr.bf16.mxu0 %v11998_v17  ;;  %19965 = vmatpush3.bf16.msra.mxu0 %v22252_v12  ;;  %v12022_v12 = vsel %vm969_vm1, %v12017_v44, %v12021_v50  ;;  %v12051_v17 = vshll.u32 %v22351_v47, 16  ;;  %v22254_v44 = vld [vmem:[#allocation3 + $0x108] sm:$0xff]  }
 0x568   : > { %19966 = vmatprep.subr.bf16.mxu0 %v22256_v51  ;;  %v15628_v37 = vshrl.u32 %v17727_v54, 16 }
 0x569   : > { %20343 = vmatpush3.bf16.msra.mxu1 %v22225_v41  ;;  %v22350_v41 = vld [vmem:[#allocation3 + $0x88] sm:$0xff]  }
 0x56a   : > { %20344 = vmatprep.subr.bf16.mxu1 %v22230_v40  ;;  %v12043_v15 = vshll.u32 %v22350_v41, 16 }
 0x56b   : > { %19967 = vmatpush3.bf16.msra.mxu0 %v22256_v51  ;;  %20313 = vmatmul.mubr.bf16.gmra.mrb[36].mxu1 %v22224_v6  ;;  %v12055_v6 = vshrl.u32 %v22351_v47, 16  ;;  %v22356_v47 = vld [vmem:[#allocation3 + $0xb0] sm:$0xff]  }
 0x56c   : > { %19968 = vmatprep.subr.bf16.mxu0 %v22258_v20  ;;  %20316 = vmatprep.mubr.bf16.mxu1 %v22226_v34  ;;  %v12045_v51 = vrot.slane %v12043_v15, 1  ;;  %v22242_v34 = vld [vmem:[#allocation3 + $0xf0] sm:$0xff]  }
 0x56d   : > { %20345 = vmatpush3.bf16.msra.mxu1 %v22230_v40  ;;  %v22262_v40 = vld [vmem:[%s26368_s3 + $0x1f8] sm:$0xff]  }
 0x56e   : > { %19937 = vmatmul.mubr.bf16.gmra.mrb[44].mxu0 %v12006_v39  ;;  %20346 = vmatprep.subr.bf16.mxu1 %v22235_v1  ;;  %v12046_v59 = vsel %vm969_vm1, %v12041_v16, %v12045_v51 }
 0x56f   : > { %19940 = vmatprep.mubr.bf16.mxu0 %v12014_v2  ;;  %19969 = vmatpush3.bf16.msra.mxu0 %v22258_v20  ;;  %v12053_v20 = vrot.slane %v12051_v17, 1  ;;  %v22353_v2 = vld [vmem:[#allocation3 + $0xa0] ss:$0 sps:$4 sm:$0x11]   ;;  %v15643_v17 = vshll.u32 %v22356_v47, 16 }
 0x570   : > { %19970 = vmatprep.subr.bf16.mxu0 %v22265_v42  ;;  %v12067_v50 = vshll.u32 %v22353_v2, 16  ;;  %v15655_v2 = vshrl.u32 %v22357_v21, 16 }
 0x571   : > { %20347 = vmatpush3.bf16.msra.mxu1 %v22235_v1  ;;  %v12047_v1 = vshrl.u32 %v22350_v41, 16  ;;  %v12057_v63 = vor.u32 %v12055_v6, %v12053_v20  ;;  %v22355_v41 = vld [vmem:[#allocation3 + $0xa8] sm:$0xff]   ;;  %v22358_v6 = vld [vmem:[#allocation3 + $0xc0] sm:$0xff]  }
 0x572   : > { %20348 = vmatprep.subr.bf16.mxu1 %v22241_v58  ;;  %v15635_v15 = vshll.u32 %v22355_v41, 16  ;;  %v15659_v14 = vshll.u32 %v22358_v6, 16 }
 0x573   : > { %19971 = vmatpush3.bf16.msra.mxu0 %v22265_v42  ;;  %20317 = vmatmul.mubr.bf16.gmra.mrb[40].mxu1 %v22229_v13  ;;  %v12049_v3 = vor.u32 %v12047_v1, %v12045_v51  ;;  %v12061_v42 = vrot.slane %v12059_v26, 1  ;;  %v22249_v13 = vld [vmem:[#allocation3 + $0x100] sm:$0xff]  }
 0x574   : > { %20320 = vmatprep.mubr.bf16.mxu1 %v22231_v28  ;;  %v22259_v28 = vld [vmem:[#allocation3 + $0x110] sm:$0xff]   ;;  %v15637_v51 = vrot.slane %v15635_v15, 1  ;;  %v22270_v1 = vld [vmem:[%s26368_s3 + $0x208] sm:$0xff]  }
 0x575   : > { %20349 = vmatpush3.bf16.msra.mxu1 %v22241_v58  ;;  %v12054_v39 = vsel %vm969_vm1, %v12049_v3, %v12053_v20  ;;  %v12062_v36 = vsel %vm969_vm1, %v12057_v63, %v12061_v42  ;;  %v12069_v58 = vrot.slane %v12067_v50, 1  ;;  %v12065_v55 = vor.u32 %v12063_v48, %v12061_v42  ;;  %v22359_v3 = vld [vmem:[#allocation3 + $0xc8] sm:$0xff]   ;;  %v26582_v50 = vld [vmem:[#allocation23_spill] sm:$0xff] }
 0x576   : > { %19941 = vmatmul.mubr.bf16.gmra.mrb[48].mxu0 %v12022_v12  ;;  %20350 = vmatprep.subr.bf16.mxu1 %v22248_v25  ;;  %v26216_v12 = vld [vmem:[#allocation3 + $0x118] sm:$0xff]   ;;  %v26581_v42 = vld [vmem:[#allocation21_spill] sm:$0xff] }
 0x577   : > { %19944 = vmatprep.mubr.bf16.mxu0 %v12030_v4  ;;  %v12070_v18 = vsel %vm969_vm1, %v12065_v55, %v12069_v58  ;;  %v26218_v4 = vld [vmem:[#allocation3 + $0x120] ss:$0 sps:$4 sm:$0x11]   ;;  %v22360_v58 = vld [vmem:[#allocation3 + $0xd0] sm:$0xff]  }
 0x578   : > { %v16067_v45 = vrot.slane %v26218_v4, 1  ;;  %v15675_v31 = vshll.u32 %v22360_v58, 16 }
 0x579   : > { %20351 = vmatpush3.bf16.msra.mxu1 %v22248_v25  ;;  %v15630_v25 = vshll.u32 %v17727_v54, 16  ;;  %v22361_v54 = vld [vmem:[#allocation3 + $0xd8] sm:$0xff]  }
 0x57a   : > { %20352 = vmatprep.subr.bf16.mxu1 %v22255_v27  ;;  %v15677_v10 = vrot.slane %v15675_v31, 1  ;;  %v22366_v31 = vld [vmem:[#allocation3 + $0x100] sm:$0xff]  }
 0x57b   : > { %20321 = vmatmul.mubr.bf16.gmra.mrb[44].mxu1 %v22234_v53  ;;  %v15632_v32 = vrot.slane %v15630_v25, 1  ;;  %v22261_v53 = vld [vmem:[#allocation3 + $0x118] sm:$0xff]   ;;  %v15679_v25 = vshrl.u32 %v22360_v58, 16 }
 0x57c   : > { %20324 = vmatprep.mubr.bf16.mxu1 %v22236_v19  ;;  %v15645_v19 = vrot.slane %v15643_v17, 1 }
 0x57d   : > { %20353 = vmatpush3.bf16.msra.mxu1 %v22255_v27  ;;  %v16065_v27 = vrot.slane %v26216_v12, 1  ;;  %v15633_v16 = vor.u32 %v15632_v32, %v15628_v37  ;;  %v15671_v32 = vshrl.u32 %v22359_v3, 16  ;;  %v15681_v15 = vor.u32 %v15679_v25, %v15677_v10  ;;  %v22362_v37 = vld [vmem:[#allocation3 + $0xe0] sm:$0xff]  }
 0x57e   : > { %19945 = vmatmul.mubr.bf16.gmra.mrb[52].mxu0 %v12038_v9  ;;  %20354 = vmatprep.subr.bf16.mxu1 %v22262_v40  ;;  %v15651_v9 = vshll.u32 %v22357_v21, 16  ;;  %v15727_v25 = vshrl.u32 %v22366_v31, 16 }
 0x57f   : > { %19948 = vmatprep.mubr.bf16.mxu0 %v12046_v59 }
 0x580   : > { %v15653_v20 = vrot.slane %v15651_v9, 1  ;;  %v15695_v9 = vshrl.u32 %v22362_v37, 16 }
 0x581   : > { %20355 = vmatpush3.bf16.msra.mxu1 %v22262_v40  ;;  %v15638_v40 = vsel %vm969_vm1, %v15633_v16, %v15637_v51 }
 0x582   : > { %20388 = vmatprep.subr.bf16.mxu1 %v26209_v46 }
 0x583   : > { %20325 = vmatmul.mubr.bf16.gmra.mrb[48].mxu1 %v22240_v35 }
 0x584   : > { %20328 = vmatprep.mubr.bf16.mxu1 %v22242_v34  ;;  %v15661_v34 = vrot.slane %v15659_v14, 1 }
 0x586   : > { %19949 = vmatmul.mubr.bf16.gmra.mrb[56].mxu0 %v12054_v39  ;;  %v22273_v39 = vld [vmem:[%s26368_s3 + $0x210] sm:$0xff]  }
 0x587   : > { %19952 = vmatprep.mubr.bf16.mxu0 %v12062_v36 }
 0x58b   : > { %20329 = vmatmul.mubr.bf16.gmra.mrb[52].mxu1 %v22247_v38  ;;  %v15657_v38 = vor.u32 %v15655_v2, %v15653_v20  ;;  %v26587_v2 = vld [vmem:[#allocation10_spill] sm:$0xff] }
 0x58c   : > { %20332 = vmatprep.mubr.bf16.mxu1 %v22249_v13 }
 0x58d   : > { %v15662_v13 = vsel %vm969_vm1, %v15657_v38, %v15661_v34  ;;  %v15723_v38 = vshll.u32 %v22366_v31, 16 }
 0x58e   : > { %19953 = vmatmul.mubr.bf16.gmra.mrb[60].mxu0 %v12070_v18  ;;  %v15683_v18 = vshll.u32 %v22361_v54, 16 }
 0x58f   : > { %19972 = vmatprep.mubr.bf16.mxu0 %v25789_v8  ;;  %v26227_v8 = vsel %vm1380_vm2, %v16065_v27, %v16067_v45 }
 0x590   : > { %v15685_v45 = vrot.slane %v15683_v18, 1 }
 0x592   : > { %v15686_v17 = vsel %vm969_vm1, %v15681_v15, %v15685_v45 }
 0x593   : > { %20333 = vmatmul.mubr.bf16.gmra.mrb[56].mxu1 %v22254_v44  ;;  %v22279_v44 = vld [vmem:[%s26368_s3 + $0x220] sm:$0xff]  }
 0x594   : > { %20336 = vmatprep.mubr.bf16.mxu1 %v22259_v28  ;;  %v26583_v28 = vld [vmem:[#allocation15_spill] sm:$0xff] }
 0x596   : > { %19973 = vmatmul.mubr.bf16.vlgmr.msra.gmra.mrb[32].mxu0 %v25754_v61  ;;  %v15647_v61 = vshrl.u32 %v22356_v47, 16 }
 0x597   : > { %19976 = vmatprep.mubr.bf16.mxu0 %v25757_v7  ;;  %v15639_v7 = vshrl.u32 %v22355_v41, 16  ;;  %v26584_v41 = vld [vmem:[#allocation16_spill] sm:$0xff] }
 0x598   : > { %v15649_v59 = vor.u32 %v15647_v61, %v15645_v19  ;;  %v26585_v61 = vld [vmem:[#allocation22_spill] sm:$0xff] }
 0x599   : > { %v15641_v26 = vor.u32 %v15639_v7, %v15637_v51  ;;  %v22282_v51 = vld [vmem:[%s26368_s3 + $0x228] sm:$0xff]   ;;  %v22285_v7 = vld [vmem:[%s26368_s3 + $0x230] sm:$0xff]  }
 0x59a   : > { %v15654_v63 = vsel %vm969_vm1, %v15649_v59, %v15653_v20  ;;  %v15687_v59 = vshrl.u32 %v22361_v54, 16  ;;  %v26586_v20 = vld [vmem:[#allocation6_spill] sm:$0xff] }
 0x59b   : > { %20337 = vmatmul.mubr.bf16.gmra.mrb[60].mxu1 %v22261_v53  ;;  %v15646_v35 = vsel %vm969_vm1, %v15641_v26, %v15645_v19  ;;  %v15691_v53 = vshll.u32 %v22362_v37, 16  ;;  %v22363_v19 = vld [vmem:[#allocation3 + $0xe8] sm:$0xff]   ;;  %v22364_v26 = vld [vmem:[#allocation3 + $0xf0] sm:$0xff]  }
 0x59c   : > { %20356 = vmatprep.mubr.bf16.mxu1 %v15638_v40  ;;  %v15699_v21 = vshll.u32 %v22363_v19, 16  ;;  %v22367_v54 = vld [vmem:[#allocation3 + $0x108] sm:$0xff]  }
 0x59d   : > { %v15693_v40 = vrot.slane %v15691_v53, 1  ;;  %v15731_v18 = vshll.u32 %v22367_v54, 16 }
 0x59e   : > { %19977 = vmatmul.mubr.bf16.gmra.mrb[36].mxu0 %v25765_v0  ;;  %v15667_v0 = vshll.u32 %v22359_v3, 16  ;;  %v15701_v14 = vrot.slane %v15699_v21, 1 }
 0x59f   : > { %19980 = vmatprep.mubr.bf16.mxu0 %v25768_v43  ;;  %v15663_v43 = vshrl.u32 %v22358_v6, 16  ;;  %v15697_v6 = vor.u32 %v15695_v9, %v15693_v40  ;;  %v15733_v15 = vrot.slane %v15731_v18, 1  ;;  %v15751_v9 = vshrl.u32 %v26216_v12, 16 }
 0x5a0   : > { %v15669_v48 = vrot.slane %v15667_v0, 1 }
 0x5a1   : > { %v15665_v36 = vor.u32 %v15663_v43, %v15661_v34  ;;  %v15702_v3 = vsel %vm969_vm1, %v15697_v6, %v15701_v14  ;;  %v22365_v43 = vld [vmem:[#allocation3 + $0xf8] sm:$0xff]  }
 0x5a2   : > { %v15673_v16 = vor.u32 %v15671_v32, %v15669_v48  ;;  %v15719_v32 = vshrl.u32 %v22365_v43, 16 }
 0x5a3   : > { %20357 = vmatmul.mubr.bf16.vlgmr.msra.gmra.mrb[32].mxu1 %v15646_v35  ;;  %v15670_v55 = vsel %vm969_vm1, %v15665_v36, %v15669_v48  ;;  %v15689_v35 = vor.u32 %v15687_v59, %v15685_v45  ;;  %v26588_v36 = vld [vmem:[#allocation14_spill] sm:$0xff] }
 0x5a4   : > { %20360 = vmatprep.mubr.bf16.mxu1 %v15654_v63  ;;  %20389 = vmatpush3.bf16.msra.mxu1 %v26209_v46  ;;  %v22276_v46 = vld [vmem:[%s26368_s3 + $0x218] sm:$0xff]   ;;  %v15678_v47 = vsel %vm969_vm1, %v15673_v16, %v15677_v10  ;;  %v15725_v10 = vrot.slane %v15723_v38, 1  ;;  %v15747_v16 = vshll.u32 %v26216_v12, 16 }
 0x5a5   : > { %20390 = vmatprep.subr.bf16.mxu1 %v22270_v1  ;;  %v22288_v63 = vld [vmem:[%s26368_s3 + $0x238] sm:$0xff]   ;;  %v15694_v34 = vsel %vm969_vm1, %v15689_v35, %v15693_v40  ;;  %v15735_v40 = vshrl.u32 %v22367_v54, 16 }
 0x5a6   : > { %19981 = vmatmul.mubr.bf16.gmra.mrb[40].mxu0 %v26581_v42  ;;  %v15715_v42 = vshll.u32 %v22365_v43, 16  ;;  %v15749_v21 = vrot.slane %v15747_v16, 1 }
 0x5a7   : > { %19984 = vmatprep.mubr.bf16.mxu0 %v26582_v50  ;;  %v15703_v50 = vshrl.u32 %v22363_v19, 16 }
 0x5a8   : > { %20391 = vmatpush3.bf16.msra.mxu1 %v22270_v1  ;;  %v15707_v1 = vshll.u32 %v22364_v26, 16  ;;  %v15717_v58 = vrot.slane %v15715_v42, 1 }
 0x5a9   : > { %20392 = vmatprep.subr.bf16.mxu1 %v22273_v39 }
 0x5aa   : > { %v15709_v0 = vrot.slane %v15707_v1, 1  ;;  %v15721_v37 = vor.u32 %v15719_v32, %v15717_v58 }
 0x5ab   : > { %20361 = vmatmul.mubr.bf16.gmra.mrb[36].mxu1 %v15662_v13 }
 0x5ac   : > { %20364 = vmatprep.mubr.bf16.mxu1 %v15670_v55  ;;  %20393 = vmatpush3.bf16.msra.mxu1 %v22273_v39  ;;  %v15711_v39 = vshrl.u32 %v22364_v26, 16 }
 0x5ad   : > { %20394 = vmatprep.subr.bf16.mxu1 %v22276_v46 }
 0x5ae   : > { %19985 = vmatmul.mubr.bf16.gmra.mrb[44].mxu0 %v26583_v28  ;;  %v15713_v48 = vor.u32 %v15711_v39, %v15709_v0  ;;  %v26589_v28 = vld [vmem:[#allocation26_spill] sm:$0xff] }
 0x5af   : > { %19988 = vmatprep.mubr.bf16.mxu0 %v26584_v41  ;;  %v15729_v41 = vor.u32 %v15727_v25, %v15725_v10 }
 0x5b0   : > { %20395 = vmatpush3.bf16.msra.mxu1 %v22276_v46  ;;  %v15705_v46 = vor.u32 %v15703_v50, %v15701_v14  ;;  %v15718_v55 = vsel %vm969_vm1, %v15713_v48, %v15717_v58 }
 0x5b1   : > { %20396 = vmatprep.subr.bf16.mxu1 %v22279_v44 }
 0x5b2   : > { %v15710_v13 = vsel %vm969_vm1, %v15705_v46, %v15709_v0 }
 0x5b3   : > { %20365 = vmatmul.mubr.bf16.gmra.mrb[40].mxu1 %v15678_v47  ;;  %v15734_v47 = vsel %vm969_vm1, %v15729_v41, %v15733_v15 }
 0x5b4   : > { %20368 = vmatprep.mubr.bf16.mxu1 %v15686_v17  ;;  %20397 = vmatpush3.bf16.msra.mxu1 %v22279_v44  ;;  %v22284_v44 = vld [vmem:[#allocation3 + $0x110] sm:$0xff]  }
 0x5b5   : > { %20398 = vmatprep.subr.bf16.mxu1 %v22282_v51  ;;  %v15739_v45 = vshll.u32 %v22284_v44, 16  ;;  %v15743_v53 = vshrl.u32 %v22284_v44, 16 }
 0x5b6   : > { %19989 = vmatmul.mubr.bf16.gmra.mrb[48].mxu0 %v26585_v61  ;;  %v15755_v61 = vshll.u32 %v26218_v4, 16 }
 0x5b7   : > { %19992 = vmatprep.mubr.bf16.mxu0 %v26586_v20  ;;  %v15741_v17 = vrot.slane %v15739_v45, 1  ;;  %v15753_v20 = vor.u32 %v15751_v9, %v15749_v21 }
 0x5b8   : > { %20399 = vmatpush3.bf16.msra.mxu1 %v22282_v51  ;;  %v15726_v51 = vsel %vm969_vm1, %v15721_v37, %v15725_v10  ;;  %v15757_v6 = vrot.slane %v15755_v61, 1 }
 0x5b9   : > { %20400 = vmatprep.subr.bf16.mxu1 %v22285_v7  ;;  %v15745_v19 = vor.u32 %v15743_v53, %v15741_v17 }
 0x5ba   : > { %v15758_v14 = vsel %vm969_vm1, %v15753_v20, %v15757_v6 }
 0x5bb   : > { %20369 = vmatmul.mubr.bf16.gmra.mrb[44].mxu1 %v15694_v34 }
 0x5bc   : > { %20372 = vmatprep.mubr.bf16.mxu1 %v15702_v3  ;;  %20401 = vmatpush3.bf16.msra.mxu1 %v22285_v7  ;;  %v15750_v7 = vsel %vm969_vm1, %v15745_v19, %v15749_v21 }
 0x5bd   : > { %20402 = vmatprep.subr.bf16.mxu1 %v22288_v63 }
 0x5be   : > { %19993 = vmatmul.mubr.bf16.gmra.mrb[52].mxu0 %v26587_v2 }
 0x5bf   : > { %19996 = vmatprep.mubr.bf16.mxu0 %v26588_v36 }
 0x5c0   : > { %20403 = vmatpush3.bf16.msra.mxu1 %v22288_v63 }
 0x5c3   : > { %20373 = vmatmul.mubr.bf16.gmra.mrb[48].mxu1 %v15710_v13 }
 0x5c4   : > { %20376 = vmatprep.mubr.bf16.mxu1 %v15718_v55 }
 0x5c6   : > { %19997 = vmatmul.mubr.bf16.gmra.mrb[56].mxu0 %v26589_v28 }
 0x5c7   : > { %20000 = vmatprep.mubr.bf16.mxu0 %v25857_v62  ;;  %v15737_v62 = vor.u32 %v15735_v40, %v15733_v15 }
 0x5c9   : > { %v15742_v59 = vsel %vm969_vm1, %v15737_v62, %v15741_v17 }
 0x5cb   : > { %20377 = vmatmul.mubr.bf16.gmra.mrb[52].mxu1 %v15726_v51 }
 0x5cc   : > { %20380 = vmatprep.mubr.bf16.mxu1 %v15734_v47 }
 0x5ce   : > { %20001 = vmatmul.mubr.bf16.gmra.mrb[60].mxu0 %v25860_v22  ;;  %v26590_v22 = vld [vmem:[#allocation28_spill] sm:$0xff] }
 0x5d3   : > { %20381 = vmatmul.mubr.bf16.gmra.mrb[56].mxu1 %v15742_v59 }
 0x5d4   : > { %20384 = vmatprep.mubr.bf16.mxu1 %v15750_v7 }
 0x5db   : > { %20385 = vmatmul.mubr.bf16.gmra.mrb[60].mxu1 %v15758_v14 }
 0x5dc   : > { %20404 = vmatprep.mubr.bf16.mxu1 %v25866_v29  ;;  %v16063_v29 = vrot.slane %v22284_v44, 1 }
 0x5e3   : > { %20405 = vmatmul.mubr.bf16.vlgmr.msra.gmra.mrb[32].mxu1 %v25869_v33  ;;  %v16066_v33 = vsel %vm1380_vm2, %v16063_v29, %v16065_v27 }
 0x5e4   : > { %20408 = vmatprep.mubr.bf16.mxu1 %v25872_v5  ;;  %v26591_v5 = vld [vmem:[#allocation27_spill] sm:$0xff] }
 0x5eb   : > { %20409 = vmatmul.mubr.bf16.gmra.mrb[36].mxu1 %v25875_v56  ;;  %v26592_v56 = vrot.slane %v26591_v5, 1 }
 0x5ec   : > { %20412 = vmatprep.mubr.bf16.mxu1 %v26590_v22 }
 0x5f3   : > { %20413 = vmatmul.mubr.bf16.gmra.mrb[40].mxu1 %v25881_v60  ;;  %v16064_v60 = vsel %vm1380_vm2, %v26592_v56, %v16063_v29  ;;  %vm16429_vm2 = vcmask 60416  }
 0x5f4   : > { %20416 = vmatprep.mubr.bf16.mxu1 %v25884_v57 }
 0x5fb   : > { %20417 = vmatmul.mubr.bf16.gmra.mrb[44].mxu1 %v25889_v23 }
 0x5fc   : > { %20420 = vmatprep.mubr.bf16.mxu1 %v25893_v52 }
 0x603   : > { %20421 = vmatmul.mubr.bf16.gmra.mrb[48].mxu1 %v25896_v24 }
 0x604   : > { %20424 = vmatprep.mubr.bf16.mxu1 %v25899_v11  ;;  %v26306_v11 = vld [vmem:[%s26369_s4] ss:$0 sm:$0xff] }
 0x60b   : > { %20425 = vmatmul.mubr.bf16.gmra.mrb[52].mxu1 %v25902_v49 }
 0x60c   : > { %20428 = vmatprep.mubr.bf16.mxu1 %v25907_v30 }
 0x613   : > { %20429 = vmatmul.mubr.bf16.gmra.mrb[56].mxu1 %v16064_v60 }
 0x614   : > { %20432 = vmatprep.mubr.bf16.mxu1 %v16066_v33 }
 0x61b   : > { %20433 = vmatmul.mubr.bf16.gmra.mrb[60].mxu1 %v26227_v8 }
 0x669   : > { %v19974_v57 = vpop.f32.mrb[32].mxu0 }
 0x66a   : > { %v12480_v23 = vpop.f32.mrb[33].mxu0 }
 0x66b   : > { %v19975_v52 = vpop.f32.mrb[34].mxu0  ;;  %v20501_v12 = vadd.f32 %v26306_v11, %v12480_v23 }
 0x66c   : > { %v12483_v24 = vpop.f32.mrb[35].mxu0 }
 0x66d   : > { %v20503_v8 = vadd.f32 %v26306_v11, %v12483_v24 }
 0x671   : > { %v19978_v49 = vpop.f32.mrb[36].mxu0 }
 0x672   : > { %v12496_v30 = vpop.f32.mrb[37].mxu0 }
 0x673   : > { %v20505_v4 = vadd.f32 %v26306_v11, %v12496_v30  ;;  %v19979_v27 = vpop.f32.mrb[38].mxu0 }
 0x674   : > { %v12499_v26 = vpop.f32.mrb[39].mxu0 }
 0x675   : > { %v12639_v1 = vmax.f32 %v20501_v12, %v20505_v4  ;;  %v20507_v35 = vadd.f32 %v26306_v11, %v12499_v26 }
 0x677   : > { %12655 = vst [vmem:[#allocation4] sm:$0xff] %v12639_v1  ;;  %v12640_v63 = vmax.f32 %v20503_v8, %v20507_v35 }
 0x679   : > { %12656 = vst [vmem:[#allocation4 + $0x8] sm:$0xff] %v12640_v63  ;;  %v19982_v34 = vpop.f32.mrb[40].mxu0 }
 0x67a   : > { %v12512_v3 = vpop.f32.mrb[41].mxu0 }
 0x67b   : > { %v19983_v0 = vpop.f32.mrb[42].mxu0  ;;  %v20509_v58 = vadd.f32 %v26306_v11, %v12512_v3 }
 0x67c   : > { %v12515_v43 = vpop.f32.mrb[43].mxu0 }
 0x67d   : > { %v20511_v55 = vadd.f32 %v26306_v11, %v12515_v43 }
 0x680   : > { %v16358_v42 = vld [vmem:[#allocation4] ss:$2 sm:$0xff]  ;;  %v16374_v39 = vld [vmem:[#allocation4 + $0x1] ss:$2 sm:$0xff] }
 0x681   : > { %v16389_v2 = vmax.f32 %v16358_v42, %v16374_v39  ;;  %v19986_v50 = vpop.f32.mrb[44].mxu0 }
 0x682   : > { %v12528_v36 = vpop.f32.mrb[45].mxu0 }
 0x683   : > { %vm16397_vm1 = vcmp.ge.f32.partialorder %v16389_v2, 0.0  ;;  %v16405_v48 = vmul.f32 0.2, %v16389_v2  ;;  %v20513_v31 = vadd.f32 %v26306_v11, %v12528_v36  ;;  %v19987_v38 = vpop.f32.mrb[46].mxu0 }
 0x684   : > { %v12531_v46 = vpop.f32.mrb[47].mxu0 }
 0x685   : > { %v16413_v13 = vsel %vm16397_vm1, %v16389_v2, %v16405_v48  ;;  %v12643_v10 = vmax.f32 %v20509_v58, %v20513_v31  ;;  %v20515_v54 = vadd.f32 %v26306_v11, %v12531_v46 }
 0x686   : > { %v16421_v18 = vpack.c.bf16 %v16413_v13, %v16413_v13 }
 0x687   : > { %12659 = vst [vmem:[#allocation4 + $0x20] sm:$0xff] %v12643_v10  ;;  %v12644_v25 = vmax.f32 %v20511_v55, %v20515_v54 }
 0x688   : > { %16430 = vst.msk [vmem:[%s26318_s25] sm:$0xf] %vm16429_vm2, %v16421_v18 }
 0x689   : > { %12660 = vst [vmem:[#allocation4 + $0x28] sm:$0xff] %v12644_v25  ;;  %v19990_v28 = vpop.f32.mrb[48].mxu0 }
 0x68a   : > { %v12544_v44 = vpop.f32.mrb[49].mxu0 }
 0x68b   : > { %v19991_v32 = vpop.f32.mrb[50].mxu0  ;;  %v20517_v47 = vadd.f32 %v26306_v11, %v12544_v44 }
 0x68c   : > { %v12547_v41 = vpop.f32.mrb[51].mxu0 }
 0x68d   : > { %v20519_v62 = vadd.f32 %v26306_v11, %v12547_v41 }
 0x690   : > { %v16360_v15 = vld [vmem:[#allocation4 + $0x20] ss:$2 sm:$0xff]  ;;  %v16376_v45 = vld [vmem:[#allocation4 + $0x21] ss:$2 sm:$0xff] }
 0x691   : > { %v16390_v37 = vmax.f32 %v16360_v15, %v16376_v45  ;;  %v19994_v53 = vpop.f32.mrb[52].mxu0 }
 0x692   : > { %v12560_v16 = vpop.f32.mrb[53].mxu0 }
 0x693   : > { %vm16398_vm13 = vcmp.ge.f32.partialorder %v16390_v37, 0.0  ;;  %v16406_v51 = vmul.f32 0.2, %v16390_v37  ;;  %v20521_v17 = vadd.f32 %v26306_v11, %v12560_v16  ;;  %v19995_v40 = vpop.f32.mrb[54].mxu0 }
 0x694   : > { %v12563_v19 = vpop.f32.mrb[55].mxu0 }
 0x695   : > { %v16414_v21 = vsel %vm16398_vm13, %v16390_v37, %v16406_v51  ;;  %v12647_v9 = vmax.f32 %v20517_v47, %v20521_v17  ;;  %v20523_v61 = vadd.f32 %v26306_v11, %v12563_v19 }
 0x696   : > { %v16422_v7 = vpack.c.bf16 %v16414_v21, %v16414_v21 }
 0x697   : > { %12663 = vst [vmem:[#allocation4 + $0x40] sm:$0xff] %v12647_v9  ;;  %v12648_v59 = vmax.f32 %v20519_v62, %v20523_v61 }
 0x698   : > { %16431 = vst.msk [vmem:[%s26318_s25 + $0x4] sm:$0xf] %vm16429_vm2, %v16422_v7 }
 0x699   : > { %12664 = vst [vmem:[#allocation4 + $0x48] sm:$0xff] %v12648_v59  ;;  %v19998_v20 = vpop.f32.mrb[56].mxu0 }
 0x69a   : > { %v12576_v6 = vpop.f32.mrb[57].mxu0 }
 0x69b   : > { %v19999_v14 = vpop.f32.mrb[58].mxu0  ;;  %v20525_v23 = vadd.f32 %v26306_v11, %v12576_v6 }
 0x69c   : > { %v12579_v22 = vpop.f32.mrb[59].mxu0 }
 0x69d   : > { %v20527_v12 = vadd.f32 %v26306_v11, %v12579_v22 }
 0x6a0   : > { %v16362_v29 = vld [vmem:[#allocation4 + $0x40] ss:$2 sm:$0xff]  ;;  %v16378_v33 = vld [vmem:[#allocation4 + $0x41] ss:$2 sm:$0xff] }
 0x6a1   : > { %v16391_v5 = vmax.f32 %v16362_v29, %v16378_v33  ;;  %v20002_v56 = vpop.f32.mrb[60].mxu0 }
 0x6a2   : > { %v12592_v60 = vpop.f32.mrb[61].mxu0 }
 0x6a3   : > { %vm16399_vm15 = vcmp.ge.f32.partialorder %v16391_v5, 0.0  ;;  %v16407_v57 = vmul.f32 0.2, %v16391_v5  ;;  %v20529_v52 = vadd.f32 %v26306_v11, %v12592_v60  ;;  %v20003_v24 = vpop.f32.mrb[62].mxu0 }
 0x6a4   : > { %v12595_v49 = vpop.f32.mrb[63].mxu0 }
 0x6a5   : > { %v16415_v30 = vsel %vm16399_vm15, %v16391_v5, %v16407_v57  ;;  %v12651_v4 = vmax.f32 %v20525_v23, %v20529_v52  ;;  %v20531_v27 = vadd.f32 %v26306_v11, %v12595_v49 }
 0x6a6   : > { %v16423_v26 = vpack.c.bf16 %v16415_v30, %v16415_v30 }
 0x6a7   : > { %12667 = vst [vmem:[#allocation4 + $0x60] sm:$0xff] %v12651_v4  ;;  %v12652_v8 = vmax.f32 %v20527_v12, %v20531_v27 }
 0x6a8   : > { %16432 = vst.msk [vmem:[%s26318_s25 + $0x8] sm:$0xf] %vm16429_vm2, %v16423_v26 }
 0x6a9   : > { %12668 = vst [vmem:[#allocation4 + $0x68] sm:$0xff] %v12652_v8 }
 0x6b0   : > { %v16364_v1 = vld [vmem:[#allocation4 + $0x60] ss:$2 sm:$0xff]  ;;  %v16380_v35 = vld [vmem:[#allocation4 + $0x61] ss:$2 sm:$0xff] }
 0x6b1   : > { %v16392_v63 = vmax.f32 %v16364_v1, %v16380_v35 }
 0x6b3   : > { %vm16400_vm5 = vcmp.ge.f32.partialorder %v16392_v63, 0.0  ;;  %v16408_v34 = vmul.f32 0.2, %v16392_v63 }
 0x6b5   : > { %v16416_v3 = vsel %vm16400_vm5, %v16392_v63, %v16408_v34 }
 0x6b6   : > { %v16424_v0 = vpack.c.bf16 %v16416_v3, %v16416_v3  ;;  %v20406_v43 = vpop.f32.mrb[32].mxu1 }
 0x6b7   : > { %v16167_v42 = vpop.f32.mrb[33].mxu1 }
 0x6b8   : > { %16433 = vst.msk [vmem:[%s26318_s25 + $0xc] sm:$0xf] %vm16429_vm2, %v16424_v0  ;;  %v20407_v39 = vpop.f32.mrb[34].mxu1  ;;  %v20533_v48 = vadd.f32 %v26306_v11, %v16167_v42 }
 0x6b9   : > { %v16170_v2 = vpop.f32.mrb[35].mxu1 }
 0x6ba   : > { %v20535_v46 = vadd.f32 %v26306_v11, %v16170_v2 }
 0x6be   : > { %v20410_v50 = vpop.f32.mrb[36].mxu1 }
 0x6bf   : > { %v16183_v36 = vpop.f32.mrb[37].mxu1 }
 0x6c0   : > { %v20537_v58 = vadd.f32 %v26306_v11, %v16183_v36  ;;  %v20411_v31 = vpop.f32.mrb[38].mxu1 }
 0x6c1   : > { %v16186_v38 = vpop.f32.mrb[39].mxu1 }
 0x6c2   : > { %v16326_v13 = vmax.f32 %v20533_v48, %v20537_v58  ;;  %v20539_v55 = vadd.f32 %v26306_v11, %v16186_v38 }
 0x6c4   : > { %16342 = vst [vmem:[#allocation4 + $0x80] sm:$0xff] %v16326_v13  ;;  %v16327_v10 = vmax.f32 %v20535_v46, %v20539_v55 }
 0x6c6   : > { %16343 = vst [vmem:[#allocation4 + $0x88] sm:$0xff] %v16327_v10  ;;  %v20414_v54 = vpop.f32.mrb[40].mxu1 }
 0x6c7   : > { %v16199_v18 = vpop.f32.mrb[41].mxu1 }
 0x6c8   : > { %v20415_v25 = vpop.f32.mrb[42].mxu1  ;;  %v20541_v53 = vadd.f32 %v26306_v11, %v16199_v18 }
 0x6c9   : > { %v16202_v28 = vpop.f32.mrb[43].mxu1 }
 0x6ca   : > { %v20543_v40 = vadd.f32 %v26306_v11, %v16202_v28 }
 0x6cd   : > { %v16366_v44 = vld [vmem:[#allocation4 + $0x80] ss:$2 sm:$0xff]  ;;  %v16382_v32 = vld [vmem:[#allocation4 + $0x81] ss:$2 sm:$0xff] }
 0x6ce   : > { %v16393_v41 = vmax.f32 %v16366_v44, %v16382_v32  ;;  %v20418_v15 = vpop.f32.mrb[44].mxu1 }
 0x6cf   : > { %v16215_v45 = vpop.f32.mrb[45].mxu1 }
 0x6d0   : > { %vm16401_vm10 = vcmp.ge.f32.partialorder %v16393_v41, 0.0  ;;  %v16409_v37 = vmul.f32 0.2, %v16393_v41  ;;  %v20545_v16 = vadd.f32 %v26306_v11, %v16215_v45  ;;  %v20419_v51 = vpop.f32.mrb[46].mxu1 }
 0x6d1   : > { %v16218_v47 = vpop.f32.mrb[47].mxu1 }
 0x6d2   : > { %v16417_v17 = vsel %vm16401_vm10, %v16393_v41, %v16409_v37  ;;  %v16330_v19 = vmax.f32 %v20541_v53, %v20545_v16  ;;  %v20547_v21 = vadd.f32 %v26306_v11, %v16218_v47 }
 0x6d3   : > { %v16425_v62 = vpack.c.bf16 %v16417_v17, %v16417_v17 }
 0x6d4   : > { %16346 = vst [vmem:[#allocation4 + $0xa0] sm:$0xff] %v16330_v19  ;;  %v16331_v9 = vmax.f32 %v20543_v40, %v20547_v21 }
 0x6d5   : > { %16434 = vst.msk [vmem:[%s26318_s25 + $0x10] sm:$0xf] %vm16429_vm2, %v16425_v62 }
 0x6d6   : > { %16347 = vst [vmem:[#allocation4 + $0xa8] sm:$0xff] %v16331_v9  ;;  %v20422_v61 = vpop.f32.mrb[48].mxu1 }
 0x6d7   : > { %v16231_v7 = vpop.f32.mrb[49].mxu1 }
 0x6d8   : > { %v20423_v59 = vpop.f32.mrb[50].mxu1  ;;  %v20549_v56 = vadd.f32 %v26306_v11, %v16231_v7 }
 0x6d9   : > { %v16234_v20 = vpop.f32.mrb[51].mxu1 }
 0x6da   : > { %v20551_v24 = vadd.f32 %v26306_v11, %v16234_v20 }
 0x6dd   : > { %v16368_v6 = vld [vmem:[#allocation4 + $0xa0] ss:$2 sm:$0xff]  ;;  %v16384_v14 = vld [vmem:[#allocation4 + $0xa1] ss:$2 sm:$0xff] }
 0x6de   : > { %v16394_v22 = vmax.f32 %v16368_v6, %v16384_v14  ;;  %v20426_v29 = vpop.f32.mrb[52].mxu1 }
 0x6df   : > { %v16247_v33 = vpop.f32.mrb[53].mxu1 }
 0x6e0   : > { %vm16402_vm0 = vcmp.ge.f32.partialorder %v16394_v22, 0.0  ;;  %v16410_v5 = vmul.f32 0.2, %v16394_v22  ;;  %v20553_v60 = vadd.f32 %v26306_v11, %v16247_v33  ;;  %v20427_v57 = vpop.f32.mrb[54].mxu1 }
 0x6e1   : > { %v16250_v23 = vpop.f32.mrb[55].mxu1 }
 0x6e2   : > { %v16418_v52 = vsel %vm16402_vm0, %v16394_v22, %v16410_v5  ;;  %v16334_v49 = vmax.f32 %v20549_v56, %v20553_v60  ;;  %v20555_v30 = vadd.f32 %v26306_v11, %v16250_v23 }
 0x6e3   : > { %v16426_v12 = vpack.c.bf16 %v16418_v52, %v16418_v52 }
 0x6e4   : > { %16350 = vst [vmem:[#allocation4 + $0xc0] sm:$0xff] %v16334_v49  ;;  %v16335_v4 = vmax.f32 %v20551_v24, %v20555_v30 }
 0x6e5   : > { %16435 = vst.msk [vmem:[%s26318_s25 + $0x14] sm:$0xf] %vm16429_vm2, %v16426_v12 }
 0x6e6   : > { %16351 = vst [vmem:[#allocation4 + $0xc8] sm:$0xff] %v16335_v4  ;;  %v20430_v27 = vpop.f32.mrb[56].mxu1 }
 0x6e7   : > { %v16263_v26 = vpop.f32.mrb[57].mxu1 }
 0x6e8   : > { %v20431_v8 = vpop.f32.mrb[58].mxu1  ;;  %v20557_v42 = vadd.f32 %v26306_v11, %v16263_v26 }
 0x6e9   : > { %v16266_v1 = vpop.f32.mrb[59].mxu1 }
 0x6ea   : > { %v20559_v48 = vadd.f32 %v26306_v11, %v16266_v1 }
 0x6ed   : > { %v16370_v35 = vld [vmem:[#allocation4 + $0xc0] ss:$2 sm:$0xff]  ;;  %v16386_v63 = vld [vmem:[#allocation4 + $0xc1] ss:$2 sm:$0xff] }
 0x6ee   : > { %v16395_v34 = vmax.f32 %v16370_v35, %v16386_v63  ;;  %v20434_v3 = vpop.f32.mrb[60].mxu1 }
 0x6ef   : > { %v16279_v0 = vpop.f32.mrb[61].mxu1 }
 0x6f0   : > { %vm16403_vm11 = vcmp.ge.f32.partialorder %v16395_v34, 0.0  ;;  %v16411_v43 = vmul.f32 0.2, %v16395_v34  ;;  %v20561_v39 = vadd.f32 %v26306_v11, %v16279_v0  ;;  %v20435_v2 = vpop.f32.mrb[62].mxu1 }
 0x6f1   : > { %v16282_v50 = vpop.f32.mrb[63].mxu1 }
 0x6f2   : > { %v16419_v36 = vsel %vm16403_vm11, %v16395_v34, %v16411_v43  ;;  %v16338_v58 = vmax.f32 %v20557_v42, %v20561_v39  ;;  %v20563_v31 = vadd.f32 %v26306_v11, %v16282_v50 }
 0x6f3   : > { %v16427_v38 = vpack.c.bf16 %v16419_v36, %v16419_v36 }
 0x6f4   : > { %16354 = vst [vmem:[#allocation4 + $0xe0] sm:$0xff] %v16338_v58  ;;  %v16339_v46 = vmax.f32 %v20559_v48, %v20563_v31 }
 0x6f5   : > { %16436 = vst.msk [vmem:[%s26318_s25 + $0x18] sm:$0xf] %vm16429_vm2, %v16427_v38 }
 0x6f6   : > { %16355 = vst [vmem:[#allocation4 + $0xe8] sm:$0xff] %v16339_v46 }
 0x6fd   : > { %v16372_v13 = vld [vmem:[#allocation4 + $0xe0] ss:$2 sm:$0xff]  ;;  %v16388_v55 = vld [vmem:[#allocation4 + $0xe1] ss:$2 sm:$0xff] }
 0x6fe   : > { %v16396_v10 = vmax.f32 %v16372_v13, %v16388_v55 }
 0x700   : > { %vm16404_vm12 = vcmp.ge.f32.partialorder %v16396_v10, 0.0  ;;  %v16412_v54 = vmul.f32 0.2, %v16396_v10 }
 0x702   : > { %v16420_v18 = vsel %vm16404_vm12, %v16396_v10, %v16412_v54 }
 0x703   : > { %v16428_v25 = vpack.c.bf16 %v16420_v18, %v16420_v18 }
 0x705   : > { %16437 = vst.msk [vmem:[%s26318_s25 + $0x1c] sm:$0xf] %vm16429_vm2, %v16428_v25 }
 0x706 PF: > { %s15_s18 = sadd.s32 1, %s22374_s18  }
 0x707   : > { %p12_p4 = scmp.ge.s32.totalorder %s15_s18, 4  }
 0x709   :  { %14 = sbr.rel (!%p12_p4) target bundleno = 1 (0x1), region = 101 }

</bundles_post_ra>
